<compile_context>
chip_gen: v7x
topology: tpu7x:2x2x1
jax: 0.10.0
libtpu: 0.0.40
codegen_flags: <defaults>
</compile_context>

<pallas_src>
import functools
import math

import jax
import jax.numpy as jnp
from jax import lax
from jax.experimental import pallas as pl
from jax.experimental.pallas import tpu as pltpu

# ---- DINOv2 ViT-S/14 (+4 register tokens) architecture constants ----------
EMBED_DIM = 384
NUM_HEADS = 6
HEAD_DIM = EMBED_DIM // NUM_HEADS          # 64
HEAD_PAIRS = NUM_HEADS // 2                # 3 (two heads per kernel = 128 lanes)
MLP_HIDDEN = 4 * EMBED_DIM                 # 1536
DEPTH = 12
PATCH = 14
NUM_REG = 4
LN_EPS = 1e-6                              # DINOv2 uses LayerNorm(eps=1e-6)
LS_INIT = 1e-5                             # LayerScale init value
NUM_CLASSES = 5
HEAD_HIDDEN = 256
CLS_N_PAD = 128                            # classifier output padded to 128 lanes

PATCH_K = 3 * PATCH * PATCH                # 588
PATCH_K_PAD = 640                          # padded to a multiple of 128

ATTN_SCALE = HEAD_DIM ** -0.5              # folded into Q weights at init time

BLOCK_M = 512                              # M-tile for linears (~85% HBM roofline)
VMEM_LIMIT = 32 * 1024 * 1024              # explicit scoped-VMEM budget (v7x-safe)


def _round_up(x, m):
    return ((x + m - 1) // m) * m


def _gelu_tanh(x):
    # tanh-approx GELU: the transcendental lands on the EUP slot instead of a
    # long erf polynomial on the VALU.  Deviates <~1e-3 from torch's exact GELU.
    c = math.sqrt(2.0 / math.pi)
    return 0.5 * x * (1.0 + jnp.tanh(c * (x + 0.044715 * (x * x * x))))


def _layernorm(x, gamma, beta, eps):
    mu = jnp.mean(x, axis=-1, keepdims=True)
    xc = x - mu
    var = jnp.mean(xc * xc, axis=-1, keepdims=True)
    return (xc * lax.rsqrt(var + eps)) * gamma + beta


# --------------------------- Pallas kernels ---------------------------------
def _fused_linear_kernel(*refs, activation, has_ln, has_res, eps):
    """[LN] -> bf16 matmul (f32 acc) -> bias -> [act] -> [res + ls * y]."""
    it = iter(refs)
    x_ref = next(it)
    if has_ln:
        g_ref = next(it)
        bb_ref = next(it)
    w_ref = next(it)
    b_ref = next(it)
    if has_res:
        ls_ref = next(it)
        res_ref = next(it)
    o_ref = next(it)

    if has_ln:
        x = _layernorm(x_ref[...].astype(jnp.float32), g_ref[...], bb_ref[...], eps)
        xb = x.astype(jnp.bfloat16)
    else:
        xb = x_ref[...].astype(jnp.bfloat16)

    y = jnp.dot(xb, w_ref[...].astype(jnp.bfloat16),
                preferred_element_type=jnp.float32)
    y = y + b_ref[...]

    if activation == "relu":
        y = jnp.maximum(y, 0.0)
    elif activation == "gelu":
        y = _gelu_tanh(y)

    if has_res:
        y = res_ref[...].astype(jnp.float32) + y * ls_ref[...]

    o_ref[...] = y.astype(o_ref.dtype)


def fused_linear(x, w, b, *, gamma=None, beta=None, activation="none",
                 ls=None, residual=None, out_dtype=jnp.float32):
    """Tiled y = [res + ls *] act(LN?(x) @ w + b) with M-axis grid."""
    m, k = x.shape
    k2, n = w.shape
    assert k == k2
    has_ln = gamma is not None
    has_res = residual is not None

    tm = min(BLOCK_M, _round_up(m, 8))
    grid = (pl.cdiv(m, tm),)

    inputs = [x]
    in_specs = [pl.BlockSpec((tm, k), lambda i: (i, 0))]
    if has_ln:
        inputs += [gamma.reshape(1, k), beta.reshape(1, k)]
        in_specs += [pl.BlockSpec((1, k), lambda i: (0, 0)),
                     pl.BlockSpec((1, k), lambda i: (0, 0))]
    inputs += [w, b.reshape(1, n)]
    in_specs += [pl.BlockSpec((k, n), lambda i: (0, 0)),    # weight stays resident
                 pl.BlockSpec((1, n), lambda i: (0, 0))]
    if has_res:
        inputs += [ls.reshape(1, n), residual]
        in_specs += [pl.BlockSpec((1, n), lambda i: (0, 0)),
                     pl.BlockSpec((tm, n), lambda i: (i, 0))]

    kernel = functools.partial(_fused_linear_kernel, activation=activation,
                               has_ln=has_ln, has_res=has_res, eps=LN_EPS)
    return pl.pallas_call(
        kernel,
        grid=grid,
        out_shape=jax.ShapeDtypeStruct((m, n), out_dtype),
        in_specs=in_specs,
        out_specs=pl.BlockSpec((tm, n), lambda i: (i, 0)),
        compiler_params=pltpu.CompilerParams(
            dimension_semantics=("parallel",),
            vmem_limit_bytes=VMEM_LIMIT),
    )(*inputs)


def _fused_dual_kernel(x_ref, w1_ref, b1_ref, ls_ref, res_ref,
                       g_ref, bb_ref, w2_ref, b2_ref,
                       r_out_ref, y_out_ref, *, activation, eps):
    """Stage 1: r = res + ls * (x @ w1 + b1)   (attention-proj or fc2)
       Stage 2: y = act(LN(r) @ w2 + b2)        (fc1+GELU or next block's qkv)
    The f32 residual is produced and consumed in-kernel (no HBM re-read)."""
    y1 = jnp.dot(x_ref[...], w1_ref[...], preferred_element_type=jnp.float32)
    r = res_ref[...].astype(jnp.float32) + (y1 + b1_ref[...]) * ls_ref[...]
    r_out_ref[...] = r

    xn = _layernorm(r, g_ref[...], bb_ref[...], eps)
    y2 = jnp.dot(xn.astype(jnp.bfloat16), w2_ref[...],
                 preferred_element_type=jnp.float32) + b2_ref[...]
    if activation == "gelu":
        y2 = _gelu_tanh(y2)
    y_out_ref[...] = y2.astype(y_out_ref.dtype)


def fused_dual(x, w1, b1, ls, residual, gamma, beta, w2, b2, *,
               activation="none", y_dtype=jnp.bfloat16):
    """Returns (new f32 residual, bf16 next-matmul output)."""
    m, k1 = x.shape
    d = w1.shape[1]                  # residual width (EMBED_DIM)
    n2 = w2.shape[1]
    tm = min(BLOCK_M, _round_up(m, 8))
    grid = (pl.cdiv(m, tm),)

    kernel = functools.partial(_fused_dual_kernel, activation=activation, eps=LN_EPS)
    return pl.pallas_call(
        kernel,
        grid=grid,
        out_shape=(jax.ShapeDtypeStruct((m, d), jnp.float32),
                   jax.ShapeDtypeStruct((m, n2), y_dtype)),
        in_specs=[
            pl.BlockSpec((tm, k1), lambda i: (i, 0)),
            pl.BlockSpec((k1, d), lambda i: (0, 0)),     # w1 resident
            pl.BlockSpec((1, d), lambda i: (0, 0)),      # b1
            pl.BlockSpec((1, d), lambda i: (0, 0)),      # layer scale
            pl.BlockSpec((tm, d), lambda i: (i, 0)),     # incoming residual
            pl.BlockSpec((1, d), lambda i: (0, 0)),      # LN gamma
            pl.BlockSpec((1, d), lambda i: (0, 0)),      # LN beta
            pl.BlockSpec((d, n2), lambda i: (0, 0)),     # w2 resident
            pl.BlockSpec((1, n2), lambda i: (0, 0)),     # b2
        ],
        out_specs=(pl.BlockSpec((tm, d), lambda i: (i, 0)),
                   pl.BlockSpec((tm, n2), lambda i: (i, 0))),
        compiler_params=pltpu.CompilerParams(
            dimension_semantics=("parallel",),
            vmem_limit_bytes=VMEM_LIMIT),
    )(x, w1, b1.reshape(1, d), ls.reshape(1, d), residual,
      gamma.reshape(1, d), beta.reshape(1, d), w2, b2.reshape(1, n2))


def _flash_attention_kernel(q_ref, k_ref, v_ref, o_ref, m_sc, l_sc, acc_sc,
                            *, seq_len, tkv):
    """Online-softmax attention for one (batch, head-pair); kv-blocked grid.
    The 1/sqrt(d) scale is pre-folded into the Q weights, so Q is used as-is."""
    kv = pl.program_id(2)

    @pl.when(kv == 0)
    def _init():
        m_sc[...] = jnp.full_like(m_sc, -jnp.inf)
        l_sc[...] = jnp.zeros_like(l_sc)
        acc_sc[...] = jnp.zeros_like(acc_sc)

    kv0 = kv * tkv
    col_valid = (kv0 + lax.broadcasted_iota(jnp.int32, (1, tkv), 1)) < seq_len
    row_valid = (kv0 + lax.broadcasted_iota(jnp.int32, (tkv, 1), 0)) < seq_len

    q = q_ref[...]                                     # (S, 128) bf16, pre-scaled
    k = k_ref[...]                                     # (TKV, 128) bf16
    v = jnp.where(row_valid, v_ref[...], jnp.zeros_like(v_ref[...]))

    for h in range(2):                                 # two heads packed per call
        sl = slice(h * HEAD_DIM, (h + 1) * HEAD_DIM)
        s = lax.dot_general(q[:, sl], k[:, sl], (((1,), (1,)), ((), ())),
                            preferred_element_type=jnp.float32)      # (S, TKV)
        s = jnp.where(col_valid, s, -jnp.inf)
        m_prev = m_sc[h]                                              # (S, 1)
        m_new = jnp.maximum(m_prev, jnp.max(s, axis=-1, keepdims=True))
        alpha = jnp.exp(m_prev - m_new)
        p = jnp.exp(s - m_new)
        l_sc[h] = alpha * l_sc[h] + jnp.sum(p, axis=-1, keepdims=True)
        acc_sc[h] = alpha * acc_sc[h] + jnp.dot(
            p.astype(jnp.bfloat16), v[:, sl], preferred_element_type=jnp.float32)
        m_sc[h] = m_new

    @pl.when(kv == pl.num_programs(2) - 1)
    def _finalize():
        o0 = acc_sc[0] * pl.reciprocal(l_sc[0], approx=True)
        o1 = acc_sc[1] * pl.reciprocal(l_sc[1], approx=True)
        o_ref[...] = jnp.concatenate([o0, o1], axis=-1).astype(o_ref.dtype)


def attention(qkv, seq_len_true):
    """qkv: [B, S, 3*EMBED_DIM] bf16 slab -> [B, S, EMBED_DIM] bf16."""
    B, S, three_d = qkv.shape
    assert three_d == 3 * EMBED_DIM
    # Single pass (no online-softmax rescaling / per-kv grid overhead) whenever
    # the whole padded sequence fits comfortably in VMEM; else 512-wide blocks.
    tkv = S if S <= 1024 else 512
    nkv = pl.cdiv(S, tkv)
    hp = HEAD_PAIRS
    # TODO(synk): for v7x at batch=1, add a parallel TQ (query-tile) grid axis so
    # both TensorCores stay busy when B*HEAD_PAIRS is small/odd.

    kernel = functools.partial(_flash_attention_kernel,
                               seq_len=seq_len_true, tkv=tkv)
    return pl.pallas_call(
        kernel,
        grid=(B, hp, nkv),
        out_shape=jax.ShapeDtypeStruct((B, S, EMBED_DIM), jnp.bfloat16),
        in_specs=[
            # q / k / v head-pair slices straight out of the qkv slab (128 lanes)
            pl.BlockSpec((None, S, 2 * HEAD_DIM), lambda b, h, kv: (b, 0, h)),
            pl.BlockSpec((None, tkv, 2 * HEAD_DIM), lambda b, h, kv: (b, kv, hp + h)),
            pl.BlockSpec((None, tkv, 2 * HEAD_DIM), lambda b, h, kv: (b, kv, 2 * hp + h)),
        ],
        out_specs=pl.BlockSpec((None, S, 2 * HEAD_DIM), lambda b, h, kv: (b, 0, h)),
        scratch_shapes=[
            pltpu.VMEM((2, S, 1), jnp.float32),          # running max per head
            pltpu.VMEM((2, S, 1), jnp.float32),          # running denom per head
            pltpu.VMEM((2, S, HEAD_DIM), jnp.float32),   # running accumulator
        ],
        compiler_params=pltpu.CompilerParams(
            dimension_semantics=("parallel", "parallel", "arbitrary"),
            vmem_limit_bytes=VMEM_LIMIT),
    )(qkv, qkv, qkv)


def _head_kernel(x_ref, g_ref, b_ref, w1_ref, b1_ref, w2_ref, b2_ref, o_ref, *, eps):
    """Fused classifier head: LN -> LN (DinoV2 applies norm twice) ->
    Linear(384,256) -> ReLU -> Linear(256, 128-padded classes)."""
    g = g_ref[...]
    b = b_ref[...]
    x = _layernorm(x_ref[...].astype(jnp.float32), g, b, eps)   # forward_features norm
    x = _layernorm(x, g, b, eps)                                 # DinoV2.forward norm again
    h = jnp.dot(x.astype(jnp.bfloat16), w1_ref[...],
                preferred_element_type=jnp.float32) + b1_ref[...]
    h = jnp.maximum(h, 0.0)
    y = jnp.dot(h.astype(jnp.bfloat16), w2_ref[...],
                preferred_element_type=jnp.float32) + b2_ref[...]
    o_ref[...] = y.astype(o_ref.dtype)


def classifier_head(x_cls, gamma, beta, w1, b1, w2, b2):
    B, d = x_cls.shape
    n1 = w1.shape[1]
    n2 = w2.shape[1]
    tm = min(BLOCK_M, _round_up(B, 8))
    kernel = functools.partial(_head_kernel, eps=LN_EPS)
    return pl.pallas_call(
        kernel,
        grid=(pl.cdiv(B, tm),),
        out_shape=jax.ShapeDtypeStruct((B, n2), jnp.float32),
        in_specs=[
            pl.BlockSpec((tm, d), lambda i: (i, 0)),
            pl.BlockSpec((1, d), lambda i: (0, 0)),
            pl.BlockSpec((1, d), lambda i: (0, 0)),
            pl.BlockSpec((d, n1), lambda i: (0, 0)),
            pl.BlockSpec((1, n1), lambda i: (0, 0)),
            pl.BlockSpec((n1, n2), lambda i: (0, 0)),
            pl.BlockSpec((1, n2), lambda i: (0, 0)),
        ],
        out_specs=pl.BlockSpec((tm, n2), lambda i: (i, 0)),
        compiler_params=pltpu.CompilerParams(
            dimension_semantics=("parallel",),
            vmem_limit_bytes=VMEM_LIMIT),
    )(x_cls, gamma.reshape(1, d), beta.reshape(1, d),
      w1, b1.reshape(1, n1), w2, b2.reshape(1, n2))


# ------------------------- parameter construction ---------------------------
def init_params(key, num_patches):
    keys = iter(jax.random.split(key, 256))

    def nrm(shape, std=0.02):
        return std * jax.random.normal(next(keys), shape, jnp.float32)

    def zeros(shape):
        return jnp.zeros(shape, jnp.float32)

    def ones(shape):
        return jnp.ones(shape, jnp.float32)

    bf16 = jnp.bfloat16
    p = {
        # patch embed conv (14x14, stride 14) flattened to [588, 384], zero-padded
        # along K to 640 so the im2col contraction is lane-aligned.
        "patch_w": jnp.pad(nrm((PATCH_K, EMBED_DIM)),
                           ((0, PATCH_K_PAD - PATCH_K), (0, 0))).astype(bf16),
        "patch_b": zeros((EMBED_DIM,)),
        "cls": nrm((1, 1, EMBED_DIM)),
        "reg": nrm((1, NUM_REG, EMBED_DIM)),
        # pos_embed sized to the actual grid => DINOv2's bicubic
        # interpolate_pos_encoding is the identity (npatch == N and w == h).
        "pos": nrm((1, 1 + num_patches, EMBED_DIM)),
        "norm_g": ones((EMBED_DIM,)),
        "norm_b": zeros((EMBED_DIM,)),
        # classifier head: Linear(384,256) -> ReLU -> Linear(256,5); the second
        # weight is zero-padded 5 -> 128 output lanes (sliced back after the kernel).
        "cls1_w": nrm((EMBED_DIM, HEAD_HIDDEN)).astype(bf16),
        "cls1_b": zeros((HEAD_HIDDEN,)),
        "cls2_w": jnp.pad(nrm((HEAD_HIDDEN, NUM_CLASSES)),
                          ((0, 0), (0, CLS_N_PAD - NUM_CLASSES))).astype(bf16),
        "cls2_b": zeros((CLS_N_PAD,)),
    }
    blocks = []
    for _ in range(DEPTH):
        qkv_w = nrm((EMBED_DIM, 3 * EMBED_DIM))
        qkv_b = zeros((3 * EMBED_DIM,))
        # Fold the 1/sqrt(head_dim) attention scale into the Q columns at
        # weight-prep time (exact: 0.125 is a power of two).  Checkpoint weights
        # would be pre-scaled the same way at load time.
        qkv_w = qkv_w.at[:, :EMBED_DIM].multiply(ATTN_SCALE)
        qkv_b = qkv_b.at[:EMBED_DIM].multiply(ATTN_SCALE)
        blocks.append(dict(
            n1_g=ones((EMBED_DIM,)), n1_b=zeros((EMBED_DIM,)),
            qkv_w=qkv_w.astype(bf16),
            qkv_b=qkv_b,
            proj_w=nrm((EMBED_DIM, EMBED_DIM)).astype(bf16),
            proj_b=zeros((EMBED_DIM,)),
            ls1=jnp.full((EMBED_DIM,), LS_INIT, jnp.float32),
            n2_g=ones((EMBED_DIM,)), n2_b=zeros((EMBED_DIM,)),
            fc1_w=nrm((EMBED_DIM, MLP_HIDDEN)).astype(bf16),
            fc1_b=zeros((MLP_HIDDEN,)),
            fc2_w=nrm((MLP_HIDDEN, EMBED_DIM)).astype(bf16),
            fc2_b=zeros((EMBED_DIM,)),
            ls2=jnp.full((EMBED_DIM,), LS_INIT, jnp.float32),
        ))
    p["blocks"] = blocks
    return p


# ------------------------------- forward ------------------------------------
def dino_v2_forward(params, x):
    """x: [B, 3, H, W] float32 (H, W multiples of 14).  Returns [B, 5] logits."""
    B, C, H, W = x.shape
    gh, gw = H // PATCH, W // PATCH
    n = gh * gw

    # --- patch embed: im2col + fused matmul (== Conv2d(3,384,14,stride=14)) ---
    patches = x.reshape(B, C, gh, PATCH, gw, PATCH)
    patches = jnp.transpose(patches, (0, 2, 4, 1, 3, 5)).reshape(B * n, PATCH_K)
    patches = jnp.pad(patches, ((0, 0), (0, PATCH_K_PAD - PATCH_K)))
    tok = fused_linear(patches, params["patch_w"], params["patch_b"],
                       out_dtype=jnp.float32).reshape(B, n, EMBED_DIM)

    # --- prepare_tokens_with_masks: cls + pos embed, then register tokens ---
    cls = jnp.broadcast_to(params["cls"], (B, 1, EMBED_DIM))
    xs = jnp.concatenate([cls, tok], axis=1) + params["pos"]
    reg = jnp.broadcast_to(params["reg"], (B, NUM_REG, EMBED_DIM))
    xs = jnp.concatenate([xs[:, :1], reg, xs[:, 1:]], axis=1)

    s_true = xs.shape[1]
    S = _round_up(s_true, 16)                # multiple of 16: bf16 packs 16 rows/vreg
    if S != s_true:                          # padded keys are masked in attention
        xs = jnp.pad(xs, ((0, 0), (0, S - s_true), (0, 0)))
    xs2 = xs.reshape(B * S, EMBED_DIM)       # f32 residual stream

    blocks = params["blocks"]
    # First LN1 + qkv projection; all later LN1+qkv projections are fused into
    # the previous block's fc2 kernel (residual never re-read from HBM).
    qkv = fused_linear(xs2, blocks[0]["qkv_w"], blocks[0]["qkv_b"],
                       gamma=blocks[0]["n1_g"], beta=blocks[0]["n1_b"],
                       out_dtype=jnp.bfloat16)

    # --- transformer blocks ---
    for i, blk in enumerate(blocks):
        ao = attention(qkv.reshape(B, S, 3 * EMBED_DIM), s_true)
        ao2 = ao.reshape(B * S, EMBED_DIM)
        # proj + LayerScale1 + residual   fused with   LN2 + fc1 + GELU
        xs2, h = fused_dual(ao2, blk["proj_w"], blk["proj_b"], blk["ls1"], xs2,
                            blk["n2_g"], blk["n2_b"], blk["fc1_w"], blk["fc1_b"],
                            activation="gelu", y_dtype=jnp.bfloat16)
        if i + 1 < DEPTH:
            nxt = blocks[i + 1]
            # fc2 + LayerScale2 + residual   fused with   next block's LN1 + qkv
            xs2, qkv = fused_dual(h, blk["fc2_w"], blk["fc2_b"], blk["ls2"], xs2,
                                  nxt["n1_g"], nxt["n1_b"],
                                  nxt["qkv_w"], nxt["qkv_b"],
                                  activation="none", y_dtype=jnp.bfloat16)
        else:
            # last block: fc2 + LayerScale2 + residual only
            xs2 = fused_linear(h, blk["fc2_w"], blk["fc2_b"],
                               ls=blk["ls2"], residual=xs2, out_dtype=jnp.float32)

    # --- forward_features final norm + DinoV2.forward's second norm + classifier,
    # all in one small kernel over the CLS token (LN is per-token, so
    # norm(x)[:, 0] == norm(x[:, 0])). ---
    x_cls = xs2.reshape(B, S, EMBED_DIM)[:, 0]                 # [B, 384]
    logits = classifier_head(x_cls, params["norm_g"], params["norm_b"],
                             params["cls1_w"], params["cls1_b"],
                             params["cls2_w"], params["cls2_b"])
    return logits[:, :NUM_CLASSES]                             # drop lane padding


# TODO(synk): torch.hub checkpoint loading has no Pallas equivalent; weights are
# synthetic deterministic initializations of the same shapes.

if __name__ == "__main__":
    key = jax.random.PRNGKey(0)
    k_param, k_x = jax.random.split(key)

    B, C, H, W = 2, 3, 28, 28                  # small, multiple of patch size 14
    num_patches = (H // PATCH) * (W // PATCH)  # 4 patches -> 9 tokens w/ cls+reg

    params = init_params(k_param, num_patches)
    x = jax.random.normal(k_x, (B, C, H, W), jnp.float32)

    forward = jax.jit(dino_v2_forward)
    logits = jax.block_until_ready(forward(params, x))

    assert logits.shape == (B, NUM_CLASSES), logits.shape
    assert bool(jnp.all(jnp.isfinite(logits)))
    print("KERNEL_OK")
</pallas_src>

<mosaic_0001>
module attributes {stable_mosaic.version = 11 : i64} {
  func.func @_fused_linear_kernel(%arg0: i32, %arg1: memref<8x640xf32, #tpu.memory_space<vmem>>, %arg2: memref<640x384xbf16, #tpu.memory_space<vmem>>, %arg3: memref<1x384xf32, #tpu.memory_space<vmem>>, %arg4: memref<8x384xf32, #tpu.memory_space<vmem>>) attributes {dimension_semantics = [#tpu.dimension_semantics<parallel>], iteration_bounds = array<i64: 1>, scalar_prefetch = 0 : i64, scratch_operands = 0 : i64, tpu.core_type = #tpu.core_type<tc>, window_params = [{transform_indices = @transform_0, window_bounds = array<i64: 8, 640>}, {pipeline_mode = #tpu.pipeline_mode<synchronous>, transform_indices = @transform_1, window_bounds = array<i64: 640, 384>}, {pipeline_mode = #tpu.pipeline_mode<synchronous>, transform_indices = @transform_2, window_bounds = array<i64: 1, 384>}, {transform_indices = @transform_3, window_bounds = array<i64: 8, 384>}]} {
    %c0 = arith.constant 0 : index
    %c0_0 = arith.constant 0 : index
    %0 = vector.load %arg1[%c0, %c0_0] : memref<8x640xf32, #tpu.memory_space<vmem>>, vector<8x640xf32>
    %1 = arith.truncf %0 : vector<8x640xf32> to vector<8x640xbf16>
    %c0_1 = arith.constant 0 : index
    %c0_2 = arith.constant 0 : index
    %2 = vector.load %arg2[%c0_1, %c0_2] : memref<640x384xbf16, #tpu.memory_space<vmem>>, vector<640x384xbf16>
    %cst = arith.constant dense<0.000000e+00> : vector<8x384xf32>
    %3 = tpu.matmul %1, %2, %cst {dimension_numbers = #tpu.dot_dimension_numbers<[1], [0], [0], [1], [0, 0, 1, 1], [], []>} : vector<8x640xbf16>, vector<640x384xbf16>, vector<8x384xf32> -> vector<8x384xf32>
    %c0_3 = arith.constant 0 : index
    %c0_4 = arith.constant 0 : index
    %4 = vector.load %arg3[%c0_3, %c0_4] : memref<1x384xf32, #tpu.memory_space<vmem>>, vector<1x384xf32>
    %5 = vector.broadcast %4 : vector<1x384xf32> to vector<8x384xf32>
    %6 = arith.addf %3, %5 : vector<8x384xf32>
    %c0_5 = arith.constant 0 : index
    %c0_6 = arith.constant 0 : index
    %7 = vector.load %arg4[%c0_5, %c0_6] : memref<8x384xf32, #tpu.memory_space<vmem>>, vector<8x384xf32>
    tpu.vector_store %arg4[%c0_5, %c0_6], %6 {strides = array<i32>} : memref<8x384xf32, #tpu.memory_space<vmem>>, vector<8x384xf32>,
    return
  }
  func.func @transform_0(%arg0: i32) -> (i32, i32) {
    %c0_i32 = arith.constant 0 : i32
    %c0_i32_0 = arith.constant 0 : i32
    return %arg0, %c0_i32 : i32, i32
  }
  func.func @transform_1(%arg0: i32) -> (i32, i32) {
    %c0_i32 = arith.constant 0 : i32
    %c0_i32_0 = arith.constant 0 : i32
    %c0_i32_1 = arith.constant 0 : i32
    return %c0_i32, %c0_i32_0 : i32, i32
  }
  func.func @transform_2(%arg0: i32) -> (i32, i32) {
    %c0_i32 = arith.constant 0 : i32
    %c0_i32_0 = arith.constant 0 : i32
    %c0_i32_1 = arith.constant 0 : i32
    return %c0_i32, %c0_i32_0 : i32, i32
  }
  func.func @transform_3(%arg0: i32) -> (i32, i32) {
    %c0_i32 = arith.constant 0 : i32
    %c0_i32_0 = arith.constant 0 : i32
    return %arg0, %c0_i32 : i32, i32
  }
}

module attributes {stable_mosaic.version = 11 : i64} {
  func.func @_flash_attention_kernel(%arg0: i32, %arg1: i32, %arg2: i32, %arg3: memref<1x16x128xbf16, #tpu.memory_space<vmem>>, %arg4: memref<1x16x128xbf16, #tpu.memory_space<vmem>>, %arg5: memref<1x16x128xbf16, #tpu.memory_space<vmem>>, %arg6: memref<1x16x128xbf16, #tpu.memory_space<vmem>>, %arg7: memref<2x16x1xf32, #tpu.memory_space<vmem>>, %arg8: memref<2x16x1xf32, #tpu.memory_space<vmem>>, %arg9: memref<2x16x64xf32, #tpu.memory_space<vmem>>) attributes {dimension_semantics = [#tpu.dimension_semantics<parallel>, #tpu.dimension_semantics<parallel>, #tpu.dimension_semantics<arbitrary>], iteration_bounds = array<i64: 2, 3, 1>, scalar_prefetch = 0 : i64, scratch_operands = 3 : i64, tpu.core_type = #tpu.core_type<tc>, window_params = [{transform_indices = @transform_0, window_bounds = array<i64: 1, 16, 128>}, {transform_indices = @transform_1, window_bounds = array<i64: 1, 16, 128>}, {transform_indices = @transform_2, window_bounds = array<i64: 1, 16, 128>}, {transform_indices = @transform_3, window_bounds = array<i64: 1, 16, 128>}]} {
    %c0_i32 = arith.constant 0 : i32
    %0 = arith.cmpi eq, %arg2, %c0_i32 : i32
    %1 = arith.extui %0 : i1 to i32
    %c0_i32_0 = arith.constant 0 : i32
    %2 = arith.cmpi ne, %1, %c0_i32_0 : i32
    scf.if %2 {
      %cst_57 = arith.constant 0xFF800000 : f32
      %107 = vector.broadcast %cst_57 : f32 to vector<2x16x1xf32>
      %c0_58 = arith.constant 0 : index
      %c0_59 = arith.constant 0 : index
      %c0_60 = arith.constant 0 : index
      %108 = vector.load %arg7[%c0_58, %c0_59, %c0_60] : memref<2x16x1xf32, #tpu.memory_space<vmem>>, vector<2x16x1xf32>
      tpu.vector_store %arg7[%c0_58, %c0_59, %c0_60], %107 {strides = array<i32>} : memref<2x16x1xf32, #tpu.memory_space<vmem>>, vector<2x16x1xf32>,
      %cst_61 = arith.constant 0.000000e+00 : f32
      %109 = vector.broadcast %cst_61 : f32 to vector<2x16x1xf32>
      %c0_62 = arith.constant 0 : index
      %c0_63 = arith.constant 0 : index
      %c0_64 = arith.constant 0 : index
      %110 = vector.load %arg8[%c0_62, %c0_63, %c0_64] : memref<2x16x1xf32, #tpu.memory_space<vmem>>, vector<2x16x1xf32>
      tpu.vector_store %arg8[%c0_62, %c0_63, %c0_64], %109 {strides = array<i32>} : memref<2x16x1xf32, #tpu.memory_space<vmem>>, vector<2x16x1xf32>,
      %cst_65 = arith.constant 0.000000e+00 : f32
      %111 = vector.broadcast %cst_65 : f32 to vector<2x16x64xf32>
      %c0_66 = arith.constant 0 : index
      %c0_67 = arith.constant 0 : index
      %c0_68 = arith.constant 0 : index
      %112 = vector.load %arg9[%c0_66, %c0_67, %c0_68] : memref<2x16x64xf32, #tpu.memory_space<vmem>>, vector<2x16x64xf32>
      tpu.vector_store %arg9[%c0_66, %c0_67, %c0_68], %111 {strides = array<i32>} : memref<2x16x64xf32, #tpu.memory_space<vmem>>, vector<2x16x64xf32>,
    } else {
    }
    %c16_i32 = arith.constant 16 : i32
    %3 = arith.muli %arg2, %c16_i32 : i32
    %4 = tpu.iota {dimensions = array<i32: 1>} : vector<1x16xi32>
    %5 = vector.broadcast %3 : i32 to vector<1x16xi32>
    %6 = arith.addi %5, %4 : vector<1x16xi32>
    %c9_i32 = arith.constant 9 : i32
    %7 = vector.broadcast %c9_i32 : i32 to vector<1x16xi32>
    %8 = arith.cmpi slt, %6, %7 : vector<1x16xi32>
    %9 = tpu.iota {dimensions = array<i32: 0>} : vector<16x1xi32>
    %10 = vector.broadcast %3 : i32 to vector<16x1xi32>
    %11 = arith.addi %10, %9 : vector<16x1xi32>
    %c9_i32_1 = arith.constant 9 : i32
    %12 = vector.broadcast %c9_i32_1 : i32 to vector<16x1xi32>
    %13 = arith.cmpi slt, %11, %12 : vector<16x1xi32>
    %c0 = arith.constant 0 : index
    %c0_2 = arith.constant 0 : index
    %c0_3 = arith.constant 0 : index
    %14 = vector.load %arg3[%c0, %c0_2, %c0_3] : memref<1x16x128xbf16, #tpu.memory_space<vmem>>, vector<1x16x128xbf16>
    %15 = vector.shape_cast %14 : vector<1x16x128xbf16> to vector<16x128xbf16>
    %c0_4 = arith.constant 0 : index
    %c0_5 = arith.constant 0 : index
    %c0_6 = arith.constant 0 : index
    %16 = vector.load %arg4[%c0_4, %c0_5, %c0_6] : memref<1x16x128xbf16, #tpu.memory_space<vmem>>, vector<1x16x128xbf16>
    %17 = vector.shape_cast %16 : vector<1x16x128xbf16> to vector<16x128xbf16>
    %c0_7 = arith.constant 0 : index
    %c0_8 = arith.constant 0 : index
    %c0_9 = arith.constant 0 : index
    %18 = vector.load %arg5[%c0_7, %c0_8, %c0_9] : memref<1x16x128xbf16, #tpu.memory_space<vmem>>, vector<1x16x128xbf16>
    %19 = vector.shape_cast %18 : vector<1x16x128xbf16> to vector<16x128xbf16>
    %cst = arith.constant 0.000000e+00 : bf16
    %20 = vector.broadcast %cst : bf16 to vector<16x128xbf16>
    %21 = vector.shape_cast %13 : vector<16x1xi1> to vector<16x1xi1>
    %22 = vector.broadcast %21 : vector<16x1xi1> to vector<16x128xi1>
    %23 = arith.select %22, %19, %20 : vector<16x128xi1>, vector<16x128xbf16>
    %24 = vector.extract_strided_slice %15 {offsets = [0, 0], sizes = [16, 64], strides = [1, 1]} : vector<16x128xbf16> to vector<16x64xbf16>
    %25 = vector.extract_strided_slice %17 {offsets = [0, 0], sizes = [16, 64], strides = [1, 1]} : vector<16x128xbf16> to vector<16x64xbf16>
    %cst_10 = arith.constant dense<0.000000e+00> : vector<16x16xf32>
    %26 = tpu.matmul %24, %25, %cst_10 {dimension_numbers = #tpu.dot_dimension_numbers<[1], [1], [0], [0], [0, 0, 1, 0], [], []>} : vector<16x64xbf16>, vector<16x64xbf16>, vector<16x16xf32> -> vector<16x16xf32>
    %cst_11 = arith.constant 0xFF800000 : f32
    %27 = vector.shape_cast %8 : vector<1x16xi1> to vector<1x16xi1>
    %28 = vector.broadcast %27 : vector<1x16xi1> to vector<16x16xi1>
    %29 = vector.broadcast %cst_11 : f32 to vector<16x16xf32>
    %30 = arith.select %28, %26, %29 : vector<16x16xi1>, vector<16x16xf32>
    %c0_12 = arith.constant 0 : index
    %c0_13 = arith.constant 0 : index
    %c0_14 = arith.constant 0 : index
    %31 = vector.load %arg7[%c0_12, %c0_13, %c0_14] : memref<2x16x1xf32, #tpu.memory_space<vmem>>, vector<1x16x1xf32>
    %32 = vector.shape_cast %31 : vector<1x16x1xf32> to vector<16x1xf32>
    %cst_15 = arith.constant dense<0xFF800000> : vector<16xf32>
    %33 = vector.multi_reduction <maximumf>, %30, %cst_15 [1] : vector<16x16xf32> to vector<16xf32>
    %34 = vector.shape_cast %33 : vector<16xf32> to vector<16x1xf32>
    %35 = arith.maximumf %32, %34 : vector<16x1xf32>
    %36 = arith.subf %32, %35 : vector<16x1xf32>
    %37 = math.exp %36 : vector<16x1xf32>
    %38 = vector.broadcast %35 : vector<16x1xf32> to vector<16x16xf32>
    %39 = arith.subf %30, %38 : vector<16x16xf32>
    %40 = math.exp %39 : vector<16x16xf32>
    %c0_16 = arith.constant 0 : index
    %c0_17 = arith.constant 0 : index
    %c0_18 = arith.constant 0 : index
    %41 = vector.load %arg8[%c0_16, %c0_17, %c0_18] : memref<2x16x1xf32, #tpu.memory_space<vmem>>, vector<1x16x1xf32>
    %42 = vector.shape_cast %41 : vector<1x16x1xf32> to vector<16x1xf32>
    %43 = arith.mulf %37, %42 : vector<16x1xf32>
    %cst_19 = arith.constant dense<0.000000e+00> : vector<16xf32>
    %44 = vector.multi_reduction <add>, %40, %cst_19 [1] : vector<16x16xf32> to vector<16xf32>
    %45 = vector.shape_cast %44 : vector<16xf32> to vector<16x1xf32>
    %46 = arith.addf %43, %45 : vector<16x1xf32>
    %c0_20 = arith.constant 0 : index
    %c0_21 = arith.constant 0 : index
    %c0_22 = arith.constant 0 : index
    %47 = vector.load %arg8[%c0_20, %c0_21, %c0_22] : memref<2x16x1xf32, #tpu.memory_space<vmem>>, vector<1x16x1xf32>
    %48 = vector.shape_cast %47 : vector<1x16x1xf32> to vector<16x1xf32>
    %49 = vector.shape_cast %46 : vector<16x1xf32> to vector<1x16x1xf32>
    tpu.vector_store %arg8[%c0_20, %c0_21, %c0_22], %49 {strides = array<i32>} : memref<2x16x1xf32, #tpu.memory_space<vmem>>, vector<1x16x1xf32>,
    %c0_23 = arith.constant 0 : index
    %c0_24 = arith.constant 0 : index
    %c0_25 = arith.constant 0 : index
    %50 = vector.load %arg9[%c0_23, %c0_24, %c0_25] : memref<2x16x64xf32, #tpu.memory_space<vmem>>, vector<1x16x64xf32>
    %51 = vector.shape_cast %50 : vector<1x16x64xf32> to vector<16x64xf32>
    %52 = vector.broadcast %37 : vector<16x1xf32> to vector<16x64xf32>
    %53 = arith.mulf %52, %51 : vector<16x64xf32>
    %54 = arith.truncf %40 : vector<16x16xf32> to vector<16x16xbf16>
    %55 = vector.extract_strided_slice %23 {offsets = [0, 0], sizes = [16, 64], strides = [1, 1]} : vector<16x128xbf16> to vector<16x64xbf16>
    %cst_26 = arith.constant dense<0.000000e+00> : vector<16x64xf32>
    %56 = tpu.matmul %54, %55, %cst_26 {dimension_numbers = #tpu.dot_dimension_numbers<[1], [0], [0], [1], [0, 0, 1, 1], [], []>} : vector<16x16xbf16>, vector<16x64xbf16>, vector<16x64xf32> -> vector<16x64xf32>
    %57 = arith.addf %53, %56 : vector<16x64xf32>
    %c0_27 = arith.constant 0 : index
    %c0_28 = arith.constant 0 : index
    %c0_29 = arith.constant 0 : index
    %58 = vector.load %arg9[%c0_27, %c0_28, %c0_29] : memref<2x16x64xf32, #tpu.memory_space<vmem>>, vector<1x16x64xf32>
    %59 = vector.shape_cast %58 : vector<1x16x64xf32> to vector<16x64xf32>
    %60 = vector.shape_cast %57 : vector<16x64xf32> to vector<1x16x64xf32>
    tpu.vector_store %arg9[%c0_27, %c0_28, %c0_29], %60 {strides = array<i32>} : memref<2x16x64xf32, #tpu.memory_space<vmem>>, vector<1x16x64xf32>,
    %c0_30 = arith.constant 0 : index
    %c0_31 = arith.constant 0 : index
    %c0_32 = arith.constant 0 : index
    %61 = vector.load %arg7[%c0_30, %c0_31, %c0_32] : memref<2x16x1xf32, #tpu.memory_space<vmem>>, vector<1x16x1xf32>
    %62 = vector.shape_cast %61 : vector<1x16x1xf32> to vector<16x1xf32>
    %63 = vector.shape_cast %35 : vector<16x1xf32> to vector<1x16x1xf32>
    tpu.vector_store %arg7[%c0_30, %c0_31, %c0_32], %63 {strides = array<i32>} : memref<2x16x1xf32, #tpu.memory_space<vmem>>, vector<1x16x1xf32>,
    %64 = vector.extract_strided_slice %15 {offsets = [0, 64], sizes = [16, 64], strides = [1, 1]} : vector<16x128xbf16> to vector<16x64xbf16>
    %65 = vector.extract_strided_slice %17 {offsets = [0, 64], sizes = [16, 64], strides = [1, 1]} : vector<16x128xbf16> to vector<16x64xbf16>
    %cst_33 = arith.constant dense<0.000000e+00> : vector<16x16xf32>
    %66 = tpu.matmul %64, %65, %cst_33 {dimension_numbers = #tpu.dot_dimension_numbers<[1], [1], [0], [0], [0, 0, 1, 0], [], []>} : vector<16x64xbf16>, vector<16x64xbf16>, vector<16x16xf32> -> vector<16x16xf32>
    %cst_34 = arith.constant 0xFF800000 : f32
    %67 = vector.shape_cast %8 : vector<1x16xi1> to vector<1x16xi1>
    %68 = vector.broadcast %67 : vector<1x16xi1> to vector<16x16xi1>
    %69 = vector.broadcast %cst_34 : f32 to vector<16x16xf32>
    %70 = arith.select %68, %66, %69 : vector<16x16xi1>, vector<16x16xf32>
    %c1 = arith.constant 1 : index
    %c0_35 = arith.constant 0 : index
    %c0_36 = arith.constant 0 : index
    %71 = vector.load %arg7[%c1, %c0_35, %c0_36] : memref<2x16x1xf32, #tpu.memory_space<vmem>>, vector<1x16x1xf32>
    %72 = vector.shape_cast %71 : vector<1x16x1xf32> to vector<16x1xf32>
    %cst_37 = arith.constant dense<0xFF800000> : vector<16xf32>
    %73 = vector.multi_reduction <maximumf>, %70, %cst_37 [1] : vector<16x16xf32> to vector<16xf32>
    %74 = vector.shape_cast %73 : vector<16xf32> to vector<16x1xf32>
    %75 = arith.maximumf %72, %74 : vector<16x1xf32>
    %76 = arith.subf %72, %75 : vector<16x1xf32>
    %77 = math.exp %76 : vector<16x1xf32>
    %78 = vector.broadcast %75 : vector<16x1xf32> to vector<16x16xf32>
    %79 = arith.subf %70, %78 : vector<16x16xf32>
    %80 = math.exp %79 : vector<16x16xf32>
    %c1_38 = arith.constant 1 : index
    %c0_39 = arith.constant 0 : index
    %c0_40 = arith.constant 0 : index
    %81 = vector.load %arg8[%c1_38, %c0_39, %c0_40] : memref<2x16x1xf32, #tpu.memory_space<vmem>>, vector<1x16x1xf32>
    %82 = vector.shape_cast %81 : vector<1x16x1xf32> to vector<16x1xf32>
    %83 = arith.mulf %77, %82 : vector<16x1xf32>
    %cst_41 = arith.constant dense<0.000000e+00> : vector<16xf32>
    %84 = vector.multi_reduction <add>, %80, %cst_41 [1] : vector<16x16xf32> to vector<16xf32>
    %85 = vector.shape_cast %84 : vector<16xf32> to vector<16x1xf32>
    %86 = arith.addf %83, %85 : vector<16x1xf32>
    %c1_42 = arith.constant 1 : index
    %c0_43 = arith.constant 0 : index
    %c0_44 = arith.constant 0 : index
    %87 = vector.load %arg8[%c1_42, %c0_43, %c0_44] : memref<2x16x1xf32, #tpu.memory_space<vmem>>, vector<1x16x1xf32>
    %88 = vector.shape_cast %87 : vector<1x16x1xf32> to vector<16x1xf32>
    %89 = vector.shape_cast %86 : vector<16x1xf32> to vector<1x16x1xf32>
    tpu.vector_store %arg8[%c1_42, %c0_43, %c0_44], %89 {strides = array<i32>} : memref<2x16x1xf32, #tpu.memory_space<vmem>>, vector<1x16x1xf32>,
    %c1_45 = arith.constant 1 : index
    %c0_46 = arith.constant 0 : index
    %c0_47 = arith.constant 0 : index
    %90 = vector.load %arg9[%c1_45, %c0_46, %c0_47] : memref<2x16x64xf32, #tpu.memory_space<vmem>>, vector<1x16x64xf32>
    %91 = vector.shape_cast %90 : vector<1x16x64xf32> to vector<16x64xf32>
    %92 = vector.broadcast %77 : vector<16x1xf32> to vector<16x64xf32>
    %93 = arith.mulf %92, %91 : vector<16x64xf32>
    %94 = arith.truncf %80 : vector<16x16xf32> to vector<16x16xbf16>
    %95 = vector.extract_strided_slice %23 {offsets = [0, 64], sizes = [16, 64], strides = [1, 1]} : vector<16x128xbf16> to vector<16x64xbf16>
    %cst_48 = arith.constant dense<0.000000e+00> : vector<16x64xf32>
    %96 = tpu.matmul %94, %95, %cst_48 {dimension_numbers = #tpu.dot_dimension_numbers<[1], [0], [0], [1], [0, 0, 1, 1], [], []>} : vector<16x16xbf16>, vector<16x64xbf16>, vector<16x64xf32> -> vector<16x64xf32>
    %97 = arith.addf %93, %96 : vector<16x64xf32>
    %c1_49 = arith.constant 1 : index
    %c0_50 = arith.constant 0 : index
    %c0_51 = arith.constant 0 : index
    %98 = vector.load %arg9[%c1_49, %c0_50, %c0_51] : memref<2x16x64xf32, #tpu.memory_space<vmem>>, vector<1x16x64xf32>
    %99 = vector.shape_cast %98 : vector<1x16x64xf32> to vector<16x64xf32>
    %100 = vector.shape_cast %97 : vector<16x64xf32> to vector<1x16x64xf32>
    tpu.vector_store %arg9[%c1_49, %c0_50, %c0_51], %100 {strides = array<i32>} : memref<2x16x64xf32, #tpu.memory_space<vmem>>, vector<1x16x64xf32>,
    %c1_52 = arith.constant 1 : index
    %c0_53 = arith.constant 0 : index
    %c0_54 = arith.constant 0 : index
    %101 = vector.load %arg7[%c1_52, %c0_53, %c0_54] : memref<2x16x1xf32, #tpu.memory_space<vmem>>, vector<1x16x1xf32>
    %102 = vector.shape_cast %101 : vector<1x16x1xf32> to vector<16x1xf32>
    %103 = vector.shape_cast %75 : vector<16x1xf32> to vector<1x16x1xf32>
    tpu.vector_store %arg7[%c1_52, %c0_53, %c0_54], %103 {strides = array<i32>} : memref<2x16x1xf32, #tpu.memory_space<vmem>>, vector<1x16x1xf32>,
    %c0_i32_55 = arith.constant 0 : i32
    %104 = arith.cmpi eq, %arg2, %c0_i32_55 : i32
    %105 = arith.extui %104 : i1 to i32
    %c0_i32_56 = arith.constant 0 : i32
    %106 = arith.cmpi ne, %105, %c0_i32_56 : i32
    scf.if %106 {
      %c0_57 = arith.constant 0 : index
      %c0_58 = arith.constant 0 : index
      %c0_59 = arith.constant 0 : index
      %107 = vector.load %arg9[%c0_57, %c0_58, %c0_59] : memref<2x16x64xf32, #tpu.memory_space<vmem>>, vector<1x16x64xf32>
      %108 = vector.shape_cast %107 : vector<1x16x64xf32> to vector<16x64xf32>
      %c0_60 = arith.constant 0 : index
      %c0_61 = arith.constant 0 : index
      %c0_62 = arith.constant 0 : index
      %109 = vector.load %arg8[%c0_60, %c0_61, %c0_62] : memref<2x16x1xf32, #tpu.memory_space<vmem>>, vector<1x16x1xf32>
      %110 = vector.shape_cast %109 : vector<1x16x1xf32> to vector<16x1xf32>
      %111 = tpu.reciprocal %110 {approx = true} : vector<16x1xf32> -> vector<16x1xf32>
      %112 = vector.broadcast %111 : vector<16x1xf32> to vector<16x64xf32>
      %113 = arith.mulf %108, %112 : vector<16x64xf32>
      %c1_63 = arith.constant 1 : index
      %c0_64 = arith.constant 0 : index
      %c0_65 = arith.constant 0 : index
      %114 = vector.load %arg9[%c1_63, %c0_64, %c0_65] : memref<2x16x64xf32, #tpu.memory_space<vmem>>, vector<1x16x64xf32>
      %115 = vector.shape_cast %114 : vector<1x16x64xf32> to vector<16x64xf32>
      %c1_66 = arith.constant 1 : index
      %c0_67 = arith.constant 0 : index
      %c0_68 = arith.constant 0 : index
      %116 = vector.load %arg8[%c1_66, %c0_67, %c0_68] : memref<2x16x1xf32, #tpu.memory_space<vmem>>, vector<1x16x1xf32>
      %117 = vector.shape_cast %116 : vector<1x16x1xf32> to vector<16x1xf32>
      %118 = tpu.reciprocal %117 {approx = true} : vector<16x1xf32> -> vector<16x1xf32>
      %119 = vector.broadcast %118 : vector<16x1xf32> to vector<16x64xf32>
      %120 = arith.mulf %115, %119 : vector<16x64xf32>
      %121 = tpu.concatenate %113, %120 in 1 : vector<16x64xf32>, vector<16x64xf32> -> vector<16x128xf32>
      %122 = arith.truncf %121 : vector<16x128xf32> to vector<16x128xbf16>
      %c0_69 = arith.constant 0 : index
      %c0_70 = arith.constant 0 : index
      %c0_71 = arith.constant 0 : index
      %123 = vector.load %arg6[%c0_69, %c0_70, %c0_71] : memref<1x16x128xbf16, #tpu.memory_space<vmem>>, vector<1x16x128xbf16>
      %124 = vector.shape_cast %123 : vector<1x16x128xbf16> to vector<16x128xbf16>
      %125 = vector.shape_cast %122 : vector<16x128xbf16> to vector<1x16x128xbf16>
      tpu.vector_store %arg6[%c0_69, %c0_70, %c0_71], %125 {strides = array<i32>} : memref<1x16x128xbf16, #tpu.memory_space<vmem>>, vector<1x16x128xbf16>,
    } else {
    }
    return
  }
  func.func @transform_0(%arg0: i32, %arg1: i32, %arg2: i32) -> (i32, i32, i32) {
    %c0_i32 = arith.constant 0 : i32
    %c0_i32_0 = arith.constant 0 : i32
    return %arg0, %c0_i32, %arg1 : i32, i32, i32
  }
  func.func @transform_1(%arg0: i32, %arg1: i32, %arg2: i32) -> (i32, i32, i32) {
    %c3_i32 = arith.constant 3 : i32
    %0 = arith.addi %c3_i32, %arg1 : i32
    %c0_i32 = arith.constant 0 : i32
    return %arg0, %arg2, %0 : i32, i32, i32
  }
  func.func @transform_2(%arg0: i32, %arg1: i32, %arg2: i32) -> (i32, i32, i32) {
    %c6_i32 = arith.constant 6 : i32
    %0 = arith.addi %c6_i32, %arg1 : i32
    %c0_i32 = arith.constant 0 : i32
    return %arg0, %arg2, %0 : i32, i32, i32
  }
  func.func @transform_3(%arg0: i32, %arg1: i32, %arg2: i32) -> (i32, i32, i32) {
    %c0_i32 = arith.constant 0 : i32
    %c0_i32_0 = arith.constant 0 : i32
    return %arg0, %c0_i32, %arg1 : i32, i32, i32
  }
}

module attributes {stable_mosaic.version = 11 : i64} {
  func.func @_fused_linear_kernel(%arg0: i32, %arg1: memref<32x384xf32, #tpu.memory_space<vmem>>, %arg2: memref<1x384xf32, #tpu.memory_space<vmem>>, %arg3: memref<1x384xf32, #tpu.memory_space<vmem>>, %arg4: memref<384x1152xbf16, #tpu.memory_space<vmem>>, %arg5: memref<1x1152xf32, #tpu.memory_space<vmem>>, %arg6: memref<32x1152xbf16, #tpu.memory_space<vmem>>) attributes {dimension_semantics = [#tpu.dimension_semantics<parallel>], iteration_bounds = array<i64: 1>, scalar_prefetch = 0 : i64, scratch_operands = 0 : i64, tpu.core_type = #tpu.core_type<tc>, window_params = [{transform_indices = @transform_0, window_bounds = array<i64: 32, 384>}, {pipeline_mode = #tpu.pipeline_mode<synchronous>, transform_indices = @transform_1, window_bounds = array<i64: 1, 384>}, {pipeline_mode = #tpu.pipeline_mode<synchronous>, transform_indices = @transform_2, window_bounds = array<i64: 1, 384>}, {pipeline_mode = #tpu.pipeline_mode<synchronous>, transform_indices = @transform_3, window_bounds = array<i64: 384, 1152>}, {pipeline_mode = #tpu.pipeline_mode<synchronous>, transform_indices = @transform_4, window_bounds = array<i64: 1, 1152>}, {transform_indices = @transform_5, window_bounds = array<i64: 32, 1152>}]} {
    %c0 = arith.constant 0 : index
    %c0_0 = arith.constant 0 : index
    %0 = vector.load %arg1[%c0, %c0_0] : memref<32x384xf32, #tpu.memory_space<vmem>>, vector<32x384xf32>
    %c0_1 = arith.constant 0 : index
    %c0_2 = arith.constant 0 : index
    %1 = vector.load %arg2[%c0_1, %c0_2] : memref<1x384xf32, #tpu.memory_space<vmem>>, vector<1x384xf32>
    %c0_3 = arith.constant 0 : index
    %c0_4 = arith.constant 0 : index
    %2 = vector.load %arg3[%c0_3, %c0_4] : memref<1x384xf32, #tpu.memory_space<vmem>>, vector<1x384xf32>
    %cst = arith.constant dense<0.000000e+00> : vector<32xf32>
    %3 = vector.multi_reduction <add>, %0, %cst [1] : vector<32x384xf32> to vector<32xf32>
    %4 = vector.shape_cast %3 : vector<32xf32> to vector<32x1xf32>
    %cst_5 = arith.constant 3.840000e+02 : f32
    %5 = vector.broadcast %cst_5 : f32 to vector<32x1xf32>
    %6 = arith.divf %4, %5 : vector<32x1xf32>
    %7 = vector.broadcast %6 : vector<32x1xf32> to vector<32x384xf32>
    %8 = arith.subf %0, %7 : vector<32x384xf32>
    %9 = arith.mulf %8, %8 : vector<32x384xf32>
    %cst_6 = arith.constant dense<0.000000e+00> : vector<32xf32>
    %10 = vector.multi_reduction <add>, %9, %cst_6 [1] : vector<32x384xf32> to vector<32xf32>
    %11 = vector.shape_cast %10 : vector<32xf32> to vector<32x1xf32>
    %cst_7 = arith.constant 3.840000e+02 : f32
    %12 = vector.broadcast %cst_7 : f32 to vector<32x1xf32>
    %13 = arith.divf %11, %12 : vector<32x1xf32>
    %cst_8 = arith.constant 9.99999997E-7 : f32
    %14 = vector.broadcast %cst_8 : f32 to vector<32x1xf32>
    %15 = arith.addf %13, %14 : vector<32x1xf32>
    %16 = math.rsqrt %15 : vector<32x1xf32>
    %17 = vector.broadcast %16 : vector<32x1xf32> to vector<32x384xf32>
    %18 = arith.mulf %8, %17 : vector<32x384xf32>
    %19 = vector.broadcast %1 : vector<1x384xf32> to vector<32x384xf32>
    %20 = arith.mulf %18, %19 : vector<32x384xf32>
    %21 = vector.broadcast %2 : vector<1x384xf32> to vector<32x384xf32>
    %22 = arith.addf %20, %21 : vector<32x384xf32>
    %23 = arith.truncf %22 : vector<32x384xf32> to vector<32x384xbf16>
    %c0_9 = arith.constant 0 : index
    %c0_10 = arith.constant 0 : index
    %24 = vector.load %arg4[%c0_9, %c0_10] : memref<384x1152xbf16, #tpu.memory_space<vmem>>, vector<384x1152xbf16>
    %cst_11 = arith.constant dense<0.000000e+00> : vector<32x1152xf32>
    %25 = tpu.matmul %23, %24, %cst_11 {dimension_numbers = #tpu.dot_dimension_numbers<[1], [0], [0], [1], [0, 0, 1, 1], [], []>} : vector<32x384xbf16>, vector<384x1152xbf16>, vector<32x1152xf32> -> vector<32x1152xf32>
    %c0_12 = arith.constant 0 : index
    %c0_13 = arith.constant 0 : index
    %26 = vector.load %arg5[%c0_12, %c0_13] : memref<1x1152xf32, #tpu.memory_space<vmem>>, vector<1x1152xf32>
    %27 = vector.broadcast %26 : vector<1x1152xf32> to vector<32x1152xf32>
    %28 = arith.addf %25, %27 : vector<32x1152xf32>
    %29 = arith.truncf %28 : vector<32x1152xf32> to vector<32x1152xbf16>
    %c0_14 = arith.constant 0 : index
    %c0_15 = arith.constant 0 : index
    %30 = vector.load %arg6[%c0_14, %c0_15] : memref<32x1152xbf16, #tpu.memory_space<vmem>>, vector<32x1152xbf16>
    tpu.vector_store %arg6[%c0_14, %c0_15], %29 {strides = array<i32>} : memref<32x1152xbf16, #tpu.memory_space<vmem>>, vector<32x1152xbf16>,
    return
  }
  func.func @transform_0(%arg0: i32) -> (i32, i32) {
    %c0_i32 = arith.constant 0 : i32
    %c0_i32_0 = arith.constant 0 : i32
    return %arg0, %c0_i32 : i32, i32
  }
  func.func @transform_1(%arg0: i32) -> (i32, i32) {
    %c0_i32 = arith.constant 0 : i32
    %c0_i32_0 = arith.constant 0 : i32
    %c0_i32_1 = arith.constant 0 : i32
    return %c0_i32, %c0_i32_0 : i32, i32
  }
  func.func @transform_2(%arg0: i32) -> (i32, i32) {
    %c0_i32 = arith.constant 0 : i32
    %c0_i32_0 = arith.constant 0 : i32
    %c0_i32_1 = arith.constant 0 : i32
    return %c0_i32, %c0_i32_0 : i32, i32
  }
  func.func @transform_3(%arg0: i32) -> (i32, i32) {
    %c0_i32 = arith.constant 0 : i32
    %c0_i32_0 = arith.constant 0 : i32
    %c0_i32_1 = arith.constant 0 : i32
    return %c0_i32, %c0_i32_0 : i32, i32
  }
  func.func @transform_4(%arg0: i32) -> (i32, i32) {
    %c0_i32 = arith.constant 0 : i32
    %c0_i32_0 = arith.constant 0 : i32
    %c0_i32_1 = arith.constant 0 : i32
    return %c0_i32, %c0_i32_0 : i32, i32
  }
  func.func @transform_5(%arg0: i32) -> (i32, i32) {
    %c0_i32 = arith.constant 0 : i32
    %c0_i32_0 = arith.constant 0 : i32
    return %arg0, %c0_i32 : i32, i32
  }
}

module attributes {stable_mosaic.version = 11 : i64} {
  func.func @_fused_dual_kernel(%arg0: i32, %arg1: memref<32x384xbf16, #tpu.memory_space<vmem>>, %arg2: memref<384x384xbf16, #tpu.memory_space<vmem>>, %arg3: memref<1x384xf32, #tpu.memory_space<vmem>>, %arg4: memref<1x384xf32, #tpu.memory_space<vmem>>, %arg5: memref<32x384xf32, #tpu.memory_space<vmem>>, %arg6: memref<1x384xf32, #tpu.memory_space<vmem>>, %arg7: memref<1x384xf32, #tpu.memory_space<vmem>>, %arg8: memref<384x1536xbf16, #tpu.memory_space<vmem>>, %arg9: memref<1x1536xf32, #tpu.memory_space<vmem>>, %arg10: memref<32x384xf32, #tpu.memory_space<vmem>>, %arg11: memref<32x1536xbf16, #tpu.memory_space<vmem>>) attributes {dimension_semantics = [#tpu.dimension_semantics<parallel>], iteration_bounds = array<i64: 1>, scalar_prefetch = 0 : i64, scratch_operands = 0 : i64, tpu.core_type = #tpu.core_type<tc>, window_params = [{transform_indices = @transform_0, window_bounds = array<i64: 32, 384>}, {pipeline_mode = #tpu.pipeline_mode<synchronous>, transform_indices = @transform_1, window_bounds = array<i64: 384, 384>}, {pipeline_mode = #tpu.pipeline_mode<synchronous>, transform_indices = @transform_2, window_bounds = array<i64: 1, 384>}, {pipeline_mode = #tpu.pipeline_mode<synchronous>, transform_indices = @transform_3, window_bounds = array<i64: 1, 384>}, {transform_indices = @transform_4, window_bounds = array<i64: 32, 384>}, {pipeline_mode = #tpu.pipeline_mode<synchronous>, transform_indices = @transform_5, window_bounds = array<i64: 1, 384>}, {pipeline_mode = #tpu.pipeline_mode<synchronous>, transform_indices = @transform_6, window_bounds = array<i64: 1, 384>}, {pipeline_mode = #tpu.pipeline_mode<synchronous>, transform_indices = @transform_7, window_bounds = array<i64: 384, 1536>}, {pipeline_mode = #tpu.pipeline_mode<synchronous>, transform_indices = @transform_8, window_bounds = array<i64: 1, 1536>}, {transform_indices = @transform_9, window_bounds = array<i64: 32, 384>}, {transform_indices = @transform_10, window_bounds = array<i64: 32, 1536>}]} {
    %c0 = arith.constant 0 : index
    %c0_0 = arith.constant 0 : index
    %0 = vector.load %arg1[%c0, %c0_0] : memref<32x384xbf16, #tpu.memory_space<vmem>>, vector<32x384xbf16>
    %c0_1 = arith.constant 0 : index
    %c0_2 = arith.constant 0 : index
    %1 = vector.load %arg2[%c0_1, %c0_2] : memref<384x384xbf16, #tpu.memory_space<vmem>>, vector<384x384xbf16>
    %cst = arith.constant dense<0.000000e+00> : vector<32x384xf32>
    %2 = tpu.matmul %0, %1, %cst {dimension_numbers = #tpu.dot_dimension_numbers<[1], [0], [0], [1], [0, 0, 1, 1], [], []>} : vector<32x384xbf16>, vector<384x384xbf16>, vector<32x384xf32> -> vector<32x384xf32>
    %c0_3 = arith.constant 0 : index
    %c0_4 = arith.constant 0 : index
    %3 = vector.load %arg5[%c0_3, %c0_4] : memref<32x384xf32, #tpu.memory_space<vmem>>, vector<32x384xf32>
    %c0_5 = arith.constant 0 : index
    %c0_6 = arith.constant 0 : index
    %4 = vector.load %arg3[%c0_5, %c0_6] : memref<1x384xf32, #tpu.memory_space<vmem>>, vector<1x384xf32>
    %5 = vector.broadcast %4 : vector<1x384xf32> to vector<32x384xf32>
    %6 = arith.addf %2, %5 : vector<32x384xf32>
    %c0_7 = arith.constant 0 : index
    %c0_8 = arith.constant 0 : index
    %7 = vector.load %arg4[%c0_7, %c0_8] : memref<1x384xf32, #tpu.memory_space<vmem>>, vector<1x384xf32>
    %8 = vector.broadcast %7 : vector<1x384xf32> to vector<32x384xf32>
    %9 = arith.mulf %6, %8 : vector<32x384xf32>
    %10 = arith.addf %3, %9 : vector<32x384xf32>
    %c0_9 = arith.constant 0 : index
    %c0_10 = arith.constant 0 : index
    %11 = vector.load %arg10[%c0_9, %c0_10] : memref<32x384xf32, #tpu.memory_space<vmem>>, vector<32x384xf32>
    tpu.vector_store %arg10[%c0_9, %c0_10], %10 {strides = array<i32>} : memref<32x384xf32, #tpu.memory_space<vmem>>, vector<32x384xf32>,
    %c0_11 = arith.constant 0 : index
    %c0_12 = arith.constant 0 : index
    %12 = vector.load %arg6[%c0_11, %c0_12] : memref<1x384xf32, #tpu.memory_space<vmem>>, vector<1x384xf32>
    %c0_13 = arith.constant 0 : index
    %c0_14 = arith.constant 0 : index
    %13 = vector.load %arg7[%c0_13, %c0_14] : memref<1x384xf32, #tpu.memory_space<vmem>>, vector<1x384xf32>
    %cst_15 = arith.constant dense<0.000000e+00> : vector<32xf32>
    %14 = vector.multi_reduction <add>, %10, %cst_15 [1] : vector<32x384xf32> to vector<32xf32>
    %15 = vector.shape_cast %14 : vector<32xf32> to vector<32x1xf32>
    %cst_16 = arith.constant 3.840000e+02 : f32
    %16 = vector.broadcast %cst_16 : f32 to vector<32x1xf32>
    %17 = arith.divf %15, %16 : vector<32x1xf32>
    %18 = vector.broadcast %17 : vector<32x1xf32> to vector<32x384xf32>
    %19 = arith.subf %10, %18 : vector<32x384xf32>
    %20 = arith.mulf %19, %19 : vector<32x384xf32>
    %cst_17 = arith.constant dense<0.000000e+00> : vector<32xf32>
    %21 = vector.multi_reduction <add>, %20, %cst_17 [1] : vector<32x384xf32> to vector<32xf32>
    %22 = vector.shape_cast %21 : vector<32xf32> to vector<32x1xf32>
    %cst_18 = arith.constant 3.840000e+02 : f32
    %23 = vector.broadcast %cst_18 : f32 to vector<32x1xf32>
    %24 = arith.divf %22, %23 : vector<32x1xf32>
    %cst_19 = arith.constant 9.99999997E-7 : f32
    %25 = vector.broadcast %cst_19 : f32 to vector<32x1xf32>
    %26 = arith.addf %24, %25 : vector<32x1xf32>
    %27 = math.rsqrt %26 : vector<32x1xf32>
    %28 = vector.broadcast %27 : vector<32x1xf32> to vector<32x384xf32>
    %29 = arith.mulf %19, %28 : vector<32x384xf32>
    %30 = vector.broadcast %12 : vector<1x384xf32> to vector<32x384xf32>
    %31 = arith.mulf %29, %30 : vector<32x384xf32>
    %32 = vector.broadcast %13 : vector<1x384xf32> to vector<32x384xf32>
    %33 = arith.addf %31, %32 : vector<32x384xf32>
    %34 = arith.truncf %33 : vector<32x384xf32> to vector<32x384xbf16>
    %c0_20 = arith.constant 0 : index
    %c0_21 = arith.constant 0 : index
    %35 = vector.load %arg8[%c0_20, %c0_21] : memref<384x1536xbf16, #tpu.memory_space<vmem>>, vector<384x1536xbf16>
    %cst_22 = arith.constant dense<0.000000e+00> : vector<32x1536xf32>
    %36 = tpu.matmul %34, %35, %cst_22 {dimension_numbers = #tpu.dot_dimension_numbers<[1], [0], [0], [1], [0, 0, 1, 1], [], []>} : vector<32x384xbf16>, vector<384x1536xbf16>, vector<32x1536xf32> -> vector<32x1536xf32>
    %c0_23 = arith.constant 0 : index
    %c0_24 = arith.constant 0 : index
    %37 = vector.load %arg9[%c0_23, %c0_24] : memref<1x1536xf32, #tpu.memory_space<vmem>>, vector<1x1536xf32>
    %38 = vector.broadcast %37 : vector<1x1536xf32> to vector<32x1536xf32>
    %39 = arith.addf %36, %38 : vector<32x1536xf32>
    %cst_25 = arith.constant 5.000000e-01 : f32
    %40 = vector.broadcast %cst_25 : f32 to vector<32x1536xf32>
    %41 = arith.mulf %40, %39 : vector<32x1536xf32>
    %42 = arith.mulf %39, %39 : vector<32x1536xf32>
    %43 = arith.mulf %42, %39 : vector<32x1536xf32>
    %cst_26 = arith.constant 4.471500e-02 : f32
    %44 = vector.broadcast %cst_26 : f32 to vector<32x1536xf32>
    %45 = arith.mulf %44, %43 : vector<32x1536xf32>
    %46 = arith.addf %39, %45 : vector<32x1536xf32>
    %cst_27 = arith.constant 0.797884583 : f32
    %47 = vector.broadcast %cst_27 : f32 to vector<32x1536xf32>
    %48 = arith.mulf %47, %46 : vector<32x1536xf32>
    %49 = math.tanh %48 : vector<32x1536xf32>
    %cst_28 = arith.constant 1.000000e+00 : f32
    %50 = vector.broadcast %cst_28 : f32 to vector<32x1536xf32>
    %51 = arith.addf %50, %49 : vector<32x1536xf32>
    %52 = arith.mulf %41, %51 : vector<32x1536xf32>
    %53 = arith.truncf %52 : vector<32x1536xf32> to vector<32x1536xbf16>
    %c0_29 = arith.constant 0 : index
    %c0_30 = arith.constant 0 : index
    %54 = vector.load %arg11[%c0_29, %c0_30] : memref<32x1536xbf16, #tpu.memory_space<vmem>>, vector<32x1536xbf16>
    tpu.vector_store %arg11[%c0_29, %c0_30], %53 {strides = array<i32>} : memref<32x1536xbf16, #tpu.memory_space<vmem>>, vector<32x1536xbf16>,
    return
  }
  func.func @transform_0(%arg0: i32) -> (i32, i32) {
    %c0_i32 = arith.constant 0 : i32
    %c0_i32_0 = arith.constant 0 : i32
    return %arg0, %c0_i32 : i32, i32
  }
  func.func @transform_1(%arg0: i32) -> (i32, i32) {
    %c0_i32 = arith.constant 0 : i32
    %c0_i32_0 = arith.constant 0 : i32
    %c0_i32_1 = arith.constant 0 : i32
    return %c0_i32, %c0_i32_0 : i32, i32
  }
  func.func @transform_2(%arg0: i32) -> (i32, i32) {
    %c0_i32 = arith.constant 0 : i32
    %c0_i32_0 = arith.constant 0 : i32
    %c0_i32_1 = arith.constant 0 : i32
    return %c0_i32, %c0_i32_0 : i32, i32
  }
  func.func @transform_3(%arg0: i32) -> (i32, i32) {
    %c0_i32 = arith.constant 0 : i32
    %c0_i32_0 = arith.constant 0 : i32
    %c0_i32_1 = arith.constant 0 : i32
    return %c0_i32, %c0_i32_0 : i32, i32
  }
  func.func @transform_4(%arg0: i32) -> (i32, i32) {
    %c0_i32 = arith.constant 0 : i32
    %c0_i32_0 = arith.constant 0 : i32
    return %arg0, %c0_i32 : i32, i32
  }
  func.func @transform_5(%arg0: i32) -> (i32, i32) {
    %c0_i32 = arith.constant 0 : i32
    %c0_i32_0 = arith.constant 0 : i32
    %c0_i32_1 = arith.constant 0 : i32
    return %c0_i32, %c0_i32_0 : i32, i32
  }
  func.func @transform_6(%arg0: i32) -> (i32, i32) {
    %c0_i32 = arith.constant 0 : i32
    %c0_i32_0 = arith.constant 0 : i32
    %c0_i32_1 = arith.constant 0 : i32
    return %c0_i32, %c0_i32_0 : i32, i32
  }
  func.func @transform_7(%arg0: i32) -> (i32, i32) {
    %c0_i32 = arith.constant 0 : i32
    %c0_i32_0 = arith.constant 0 : i32
    %c0_i32_1 = arith.constant 0 : i32
    return %c0_i32, %c0_i32_0 : i32, i32
  }
  func.func @transform_8(%arg0: i32) -> (i32, i32) {
    %c0_i32 = arith.constant 0 : i32
    %c0_i32_0 = arith.constant 0 : i32
    %c0_i32_1 = arith.constant 0 : i32
    return %c0_i32, %c0_i32_0 : i32, i32
  }
  func.func @transform_9(%arg0: i32) -> (i32, i32) {
    %c0_i32 = arith.constant 0 : i32
    %c0_i32_0 = arith.constant 0 : i32
    return %arg0, %c0_i32 : i32, i32
  }
  func.func @transform_10(%arg0: i32) -> (i32, i32) {
    %c0_i32 = arith.constant 0 : i32
    %c0_i32_0 = arith.constant 0 : i32
    return %arg0, %c0_i32 : i32, i32
  }
}

module attributes {stable_mosaic.version = 11 : i64} {
  func.func @_fused_linear_kernel(%arg0: i32, %arg1: memref<32x1536xbf16, #tpu.memory_space<vmem>>, %arg2: memref<1536x384xbf16, #tpu.memory_space<vmem>>, %arg3: memref<1x384xf32, #tpu.memory_space<vmem>>, %arg4: memref<1x384xf32, #tpu.memory_space<vmem>>, %arg5: memref<32x384xf32, #tpu.memory_space<vmem>>, %arg6: memref<32x384xf32, #tpu.memory_space<vmem>>) attributes {dimension_semantics = [#tpu.dimension_semantics<parallel>], iteration_bounds = array<i64: 1>, scalar_prefetch = 0 : i64, scratch_operands = 0 : i64, tpu.core_type = #tpu.core_type<tc>, window_params = [{transform_indices = @transform_0, window_bounds = array<i64: 32, 1536>}, {pipeline_mode = #tpu.pipeline_mode<synchronous>, transform_indices = @transform_1, window_bounds = array<i64: 1536, 384>}, {pipeline_mode = #tpu.pipeline_mode<synchronous>, transform_indices = @transform_2, window_bounds = array<i64: 1, 384>}, {pipeline_mode = #tpu.pipeline_mode<synchronous>, transform_indices = @transform_3, window_bounds = array<i64: 1, 384>}, {transform_indices = @transform_4, window_bounds = array<i64: 32, 384>}, {transform_indices = @transform_5, window_bounds = array<i64: 32, 384>}]} {
    %c0 = arith.constant 0 : index
    %c0_0 = arith.constant 0 : index
    %0 = vector.load %arg1[%c0, %c0_0] : memref<32x1536xbf16, #tpu.memory_space<vmem>>, vector<32x1536xbf16>
    %c0_1 = arith.constant 0 : index
    %c0_2 = arith.constant 0 : index
    %1 = vector.load %arg2[%c0_1, %c0_2] : memref<1536x384xbf16, #tpu.memory_space<vmem>>, vector<1536x384xbf16>
    %cst = arith.constant dense<0.000000e+00> : vector<32x384xf32>
    %2 = tpu.matmul %0, %1, %cst {dimension_numbers = #tpu.dot_dimension_numbers<[1], [0], [0], [1], [0, 0, 1, 1], [], []>} : vector<32x1536xbf16>, vector<1536x384xbf16>, vector<32x384xf32> -> vector<32x384xf32>
    %c0_3 = arith.constant 0 : index
    %c0_4 = arith.constant 0 : index
    %3 = vector.load %arg3[%c0_3, %c0_4] : memref<1x384xf32, #tpu.memory_space<vmem>>, vector<1x384xf32>
    %4 = vector.broadcast %3 : vector<1x384xf32> to vector<32x384xf32>
    %5 = arith.addf %2, %4 : vector<32x384xf32>
    %c0_5 = arith.constant 0 : index
    %c0_6 = arith.constant 0 : index
    %6 = vector.load %arg5[%c0_5, %c0_6] : memref<32x384xf32, #tpu.memory_space<vmem>>, vector<32x384xf32>
    %c0_7 = arith.constant 0 : index
    %c0_8 = arith.constant 0 : index
    %7 = vector.load %arg4[%c0_7, %c0_8] : memref<1x384xf32, #tpu.memory_space<vmem>>, vector<1x384xf32>
    %8 = vector.broadcast %7 : vector<1x384xf32> to vector<32x384xf32>
    %9 = arith.mulf %5, %8 : vector<32x384xf32>
    %10 = arith.addf %6, %9 : vector<32x384xf32>
    %c0_9 = arith.constant 0 : index
    %c0_10 = arith.constant 0 : index
    %11 = vector.load %arg6[%c0_9, %c0_10] : memref<32x384xf32, #tpu.memory_space<vmem>>, vector<32x384xf32>
    tpu.vector_store %arg6[%c0_9, %c0_10], %10 {strides = array<i32>} : memref<32x384xf32, #tpu.memory_space<vmem>>, vector<32x384xf32>,
    return
  }
  func.func @transform_0(%arg0: i32) -> (i32, i32) {
    %c0_i32 = arith.constant 0 : i32
    %c0_i32_0 = arith.constant 0 : i32
    return %arg0, %c0_i32 : i32, i32
  }
  func.func @transform_1(%arg0: i32) -> (i32, i32) {
    %c0_i32 = arith.constant 0 : i32
    %c0_i32_0 = arith.constant 0 : i32
    %c0_i32_1 = arith.constant 0 : i32
    return %c0_i32, %c0_i32_0 : i32, i32
  }
  func.func @transform_2(%arg0: i32) -> (i32, i32) {
    %c0_i32 = arith.constant 0 : i32
    %c0_i32_0 = arith.constant 0 : i32
    %c0_i32_1 = arith.constant 0 : i32
    return %c0_i32, %c0_i32_0 : i32, i32
  }
  func.func @transform_3(%arg0: i32) -> (i32, i32) {
    %c0_i32 = arith.constant 0 : i32
    %c0_i32_0 = arith.constant 0 : i32
    %c0_i32_1 = arith.constant 0 : i32
    return %c0_i32, %c0_i32_0 : i32, i32
  }
  func.func @transform_4(%arg0: i32) -> (i32, i32) {
    %c0_i32 = arith.constant 0 : i32
    %c0_i32_0 = arith.constant 0 : i32
    return %arg0, %c0_i32 : i32, i32
  }
  func.func @transform_5(%arg0: i32) -> (i32, i32) {
    %c0_i32 = arith.constant 0 : i32
    %c0_i32_0 = arith.constant 0 : i32
    return %arg0, %c0_i32 : i32, i32
  }
}

module attributes {stable_mosaic.version = 11 : i64} {
  func.func @_fused_dual_kernel(%arg0: i32, %arg1: memref<32x1536xbf16, #tpu.memory_space<vmem>>, %arg2: memref<1536x384xbf16, #tpu.memory_space<vmem>>, %arg3: memref<1x384xf32, #tpu.memory_space<vmem>>, %arg4: memref<1x384xf32, #tpu.memory_space<vmem>>, %arg5: memref<32x384xf32, #tpu.memory_space<vmem>>, %arg6: memref<1x384xf32, #tpu.memory_space<vmem>>, %arg7: memref<1x384xf32, #tpu.memory_space<vmem>>, %arg8: memref<384x1152xbf16, #tpu.memory_space<vmem>>, %arg9: memref<1x1152xf32, #tpu.memory_space<vmem>>, %arg10: memref<32x384xf32, #tpu.memory_space<vmem>>, %arg11: memref<32x1152xbf16, #tpu.memory_space<vmem>>) attributes {dimension_semantics = [#tpu.dimension_semantics<parallel>], iteration_bounds = array<i64: 1>, scalar_prefetch = 0 : i64, scratch_operands = 0 : i64, tpu.core_type = #tpu.core_type<tc>, window_params = [{transform_indices = @transform_0, window_bounds = array<i64: 32, 1536>}, {pipeline_mode = #tpu.pipeline_mode<synchronous>, transform_indices = @transform_1, window_bounds = array<i64: 1536, 384>}, {pipeline_mode = #tpu.pipeline_mode<synchronous>, transform_indices = @transform_2, window_bounds = array<i64: 1, 384>}, {pipeline_mode = #tpu.pipeline_mode<synchronous>, transform_indices = @transform_3, window_bounds = array<i64: 1, 384>}, {transform_indices = @transform_4, window_bounds = array<i64: 32, 384>}, {pipeline_mode = #tpu.pipeline_mode<synchronous>, transform_indices = @transform_5, window_bounds = array<i64: 1, 384>}, {pipeline_mode = #tpu.pipeline_mode<synchronous>, transform_indices = @transform_6, window_bounds = array<i64: 1, 384>}, {pipeline_mode = #tpu.pipeline_mode<synchronous>, transform_indices = @transform_7, window_bounds = array<i64: 384, 1152>}, {pipeline_mode = #tpu.pipeline_mode<synchronous>, transform_indices = @transform_8, window_bounds = array<i64: 1, 1152>}, {transform_indices = @transform_9, window_bounds = array<i64: 32, 384>}, {transform_indices = @transform_10, window_bounds = array<i64: 32, 1152>}]} {
    %c0 = arith.constant 0 : index
    %c0_0 = arith.constant 0 : index
    %0 = vector.load %arg1[%c0, %c0_0] : memref<32x1536xbf16, #tpu.memory_space<vmem>>, vector<32x1536xbf16>
    %c0_1 = arith.constant 0 : index
    %c0_2 = arith.constant 0 : index
    %1 = vector.load %arg2[%c0_1, %c0_2] : memref<1536x384xbf16, #tpu.memory_space<vmem>>, vector<1536x384xbf16>
    %cst = arith.constant dense<0.000000e+00> : vector<32x384xf32>
    %2 = tpu.matmul %0, %1, %cst {dimension_numbers = #tpu.dot_dimension_numbers<[1], [0], [0], [1], [0, 0, 1, 1], [], []>} : vector<32x1536xbf16>, vector<1536x384xbf16>, vector<32x384xf32> -> vector<32x384xf32>
    %c0_3 = arith.constant 0 : index
    %c0_4 = arith.constant 0 : index
    %3 = vector.load %arg5[%c0_3, %c0_4] : memref<32x384xf32, #tpu.memory_space<vmem>>, vector<32x384xf32>
    %c0_5 = arith.constant 0 : index
    %c0_6 = arith.constant 0 : index
    %4 = vector.load %arg3[%c0_5, %c0_6] : memref<1x384xf32, #tpu.memory_space<vmem>>, vector<1x384xf32>
    %5 = vector.broadcast %4 : vector<1x384xf32> to vector<32x384xf32>
    %6 = arith.addf %2, %5 : vector<32x384xf32>
    %c0_7 = arith.constant 0 : index
    %c0_8 = arith.constant 0 : index
    %7 = vector.load %arg4[%c0_7, %c0_8] : memref<1x384xf32, #tpu.memory_space<vmem>>, vector<1x384xf32>
    %8 = vector.broadcast %7 : vector<1x384xf32> to vector<32x384xf32>
    %9 = arith.mulf %6, %8 : vector<32x384xf32>
    %10 = arith.addf %3, %9 : vector<32x384xf32>
    %c0_9 = arith.constant 0 : index
    %c0_10 = arith.constant 0 : index
    %11 = vector.load %arg10[%c0_9, %c0_10] : memref<32x384xf32, #tpu.memory_space<vmem>>, vector<32x384xf32>
    tpu.vector_store %arg10[%c0_9, %c0_10], %10 {strides = array<i32>} : memref<32x384xf32, #tpu.memory_space<vmem>>, vector<32x384xf32>,
    %c0_11 = arith.constant 0 : index
    %c0_12 = arith.constant 0 : index
    %12 = vector.load %arg6[%c0_11, %c0_12] : memref<1x384xf32, #tpu.memory_space<vmem>>, vector<1x384xf32>
    %c0_13 = arith.constant 0 : index
    %c0_14 = arith.constant 0 : index
    %13 = vector.load %arg7[%c0_13, %c0_14] : memref<1x384xf32, #tpu.memory_space<vmem>>, vector<1x384xf32>
    %cst_15 = arith.constant dense<0.000000e+00> : vector<32xf32>
    %14 = vector.multi_reduction <add>, %10, %cst_15 [1] : vector<32x384xf32> to vector<32xf32>
    %15 = vector.shape_cast %14 : vector<32xf32> to vector<32x1xf32>
    %cst_16 = arith.constant 3.840000e+02 : f32
    %16 = vector.broadcast %cst_16 : f32 to vector<32x1xf32>
    %17 = arith.divf %15, %16 : vector<32x1xf32>
    %18 = vector.broadcast %17 : vector<32x1xf32> to vector<32x384xf32>
    %19 = arith.subf %10, %18 : vector<32x384xf32>
    %20 = arith.mulf %19, %19 : vector<32x384xf32>
    %cst_17 = arith.constant dense<0.000000e+00> : vector<32xf32>
    %21 = vector.multi_reduction <add>, %20, %cst_17 [1] : vector<32x384xf32> to vector<32xf32>
    %22 = vector.shape_cast %21 : vector<32xf32> to vector<32x1xf32>
    %cst_18 = arith.constant 3.840000e+02 : f32
    %23 = vector.broadcast %cst_18 : f32 to vector<32x1xf32>
    %24 = arith.divf %22, %23 : vector<32x1xf32>
    %cst_19 = arith.constant 9.99999997E-7 : f32
    %25 = vector.broadcast %cst_19 : f32 to vector<32x1xf32>
    %26 = arith.addf %24, %25 : vector<32x1xf32>
    %27 = math.rsqrt %26 : vector<32x1xf32>
    %28 = vector.broadcast %27 : vector<32x1xf32> to vector<32x384xf32>
    %29 = arith.mulf %19, %28 : vector<32x384xf32>
    %30 = vector.broadcast %12 : vector<1x384xf32> to vector<32x384xf32>
    %31 = arith.mulf %29, %30 : vector<32x384xf32>
    %32 = vector.broadcast %13 : vector<1x384xf32> to vector<32x384xf32>
    %33 = arith.addf %31, %32 : vector<32x384xf32>
    %34 = arith.truncf %33 : vector<32x384xf32> to vector<32x384xbf16>
    %c0_20 = arith.constant 0 : index
    %c0_21 = arith.constant 0 : index
    %35 = vector.load %arg8[%c0_20, %c0_21] : memref<384x1152xbf16, #tpu.memory_space<vmem>>, vector<384x1152xbf16>
    %cst_22 = arith.constant dense<0.000000e+00> : vector<32x1152xf32>
    %36 = tpu.matmul %34, %35, %cst_22 {dimension_numbers = #tpu.dot_dimension_numbers<[1], [0], [0], [1], [0, 0, 1, 1], [], []>} : vector<32x384xbf16>, vector<384x1152xbf16>, vector<32x1152xf32> -> vector<32x1152xf32>
    %c0_23 = arith.constant 0 : index
    %c0_24 = arith.constant 0 : index
    %37 = vector.load %arg9[%c0_23, %c0_24] : memref<1x1152xf32, #tpu.memory_space<vmem>>, vector<1x1152xf32>
    %38 = vector.broadcast %37 : vector<1x1152xf32> to vector<32x1152xf32>
    %39 = arith.addf %36, %38 : vector<32x1152xf32>
    %40 = arith.truncf %39 : vector<32x1152xf32> to vector<32x1152xbf16>
    %c0_25 = arith.constant 0 : index
    %c0_26 = arith.constant 0 : index
    %41 = vector.load %arg11[%c0_25, %c0_26] : memref<32x1152xbf16, #tpu.memory_space<vmem>>, vector<32x1152xbf16>
    tpu.vector_store %arg11[%c0_25, %c0_26], %40 {strides = array<i32>} : memref<32x1152xbf16, #tpu.memory_space<vmem>>, vector<32x1152xbf16>,
    return
  }
  func.func @transform_0(%arg0: i32) -> (i32, i32) {
    %c0_i32 = arith.constant 0 : i32
    %c0_i32_0 = arith.constant 0 : i32
    return %arg0, %c0_i32 : i32, i32
  }
  func.func @transform_1(%arg0: i32) -> (i32, i32) {
    %c0_i32 = arith.constant 0 : i32
    %c0_i32_0 = arith.constant 0 : i32
    %c0_i32_1 = arith.constant 0 : i32
    return %c0_i32, %c0_i32_0 : i32, i32
  }
  func.func @transform_2(%arg0: i32) -> (i32, i32) {
    %c0_i32 = arith.constant 0 : i32
    %c0_i32_0 = arith.constant 0 : i32
    %c0_i32_1 = arith.constant 0 : i32
    return %c0_i32, %c0_i32_0 : i32, i32
  }
  func.func @transform_3(%arg0: i32) -> (i32, i32) {
    %c0_i32 = arith.constant 0 : i32
    %c0_i32_0 = arith.constant 0 : i32
    %c0_i32_1 = arith.constant 0 : i32
    return %c0_i32, %c0_i32_0 : i32, i32
  }
  func.func @transform_4(%arg0: i32) -> (i32, i32) {
    %c0_i32 = arith.constant 0 : i32
    %c0_i32_0 = arith.constant 0 : i32
    return %arg0, %c0_i32 : i32, i32
  }
  func.func @transform_5(%arg0: i32) -> (i32, i32) {
    %c0_i32 = arith.constant 0 : i32
    %c0_i32_0 = arith.constant 0 : i32
    %c0_i32_1 = arith.constant 0 : i32
    return %c0_i32, %c0_i32_0 : i32, i32
  }
  func.func @transform_6(%arg0: i32) -> (i32, i32) {
    %c0_i32 = arith.constant 0 : i32
    %c0_i32_0 = arith.constant 0 : i32
    %c0_i32_1 = arith.constant 0 : i32
    return %c0_i32, %c0_i32_0 : i32, i32
  }
  func.func @transform_7(%arg0: i32) -> (i32, i32) {
    %c0_i32 = arith.constant 0 : i32
    %c0_i32_0 = arith.constant 0 : i32
    %c0_i32_1 = arith.constant 0 : i32
    return %c0_i32, %c0_i32_0 : i32, i32
  }
  func.func @transform_8(%arg0: i32) -> (i32, i32) {
    %c0_i32 = arith.constant 0 : i32
    %c0_i32_0 = arith.constant 0 : i32
    %c0_i32_1 = arith.constant 0 : i32
    return %c0_i32, %c0_i32_0 : i32, i32
  }
  func.func @transform_9(%arg0: i32) -> (i32, i32) {
    %c0_i32 = arith.constant 0 : i32
    %c0_i32_0 = arith.constant 0 : i32
    return %arg0, %c0_i32 : i32, i32
  }
  func.func @transform_10(%arg0: i32) -> (i32, i32) {
    %c0_i32 = arith.constant 0 : i32
    %c0_i32_0 = arith.constant 0 : i32
    return %arg0, %c0_i32 : i32, i32
  }
}

module attributes {stable_mosaic.version = 11 : i64} {
  func.func @_head_kernel(%arg0: i32, %arg1: memref<8x384xf32, #tpu.memory_space<vmem>>, %arg2: memref<1x384xf32, #tpu.memory_space<vmem>>, %arg3: memref<1x384xf32, #tpu.memory_space<vmem>>, %arg4: memref<384x256xbf16, #tpu.memory_space<vmem>>, %arg5: memref<1x256xf32, #tpu.memory_space<vmem>>, %arg6: memref<256x128xbf16, #tpu.memory_space<vmem>>, %arg7: memref<1x128xf32, #tpu.memory_space<vmem>>, %arg8: memref<8x128xf32, #tpu.memory_space<vmem>>) attributes {dimension_semantics = [#tpu.dimension_semantics<parallel>], iteration_bounds = array<i64: 1>, scalar_prefetch = 0 : i64, scratch_operands = 0 : i64, tpu.core_type = #tpu.core_type<tc>, window_params = [{transform_indices = @transform_0, window_bounds = array<i64: 8, 384>}, {pipeline_mode = #tpu.pipeline_mode<synchronous>, transform_indices = @transform_1, window_bounds = array<i64: 1, 384>}, {pipeline_mode = #tpu.pipeline_mode<synchronous>, transform_indices = @transform_2, window_bounds = array<i64: 1, 384>}, {pipeline_mode = #tpu.pipeline_mode<synchronous>, transform_indices = @transform_3, window_bounds = array<i64: 384, 256>}, {pipeline_mode = #tpu.pipeline_mode<synchronous>, transform_indices = @transform_4, window_bounds = array<i64: 1, 256>}, {pipeline_mode = #tpu.pipeline_mode<synchronous>, transform_indices = @transform_5, window_bounds = array<i64: 256, 128>}, {pipeline_mode = #tpu.pipeline_mode<synchronous>, transform_indices = @transform_6, window_bounds = array<i64: 1, 128>}, {transform_indices = @transform_7, window_bounds = array<i64: 8, 128>}]} {
    %c0 = arith.constant 0 : index
    %c0_0 = arith.constant 0 : index
    %0 = vector.load %arg2[%c0, %c0_0] : memref<1x384xf32, #tpu.memory_space<vmem>>, vector<1x384xf32>
    %c0_1 = arith.constant 0 : index
    %c0_2 = arith.constant 0 : index
    %1 = vector.load %arg3[%c0_1, %c0_2] : memref<1x384xf32, #tpu.memory_space<vmem>>, vector<1x384xf32>
    %c0_3 = arith.constant 0 : index
    %c0_4 = arith.constant 0 : index
    %2 = vector.load %arg1[%c0_3, %c0_4] : memref<8x384xf32, #tpu.memory_space<vmem>>, vector<8x384xf32>
    %cst = arith.constant dense<0.000000e+00> : vector<8xf32>
    %3 = vector.multi_reduction <add>, %2, %cst [1] : vector<8x384xf32> to vector<8xf32>
    %4 = vector.shape_cast %3 : vector<8xf32> to vector<8x1xf32>
    %cst_5 = arith.constant 3.840000e+02 : f32
    %5 = vector.broadcast %cst_5 : f32 to vector<8x1xf32>
    %6 = arith.divf %4, %5 : vector<8x1xf32>
    %7 = vector.broadcast %6 : vector<8x1xf32> to vector<8x384xf32>
    %8 = arith.subf %2, %7 : vector<8x384xf32>
    %9 = arith.mulf %8, %8 : vector<8x384xf32>
    %cst_6 = arith.constant dense<0.000000e+00> : vector<8xf32>
    %10 = vector.multi_reduction <add>, %9, %cst_6 [1] : vector<8x384xf32> to vector<8xf32>
    %11 = vector.shape_cast %10 : vector<8xf32> to vector<8x1xf32>
    %cst_7 = arith.constant 3.840000e+02 : f32
    %12 = vector.broadcast %cst_7 : f32 to vector<8x1xf32>
    %13 = arith.divf %11, %12 : vector<8x1xf32>
    %cst_8 = arith.constant 9.99999997E-7 : f32
    %14 = vector.broadcast %cst_8 : f32 to vector<8x1xf32>
    %15 = arith.addf %13, %14 : vector<8x1xf32>
    %16 = math.rsqrt %15 : vector<8x1xf32>
    %17 = vector.broadcast %16 : vector<8x1xf32> to vector<8x384xf32>
    %18 = arith.mulf %8, %17 : vector<8x384xf32>
    %19 = vector.broadcast %0 : vector<1x384xf32> to vector<8x384xf32>
    %20 = arith.mulf %18, %19 : vector<8x384xf32>
    %21 = vector.broadcast %1 : vector<1x384xf32> to vector<8x384xf32>
    %22 = arith.addf %20, %21 : vector<8x384xf32>
    %cst_9 = arith.constant dense<0.000000e+00> : vector<8xf32>
    %23 = vector.multi_reduction <add>, %22, %cst_9 [1] : vector<8x384xf32> to vector<8xf32>
    %24 = vector.shape_cast %23 : vector<8xf32> to vector<8x1xf32>
    %cst_10 = arith.constant 3.840000e+02 : f32
    %25 = vector.broadcast %cst_10 : f32 to vector<8x1xf32>
    %26 = arith.divf %24, %25 : vector<8x1xf32>
    %27 = vector.broadcast %26 : vector<8x1xf32> to vector<8x384xf32>
    %28 = arith.subf %22, %27 : vector<8x384xf32>
    %29 = arith.mulf %28, %28 : vector<8x384xf32>
    %cst_11 = arith.constant dense<0.000000e+00> : vector<8xf32>
    %30 = vector.multi_reduction <add>, %29, %cst_11 [1] : vector<8x384xf32> to vector<8xf32>
    %31 = vector.shape_cast %30 : vector<8xf32> to vector<8x1xf32>
    %cst_12 = arith.constant 3.840000e+02 : f32
    %32 = vector.broadcast %cst_12 : f32 to vector<8x1xf32>
    %33 = arith.divf %31, %32 : vector<8x1xf32>
    %cst_13 = arith.constant 9.99999997E-7 : f32
    %34 = vector.broadcast %cst_13 : f32 to vector<8x1xf32>
    %35 = arith.addf %33, %34 : vector<8x1xf32>
    %36 = math.rsqrt %35 : vector<8x1xf32>
    %37 = vector.broadcast %36 : vector<8x1xf32> to vector<8x384xf32>
    %38 = arith.mulf %28, %37 : vector<8x384xf32>
    %39 = vector.broadcast %0 : vector<1x384xf32> to vector<8x384xf32>
    %40 = arith.mulf %38, %39 : vector<8x384xf32>
    %41 = vector.broadcast %1 : vector<1x384xf32> to vector<8x384xf32>
    %42 = arith.addf %40, %41 : vector<8x384xf32>
    %43 = arith.truncf %42 : vector<8x384xf32> to vector<8x384xbf16>
    %c0_14 = arith.constant 0 : index
    %c0_15 = arith.constant 0 : index
    %44 = vector.load %arg4[%c0_14, %c0_15] : memref<384x256xbf16, #tpu.memory_space<vmem>>, vector<384x256xbf16>
    %cst_16 = arith.constant dense<0.000000e+00> : vector<8x256xf32>
    %45 = tpu.matmul %43, %44, %cst_16 {dimension_numbers = #tpu.dot_dimension_numbers<[1], [0], [0], [1], [0, 0, 1, 1], [], []>} : vector<8x384xbf16>, vector<384x256xbf16>, vector<8x256xf32> -> vector<8x256xf32>
    %c0_17 = arith.constant 0 : index
    %c0_18 = arith.constant 0 : index
    %46 = vector.load %arg5[%c0_17, %c0_18] : memref<1x256xf32, #tpu.memory_space<vmem>>, vector<1x256xf32>
    %47 = vector.broadcast %46 : vector<1x256xf32> to vector<8x256xf32>
    %48 = arith.addf %45, %47 : vector<8x256xf32>
    %cst_19 = arith.constant 0.000000e+00 : f32
    %49 = vector.broadcast %cst_19 : f32 to vector<8x256xf32>
    %50 = arith.maximumf %48, %49 : vector<8x256xf32>
    %51 = arith.truncf %50 : vector<8x256xf32> to vector<8x256xbf16>
    %c0_20 = arith.constant 0 : index
    %c0_21 = arith.constant 0 : index
    %52 = vector.load %arg6[%c0_20, %c0_21] : memref<256x128xbf16, #tpu.memory_space<vmem>>, vector<256x128xbf16>
    %cst_22 = arith.constant dense<0.000000e+00> : vector<8x128xf32>
    %53 = tpu.matmul %51, %52, %cst_22 {dimension_numbers = #tpu.dot_dimension_numbers<[1], [0], [0], [1], [0, 0, 1, 1], [], []>} : vector<8x256xbf16>, vector<256x128xbf16>, vector<8x128xf32> -> vector<8x128xf32>
    %c0_23 = arith.constant 0 : index
    %c0_24 = arith.constant 0 : index
    %54 = vector.load %arg7[%c0_23, %c0_24] : memref<1x128xf32, #tpu.memory_space<vmem>>, vector<1x128xf32>
    %55 = vector.broadcast %54 : vector<1x128xf32> to vector<8x128xf32>
    %56 = arith.addf %53, %55 : vector<8x128xf32>
    %c0_25 = arith.constant 0 : index
    %c0_26 = arith.constant 0 : index
    %57 = vector.load %arg8[%c0_25, %c0_26] : memref<8x128xf32, #tpu.memory_space<vmem>>, vector<8x128xf32>
    tpu.vector_store %arg8[%c0_25, %c0_26], %56 {strides = array<i32>} : memref<8x128xf32, #tpu.memory_space<vmem>>, vector<8x128xf32>,
    return
  }
  func.func @transform_0(%arg0: i32) -> (i32, i32) {
    %c0_i32 = arith.constant 0 : i32
    %c0_i32_0 = arith.constant 0 : i32
    return %arg0, %c0_i32 : i32, i32
  }
  func.func @transform_1(%arg0: i32) -> (i32, i32) {
    %c0_i32 = arith.constant 0 : i32
    %c0_i32_0 = arith.constant 0 : i32
    %c0_i32_1 = arith.constant 0 : i32
    return %c0_i32, %c0_i32_0 : i32, i32
  }
  func.func @transform_2(%arg0: i32) -> (i32, i32) {
    %c0_i32 = arith.constant 0 : i32
    %c0_i32_0 = arith.constant 0 : i32
    %c0_i32_1 = arith.constant 0 : i32
    return %c0_i32, %c0_i32_0 : i32, i32
  }
  func.func @transform_3(%arg0: i32) -> (i32, i32) {
    %c0_i32 = arith.constant 0 : i32
    %c0_i32_0 = arith.constant 0 : i32
    %c0_i32_1 = arith.constant 0 : i32
    return %c0_i32, %c0_i32_0 : i32, i32
  }
  func.func @transform_4(%arg0: i32) -> (i32, i32) {
    %c0_i32 = arith.constant 0 : i32
    %c0_i32_0 = arith.constant 0 : i32
    %c0_i32_1 = arith.constant 0 : i32
    return %c0_i32, %c0_i32_0 : i32, i32
  }
  func.func @transform_5(%arg0: i32) -> (i32, i32) {
    %c0_i32 = arith.constant 0 : i32
    %c0_i32_0 = arith.constant 0 : i32
    %c0_i32_1 = arith.constant 0 : i32
    return %c0_i32, %c0_i32_0 : i32, i32
  }
  func.func @transform_6(%arg0: i32) -> (i32, i32) {
    %c0_i32 = arith.constant 0 : i32
    %c0_i32_0 = arith.constant 0 : i32
    %c0_i32_1 = arith.constant 0 : i32
    return %c0_i32, %c0_i32_0 : i32, i32
  }
  func.func @transform_7(%arg0: i32) -> (i32, i32) {
    %c0_i32 = arith.constant 0 : i32
    %c0_i32_0 = arith.constant 0 : i32
    return %arg0, %c0_i32 : i32, i32
  }
}

</mosaic_0001>

<bundles_post_ra>
// kernel: dino_v2_forward.41
= control target key start
LH: loop header
LB: loop body
LE: loop exit
PB: predicated region body
PF: predicated region fallthrough
CT: control target
= control target key end

     0   :  { %s1637_s0 = inlined_call_operand.vmem [shape: bf16[2,16,1152], index: 0, kind: input, shape index: {}, may-alias: {0,1,2}]   ;;  %s1638_s1 = inlined_call_operand.vmem [shape: bf16[2,16,1152], index: 1, kind: input, shape index: {}, may-alias: {0,1,2}]   ;;  %s1639_s2 = inlined_call_operand.vmem [shape: bf16[2,16,1152], index: 2, kind: input, shape index: {}, may-alias: {0,1,2}]   ;;  %s1640_s3 = inlined_call_operand.vmem [shape: bf16[2,16,384], index: 3, kind: output, shape index: {}]  }
   0x1   :  { %1643 = sst [smem:[#allocation12_spill]] %s1640_s3 }
   0x2   :  { %s1338_s12 = smov 0   ;;  %s1340_s13 = smov 0  }
   0x3   :  { %s1342_s14 = smov 0   ;;  %s1344_s15 = smov 0  }
   0x4   :  { %s1346_s16 = smov 0   ;;  %s1348_s17 = smov 0  }
   0x5   :  { %s1350_s18 = smov 0   ;;  %s1352_s19 = smov 0  }
   0x6   :  { %s1354_s20 = smov 0   ;;  %s1356_s21 = smov 0  }
   0x7   :  { %s1358_s22 = smov 0  }
   0x8 LB: > { %s28_s24 = sadd.s32 1, %s1302_s20  ;;  %s32_s25 = sadd.s32 1, %s1306_s21  ;;  %s1310_s22 = sphi %s1358_s22, %s13_s22   ;;  %s1306_s21 = sphi %s1356_s21, %s1665_s21   ;;  %s1302_s20 = sphi %s1354_s20, %s1664_s20   ;;  %s1298_s19 = sphi %s1352_s19, %s1663_s19   ;;  %s1294_s18 = sphi %s1350_s18, %s1662_s18   ;;  %s1290_s17 = sphi %s1348_s17, %s1661_s17   ;;  %s1286_s16 = sphi %s1346_s16, %s1660_s16   ;;  %s1282_s15 = sphi %s1344_s15, %s1659_s15   ;;  %s1278_s14 = sphi %s1342_s14, %s1658_s14   ;;  %s1274_s13 = sphi %s1340_s13, %s1657_s13   ;;  %s1270_s12 = sphi %s1338_s12, %s1656_s12  }
   0x9   : > { %p30_p0 = scmp.ge.s32.totalorder %s28_s24, 3  ;;  %s41_s26 = sadd.s32 1, %s1290_s17 }
   0xa   : > { %p48_p1 = scmp.ne.s32.totalorder %s1290_s17, %s1286_s16  ;;  %p49_p2 = scmp.eq.s32.totalorder %s1310_s22, 0 }
   0xb   : > { %s1667_s24 = smov (%p30_p0, %s28_s24), 0  ;;  %s1669_s25 = smov (!%p30_p0, %s32_s25), %s1306_s21 }
   0xc   : > { %1644 = sst [smem:[#allocation9_spill]] %s1667_s24  ;;  %s37_s27 = ssub.s32 %s1302_s20, %s1667_s24 }
   0xd   : > { %p34_p3 = scmp.ge.s32.totalorder %s1669_s25, 2  ;;  %s64_s28 = sadd.s32 3, %s1302_s20 }
   0xe   : > { %p1411_p4 = por %p49_p2, %p48_p1  ;;  %s65_s30 = sadd.s32 3, %s1667_s24 }
   0xf   : > { %s1671_s25 = smov (%p34_p3, %s1669_s25), 0  ;;  %s69_s4 = ssub.s32 %s64_s28, %s65_s30 }
  0x10   : > { %1646 = sst [smem:[#allocation10_spill]] %s1671_s25  ;;  %s73_s5 = sadd.s32 1, %s1282_s15 }
  0x11   : > { %s36_s6 = ssub.s32 %s1306_s21, %s1671_s25  ;;  %p80_p5 = scmp.ne.s32.totalorder %s1282_s15, %s1278_s14 }
  0x12   : > { %s38_s7 = sor.u32 %s37_s27, %s36_s6  ;;  %s70_s8 = sor.u32 %s69_s4, %s36_s6 }
  0x13   : > { %p39_p6 = scmp.eq.s32.totalorder %s38_s7, 0  ;;  %p71_p7 = scmp.eq.s32.totalorder %s70_s8, 0 }
  0x14   : > { %p1425_p8 = por %p80_p5, %p49_p2  ;;  %s96_s10 = sadd.s32 6, %s1302_s20 }
  0x15   : > { %s1431_s11 = scalar_select %p39_p6, %s1290_s17, %s41_s26  }
  0x16   : > { %s1434_s28 = scalar_select %p71_p7, %s1282_s15, %s73_s5  }
  0x17   : > { %1648 = sst [smem:[#allocation11_spill]] %s1431_s11  ;;  %s97_s30 = sadd.s32 6, %s1667_s24 }
  0x18   : > { %s105_s23 = sadd.s32 1, %s1274_s13  ;;  %s101_s25 = ssub.s32 %s96_s10, %s97_s30 }
  0x19   : > { %p112_p9 = scmp.ne.s32.totalorder %s1274_s13, %s1270_s12  ;;  %s102_s27 = sor.u32 %s101_s25, %s36_s6 }
  0x1a   : > { %s1649_s3 = sadd.s32 4294967295, %s1310_s22   ;;  %p103_p11 = scmp.eq.s32.totalorder %s102_s27, 0 }
  0x1b   : > { %p144_p10 = scmp.eq.s32.totalorder %s1649_s3, 5  ;;  %p1444_p12 = por %p112_p9, %p49_p2 }
  0x1c   : > { %s1456_s26 = scalar_select %p103_p11, %s1274_s13, %s105_s23  }
  0x1d   : > { %p1451_p13 = por %p144_p10, %p48_p1  ;;  %p1027_p0 = scmp.ge.s32.totalorder %s1310_s22, 6 }
  0x1f   : > { %166 = sbr.rel (%p1027_p0) target bundleno = 62 (0x3e), region = 16 }
  0x26   : > { %169 = sbr.rel (!%p1411_p4) target bundleno = 46 (0x2e), region = 20  ;;  %s171_s3 = sand.u32 (%p1411_p4), 1, %s1290_s17  }
  0x27   : > { %s1095_s25 = smul.u32 (%p1411_p4), 18, %s1306_s21  ;;  %s1028_s5 = sshll.u32 (%p1411_p4), %s171_s3, 3 }
  0x28   : > { %s173_s23 = scalar_lea.vmem (%p1411_p4), [#allocation5], %s1028_s5 }
  0x29   : > { %s175_s6 = sadd.s32 (%p1411_p4), %s1302_s20, %s1095_s25 }
  0x2a   : > { %s1029_s8 = sshll.u32 (%p1411_p4), %s175_s6, 2 }
  0x2b   : > { %s177_s27 = scalar_lea.vmem (%p1411_p4), %s1637_s0, %s1029_s8 }
  0x2c   : > { %v193_v0 = vld [vmem:[%s177_s27] sm:$0xf] (%p1411_p4)  ;;  %v195_v1 = vld [vmem:[%s177_s27 + $0x24] sm:$0xf] (%p1411_p4) }
  0x2d   : > { %194 = vst [vmem:[%s173_s23] sm:$0xf] %v193_v0  ;;  %196 = vst [vmem:[%s173_s23 + $0x4] sm:$0xf] %v195_v1 }
  0x2e PF: > { %223 = sbr.rel (!%p1425_p8) target bundleno = 54 (0x36), region = 61  ;;  %s225_s29 = sand.u32 (%p1425_p8), 1, %s1282_s15  }
  0x2f   : > { %s925_s3 = smul.u32 (%p1425_p8), 18, %s1306_s21  ;;  %s1030_s25 = sshll.u32 (%p1425_p8), %s225_s29, 3 }
  0x30   : > { %s227_s5 = scalar_lea.vmem (%p1425_p8), [#allocation6], %s1030_s25 }
  0x31   : > { %s926_s6 = sadd.s32 (%p1425_p8), %s1302_s20, %s925_s3 }
  0x32   : > { %s1031_s24 = sshll.u32 (%p1425_p8), %s926_s6, 2 }
  0x33   : > { %s928_s8 = scalar_lea.vmem (%p1425_p8), %s1638_s1, %s1031_s24 }
  0x34   : > { %v1032_v2 = vld [vmem:[%s928_s8 + $0xc] sm:$0xf] (%p1425_p8)  ;;  %v1033_v3 = vld [vmem:[%s928_s8 + $0x30] sm:$0xf] (%p1425_p8) }
  0x35   : > { %252 = vst [vmem:[%s227_s5] sm:$0xf] %v1032_v2  ;;  %254 = vst [vmem:[%s227_s5 + $0x4] sm:$0xf] %v1033_v3 }
  0x36 PF: > { %281 = sbr.rel (!%p1444_p12) target bundleno = 62 (0x3e), region = 102  ;;  %s283_s9 = sand.u32 (%p1444_p12), 1, %s1274_s13  }
  0x37   : > { %s934_s30 = smul.u32 (%p1444_p12), 18, %s1306_s21  ;;  %s1034_s27 = sshll.u32 (%p1444_p12), %s283_s9, 3 }
  0x38   : > { %s285_s25 = scalar_lea.vmem (%p1444_p12), [#allocation7], %s1034_s27 }
  0x39   : > { %s935_s23 = sadd.s32 (%p1444_p12), %s1302_s20, %s934_s30 }
  0x3a   : > { %s1035_s29 = sshll.u32 (%p1444_p12), %s935_s23, 2 }
  0x3b   : > { %s937_s24 = scalar_lea.vmem (%p1444_p12), %s1639_s2, %s1035_s29 }
  0x3c   : > { %v1036_v4 = vld [vmem:[%s937_s24 + $0x18] sm:$0xf] (%p1444_p12)  ;;  %v1037_v5 = vld [vmem:[%s937_s24 + $0x3c] sm:$0xf] (%p1444_p12) }
  0x3d   : > { %310 = vst [vmem:[%s285_s25] sm:$0xf] %v1036_v4  ;;  %312 = vst [vmem:[%s285_s25 + $0x4] sm:$0xf] %v1037_v5 }
  0x3e PF: > { %p1038_p1 = scmp.ge.s32.totalorder %s1310_s22, 1  ;;  %p338_p2 = scmp.lt.s32.totalorder %s1310_s22, 7 }
  0x40   : > { %p339_p3 = pnand %p1038_p1, %p338_p2 }
  0x41   : > { %s352_s4 = sand.u32 (!%p339_p3), 1, %s1278_s14   ;;  %vm407_vm0 = vcmask (!%p339_p3), 523264   ;;  %s345_s6 = sand.u32 (!%p339_p3), 1, %s1286_s16   ;;  %v1312_v6 = vmov (!%p339_p3), 0.0   ;;  %vm1313_vm1 = vmmov (!%p339_p3), 0   ;;  %vm398_vm2 = vcmask (!%p339_p3), 7168  }
  0x42   : > { %342 = sbr.rel (%p339_p3) target bundleno = 1520 (0x5f0), region = 143  ;;  %1071 = vmatprep.subr.bf16.mxu0 (!%p339_p3), %v1312_v6  ;;  %s1040_s10 = sshll.u32 (!%p339_p3), %s352_s4, 3  ;;  %408 = vst.msk [vmem:[#allocation4] sm:$0xff] (!%p339_p3), %vm407_vm0, %v1312_v6  ;;  %409 = vst.msk [vmem:[#allocation4 + $0x8] sm:$0xff] (!%p339_p3), %vm407_vm0, %v1312_v6  ;;  %1073 = vmatprep.mubr.msk.bf16.mxu0 (!%p339_p3), %vm1313_vm1, %v1312_v6  ;;  %v1314_v10 = vmov (!%p339_p3), -inf   ;;  %v413_v11 = vlaneseq (!%p339_p3)  ;;  %vm503_vm4 = vcmask (!%p339_p3), 130048  }
  0x43   : > { %410 = vst.msk [vmem:[#allocation4 + $0x10] sm:$0xff] (!%p339_p3), %vm407_vm0, %v1312_v6  ;;  %411 = vst.msk [vmem:[#allocation4 + $0x18] sm:$0xff] (!%p339_p3), %vm407_vm0, %v1312_v6  ;;  %s1498_s14 = sshll.u32 (!%p339_p3), %s345_s6, 3  ;;  %1077 = vmatprep.subr.bf16.mxu1 (!%p339_p3), %v1312_v6  ;;  %1079 = vmatprep.mubr.msk.bf16.mxu1 (!%p339_p3), %vm1313_vm1, %v1312_v6  ;;  %s354_s16 = scalar_lea.vmem (!%p339_p3), [#allocation6], %s1040_s10  ;;  %v1315_v21 = vmov (!%p339_p3), 0   ;;  %vm1317_vm6 = vmmov (!%p339_p3), 1  }
  0x44   : > { %v1198_v7 = vld [vmem:[%s354_s16] sm:$0xff] (!%p339_p3)   ;;  %s347_s8 = scalar_lea.vmem (!%p339_p3), [#allocation5], %s1498_s14  ;;  %399 = vst.msk [vmem:[#allocation2] sm:$0xff] (!%p339_p3), %vm398_vm2, %v1314_v10  ;;  %400 = vst.msk [vmem:[#allocation2 + $0x8] sm:$0xff] (!%p339_p3), %vm398_vm2, %v1314_v10  ;;  %v1521_v12 = vand.u32 (!%p339_p3), 127, %v413_v11  ;;  %1191 = vset.pattern.permute.xlu1 (!%p339_p3), %v1315_v21  ;;  %1192 = vset.pattern.permute.xlu0 (!%p339_p3), %v1315_v21  ;;  %s1316_s5 = smov (!%p339_p3), 64  }
  0x45   : > { %v454_v8 = vsel (!%p339_p3), %vm407_vm0, %v1198_v7, 0  ;;  %v1199_v9 = vld [vmem:[%s347_s8] sm:$0xff] (!%p339_p3)   ;;  %401 = vst.msk [vmem:[#allocation2 + $0x10] sm:$0xff] (!%p339_p3), %vm398_vm2, %v1314_v10  ;;  %402 = vst.msk [vmem:[#allocation2 + $0x18] sm:$0xff] (!%p339_p3), %vm398_vm2, %v1314_v10  ;;  %v419_v30 = vshrl.u32 (!%p339_p3), %v413_v11, 7  ;;  %s359_s9 = sand.u32 (!%p339_p3), 1, %s1270_s12  }
  0x46   : > { %1072 = vmatpush3.bf16.xpose.msra.mxu0 (!%p339_p3), %v454_v8  ;;  %403 = vst.msk [vmem:[#allocation3] sm:$0xff] (!%p339_p3), %vm398_vm2, %v1312_v6  ;;  %404 = vst.msk [vmem:[#allocation3 + $0x8] sm:$0xff] (!%p339_p3), %vm398_vm2, %v1312_v6  ;;  %vm417_vm3 = vcmp.lt.s32.totalorder (!%p339_p3), %v1521_v12, 9  ;;  %s1041_s30 = sshll.u32 (!%p339_p3), %s359_s9, 3  ;;  %s388_s12 = scalar_lea.vmem (!%p339_p3), [#allocation8], %s1498_s14 }
  0x47   : > { %1089 = vmatprep.subr.bf16.mxu0 (!%p339_p3), %v1312_v6  ;;  %405 = vst.msk [vmem:[#allocation3 + $0x10] sm:$0xff] (!%p339_p3), %vm398_vm2, %v1312_v6  ;;  %406 = vst.msk [vmem:[#allocation3 + $0x18] sm:$0xff] (!%p339_p3), %vm398_vm2, %v1312_v6  ;;  %v420_v31 = vadd.s32 (!%p339_p3), 8, %v419_v30  ;;  %s361_s27 = scalar_lea.vmem (!%p339_p3), [#allocation7], %s1041_s30 }
  0x48   : > { %v429_v32 = vld [vmem:[%s361_s27] sm:$0xf] (!%p339_p3)  ;;  %v430_v33 = vld [vmem:[%s361_s27 + $0x4] sm:$0xf] (!%p339_p3)  ;;  %vm435_vm7 = vmpackc.low (!%p339_p3), %vm1317_vm6, %vm1317_vm6 }
  0x49   : > { %vm424_vm5 = vcmp.lt.s32.totalorder %v420_v31, 9  ;;  %v437_v34 = vsel %vm435_vm7, %v429_v32, 0  ;;  %s1096_s23 = smul.u32 (%p1451_p13), 6, %s1298_s19  ;;  %s1652_s25 = sld [smem:[#allocation12_spill]] (%p1451_p13) }
  0x4a   : > { %vm436_vm8 = vmpackc.low %vm424_vm5, %vm424_vm5 }
  0x4b   : > { %v1531_v22 = vld [vmem:[#allocation2] sm:$0xff]  ;;  %v1536_v25 = vld [vmem:[#allocation2 + $0x8] sm:$0xff]  ;;  %v438_v35 = vsel %vm436_vm8, %v430_v33, 0  ;;  %s857_s29 = sadd.s32 (%p1451_p13), %s1294_s18, %s1096_s23 }
  0x4c   : > { %v1046_v36 = vcombine.low %v437_v34, %v438_v35  ;;  %v674_v61 = vld [vmem:[#allocation2 + $0x10] sm:$0xff]  ;;  %v675_v63 = vld [vmem:[#allocation2 + $0x18] sm:$0xff]  ;;  %s1053_s3 = sshll.u32 (%p1451_p13), %s857_s29, 2 }
  0x4d   : > { %1074 = vmatmul.mubr.msk.bf16.vlgmr.msra.gmra.mrb[0].mxu0 %vm407_vm0, %v1199_v9 }
  0x4e   : > { %1091 = vmatprep.mubr.msk.bf16.mxu0 %vm1313_vm1, %v1312_v6  ;;  %1078 = vmatpush3.bf16.msra.mxu1 %v1046_v36  ;;  %v707_v31 = vld [vmem:[#allocation3 + $0x10] sm:$0xff]  ;;  %v708_v32 = vld [vmem:[#allocation3 + $0x18] sm:$0xff] }
  0x4f   : > { %1083 = vmatprep.subr.bf16.mxu1 %v1312_v6  ;;  %s859_s4 = scalar_lea.vmem (%p1451_p13), %s1652_s25, %s1053_s3 }
 0x120   : > { %v490_v13 = vpop.f32.mrb[0].mxu0 }
 0x121   : > { %v499_v14 = vsel %vm417_vm3, %v490_v13, -inf  ;;  %v1075_v15 = vpop.f32.mrb[1].mxu0 }
 0x122   : > { %v493_v16 = vpop.f32.mrb[2].mxu0  ;;  %v504_v17 = vsel %vm503_vm4, %v499_v14, -inf }
 0x123   : > { %v500_v18 = vsel %vm417_vm3, %v493_v16, -inf  ;;  %505 = vmax.xlane.f32.xlu0 %v504_v17  ;;  %v1076_v19 = vpop.f32.mrb[3].mxu0 }
 0x124   : > { %v507_v20 = vsel %vm503_vm4, %v500_v18, -inf }
 0x127   : > { %508 = vmax.xlane.f32.xlu0 %v507_v20 }
 0x13d   : > { %622 = vrot.lane.b32.xlu0 %v1198_v7, %s1316_s5 }
 0x1b0   : > { %v506_v23 = vpop.xlane.xlu0 %505 }
 0x1b1   : > { %v1534_v24 = vmax.f32 %v1531_v22, %v506_v23 }
 0x1b3   : > { %v512_v26 = vsub.f32 %v1531_v22, %v1534_v24  ;;  %618 = vst.msk [vmem:[#allocation2] sm:$0xff] %vm398_vm2, %v1534_v24  ;;  %520 = vperm.xlu1 %1191, %v1534_v24  }
 0x1b4   : > { %v509_v27 = vpop.xlane.xlu0 %508 }
 0x1b5   : > { %v1544_v28 = vmax.f32 %v1536_v25, %v509_v27  ;;  %v514_v27 = vmul.f32 1.442695, %v512_v26 }
 0x1b7   : > { %v513_v29 = vsub.f32 %v1536_v25, %v1544_v28  ;;  %619 = vst.msk [vmem:[#allocation2 + $0x8] sm:$0xff] %vm398_vm2, %v1544_v28  ;;  %525 = vperm.xlu1 %1191, %v1544_v28  }
 0x1b8   : > { %v623_v43 = vpop.permute.xlu0 %622 }
 0x1b9   : > { %v628_v46 = vsel %vm407_vm0, %v623_v43, 0  ;;  %v516_v30 = vmul.f32 1.442695, %v513_v29 }
 0x1bb   : > { %620 = vrot.lane.b32.xlu1 %v1199_v9, %s1316_s5 }
 0x232   : > { %v521_v37 = vpop.permute.xlu1 %520 }
 0x233   : > { %v528_v38 = vsub.f32 %v499_v14, %v521_v37 }
 0x235   : > { %v530_v39 = vmul.f32 1.442695, %v528_v38 }
 0x236   : > { %v526_v40 = vpop.permute.xlu1 %525 }
 0x237   : > { %v529_v41 = vsub.f32 %v500_v18, %v526_v40  ;;  %1200 = vpow2.f32 %v530_v39 }
 0x239   : > { %v532_v42 = vmul.f32 1.442695, %v529_v41  ;;  %v535_v41 = vld [vmem:[#allocation3 + $0x8] sm:$0xff] }
 0x23a   : > { %v621_v48 = vpop.permute.xlu1 %620 }
 0x23b   : > { %1202 = vpow2.f32 %v532_v42 }
 0x241   : > { %v1201_v44 = vpop.eup %1200 }
 0x242   : > { %v538_v17 = vsel %vm503_vm4, %v1201_v44, 0.0 }
 0x245   : > { %v1203_v45 = vpop.eup %1202 }
 0x246   : > { %v563_v47 = vpack.c.bf16 %v1203_v45, %v1201_v44  ;;  %v541_v18 = vsel %vm503_vm4, %v1203_v45, 0.0 }
 0x248   : > { %1080 = vmatmul.mubr.msk.bf16.vlgmr.msra.gmra.mrb[0].mxu1 %vm503_vm4, %v563_v47 }
 0x249   : > { %1084 = vmatpush3.bf16.xpose.msra.mxu1 %v628_v46  ;;  %1085 = vmatprep.mubr.msk.bf16.mxu1 %vm1313_vm1, %v1312_v6 }
 0x250   : > { %1086 = vmatmul.mubr.msk.bf16.vlgmr.msra.gmra.mrb[4].mxu1 %vm407_vm0, %v621_v48 }
 0x31b   : > { %v1559_v49 = vpop.f32.mrb[0].mxu1 }
 0x31c   : > { %v1081_v50 = vpop.f32.mrb[1].mxu1 }
 0x31d   : > { %v1561_v51 = vpop.f32.mrb[2].mxu1 }
 0x31e   : > { %v1082_v52 = vpop.f32.mrb[3].mxu1 }
 0x323   : > { %v664_v53 = vpop.f32.mrb[4].mxu1 }
 0x324   : > { %v671_v54 = vsel %vm417_vm3, %v664_v53, -inf  ;;  %v1087_v55 = vpop.f32.mrb[5].mxu1 }
 0x325   : > { %v667_v56 = vpop.f32.mrb[6].mxu1  ;;  %v676_v57 = vsel %vm503_vm4, %v671_v54, -inf  ;;  %v723_v55 = vld [vmem:[#allocation4 + $0x18] sm:$0xff] }
 0x326   : > { %v672_v58 = vsel %vm417_vm3, %v667_v56, -inf  ;;  %677 = vmax.xlane.f32.xlu1 %v676_v57  ;;  %v1088_v59 = vpop.f32.mrb[7].mxu1 }
 0x327   : > { %v679_v60 = vsel %vm503_vm4, %v672_v58, -inf }
 0x328   : > { %680 = vmax.xlane.f32.xlu0 %v679_v60 }
 0x3b3   : > { %v678_v62 = vpop.xlane.xlu1 %677 }
 0x3b4   : > { %v682_v0 = vmax.f32 %v674_v61, %v678_v62 }
 0x3b5   : > { %v681_v1 = vpop.xlane.xlu0 %680 }
 0x3b6   : > { %v684_v2 = vsub.f32 %v674_v61, %v682_v0  ;;  %788 = vst.msk [vmem:[#allocation2 + $0x10] sm:$0xff] %vm398_vm2, %v682_v0  ;;  %v683_v3 = vmax.f32 %v675_v63, %v681_v1  ;;  %692 = vperm.xlu1 %1191, %v682_v0  }
 0x3b8   : > { %v685_v4 = vsub.f32 %v675_v63, %v683_v3  ;;  %789 = vst.msk [vmem:[#allocation2 + $0x18] sm:$0xff] %vm398_vm2, %v683_v3  ;;  %697 = vperm.xlu0 %1192, %v683_v3   ;;  %v686_v19 = vmul.f32 1.442695, %v684_v2 }
 0x3ba   : > { %737 = vrot.lane.b32.xlu1 %v1046_v36, %s1316_s5  ;;  %v688_v20 = vmul.f32 1.442695, %v685_v4  ;;  %v534_v36 = vld [vmem:[#allocation3] sm:$0xff] }
 0x435   : > { %v693_v5 = vpop.permute.xlu1 %692 }
 0x436   : > { %v700_v6 = vsub.f32 %v671_v54, %v693_v5  ;;  %v722_v54 = vld [vmem:[#allocation4 + $0x10] sm:$0xff]  ;;  %v549_v5 = vld [vmem:[#allocation4] sm:$0xff] }
 0x437   : > { %v698_v7 = vpop.permute.xlu0 %697 }
 0x438   : > { %v702_v8 = vmul.f32 1.442695, %v700_v6  ;;  %v701_v9 = vsub.f32 %v672_v58, %v698_v7 }
 0x439   : > { %v738_v10 = vpop.permute.xlu1 %737 }
 0x43a   : > { %1204 = vpow2.f32 %v702_v8  ;;  %v704_v11 = vmul.f32 1.442695, %v701_v9  ;;  %1090 = vmatpush3.bf16.msra.mxu0 %v738_v10 }
 0x43c   : > { %1206 = vpow2.f32 %v704_v11  ;;  %v550_v11 = vld [vmem:[#allocation4 + $0x8] sm:$0xff] }
 0x43d   : > { %1208 = vpow2.f32 %v686_v19 }
 0x43e   : > { %1210 = vpow2.f32 %v688_v20 }
 0x43f   : > { %1212 = vpow2.f32 %v514_v27 }
 0x440   : > { %1214 = vpow2.f32 %v516_v30 }
 0x444   : > { %v1205_v12 = vpop.eup %1204 }
 0x445   : > { %v711_v13 = vsel %vm503_vm4, %v1205_v12, 0.0 }
 0x446   : > { %v1207_v14 = vpop.eup %1206  ;;  %712 = vadd.xlane.f32.xlu1 %v711_v13 }
 0x447   : > { %v714_v15 = vsel %vm503_vm4, %v1207_v14, 0.0  ;;  %v736_v16 = vpack.c.bf16 %v1207_v14, %v1205_v12  ;;  %v1209_v21 = vpop.eup %1208 }
 0x448   : > { %715 = vadd.xlane.f32.xlu0 %v714_v15  ;;  %v1211_v23 = vpop.eup %1210  ;;  %v709_v33 = vmul.f32 %v1209_v21, %v707_v31 }
 0x449   : > { %1092 = vmatmul.mubr.msk.bf16.vlgmr.msra.gmra.mrb[4].mxu0 %vm503_vm4, %v736_v16  ;;  %v1213_v34 = vpop.eup %1212  ;;  %v710_v38 = vmul.f32 %v1211_v23, %v708_v32 }
 0x44a   : > { %539 = vadd.xlane.f32.xlu1 %v538_v17  ;;  %v536_v22 = vmul.f32 %v1213_v34, %v534_v36  ;;  %v1215_v24 = vpop.eup %1214 }
 0x44b   : > { %v537_v28 = vmul.f32 %v1215_v24, %v535_v41 }
 0x44e   : > { %542 = vadd.xlane.f32.xlu1 %v541_v18 }
 0x45f   : > { %726 = vperm.xlu1 %1191, %v1209_v21  }
 0x463   : > { %731 = vperm.xlu1 %1191, %v1211_v23  }
 0x4d3   : > { %v713_v35 = vpop.xlane.xlu1 %712 }
 0x4d4   : > { %v717_v37 = vadd.f32 %v713_v35, %v709_v33 }
 0x4d5   : > { %v716_v39 = vpop.xlane.xlu0 %715 }
 0x4d6   : > { %719 = vst.msk [vmem:[#allocation3 + $0x10] sm:$0xff] %vm398_vm2, %v717_v37  ;;  %v718_v40 = vadd.f32 %v716_v39, %v710_v38 }
 0x4d7   : > { %v540_v26 = vpop.xlane.xlu1 %539 }
 0x4d8   : > { %720 = vst.msk [vmem:[#allocation3 + $0x18] sm:$0xff] %vm398_vm2, %v718_v40  ;;  %v544_v25 = vadd.f32 %v540_v26, %v536_v22 }
 0x4da   : > { %547 = vst.msk [vmem:[#allocation3] sm:$0xff] %vm398_vm2, %v544_v25 }
 0x4db   : > { %v543_v29 = vpop.xlane.xlu1 %542 }
 0x4dc   : > { %v545_v42 = vadd.f32 %v543_v29, %v537_v28 }
 0x4dd   : > { %v813_v43 = vld [vmem:[#allocation3 + $0x10] sm:$0xff] }
 0x4de   : > { %548 = vst.msk [vmem:[#allocation3 + $0x8] sm:$0xff] %vm398_vm2, %v545_v42  ;;  %1216 = vrcp.f32 %v813_v43 }
 0x4df   : > { %v814_v44 = vld [vmem:[#allocation3 + $0x18] sm:$0xff]  ;;  %v727_v53 = vpop.permute.xlu1 %726 }
 0x4e0   : > { %1218 = vrcp.f32 %v814_v44  ;;  %v734_v57 = vmul.f32 %v727_v53, %v722_v54 }
 0x4e1   : > { %v795_v45 = vld [vmem:[#allocation3] sm:$0xff] }
 0x4e2   : > { %1220 = vrcp.f32 %v795_v45 }
 0x4e3   : > { %v732_v56 = vpop.permute.xlu1 %731 }
 0x4e4   : > { %v735_v59 = vmul.f32 %v732_v56, %v723_v55 }
 0x4e5   : > { %v796_v48 = vld [vmem:[#allocation3 + $0x8] sm:$0xff] }
 0x4e6   : > { %1222 = vrcp.f32 %v796_v48 }
 0x4e8   : > { %v1217_v46 = vpop.eup %1216 }
 0x4e9   : > { %819 = vperm.xlu1 %1191, %v1217_v46  }
 0x4ea   : > { %v1219_v47 = vpop.eup %1218 }
 0x4eb   : > { %824 = vperm.xlu0 %1192, %v1219_v47  }
 0x4ec   : > { %v1221_v50 = vpop.eup %1220 }
 0x4ed   : > { %553 = vperm.xlu1 %1191, %v1213_v34  }
 0x4f0   : > { %v1223_v52 = vpop.eup %1222 }
 0x4f1   : > { %558 = vperm.xlu1 %1191, %v1215_v24  }
 0x4f5   : > { %801 = vperm.xlu1 %1191, %v1221_v50  }
 0x4f9   : > { %806 = vperm.xlu1 %1191, %v1223_v52  }
 0x51c   : > { %v777_v58 = vpop.f32.mrb[4].mxu0 }
 0x51d   : > { %v784_v60 = vadd.f32 %v777_v58, %v734_v57  ;;  %v1093_v61 = vpop.f32.mrb[5].mxu0 }
 0x51e   : > { %v780_v62 = vpop.f32.mrb[6].mxu0 }
 0x51f   : > { %786 = vst.msk [vmem:[#allocation4 + $0x10] sm:$0xff] %vm407_vm0, %v784_v60  ;;  %v785_v63 = vadd.f32 %v780_v62, %v735_v59  ;;  %v1094_v0 = vpop.f32.mrb[7].mxu0 }
 0x521   : > { %787 = vst.msk [vmem:[#allocation4 + $0x18] sm:$0xff] %vm407_vm0, %v785_v63 }
 0x526   : > { %v811_v2 = vld [vmem:[#allocation4 + $0x10] sm:$0xff] }
 0x528   : > { %v812_v4 = vld [vmem:[#allocation4 + $0x18] sm:$0xff] }
 0x568   : > { %v820_v1 = vpop.permute.xlu1 %819 }
 0x569   : > { %v827_v6 = vmul.f32 %v820_v1, %v811_v2 }
 0x56a   : > { %v825_v3 = vpop.permute.xlu0 %824 }
 0x56b   : > { %v828_v7 = vmul.f32 %v825_v3, %v812_v4 }
 0x56c   : > { %v554_v8 = vpop.permute.xlu1 %553 }
 0x56d   : > { %v1193_v9 = vpack.i.bf16 %v828_v7, %v827_v6  ;;  %v561_v10 = vmul.f32 %v554_v8, %v549_v5 }
 0x56f   : > { %v614_v12 = vadd.f32 %v1559_v49, %v561_v10  ;;  %1194 = vrot.lane.b32.xlu1 %v1193_v9, %s1316_s5 }
 0x570   : > { %v559_v13 = vpop.permute.xlu1 %558 }
 0x571   : > { %616 = vst.msk [vmem:[#allocation4] sm:$0xff] %vm407_vm0, %v614_v12  ;;  %v562_v14 = vmul.f32 %v559_v13, %v550_v11 }
 0x573   : > { %v615_v15 = vadd.f32 %v1561_v51, %v562_v14 }
 0x574   : > { %v802_v16 = vpop.permute.xlu1 %801 }
 0x575   : > { %617 = vst.msk [vmem:[#allocation4 + $0x8] sm:$0xff] %vm407_vm0, %v615_v15 }
 0x578   : > { %v807_v17 = vpop.permute.xlu1 %806  ;;  %v793_v18 = vld [vmem:[#allocation4] sm:$0xff] }
 0x579   : > { %v809_v21 = vmul.f32 %v802_v16, %v793_v18 }
 0x57c   : > { %v794_v19 = vld [vmem:[#allocation4 + $0x8] sm:$0xff] }
 0x57d   : > { %v810_v23 = vmul.f32 %v807_v17, %v794_v19 }
 0x5e1   : > { %v1195_v20 = vpop.permute.xlu1 %1194  ;;  %855 = sbr.rel (!%p1451_p13) target bundleno = 1520 (0x5f0), region = 167 }
 0x5e2   : > { %v1197_v27 = vunpack.i.h.bf16 %v1195_v20  ;;  %v1196_v49 = vunpack.i.l.bf16 %v1195_v20 }
 0x5e4   : > { %v838_v30 = vsel %vm407_vm0, %v810_v23, %v1197_v27  ;;  %v837_v31 = vsel %vm407_vm0, %v809_v21, %v1196_v49 }
 0x5e5   : > { %v1061_v32 = vpack.c.bf16 %v838_v30, %v837_v31 }
 0x5e7   : > { %1062 = vst [vmem:[%s388_s12] sm:$0xff] %v1061_v32  }
 0x5ee   : > { %v875_v51 = vld [vmem:[%s388_s12] sm:$0xf]  ;;  %v877_v33 = vld [vmem:[%s388_s12 + $0x4] sm:$0xf] }
 0x5ef   : > { %876 = vst [vmem:[%s859_s4] sm:$0xf] %v875_v51  ;;  %878 = vst [vmem:[%s859_s4 + $0xc] sm:$0xf] %v877_v33 }
 0x5f0 PF: > { %s13_s22 = sadd.s32 1, %s1310_s22   ;;  %s1653_s18 = sld [smem:[#allocation11_spill]] }
 0x5f1   : > { %p10_p4 = scmp.ge.s32.totalorder %s13_s22, 8   ;;  %s1654_s7 = sld [smem:[#allocation9_spill]] }
 0x5f2   : > { %s1655_s6 = sld [smem:[#allocation10_spill]]  ;;  %s1656_s12 = smov %s1274_s13 }
 0x5f3   : > { %s1657_s13 = smov %s1456_s26  ;;  %s1658_s14 = smov %s1282_s15 }
 0x5f4   : > { %s1659_s15 = smov %s1434_s28  ;;  %s1660_s16 = smov %s1290_s17 }
 0x5f5   : > { %s1663_s19 = smov %s1306_s21  ;;  %12 = sbr.rel (!%p10_p4) target bundleno = 8 (0x8), region = 258 }
 0x5f6   : > { %s1661_s17 = smov %s1653_s18  ;;  %s1662_s18 = smov %s1302_s20 }
 0x5f7   : > { %s1664_s20 = smov %s1654_s7 }
 0x5f8   : > { %s1665_s21 = smov %s1655_s6 }

// kernel: dino_v2_forward.39
= control target key start
LH: loop header
LB: loop body
LE: loop exit
PB: predicated region body
PF: predicated region fallthrough
CT: control target
= control target key end

     0   :  { %v1456_v1 = vmov 0   ;;  %vm1458_vm0 = vmmov 0   ;;  %s1870_s1 = inlined_call_operand.vmem [shape: bf16[640,384], index: 1, kind: input, shape index: {}]   ;;  %s1871_s0 = inlined_call_operand.vmem [shape: f32[8,640], index: 0, kind: input, shape index: {}]   ;;  %s1872_s2 = inlined_call_operand.vmem [shape: f32[1,384], index: 2, kind: input, shape index: {}]   ;;  %s1873_s3 = inlined_call_operand.vmem [shape: f32[8,384], index: 3, kind: output, shape index: {}]  }
   0x1   :  { %v1296_v0 = vld [vmem:[%s1870_s1 + $0x4] ss:$12 sps:$4 sm:$0xff]   ;;  %956 = vmatprep.mubr.bf16.mxu1 %v1456_v1  ;;  %v1300_v3 = vld [vmem:[%s1870_s1] ss:$12 sps:$4 sm:$0xff]   ;;  %v1302_v5 = vld [vmem:[%s1870_s1 + $0x1c] ss:$12 sps:$4 sm:$0xff]  }
   0x2   :  { %v1298_v2 = vld [vmem:[%s1870_s1 + $0x304] ss:$12 sps:$4 sm:$0xff]   ;;  %842 = vmatprep.subr.bf16.mxu0 %v1296_v0  ;;  %v1301_v4 = vld [vmem:[%s1870_s1 + $0x300] ss:$12 sps:$4 sm:$0xff]   ;;  %v1304_v6 = vld [vmem:[%s1870_s1 + $0x31c] ss:$12 sps:$4 sm:$0xff]  }
   0x3   :  { %924 = vmatprep.subr.bf16.mxu1 %v1298_v2  ;;  %843 = vmatpush1.bf16.msra.mxu0 %v1300_v3  ;;  %v1306_v7 = vld [vmem:[%s1870_s1 + $0x18] ss:$12 sps:$4 sm:$0xff]   ;;  %v1308_v9 = vld [vmem:[%s1870_s1 + $0x34] ss:$12 sps:$4 sm:$0xff]   ;;  %v1312_v11 = vld [vmem:[%s1870_s1 + $0x30] ss:$12 sps:$4 sm:$0xff]  }
   0x4   :  { %925 = vmatpush1.bf16.msra.mxu1 %v1301_v4  ;;  %844 = vmatprep.subr.bf16.mxu0 %v1302_v5  ;;  %v1307_v8 = vld [vmem:[%s1870_s1 + $0x318] ss:$12 sps:$4 sm:$0xff]   ;;  %v1310_v10 = vld [vmem:[%s1870_s1 + $0x334] ss:$12 sps:$4 sm:$0xff]   ;;  %v1313_v12 = vld [vmem:[%s1870_s1 + $0x330] ss:$12 sps:$4 sm:$0xff]  }
   0x5   :  { %926 = vmatprep.subr.bf16.mxu1 %v1304_v6  ;;  %v1314_v13 = vld [vmem:[%s1870_s1 + $0x4c] ss:$12 sps:$4 sm:$0xff]   ;;  %v1318_v15 = vld [vmem:[%s1870_s1 + $0x48] ss:$12 sps:$4 sm:$0xff]   ;;  %v1320_v17 = vld [vmem:[%s1870_s1 + $0x64] ss:$12 sps:$4 sm:$0xff]  }
   0x6   :  { %v1316_v14 = vld [vmem:[%s1870_s1 + $0x34c] ss:$12 sps:$4 sm:$0xff]   ;;  %v1319_v16 = vld [vmem:[%s1870_s1 + $0x348] ss:$12 sps:$4 sm:$0xff]   ;;  %v1322_v18 = vld [vmem:[%s1870_s1 + $0x364] ss:$12 sps:$4 sm:$0xff]  }
   0x7   :  { %845 = vmatpush1.bf16.msra.mxu0 %v1306_v7  ;;  %v1324_v19 = vld [vmem:[%s1870_s1 + $0x60] ss:$12 sps:$4 sm:$0xff]   ;;  %v1326_v21 = vld [vmem:[%s1870_s1 + $0x7c] ss:$12 sps:$4 sm:$0xff]   ;;  %v1330_v23 = vld [vmem:[%s1870_s1 + $0x78] ss:$12 sps:$4 sm:$0xff]  }
   0x8   :  { %927 = vmatpush1.bf16.msra.mxu1 %v1307_v8  ;;  %846 = vmatprep.subr.bf16.mxu0 %v1308_v9  ;;  %v1325_v20 = vld [vmem:[%s1870_s1 + $0x360] ss:$12 sps:$4 sm:$0xff]   ;;  %v1328_v22 = vld [vmem:[%s1870_s1 + $0x37c] ss:$12 sps:$4 sm:$0xff]   ;;  %v1331_v24 = vld [vmem:[%s1870_s1 + $0x378] ss:$12 sps:$4 sm:$0xff]  }
   0x9   :  { %928 = vmatprep.subr.bf16.mxu1 %v1310_v10  ;;  %v1332_v25 = vld [vmem:[%s1870_s1 + $0x94] ss:$12 sps:$4 sm:$0xff]   ;;  %v1336_v27 = vld [vmem:[%s1870_s1 + $0x90] ss:$12 sps:$4 sm:$0xff]   ;;  %v1338_v29 = vld [vmem:[%s1870_s1 + $0xac] ss:$12 sps:$4 sm:$0xff]  }
   0xa   :  { %v1334_v26 = vld [vmem:[%s1870_s1 + $0x394] ss:$12 sps:$4 sm:$0xff]   ;;  %v1337_v28 = vld [vmem:[%s1870_s1 + $0x390] ss:$12 sps:$4 sm:$0xff]   ;;  %v1340_v30 = vld [vmem:[%s1870_s1 + $0x3ac] ss:$12 sps:$4 sm:$0xff]  }
   0xb   :  { %847 = vmatpush1.bf16.msra.mxu0 %v1312_v11  ;;  %v1342_v31 = vld [vmem:[%s1870_s1 + $0xa8] ss:$12 sps:$4 sm:$0xff]   ;;  %v1344_v33 = vld [vmem:[%s1870_s1 + $0xc4] ss:$12 sps:$4 sm:$0xff]   ;;  %v1347_v36 = vld [vmem:[%s1870_s1 + $0xc0] ss:$12 sps:$4 sm:$0xff]  }
   0xc   :  { %929 = vmatpush1.bf16.msra.mxu1 %v1313_v12  ;;  %848 = vmatprep.subr.bf16.mxu0 %v1314_v13  ;;  %v1343_v32 = vld [vmem:[%s1870_s1 + $0x3a8] ss:$12 sps:$4 sm:$0xff]   ;;  %v19_v34 = vld [vmem:[%s1871_s0 + $0x20] sm:$0xff]  ;;  %v1357_v45 = vld [vmem:[%s1870_s1 + $0xf0] ss:$12 sps:$4 sm:$0xff]  }
   0xd   :  { %930 = vmatprep.subr.bf16.mxu1 %v1316_v14  ;;  %v1346_v35 = vld [vmem:[%s1870_s1 + $0xc8] ss:$12 sps:$4 sm:$0xff]   ;;  %v1587_v37 = vpack.c.bf16 %v19_v34, %v19_v34  ;;  %v1351_v40 = vld [vmem:[%s1870_s1 + $0xe0] ss:$12 sps:$4 sm:$0xff]   ;;  %v1352_v41 = vld [vmem:[%s1870_s1 + $0xd8] ss:$12 sps:$4 sm:$0xff]  }
   0xe   :  { %v1348_v38 = vld [vmem:[%s1870_s1 + $0x8] ss:$12 sps:$4 sm:$0xff]   ;;  %v1353_v42 = vld [vmem:[%s1870_s1 + $0x20] ss:$12 sps:$4 sm:$0xff]   ;;  %v1356_v44 = vld [vmem:[%s1870_s1 + $0xf8] ss:$12 sps:$4 sm:$0xff]  }
   0xf   :  { %849 = vmatpush1.bf16.msra.mxu0 %v1318_v15  ;;  %v1349_v39 = vld [vmem:[%s1870_s1 + $0xdc] ss:$12 sps:$4 sm:$0xff]   ;;  %v1354_v43 = vld [vmem:[%s1870_s1 + $0xf4] ss:$12 sps:$4 sm:$0xff]   ;;  %v1358_v46 = vld [vmem:[%s1870_s1 + $0x38] ss:$12 sps:$4 sm:$0xff]  }
  0x10   :  { %931 = vmatpush1.bf16.msra.mxu1 %v1319_v16  ;;  %850 = vmatprep.subr.bf16.mxu0 %v1320_v17  ;;  %v1359_v47 = vld [vmem:[%s1870_s1 + $0x10c] ss:$12 sps:$4 sm:$0xff]   ;;  %v1361_v48 = vld [vmem:[%s1870_s1 + $0x110] ss:$12 sps:$4 sm:$0xff]   ;;  %v1362_v49 = vld [vmem:[%s1870_s1 + $0x108] ss:$12 sps:$4 sm:$0xff]  }
  0x11   :  { %932 = vmatprep.subr.bf16.mxu1 %v1322_v18  ;;  %v1363_v50 = vld [vmem:[%s1870_s1 + $0x50] ss:$12 sps:$4 sm:$0xff]   ;;  %v1366_v52 = vld [vmem:[%s1870_s1 + $0x128] ss:$12 sps:$4 sm:$0xff]   ;;  %v1367_v53 = vld [vmem:[%s1870_s1 + $0x120] ss:$12 sps:$4 sm:$0xff]  }
  0x12   :  { %v1364_v51 = vld [vmem:[%s1870_s1 + $0x124] ss:$12 sps:$4 sm:$0xff]   ;;  %v1368_v54 = vld [vmem:[%s1870_s1 + $0x68] ss:$12 sps:$4 sm:$0xff]   ;;  %v1371_v57 = vld [vmem:[%s1870_s1 + $0x140] ss:$12 sps:$4 sm:$0xff]  }
  0x13   :  { %851 = vmatpush1.bf16.msra.mxu0 %v1324_v19  ;;  %v16_v55 = vld [vmem:[%s1871_s0 + $0x8] sm:$0xff]  ;;  %v1372_v59 = vld [vmem:[%s1870_s1 + $0x138] ss:$12 sps:$4 sm:$0xff]   ;;  %v1374_v61 = vld [vmem:[%s1870_s1 + $0x154] ss:$12 sps:$4 sm:$0xff]  }
  0x14   :  { %933 = vmatpush1.bf16.msra.mxu1 %v1325_v20  ;;  %852 = vmatprep.subr.bf16.mxu0 %v1326_v21  ;;  %v1369_v56 = vld [vmem:[%s1870_s1 + $0x13c] ss:$12 sps:$4 sm:$0xff]   ;;  %v21_v58 = vpack.c.bf16 %v16_v55, %v16_v55  ;;  %v1373_v60 = vld [vmem:[%s1870_s1 + $0x80] ss:$12 sps:$4 sm:$0xff]   ;;  %v1376_v62 = vld [vmem:[%s1870_s1 + $0x158] ss:$12 sps:$4 sm:$0xff]  }
  0x15   :  { %934 = vmatprep.subr.bf16.mxu1 %v1328_v22  ;;  %v1377_v63 = vld [vmem:[%s1870_s1 + $0x150] ss:$12 sps:$4 sm:$0xff]   ;;  %v1378_v0 = vld [vmem:[%s1870_s1 + $0x98] ss:$12 sps:$4 sm:$0xff]   ;;  %v1382_v3 = vld [vmem:[%s1870_s1 + $0x168] ss:$12 sps:$4 sm:$0xff]  }
  0x16   :  { %874 = vmatprep.mubr.bf16.mxu0 %v21_v58  ;;  %v1379_v1 = vld [vmem:[%s1870_s1 + $0x16c] ss:$12 sps:$4 sm:$0xff]   ;;  %v1381_v2 = vld [vmem:[%s1870_s1 + $0x170] ss:$12 sps:$4 sm:$0xff]   ;;  %v15_v6 = vld [vmem:[%s1871_s0] sm:$0xff] }
  0x17   :  { %853 = vmatpush1.bf16.msra.mxu0 %v1330_v23  ;;  %v1383_v4 = vld [vmem:[%s1870_s1 + $0xb0] ss:$12 sps:$4 sm:$0xff]   ;;  %v1387_v7 = vld [vmem:[%s1870_s1 + $0x248] ss:$12 sps:$4 sm:$0xff]   ;;  %v1384_v8 = vld [vmem:[%s1870_s1 + $0x180] ss:$12 sps:$4 sm:$0xff]   ;;  %v20_v9 = vpack.c.bf16 %v15_v6, %v15_v6 }
  0x18   :  { %935 = vmatpush1.bf16.msra.mxu1 %v1331_v24  ;;  %854 = vmatprep.subr.bf16.mxu0 %v1332_v25  ;;  %v1386_v5 = vld [vmem:[%s1870_s1 + $0x184] ss:$12 sps:$4 sm:$0xff]   ;;  %v1388_v10 = vld [vmem:[%s1870_s1 + $0x188] ss:$12 sps:$4 sm:$0xff]   ;;  %v1392_v12 = vld [vmem:[%s1870_s1 + $0x260] ss:$12 sps:$4 sm:$0xff]  }
  0x19   :  { %936 = vmatprep.subr.bf16.mxu1 %v1334_v26  ;;  %v1391_v11 = vld [vmem:[%s1870_s1 + $0x19c] ss:$12 sps:$4 sm:$0xff]   ;;  %v1389_v13 = vld [vmem:[%s1870_s1 + $0x198] ss:$12 sps:$4 sm:$0xff]   ;;  %v1393_v14 = vld [vmem:[%s1870_s1 + $0x1a0] ss:$12 sps:$4 sm:$0xff]  }
  0x1a   :  { %v1396_v15 = vld [vmem:[%s1870_s1 + $0x1b4] ss:$12 sps:$4 sm:$0xff]   ;;  %v1397_v16 = vld [vmem:[%s1870_s1 + $0x278] ss:$12 sps:$4 sm:$0xff]   ;;  %v1394_v17 = vld [vmem:[%s1870_s1 + $0x1b0] ss:$12 sps:$4 sm:$0xff]  }
  0x1b   :  { %855 = vmatpush1.bf16.msra.mxu0 %v1336_v27  ;;  %v1398_v18 = vld [vmem:[%s1870_s1 + $0x1b8] ss:$12 sps:$4 sm:$0xff]   ;;  %v1402_v20 = vld [vmem:[%s1870_s1 + $0x290] ss:$12 sps:$4 sm:$0xff]   ;;  %v1399_v21 = vld [vmem:[%s1870_s1 + $0x1c8] ss:$12 sps:$4 sm:$0xff]  }
  0x1c   :  { %937 = vmatpush1.bf16.msra.mxu1 %v1337_v28  ;;  %856 = vmatprep.subr.bf16.mxu0 %v1338_v29  ;;  %v1401_v19 = vld [vmem:[%s1870_s1 + $0x1cc] ss:$12 sps:$4 sm:$0xff]   ;;  %v1403_v23 = vld [vmem:[%s1870_s1 + $0x1d0] ss:$12 sps:$4 sm:$0xff]   ;;  %v1407_v26 = vld [vmem:[%s1870_s1 + $0x2a8] ss:$12 sps:$4 sm:$0xff]  }
  0x1d   :  { %938 = vmatprep.subr.bf16.mxu1 %v1340_v30  ;;  %v18_v22 = vld [vmem:[%s1871_s0 + $0x18] sm:$0xff]  ;;  %v1406_v25 = vld [vmem:[%s1870_s1 + $0x1e4] ss:$12 sps:$4 sm:$0xff]   ;;  %v1404_v27 = vld [vmem:[%s1870_s1 + $0x1e0] ss:$12 sps:$4 sm:$0xff]  }
  0x1e   :  { %v23_v24 = vpack.c.bf16 %v18_v22, %v18_v22  ;;  %v1408_v28 = vld [vmem:[%s1870_s1 + $0x1e8] ss:$12 sps:$4 sm:$0xff]   ;;  %v1412_v30 = vld [vmem:[%s1870_s1 + $0x2c0] ss:$12 sps:$4 sm:$0xff]   ;;  %v1417_v34 = vld [vmem:[%s1870_s1 + $0x2d8] ss:$12 sps:$4 sm:$0xff]  }
  0x1f   :  { %857 = vmatpush1.bf16.msra.mxu0 %v1342_v31  ;;  %v1411_v29 = vld [vmem:[%s1870_s1 + $0x1fc] ss:$12 sps:$4 sm:$0xff]   ;;  %v1409_v31 = vld [vmem:[%s1870_s1 + $0x1f8] ss:$12 sps:$4 sm:$0xff]  }
  0x20   :  { %939 = vmatpush1.bf16.msra.mxu1 %v1343_v32  ;;  %858 = vmatprep.subr.bf16.mxu0 %v1344_v33  ;;  %v1413_v32 = vld [vmem:[%s1870_s1 + $0x200] ss:$12 sps:$4 sm:$0xff]   ;;  %v1436_v55 = vld [vmem:[%s1870_s1 + $0x288] ss:$12 sps:$4 sm:$0xff]  }
  0x21   :  { %1212 = vmatprep.subr.bf16.mxu1 %v1346_v35  ;;  %v1416_v33 = vld [vmem:[%s1870_s1 + $0x214] ss:$12 sps:$4 sm:$0xff]   ;;  %v1414_v35 = vld [vmem:[%s1870_s1 + $0x210] ss:$12 sps:$4 sm:$0xff]  }
  0x23   :  { %957 = vmatmul.mubr.bf16.vlgmr.msra.gmra.mrb[0].mxu1 %v1587_v37  ;;  %859 = vmatpush1.bf16.msra.mxu0 %v1347_v36  ;;  %v1418_v36 = vld [vmem:[%s1870_s1 + $0x218] ss:$12 sps:$4 sm:$0xff]  }
  0x24   :  { %1213 = vmatpush3.bf16.msra.mxu1 %v1348_v38  ;;  %860 = vmatprep.subr.bf16.mxu0 %v1349_v39  ;;  %v1421_v38 = vld [vmem:[%s1870_s1 + $0x22c] ss:$12 sps:$4 sm:$0xff]   ;;  %v1422_v39 = vld [vmem:[%s1870_s1 + $0x2f0] ss:$12 sps:$4 sm:$0xff]  }
  0x25   :  { %1214 = vmatprep.subr.bf16.mxu1 %v1351_v40  ;;  %997 = vmatprep.mubr.bf16.mxu1 %v21_v58  ;;  %v1419_v40 = vld [vmem:[%s1870_s1 + $0x228] ss:$12 sps:$4 sm:$0xff]   ;;  %v1440_v58 = vld [vmem:[%s1870_s1 + $0x2a0] ss:$12 sps:$4 sm:$0xff]  }
  0x27   :  { %861 = vmatpush1.bf16.msra.mxu0 %v1352_v41  ;;  %v1423_v41 = vld [vmem:[%s1870_s1 + $0x230] ss:$12 sps:$4 sm:$0xff]  }
  0x28   :  { %1215 = vmatpush3.bf16.msra.mxu1 %v1353_v42  ;;  %862 = vmatprep.subr.bf16.mxu0 %v1354_v43  ;;  %v17_v42 = vld [vmem:[%s1871_s0 + $0x10] sm:$0xff] }
  0x29   :  { %1216 = vmatprep.subr.bf16.mxu1 %v1356_v44  ;;  %v1426_v43 = vld [vmem:[%s1870_s1 + $0x244] ss:$12 sps:$4 sm:$0xff]   ;;  %v22_v44 = vpack.c.bf16 %v17_v42, %v17_v42 }
  0x2b   :  { %863 = vmatpush1.bf16.msra.mxu0 %v1357_v45  ;;  %v1424_v45 = vld [vmem:[%s1870_s1 + $0x240] ss:$12 sps:$4 sm:$0xff]  }
  0x2c   :  { %1217 = vmatpush3.bf16.msra.mxu1 %v1358_v46  ;;  %864 = vmatprep.subr.bf16.mxu0 %v1359_v47  ;;  %v1427_v46 = vld [vmem:[%s1870_s1 + $0x308] ss:$12 sps:$4 sm:$0xff]   ;;  %v1457_v47 = vmov 0.0  }
  0x2d   :  { %1218 = vmatprep.subr.bf16.mxu1 %v1361_v48  ;;  %v1430_v48 = vld [vmem:[%s1870_s1 + $0x25c] ss:$12 sps:$4 sm:$0xff]  }
  0x2f   :  { %865 = vmatpush1.bf16.msra.mxu0 %v1362_v49  ;;  %v1428_v49 = vld [vmem:[%s1870_s1 + $0x258] ss:$12 sps:$4 sm:$0xff]  }
  0x30   :  { %1219 = vmatpush3.bf16.msra.mxu1 %v1363_v50  ;;  %866 = vmatprep.subr.bf16.mxu0 %v1364_v51  ;;  %v1431_v50 = vld [vmem:[%s1870_s1 + $0x320] ss:$12 sps:$4 sm:$0xff]  }
  0x31   :  { %1220 = vmatprep.subr.bf16.mxu1 %v1366_v52  ;;  %v1434_v51 = vld [vmem:[%s1870_s1 + $0x274] ss:$12 sps:$4 sm:$0xff]   ;;  %v1432_v52 = vld [vmem:[%s1870_s1 + $0x270] ss:$12 sps:$4 sm:$0xff]  }
  0x33   :  { %867 = vmatpush1.bf16.msra.mxu0 %v1367_v53  ;;  %v1435_v53 = vld [vmem:[%s1870_s1 + $0x338] ss:$12 sps:$4 sm:$0xff]  }
  0x34   :  { %1221 = vmatpush3.bf16.msra.mxu1 %v1368_v54  ;;  %868 = vmatprep.subr.bf16.mxu0 %v1369_v56  ;;  %v1438_v54 = vld [vmem:[%s1870_s1 + $0x28c] ss:$12 sps:$4 sm:$0xff]   ;;  %v1439_v56 = vld [vmem:[%s1870_s1 + $0x350] ss:$12 sps:$4 sm:$0xff]  }
  0x35   :  { %1222 = vmatprep.subr.bf16.mxu1 %v1371_v57  ;;  %v1442_v57 = vld [vmem:[%s1870_s1 + $0x2a4] ss:$12 sps:$4 sm:$0xff]  }
  0x37   :  { %869 = vmatpush1.bf16.msra.mxu0 %v1372_v59  ;;  %v1443_v59 = vld [vmem:[%s1870_s1 + $0x368] ss:$12 sps:$4 sm:$0xff]  }
  0x38   :  { %1223 = vmatpush3.bf16.msra.mxu1 %v1373_v60  ;;  %870 = vmatprep.subr.bf16.mxu0 %v1374_v61  ;;  %v1446_v60 = vld [vmem:[%s1870_s1 + $0x2bc] ss:$12 sps:$4 sm:$0xff]   ;;  %v1444_v61 = vld [vmem:[%s1870_s1 + $0x2b8] ss:$12 sps:$4 sm:$0xff]  }
  0x39   :  { %1224 = vmatprep.subr.bf16.mxu1 %v1376_v62  ;;  %v1447_v62 = vld [vmem:[%s1870_s1 + $0x380] ss:$12 sps:$4 sm:$0xff]  }
  0x3b   :  { %871 = vmatpush1.bf16.msra.mxu0 %v1377_v63  ;;  %v1450_v63 = vld [vmem:[%s1870_s1 + $0x2d4] ss:$12 sps:$4 sm:$0xff]  }
  0x3c   :  { %1225 = vmatpush3.bf16.msra.mxu1 %v1378_v0  ;;  %872 = vmatprep.subr.bf16.mxu0 %v1379_v1  ;;  %v1448_v0 = vld [vmem:[%s1870_s1 + $0x2d0] ss:$12 sps:$4 sm:$0xff]   ;;  %v1451_v1 = vld [vmem:[%s1870_s1 + $0x398] ss:$12 sps:$4 sm:$0xff]  }
  0x3d   :  { %1226 = vmatprep.subr.bf16.mxu1 %v1381_v2  ;;  %v1454_v2 = vld [vmem:[%s1870_s1 + $0x2ec] ss:$12 sps:$4 sm:$0xff]  }
  0x3f   :  { %873 = vmatpush1.bf16.msra.mxu0 %v1382_v3  ;;  %v1452_v3 = vld [vmem:[%s1870_s1 + $0x2e8] ss:$12 sps:$4 sm:$0xff]  }
  0x40   :  { %1227 = vmatpush3.bf16.msra.mxu1 %v1383_v4  ;;  %883 = vmatprep.subr.bf16.mxu0 %v1386_v5  ;;  %v1455_v4 = vld [vmem:[%s1870_s1 + $0x3b0] ss:$12 sps:$4 sm:$0xff]  }
  0x41   :  { %1234 = vmatprep.subr.bf16.mxu1 %v1387_v7 }
  0x42   :  { %875 = vmatmul.mubr.bf16.vlgmr.msra.gmra.mrb[0].mxu0 %v20_v9 }
  0x43   :  { %998 = vmatmul.mubr.bf16.vlgmr.msra.gmra.mrb[4].mxu1 %v20_v9  ;;  %884 = vmatpush1.bf16.msra.mxu0 %v1384_v8 }
  0x44   :  { %1235 = vmatpush3.bf16.msra.mxu1 %v1388_v10  ;;  %885 = vmatprep.subr.bf16.mxu0 %v1391_v11 }
  0x45   :  { %1236 = vmatprep.subr.bf16.mxu1 %v1392_v12  ;;  %1037 = vmatprep.mubr.bf16.mxu1 %v23_v24 }
  0x46   :  { %915 = vmatprep.mubr.bf16.mxu0 %v23_v24 }
  0x47   :  { %886 = vmatpush1.bf16.msra.mxu0 %v1389_v13 }
  0x48   :  { %1237 = vmatpush3.bf16.msra.mxu1 %v1393_v14  ;;  %887 = vmatprep.subr.bf16.mxu0 %v1396_v15  ;;  %v187_v14 = vlaneseq }
  0x49   :  { %1238 = vmatprep.subr.bf16.mxu1 %v1397_v16 }
  0x4a   :  { %v188_v15 = vshrl.u32 %v187_v14, 7 }
  0x4b   :  { %888 = vmatpush1.bf16.msra.mxu0 %v1394_v17  ;;  %v185_v17 = vld [vmem:[%s1872_s2] sm:$0x7] }
  0x4c   :  { %1239 = vmatpush3.bf16.msra.mxu1 %v1398_v18  ;;  %889 = vmatprep.subr.bf16.mxu0 %v1401_v19  ;;  %v197_v16 = vsub.s32 2, %v188_v15 }
  0x4d   :  { %1240 = vmatprep.subr.bf16.mxu1 %v1402_v20 }
  0x4e   :  { %v198_v18 = vrot.slane %v185_v17, %v197_v16 }
  0x4f   :  { %890 = vmatpush1.bf16.msra.mxu0 %v1399_v21 }
  0x50   :  { %1241 = vmatpush3.bf16.msra.mxu1 %v1403_v23  ;;  %891 = vmatprep.subr.bf16.mxu0 %v1406_v25  ;;  %v189_v25 = vsub.s32 0, %v188_v15 }
  0x51   :  { %1242 = vmatprep.subr.bf16.mxu1 %v1407_v26  ;;  %v193_v26 = vsub.s32 1, %v188_v15 }
  0x53   :  { %892 = vmatpush1.bf16.msra.mxu0 %v1404_v27  ;;  %v190_v27 = vrot.slane %v185_v17, %v189_v25 }
  0x54   :  { %1243 = vmatpush3.bf16.msra.mxu1 %v1408_v28  ;;  %893 = vmatprep.subr.bf16.mxu0 %v1411_v29  ;;  %v194_v28 = vrot.slane %v185_v17, %v193_v26 }
  0x55   :  { %1244 = vmatprep.subr.bf16.mxu1 %v1412_v30 }
  0x57   :  { %894 = vmatpush1.bf16.msra.mxu0 %v1409_v31 }
  0x58   :  { %1245 = vmatpush3.bf16.msra.mxu1 %v1413_v32  ;;  %895 = vmatprep.subr.bf16.mxu0 %v1416_v33 }
  0x59   :  { %1246 = vmatprep.subr.bf16.mxu1 %v1417_v34 }
  0x5b   :  { %896 = vmatpush1.bf16.msra.mxu0 %v1414_v35 }
  0x5c   :  { %1247 = vmatpush3.bf16.msra.mxu1 %v1418_v36  ;;  %897 = vmatprep.subr.bf16.mxu0 %v1421_v38 }
  0x5d   :  { %1248 = vmatprep.subr.bf16.mxu1 %v1422_v39 }
  0x5f   :  { %898 = vmatpush1.bf16.msra.mxu0 %v1419_v40 }
  0x60   :  { %1249 = vmatpush3.bf16.msra.mxu1 %v1423_v41  ;;  %899 = vmatprep.subr.bf16.mxu0 %v1426_v43 }
  0x61   :  { %1265 = vmatprep.subr.bf16.mxu1 %v1457_v47 }
  0x63   :  { %1038 = vmatmul.mubr.bf16.vlgmr.msra.gmra.mrb[8].mxu1 %v22_v44  ;;  %900 = vmatpush1.bf16.msra.mxu0 %v1424_v45 }
  0x64   :  { %1266 = vmatpush3.bf16.msra.mxu1 %v1427_v46  ;;  %901 = vmatprep.subr.bf16.mxu0 %v1430_v48 }
  0x65   :  { %1267 = vmatprep.subr.bf16.mxu1 %v1457_v47  ;;  %1281 = vmatprep.mubr.msk.bf16.mxu1 %vm1458_vm0, %v1457_v47 }
  0x67   :  { %902 = vmatpush1.bf16.msra.mxu0 %v1428_v49 }
  0x68   :  { %1268 = vmatpush3.bf16.msra.mxu1 %v1431_v50  ;;  %903 = vmatprep.subr.bf16.mxu0 %v1434_v51 }
  0x69   :  { %1269 = vmatprep.subr.bf16.mxu1 %v1457_v47 }
  0x6b   :  { %904 = vmatpush1.bf16.msra.mxu0 %v1432_v52 }
  0x6c   :  { %1270 = vmatpush3.bf16.msra.mxu1 %v1435_v53  ;;  %905 = vmatprep.subr.bf16.mxu0 %v1438_v54 }
  0x6d   :  { %1271 = vmatprep.subr.bf16.mxu1 %v1457_v47 }
  0x6f   :  { %906 = vmatpush1.bf16.msra.mxu0 %v1436_v55 }
  0x70   :  { %1272 = vmatpush3.bf16.msra.mxu1 %v1439_v56  ;;  %907 = vmatprep.subr.bf16.mxu0 %v1442_v57 }
  0x71   :  { %1273 = vmatprep.subr.bf16.mxu1 %v1457_v47 }
  0x73   :  { %908 = vmatpush1.bf16.msra.mxu0 %v1440_v58 }
  0x74   :  { %1274 = vmatpush3.bf16.msra.mxu1 %v1443_v59  ;;  %909 = vmatprep.subr.bf16.mxu0 %v1446_v60 }
  0x75   :  { %1275 = vmatprep.subr.bf16.mxu1 %v1457_v47 }
  0x77   :  { %910 = vmatpush1.bf16.msra.mxu0 %v1444_v61 }
  0x78   :  { %1276 = vmatpush3.bf16.msra.mxu1 %v1447_v62  ;;  %911 = vmatprep.subr.bf16.mxu0 %v1450_v63 }
  0x79   :  { %1277 = vmatprep.subr.bf16.mxu1 %v1457_v47 }
  0x7b   :  { %912 = vmatpush1.bf16.msra.mxu0 %v1448_v0 }
  0x7c   :  { %1278 = vmatpush3.bf16.msra.mxu1 %v1451_v1  ;;  %913 = vmatprep.subr.bf16.mxu0 %v1454_v2 }
  0x7d   :  { %1279 = vmatprep.subr.bf16.mxu1 %v1457_v47 }
  0x7f   :  { %914 = vmatpush1.bf16.msra.mxu0 %v1452_v3 }
  0x80   :  { %1280 = vmatpush3.bf16.msra.mxu1 %v1455_v4 }
  0x82   :  { %916 = vmatmul.mubr.bf16.vlgmr.msra.gmra.mrb[0].mxu0 %v22_v44 }
  0x83   :  { %1282 = vmatmul.mubr.bf16.vlgmr.msra.gmra.mrb[12].mxu1 %v1587_v37 }
  0xf6   :  { %v958_v5 = vpop.f32.mrb[0].mxu1 }
  0xf7   :  { %v960_v6 = vpop.f32.mrb[1].mxu1 }
  0xf8   :  { %v962_v7 = vpop.f32.mrb[2].mxu1 }
  0xf9   :  { %v963_v8 = vpop.f32.mrb[3].mxu1 }
 0x116   :  { %v1228_v9 = vpop.f32.mrb[4].mxu1 }
 0x117   :  { %v1229_v10 = vpop.f32.mrb[5].mxu1 }
 0x118   :  { %v1230_v11 = vadd.f32 %v1229_v10, %v1228_v9  ;;  %v1231_v12 = vpop.f32.mrb[6].mxu1 }
 0x119   :  { %v1232_v13 = vpop.f32.mrb[7].mxu1 }
 0x11a   :  { %v1000_v37 = vadd.f32 %v1230_v11, %v198_v18 }
 0x136   :  { %v1250_v19 = vpop.f32.mrb[8].mxu1 }
 0x137   :  { %v1251_v20 = vpop.f32.mrb[9].mxu1 }
 0x138   :  { %v1252_v21 = vadd.f32 %v1251_v20, %v1250_v19  ;;  %v1253_v22 = vpop.f32.mrb[10].mxu1 }
 0x139   :  { %v1254_v23 = vpop.f32.mrb[11].mxu1 }
 0x13a   :  { %v1040_v24 = vadd.f32 %v1252_v21, %v1000_v37 }
 0x155   :  { %v917_v29 = vpop.f32.mrb[0].mxu0 }
 0x156   :  { %v1079_v30 = vpop.f32.mrb[12].mxu1  ;;  %v1285_v31 = vadd.f32 %v917_v29, %v190_v27  ;;  %v919_v33 = vpop.f32.mrb[1].mxu0 }
 0x157   :  { %v1080_v32 = vadd.f32 %v1079_v30, %v1040_v24  ;;  %v1283_v34 = vpop.f32.mrb[13].mxu1  ;;  %v1287_v35 = vadd.f32 %v919_v33, %v194_v28  ;;  %v921_v36 = vpop.f32.mrb[2].mxu0 }
 0x158   :  { %v1082_v38 = vpop.f32.mrb[14].mxu1  ;;  %v1286_v39 = vadd.f32 %v1285_v31, %v958_v5  ;;  %v922_v40 = vpop.f32.mrb[3].mxu0 }
 0x159   :  { %1087 = vst [vmem:[%s1873_s3 + $0x10] sm:$0xff] %v1080_v32  ;;  %v1284_v41 = vpop.f32.mrb[15].mxu1  ;;  %v1288_v42 = vadd.f32 %v1287_v35, %v960_v6 }
 0x15a   :  { %1085 = vst [vmem:[%s1873_s3] sm:$0xff] %v1286_v39 }
 0x15b   :  { %1086 = vst [vmem:[%s1873_s3 + $0x8] sm:$0xff] %v1288_v42 }

// kernel: dino_v2_forward.40
= control target key start
LH: loop header
LB: loop body
LE: loop exit
PB: predicated region body
PF: predicated region fallthrough
CT: control target
= control target key end

     0   :  { %s3933_s0 = inlined_call_operand.vmem [shape: f32[32,384], index: 0, kind: input, shape index: {}]   ;;  %s3934_s3 = inlined_call_operand.vmem [shape: bf16[384,1152], index: 3, kind: input, shape index: {}]   ;;  %s3935_s1 = inlined_call_operand.vmem [shape: f32[1,384], index: 1, kind: input, shape index: {}]   ;;  %s3936_s2 = inlined_call_operand.vmem [shape: f32[1,384], index: 2, kind: input, shape index: {}]   ;;  %s3937_s4 = inlined_call_operand.vmem [shape: f32[1,1152], index: 4, kind: input, shape index: {}]   ;;  %s3938_s5 = inlined_call_operand.vmem [shape: bf16[32,1152], index: 5, kind: output, shape index: {}]  }
   0x1   :  { %v2967_v0 = vld [vmem:[%s3933_s0] sm:$0xff]  ;;  %v2972_v1 = vld [vmem:[%s3933_s0 + $0x8] sm:$0xff]  ;;  %v2977_v2 = vld [vmem:[%s3933_s0 + $0x10] sm:$0xff] }
   0x2   :  { %v35_v3 = vadd.f32 %v2972_v1, %v2967_v0  ;;  %v2984_v4 = vld [vmem:[%s3933_s0 + $0x30] sm:$0xff]  ;;  %v2989_v5 = vld [vmem:[%s3933_s0 + $0x38] sm:$0xff]  ;;  %v2994_v6 = vld [vmem:[%s3933_s0 + $0x40] sm:$0xff] }
   0x3   :  { %v43_v7 = vadd.f32 %v2989_v5, %v2984_v4  ;;  %v3001_v8 = vld [vmem:[%s3933_s0 + $0x18] sm:$0xff]  ;;  %v3006_v9 = vld [vmem:[%s3933_s0 + $0x20] sm:$0xff]  ;;  %v3011_v10 = vld [vmem:[%s3933_s0 + $0x28] sm:$0xff] }
   0x4   :  { %v36_v11 = vadd.f32 %v35_v3, %v2977_v2  ;;  %v39_v12 = vadd.f32 %v3006_v9, %v3001_v8  ;;  %v3019_v13 = vld [vmem:[%s3933_s0 + $0x48] sm:$0xff]  ;;  %v3024_v14 = vld [vmem:[%s3933_s0 + $0x50] sm:$0xff]  ;;  %v3029_v15 = vld [vmem:[%s3933_s0 + $0x58] sm:$0xff] }
   0x5   :  { %v44_v16 = vadd.f32 %v43_v7, %v2994_v6  ;;  %v47_v17 = vadd.f32 %v3024_v14, %v3019_v13  ;;  %v2613_v20 = vld [vmem:[%s3934_s3 + $0x4] ss:$36 sps:$4 sm:$0xff]   ;;  %v2615_v21 = vld [vmem:[%s3934_s3 + $0xc] ss:$36 sps:$4 sm:$0xff]   ;;  %v2621_v25 = vld [vmem:[%s3934_s3 + $0x54] ss:$36 sps:$4 sm:$0xff]  }
   0x6   :  { %37 = vadd.xlane.f32.xlu0 %v36_v11  ;;  %v40_v18 = vadd.f32 %v39_v12, %v3011_v10  ;;  %1575 = vmatprep.subr.bf16.mxu0 %v2613_v20  ;;  %v2617_v22 = vld [vmem:[%s3934_s3] ss:$36 sps:$4 sm:$0xff]   ;;  %v2618_v23 = vld [vmem:[%s3934_s3 + $0x8] ss:$36 sps:$4 sm:$0xff]   ;;  %v2624_v27 = vld [vmem:[%s3934_s3 + $0x50] ss:$36 sps:$4 sm:$0xff]  }
   0x7   :  { %45 = vadd.xlane.f32.xlu1 %v44_v16  ;;  %v48_v19 = vadd.f32 %v47_v17, %v3029_v15  ;;  %1681 = vmatprep.subr.bf16.mxu1 %v2615_v21  ;;  %v2619_v24 = vld [vmem:[%s3934_s3 + $0x4c] ss:$36 sps:$4 sm:$0xff]   ;;  %v2625_v28 = vld [vmem:[%s3934_s3 + $0x94] ss:$36 sps:$4 sm:$0xff]   ;;  %v2627_v29 = vld [vmem:[%s3934_s3 + $0x9c] ss:$36 sps:$4 sm:$0xff]  }
   0x8   :  { %1576 = vmatpush1.bf16.msra.mxu0 %v2617_v22  ;;  %1682 = vmatpush1.bf16.msra.mxu1 %v2618_v23  ;;  %v2623_v26 = vld [vmem:[%s3934_s3 + $0x48] ss:$36 sps:$4 sm:$0xff]   ;;  %v2629_v30 = vld [vmem:[%s3934_s3 + $0x90] ss:$36 sps:$4 sm:$0xff]   ;;  %v2630_v31 = vld [vmem:[%s3934_s3 + $0x98] ss:$36 sps:$4 sm:$0xff]  }
   0x9   :  { %1577 = vmatprep.subr.bf16.mxu0 %v2619_v24  ;;  %1683 = vmatprep.subr.bf16.mxu1 %v2621_v25  ;;  %v2631_v32 = vld [vmem:[%s3934_s3 + $0xdc] ss:$36 sps:$4 sm:$0xff]   ;;  %v2633_v33 = vld [vmem:[%s3934_s3 + $0xe4] ss:$36 sps:$4 sm:$0xff]   ;;  %v2639_v37 = vld [vmem:[%s3934_s3 + $0x12c] ss:$36 sps:$4 sm:$0xff]  }
   0xa   :  { %41 = vadd.xlane.f32.xlu0 %v40_v18  ;;  %v2635_v34 = vld [vmem:[%s3934_s3 + $0xd8] ss:$36 sps:$4 sm:$0xff]   ;;  %v2636_v35 = vld [vmem:[%s3934_s3 + $0xe0] ss:$36 sps:$4 sm:$0xff]   ;;  %v2642_v39 = vld [vmem:[%s3934_s3 + $0x128] ss:$36 sps:$4 sm:$0xff]  }
   0xb   :  { %49 = vadd.xlane.f32.xlu1 %v48_v19  ;;  %v2637_v36 = vld [vmem:[%s3934_s3 + $0x124] ss:$36 sps:$4 sm:$0xff]   ;;  %v2643_v40 = vld [vmem:[%s3934_s3 + $0x16c] ss:$36 sps:$4 sm:$0xff]   ;;  %v2645_v41 = vld [vmem:[%s3934_s3 + $0x174] ss:$36 sps:$4 sm:$0xff]  }
   0xc   :  { %1578 = vmatpush1.bf16.msra.mxu0 %v2623_v26  ;;  %1684 = vmatpush1.bf16.msra.mxu1 %v2624_v27  ;;  %v2641_v38 = vld [vmem:[%s3934_s3 + $0x120] ss:$36 sps:$4 sm:$0xff]   ;;  %v2647_v42 = vld [vmem:[%s3934_s3 + $0x168] ss:$36 sps:$4 sm:$0xff]   ;;  %v2648_v43 = vld [vmem:[%s3934_s3 + $0x170] ss:$36 sps:$4 sm:$0xff]  }
   0xd   :  { %1579 = vmatprep.subr.bf16.mxu0 %v2625_v28  ;;  %1685 = vmatprep.subr.bf16.mxu1 %v2627_v29  ;;  %v2649_v44 = vld [vmem:[%s3934_s3 + $0x1b4] ss:$36 sps:$4 sm:$0xff]   ;;  %v2651_v45 = vld [vmem:[%s3934_s3 + $0x1bc] ss:$36 sps:$4 sm:$0xff]   ;;  %v2657_v49 = vld [vmem:[%s3934_s3 + $0x204] ss:$36 sps:$4 sm:$0xff]  }
   0xe   :  { %v2653_v46 = vld [vmem:[%s3934_s3 + $0x1b0] ss:$36 sps:$4 sm:$0xff]   ;;  %v2654_v47 = vld [vmem:[%s3934_s3 + $0x1b8] ss:$36 sps:$4 sm:$0xff]   ;;  %v2660_v51 = vld [vmem:[%s3934_s3 + $0x200] ss:$36 sps:$4 sm:$0xff]  }
   0xf   :  { %v2655_v48 = vld [vmem:[%s3934_s3 + $0x1fc] ss:$36 sps:$4 sm:$0xff]   ;;  %v2661_v52 = vld [vmem:[%s3934_s3 + $0x244] ss:$36 sps:$4 sm:$0xff]   ;;  %v2663_v53 = vld [vmem:[%s3934_s3 + $0x24c] ss:$36 sps:$4 sm:$0xff]  }
  0x10   :  { %1580 = vmatpush1.bf16.msra.mxu0 %v2629_v30  ;;  %1686 = vmatpush1.bf16.msra.mxu1 %v2630_v31  ;;  %v2659_v50 = vld [vmem:[%s3934_s3 + $0x1f8] ss:$36 sps:$4 sm:$0xff]   ;;  %v2665_v54 = vld [vmem:[%s3934_s3 + $0x240] ss:$36 sps:$4 sm:$0xff]   ;;  %v2666_v55 = vld [vmem:[%s3934_s3 + $0x248] ss:$36 sps:$4 sm:$0xff]  }
  0x11   :  { %1581 = vmatprep.subr.bf16.mxu0 %v2631_v32  ;;  %1687 = vmatprep.subr.bf16.mxu1 %v2633_v33  ;;  %v2667_v56 = vld [vmem:[%s3934_s3 + $0x28c] ss:$36 sps:$4 sm:$0xff]   ;;  %v2669_v57 = vld [vmem:[%s3934_s3 + $0x294] ss:$36 sps:$4 sm:$0xff]  }
  0x14   :  { %1582 = vmatpush1.bf16.msra.mxu0 %v2635_v34  ;;  %1688 = vmatpush1.bf16.msra.mxu1 %v2636_v35  ;;  %v2671_v34 = vld [vmem:[%s3934_s3 + $0x288] ss:$36 sps:$4 sm:$0xff]   ;;  %v2672_v35 = vld [vmem:[%s3934_s3 + $0x290] ss:$36 sps:$4 sm:$0xff]  }
  0x15   :  { %1583 = vmatprep.subr.bf16.mxu0 %v2637_v36  ;;  %1689 = vmatprep.subr.bf16.mxu1 %v2639_v37  ;;  %v2673_v36 = vld [vmem:[%s3934_s3 + $0x2d4] ss:$36 sps:$4 sm:$0xff]   ;;  %v2675_v37 = vld [vmem:[%s3934_s3 + $0x2dc] ss:$36 sps:$4 sm:$0xff]  }
  0x18   :  { %1584 = vmatpush1.bf16.msra.mxu0 %v2641_v38  ;;  %1690 = vmatpush1.bf16.msra.mxu1 %v2642_v39  ;;  %v2677_v38 = vld [vmem:[%s3934_s3 + $0x2d0] ss:$36 sps:$4 sm:$0xff]   ;;  %v2678_v39 = vld [vmem:[%s3934_s3 + $0x2d8] ss:$36 sps:$4 sm:$0xff]  }
  0x19   :  { %1585 = vmatprep.subr.bf16.mxu0 %v2643_v40  ;;  %1691 = vmatprep.subr.bf16.mxu1 %v2645_v41  ;;  %v2679_v40 = vld [vmem:[%s3934_s3 + $0x31c] ss:$36 sps:$4 sm:$0xff]   ;;  %v2681_v41 = vld [vmem:[%s3934_s3 + $0x324] ss:$36 sps:$4 sm:$0xff]  }
  0x1c   :  { %1586 = vmatpush1.bf16.msra.mxu0 %v2647_v42  ;;  %1692 = vmatpush1.bf16.msra.mxu1 %v2648_v43  ;;  %v2683_v42 = vld [vmem:[%s3934_s3 + $0x318] ss:$36 sps:$4 sm:$0xff]   ;;  %v2684_v43 = vld [vmem:[%s3934_s3 + $0x320] ss:$36 sps:$4 sm:$0xff]  }
  0x1d   :  { %1587 = vmatprep.subr.bf16.mxu0 %v2649_v44  ;;  %1693 = vmatprep.subr.bf16.mxu1 %v2651_v45  ;;  %v2685_v44 = vld [vmem:[%s3934_s3 + $0x364] ss:$36 sps:$4 sm:$0xff]   ;;  %v2687_v45 = vld [vmem:[%s3934_s3 + $0x36c] ss:$36 sps:$4 sm:$0xff]  }
  0x20   :  { %1588 = vmatpush1.bf16.msra.mxu0 %v2653_v46  ;;  %1694 = vmatpush1.bf16.msra.mxu1 %v2654_v47  ;;  %v2689_v46 = vld [vmem:[%s3934_s3 + $0x360] ss:$36 sps:$4 sm:$0xff]   ;;  %v2690_v47 = vld [vmem:[%s3934_s3 + $0x368] ss:$36 sps:$4 sm:$0xff]  }
  0x21   :  { %1589 = vmatprep.subr.bf16.mxu0 %v2655_v48  ;;  %1695 = vmatprep.subr.bf16.mxu1 %v2657_v49  ;;  %v2691_v48 = vld [vmem:[%s3934_s3 + $0x3ac] ss:$36 sps:$4 sm:$0xff]   ;;  %v2693_v49 = vld [vmem:[%s3934_s3 + $0x3b4] ss:$36 sps:$4 sm:$0xff]  }
  0x24   :  { %1590 = vmatpush1.bf16.msra.mxu0 %v2659_v50  ;;  %1696 = vmatpush1.bf16.msra.mxu1 %v2660_v51  ;;  %v2695_v50 = vld [vmem:[%s3934_s3 + $0x3a8] ss:$36 sps:$4 sm:$0xff]   ;;  %v2696_v51 = vld [vmem:[%s3934_s3 + $0x3b0] ss:$36 sps:$4 sm:$0xff]  }
  0x25   :  { %1591 = vmatprep.subr.bf16.mxu0 %v2661_v52  ;;  %1697 = vmatprep.subr.bf16.mxu1 %v2663_v53  ;;  %v2697_v52 = vld [vmem:[%s3934_s3 + $0x3f4] ss:$36 sps:$4 sm:$0xff]   ;;  %v2699_v53 = vld [vmem:[%s3934_s3 + $0x3fc] ss:$36 sps:$4 sm:$0xff]  }
  0x28   :  { %1592 = vmatpush1.bf16.msra.mxu0 %v2665_v54  ;;  %1698 = vmatpush1.bf16.msra.mxu1 %v2666_v55  ;;  %v2701_v54 = vld [vmem:[%s3934_s3 + $0x3f0] ss:$36 sps:$4 sm:$0xff]   ;;  %v2702_v55 = vld [vmem:[%s3934_s3 + $0x3f8] ss:$36 sps:$4 sm:$0xff]  }
  0x29   :  { %1593 = vmatprep.subr.bf16.mxu0 %v2667_v56  ;;  %1699 = vmatprep.subr.bf16.mxu1 %v2669_v57  ;;  %v2703_v56 = vld [vmem:[%s3934_s3 + $0x43c] ss:$36 sps:$4 sm:$0xff]   ;;  %v2705_v57 = vld [vmem:[%s3934_s3 + $0x444] ss:$36 sps:$4 sm:$0xff]  }
  0x2c   :  { %1594 = vmatpush1.bf16.msra.mxu0 %v2671_v34  ;;  %1700 = vmatpush1.bf16.msra.mxu1 %v2672_v35 }
  0x2d   :  { %1595 = vmatprep.subr.bf16.mxu0 %v2673_v36  ;;  %1701 = vmatprep.subr.bf16.mxu1 %v2675_v37 }
  0x30   :  { %1596 = vmatpush1.bf16.msra.mxu0 %v2677_v38  ;;  %1702 = vmatpush1.bf16.msra.mxu1 %v2678_v39 }
  0x31   :  { %1597 = vmatprep.subr.bf16.mxu0 %v2679_v40  ;;  %1703 = vmatprep.subr.bf16.mxu1 %v2681_v41 }
  0x34   :  { %1598 = vmatpush1.bf16.msra.mxu0 %v2683_v42  ;;  %1704 = vmatpush1.bf16.msra.mxu1 %v2684_v43 }
  0x35   :  { %1599 = vmatprep.subr.bf16.mxu0 %v2685_v44  ;;  %1705 = vmatprep.subr.bf16.mxu1 %v2687_v45 }
  0x38   :  { %1600 = vmatpush1.bf16.msra.mxu0 %v2689_v46  ;;  %1706 = vmatpush1.bf16.msra.mxu1 %v2690_v47 }
  0x39   :  { %1601 = vmatprep.subr.bf16.mxu0 %v2691_v48  ;;  %1707 = vmatprep.subr.bf16.mxu1 %v2693_v49 }
  0x3c   :  { %1602 = vmatpush1.bf16.msra.mxu0 %v2695_v50  ;;  %1708 = vmatpush1.bf16.msra.mxu1 %v2696_v51  ;;  %v2712_v50 = vld [vmem:[%s3934_s3 + $0x488] ss:$36 sps:$4 sm:$0xff]  }
  0x3d   :  { %1603 = vmatprep.subr.bf16.mxu0 %v2697_v52  ;;  %1709 = vmatprep.subr.bf16.mxu1 %v2699_v53 }
  0x40   :  { %1604 = vmatpush1.bf16.msra.mxu0 %v2701_v54  ;;  %1710 = vmatpush1.bf16.msra.mxu1 %v2702_v55 }
  0x41   :  { %1605 = vmatprep.subr.bf16.mxu0 %v2703_v56  ;;  %1711 = vmatprep.subr.bf16.mxu1 %v2705_v57  ;;  %v2715_v57 = vld [vmem:[%s3934_s3 + $0x4c8] ss:$36 sps:$4 sm:$0xff]  }
  0x93   :  { %v38_v58 = vpop.xlane.xlu0 %37 }
  0x94   :  { %v52_v59 = vmul.f32 0.0026041667, %v38_v58  ;;  %v46_v60 = vpop.xlane.xlu1 %45  ;;  %v2707_v58 = vld [vmem:[%s3934_s3 + $0x438] ss:$36 sps:$4 sm:$0xff]  }
  0x95   :  { %v54_v61 = vmul.f32 0.0026041667, %v46_v60  ;;  %1606 = vmatpush1.bf16.msra.mxu0 %v2707_v58  ;;  %v2711_v60 = vld [vmem:[%s3934_s3 + $0x484] ss:$36 sps:$4 sm:$0xff]   ;;  %v2718_v58 = vld [vmem:[%s3934_s3 + $0x4d0] ss:$36 sps:$4 sm:$0xff]  }
  0x96   :  { %v3151_v62 = vsub.f32 %v2967_v0, %v52_v59  ;;  %v3154_v63 = vsub.f32 %v2972_v1, %v52_v59  ;;  %v3157_v3 = vsub.f32 %v2977_v2, %v52_v59  ;;  %v2708_v59 = vld [vmem:[%s3934_s3 + $0x440] ss:$36 sps:$4 sm:$0xff]   ;;  %1628 = vmatprep.subr.bf16.mxu0 %v2711_v60 }
  0x97   :  { %v3160_v7 = vsub.f32 %v2984_v4, %v54_v61  ;;  %v3163_v11 = vsub.f32 %v2989_v5, %v54_v61  ;;  %v3166_v12 = vsub.f32 %v2994_v6, %v54_v61  ;;  %v42_v16 = vpop.xlane.xlu0 %41  ;;  %1712 = vmatpush1.bf16.msra.mxu1 %v2708_v59  ;;  %v2714_v61 = vld [vmem:[%s3934_s3 + $0x48c] ss:$36 sps:$4 sm:$0xff]   ;;  %v2723_v59 = vld [vmem:[%s3934_s3 + $0x514] ss:$36 sps:$4 sm:$0xff]   ;;  %v2726_v60 = vld [vmem:[%s3934_s3 + $0x51c] ss:$36 sps:$4 sm:$0xff]  }
  0x98   :  { %v53_v17 = vmul.f32 0.0026041667, %v42_v16  ;;  %v50_v18 = vpop.xlane.xlu1 %49  ;;  %v68_v0 = vmul.f32 %v3151_v62, %v3151_v62  ;;  %v69_v1 = vmul.f32 %v3154_v63, %v3154_v63  ;;  %v70_v2 = vmul.f32 %v3157_v3, %v3157_v3  ;;  %1734 = vmatprep.subr.bf16.mxu1 %v2714_v61 }
  0x99   :  { %v55_v4 = vmul.f32 0.0026041667, %v50_v18  ;;  %v74_v5 = vmul.f32 %v3160_v7, %v3160_v7  ;;  %v75_v6 = vmul.f32 %v3163_v11, %v3163_v11  ;;  %v76_v19 = vmul.f32 %v3166_v12, %v3166_v12 }
  0x9a   :  { %v3181_v20 = vsub.f32 %v3001_v8, %v53_v17  ;;  %v3184_v21 = vsub.f32 %v3006_v9, %v53_v17  ;;  %v3187_v22 = vsub.f32 %v3011_v10, %v53_v17  ;;  %v80_v23 = vadd.f32 %v69_v1, %v68_v0 }
  0x9b   :  { %v3190_v24 = vsub.f32 %v3019_v13, %v55_v4  ;;  %v3193_v25 = vsub.f32 %v3024_v14, %v55_v4  ;;  %v3196_v26 = vsub.f32 %v3029_v15, %v55_v4  ;;  %v88_v27 = vadd.f32 %v75_v6, %v74_v5 }
  0x9c   :  { %v81_v28 = vadd.f32 %v80_v23, %v70_v2  ;;  %v71_v8 = vmul.f32 %v3181_v20, %v3181_v20  ;;  %v72_v9 = vmul.f32 %v3184_v21, %v3184_v21  ;;  %v73_v15 = vmul.f32 %v3187_v22, %v3187_v22 }
  0x9d   :  { %v77_v10 = vmul.f32 %v3190_v24, %v3190_v24  ;;  %v78_v13 = vmul.f32 %v3193_v25, %v3193_v25  ;;  %v89_v14 = vadd.f32 %v88_v27, %v76_v19  ;;  %v79_v30 = vmul.f32 %v3196_v26, %v3196_v26 }
  0x9e   :  { %82 = vadd.xlane.f32.xlu0 %v81_v28  ;;  %v84_v29 = vadd.f32 %v72_v9, %v71_v8  ;;  %v121_v0 = vlaneseq }
  0x9f   :  { %v92_v31 = vadd.f32 %v78_v13, %v77_v10  ;;  %v3305_v13 = vld [vmem:[%s3935_s1] sm:$0x7] }
  0xa0   :  { %v85_v32 = vadd.f32 %v84_v29, %v73_v15  ;;  %v3294_v23 = vshrl.u32 %v121_v0, 7 }
  0xa1   :  { %v93_v33 = vadd.f32 %v92_v31, %v79_v30  ;;  %v3316_v30 = vld [vmem:[%s3936_s2] sm:$0x7] }
  0xa2   :  { %90 = vadd.xlane.f32.xlu0 %v89_v14  ;;  %86 = vadd.xlane.f32.xlu1 %v85_v32  ;;  %v3297_v9 = vsub.s32 1, %v3294_v23  ;;  %v3300_v10 = vsub.s32 0, %v3294_v23 }
  0xa4   :  { %v128_v15 = vrot.slane %v3305_v13, %v3297_v9  ;;  %v124_v29 = vrot.slane %v3305_v13, %v3300_v10  ;;  %v156_v35 = vrot.slane %v3316_v30, %v3297_v9  ;;  %v152_v37 = vrot.slane %v3316_v30, %v3300_v10 }
  0xa6   :  { %94 = vadd.xlane.f32.xlu1 %v93_v33 }
 0x12b   :  { %v83_v16 = vpop.xlane.xlu0 %82 }
 0x12c   :  { %v96_v17 = vmul.f32 0.0026041667, %v83_v16 }
 0x12e   :  { %v100_v18 = vadd.f32 1e-06, %v96_v17  ;;  %v2721_v17 = vld [vmem:[%s3934_s3 + $0x510] ss:$36 sps:$4 sm:$0xff]  }
 0x12f   :  { %v87_v1 = vpop.xlane.xlu1 %86  ;;  %v91_v2 = vpop.xlane.xlu0 %90 }
 0x130   :  { %2925 = vrsqrt.f32 %v100_v18  ;;  %v97_v4 = vmul.f32 0.0026041667, %v87_v1  ;;  %v98_v5 = vmul.f32 0.0026041667, %v91_v2  ;;  %v2724_v18 = vld [vmem:[%s3934_s3 + $0x518] ss:$36 sps:$4 sm:$0xff]  }
 0x131   :  { %v2729_v1 = vld [vmem:[%s3934_s3 + $0x55c] ss:$36 sps:$4 sm:$0xff]   ;;  %v2732_v2 = vld [vmem:[%s3934_s3 + $0x564] ss:$36 sps:$4 sm:$0xff]  }
 0x132   :  { %v101_v6 = vadd.f32 1e-06, %v97_v4  ;;  %v102_v19 = vadd.f32 1e-06, %v98_v5  ;;  %v2727_v4 = vld [vmem:[%s3934_s3 + $0x558] ss:$36 sps:$4 sm:$0xff]  }
 0x133   :  { %v95_v27 = vpop.xlane.xlu1 %94  ;;  %v2730_v5 = vld [vmem:[%s3934_s3 + $0x560] ss:$36 sps:$4 sm:$0xff]  }
 0x134   :  { %2927 = vrsqrt.f32 %v101_v6  ;;  %v99_v28 = vmul.f32 0.0026041667, %v95_v27  ;;  %v2735_v6 = vld [vmem:[%s3934_s3 + $0x5a4] ss:$36 sps:$4 sm:$0xff]   ;;  %v2933_v27 = vmov 0  }
 0x135   :  { %2929 = vrsqrt.f32 %v102_v19  ;;  %v2738_v19 = vld [vmem:[%s3934_s3 + $0x5ac] ss:$36 sps:$4 sm:$0xff]  }
 0x136   :  { %v103_v8 = vadd.f32 1e-06, %v99_v28  ;;  %v2733_v28 = vld [vmem:[%s3934_s3 + $0x5a0] ss:$36 sps:$4 sm:$0xff]  }
 0x138   :  { %2931 = vrsqrt.f32 %v103_v8  ;;  %v2736_v8 = vld [vmem:[%s3934_s3 + $0x5a8] ss:$36 sps:$4 sm:$0xff]  }
 0x13a   :  { %v3307_v14 = vpop.eup %2925 }
 0x13b   :  { %v109_v31 = vmul.f32 %v3307_v14, %v3154_v63  ;;  %v108_v32 = vmul.f32 %v3307_v14, %v3151_v62 }
 0x13d   :  { %v137_v34 = vmul.f32 %v128_v15, %v109_v31  ;;  %v136_v36 = vmul.f32 %v124_v29, %v108_v32  ;;  %v3423_v31 = vsub.s32 2, %v3294_v23  ;;  %v2739_v32 = vld [vmem:[%s3934_s3 + $0x5e8] ss:$36 sps:$4 sm:$0xff]  }
 0x13e   :  { %v3322_v33 = vpop.eup %2927 }
 0x13f   :  { %v3328_v38 = vpop.eup %2929  ;;  %v112_v39 = vmul.f32 %v3322_v33, %v3184_v21  ;;  %v111_v63 = vmul.f32 %v3322_v33, %v3181_v20  ;;  %v165_v43 = vadd.f32 %v156_v35, %v137_v34  ;;  %v164_v44 = vadd.f32 %v152_v37, %v136_v36  ;;  %v2742_v34 = vld [vmem:[%s3934_s3 + $0x5f0] ss:$36 sps:$4 sm:$0xff]   ;;  %v2750_v36 = vld [vmem:[%s3934_s3 + $0x63c] ss:$36 sps:$4 sm:$0xff]  }
 0x140   :  { %v115_v62 = vmul.f32 %v3328_v38, %v3163_v11  ;;  %v114_v20 = vmul.f32 %v3328_v38, %v3160_v7  ;;  %v2709_v11 = vld [vmem:[%s3934_s3 + $0x480] ss:$36 sps:$4 sm:$0xff]   ;;  %v2720_v7 = vld [vmem:[%s3934_s3 + $0x4d4] ss:$36 sps:$4 sm:$0xff]  }
 0x141   :  { %v140_v40 = vmul.f32 %v128_v15, %v112_v39  ;;  %v139_v41 = vmul.f32 %v124_v29, %v111_v63  ;;  %v110_v39 = vmul.f32 %v3307_v14, %v3157_v3  ;;  %v132_v63 = vrot.slane %v3305_v13, %v3423_v31  ;;  %v2756_v3 = vld [vmem:[%s3934_s3 + $0x684] ss:$36 sps:$4 sm:$0xff]  }
 0x142   :  { %v3336_v42 = vpop.eup %2931  ;;  %v143_v45 = vmul.f32 %v128_v15, %v115_v62  ;;  %v142_v55 = vmul.f32 %v124_v29, %v114_v20  ;;  %v2745_v62 = vld [vmem:[%s3934_s3 + $0x630] ss:$36 sps:$4 sm:$0xff]   ;;  %v2760_v20 = vld [vmem:[%s3934_s3 + $0x18] ss:$36 sps:$4 sm:$0xff]  }
 0x143   :  { %v168_v46 = vadd.f32 %v156_v35, %v140_v40  ;;  %v167_v47 = vadd.f32 %v152_v37, %v139_v41  ;;  %v118_v48 = vmul.f32 %v3336_v42, %v3193_v25  ;;  %v117_v21 = vmul.f32 %v3336_v42, %v3190_v24  ;;  %v2717_v24 = vld [vmem:[%s3934_s3 + $0x4cc] ss:$36 sps:$4 sm:$0xff]   ;;  %v2748_v40 = vld [vmem:[%s3934_s3 + $0x638] ss:$36 sps:$4 sm:$0xff]  }
 0x144   :  { %v171_v53 = vadd.f32 %v156_v35, %v143_v45  ;;  %v170_v16 = vadd.f32 %v152_v37, %v142_v55  ;;  %v138_v14 = vmul.f32 %v132_v63, %v110_v39  ;;  %v2751_v41 = vld [vmem:[%s3934_s3 + $0x678] ss:$36 sps:$4 sm:$0xff]   ;;  %v2805_v39 = vld [vmem:[%s3934_s3 + $0x250] ss:$36 sps:$4 sm:$0xff]  }
 0x145   :  { %v3344_v49 = vpack.c.bf16 %v168_v46, %v165_v43  ;;  %v3352_v51 = vpack.c.bf16 %v167_v47, %v164_v44  ;;  %v146_v52 = vmul.f32 %v128_v15, %v118_v48  ;;  %v145_v25 = vmul.f32 %v124_v29, %v117_v21  ;;  %v2741_v15 = vld [vmem:[%s3934_s3 + $0x5ec] ss:$36 sps:$4 sm:$0xff]   ;;  %v2744_v29 = vld [vmem:[%s3934_s3 + $0x5f4] ss:$36 sps:$4 sm:$0xff]   ;;  %v2754_v43 = vld [vmem:[%s3934_s3 + $0x680] ss:$36 sps:$4 sm:$0xff]  }
 0x146   :  { %v2759_v45 = vld [vmem:[%s3934_s3 + $0x14] ss:$36 sps:$4 sm:$0xff]   ;;  %v119_v46 = vmul.f32 %v3336_v42, %v3196_v26  ;;  %v116_v48 = vmul.f32 %v3328_v38, %v3166_v12  ;;  %v2765_v26 = vld [vmem:[%s3934_s3 + $0x5c] ss:$36 sps:$4 sm:$0xff]   ;;  %v2768_v12 = vld [vmem:[%s3934_s3 + $0x64] ss:$36 sps:$4 sm:$0xff]  }
 0x147   :  { %1607 = vmatprep.mubr.bf16.mxu0 %v3344_v49  ;;  %1713 = vmatprep.mubr.bf16.mxu1 %v3344_v49  ;;  %v174_v54 = vadd.f32 %v156_v35, %v146_v52  ;;  %v173_v61 = vadd.f32 %v152_v37, %v145_v25  ;;  %v2747_v35 = vld [vmem:[%s3934_s3 + $0x634] ss:$36 sps:$4 sm:$0xff]   ;;  %v113_v37 = vmul.f32 %v3322_v33, %v3187_v22  ;;  %v2753_v22 = vld [vmem:[%s3934_s3 + $0x67c] ss:$36 sps:$4 sm:$0xff]   ;;  %v2774_v25 = vld [vmem:[%s3934_s3 + $0xac] ss:$36 sps:$4 sm:$0xff]  }
 0x148   :  { %1608 = vmatmul.mubr.bf16.vlgmr.msra.gmra.mrb[0].mxu0 %v3352_v51  ;;  %1714 = vmatmul.mubr.bf16.vlgmr.msra.gmra.mrb[0].mxu1 %v3352_v51  ;;  %v160_v33 = vrot.slane %v3316_v30, %v3423_v31  ;;  %v2762_v30 = vld [vmem:[%s3934_s3 + $0x1c] ss:$36 sps:$4 sm:$0xff]   ;;  %v2757_v21 = vld [vmem:[%s3934_s3 + $0x10] ss:$36 sps:$4 sm:$0xff]   ;;  %v147_v38 = vmul.f32 %v132_v63, %v119_v46  ;;  %v144_v42 = vmul.f32 %v132_v63, %v116_v48 }
 0x149   :  { %1629 = vmatpush1.bf16.msra.mxu0 %v2709_v11  ;;  %1735 = vmatpush1.bf16.msra.mxu1 %v2712_v50  ;;  %v3364_v56 = vpack.c.bf16 %v174_v54, %v171_v53  ;;  %v3386_v0 = vpack.c.bf16 %v173_v61, %v170_v16  ;;  %v141_v13 = vmul.f32 %v132_v63, %v113_v37  ;;  %v2763_v50 = vld [vmem:[%s3934_s3 + $0x58] ss:$36 sps:$4 sm:$0xff]   ;;  %v2766_v52 = vld [vmem:[%s3934_s3 + $0x60] ss:$36 sps:$4 sm:$0xff]   ;;  %v2778_v61 = vld [vmem:[%s3934_s3 + $0xf0] ss:$36 sps:$4 sm:$0xff]  }
 0x14a   :  { %1630 = vmatprep.subr.bf16.mxu0 %v2717_v24  ;;  %1736 = vmatprep.subr.bf16.mxu1 %v2720_v7  ;;  %v166_v47 = vadd.f32 %v160_v33, %v138_v14  ;;  %v175_v24 = vadd.f32 %v160_v33, %v147_v38  ;;  %v2771_v7 = vld [vmem:[%s3934_s3 + $0xa4] ss:$36 sps:$4 sm:$0xff]   ;;  %v172_v53 = vadd.f32 %v160_v33, %v144_v42  ;;  %v2783_v16 = vld [vmem:[%s3934_s3 + $0x134] ss:$36 sps:$4 sm:$0xff]   ;;  %v2810_v37 = vld [vmem:[%s3934_s3 + $0x25c] ss:$36 sps:$4 sm:$0xff]  }
 0x14b   :  { %1617 = vmatprep.mubr.bf16.mxu0 %v3364_v56  ;;  %1723 = vmatprep.mubr.bf16.mxu1 %v3364_v56  ;;  %v169_v44 = vadd.f32 %v160_v33, %v141_v13  ;;  %v2769_v54 = vld [vmem:[%s3934_s3 + $0xa0] ss:$36 sps:$4 sm:$0xff]   ;;  %v2808_v63 = vld [vmem:[%s3934_s3 + $0x258] ss:$36 sps:$4 sm:$0xff]   ;;  %v2822_v14 = vld [vmem:[%s3934_s3 + $0x2ec] ss:$36 sps:$4 sm:$0xff]  }
 0x14c   :  { %v3506_v55 = vpack.c.bf16 %v175_v24, %v172_v53  ;;  %v2819_v13 = vld [vmem:[%s3934_s3 + $0x2e4] ss:$36 sps:$4 sm:$0xff]   ;;  %v2831_v46 = vld [vmem:[%s3934_s3 + $0x374] ss:$36 sps:$4 sm:$0xff]  }
 0x14d   :  { %1631 = vmatpush1.bf16.msra.mxu0 %v2715_v57  ;;  %1737 = vmatpush1.bf16.msra.mxu1 %v2718_v58  ;;  %v3479_v11 = vpack.c.bf16 %v169_v44, %v166_v47  ;;  %v2772_v57 = vld [vmem:[%s3934_s3 + $0xa8] ss:$36 sps:$4 sm:$0xff]   ;;  %v2817_v33 = vld [vmem:[%s3934_s3 + $0x2e0] ss:$36 sps:$4 sm:$0xff]   ;;  %v2828_v44 = vld [vmem:[%s3934_s3 + $0x334] ss:$36 sps:$4 sm:$0xff]  }
 0x14e   :  { %1632 = vmatprep.subr.bf16.mxu0 %v2723_v59  ;;  %1738 = vmatprep.subr.bf16.mxu1 %v2726_v60  ;;  %v2777_v58 = vld [vmem:[%s3934_s3 + $0xec] ss:$36 sps:$4 sm:$0xff]   ;;  %v2780_v59 = vld [vmem:[%s3934_s3 + $0xf4] ss:$36 sps:$4 sm:$0xff]   ;;  %v2834_v47 = vld [vmem:[%s3934_s3 + $0x37c] ss:$36 sps:$4 sm:$0xff]  }
 0x14f   :  { %v2775_v60 = vld [vmem:[%s3934_s3 + $0xe8] ss:$36 sps:$4 sm:$0xff]   ;;  %v2829_v48 = vld [vmem:[%s3934_s3 + $0x370] ss:$36 sps:$4 sm:$0xff]   ;;  %v2838_v38 = vld [vmem:[%s3934_s3 + $0x3c0] ss:$36 sps:$4 sm:$0xff]  }
 0x150   :  { %1618 = vmatmul.mubr.bf16.gmra.mrb[4].mxu0 %v3386_v0  ;;  %1724 = vmatmul.mubr.bf16.gmra.mrb[4].mxu1 %v3386_v0  ;;  %v2843_v42 = vld [vmem:[%s3934_s3 + $0x404] ss:$36 sps:$4 sm:$0xff]  }
 0x151   :  { %1633 = vmatpush1.bf16.msra.mxu0 %v2721_v17  ;;  %1739 = vmatpush1.bf16.msra.mxu1 %v2724_v18  ;;  %v2786_v17 = vld [vmem:[%s3934_s3 + $0x13c] ss:$36 sps:$4 sm:$0xff]   ;;  %v2781_v18 = vld [vmem:[%s3934_s3 + $0x130] ss:$36 sps:$4 sm:$0xff]   ;;  %v2844_v24 = vld [vmem:[%s3934_s3 + $0x408] ss:$36 sps:$4 sm:$0xff]  }
 0x152   :  { %1634 = vmatprep.subr.bf16.mxu0 %v2729_v1  ;;  %1740 = vmatprep.subr.bf16.mxu1 %v2732_v2  ;;  %v2784_v1 = vld [vmem:[%s3934_s3 + $0x138] ss:$36 sps:$4 sm:$0xff]   ;;  %v2847_v53 = vld [vmem:[%s3934_s3 + $0x448] ss:$36 sps:$4 sm:$0xff]  }
 0x153   :  { %1660 = vmatprep.mubr.bf16.mxu0 %v2933_v27  ;;  %1766 = vmatprep.mubr.bf16.mxu1 %v2933_v27  ;;  %v2789_v2 = vld [vmem:[%s3934_s3 + $0x17c] ss:$36 sps:$4 sm:$0xff]  }
 0x155   :  { %1635 = vmatpush1.bf16.msra.mxu0 %v2727_v4  ;;  %1741 = vmatpush1.bf16.msra.mxu1 %v2730_v5  ;;  %v2792_v4 = vld [vmem:[%s3934_s3 + $0x184] ss:$36 sps:$4 sm:$0xff]   ;;  %v2787_v5 = vld [vmem:[%s3934_s3 + $0x178] ss:$36 sps:$4 sm:$0xff]  }
 0x156   :  { %1636 = vmatprep.subr.bf16.mxu0 %v2735_v6  ;;  %1742 = vmatprep.subr.bf16.mxu1 %v2738_v19  ;;  %v2790_v6 = vld [vmem:[%s3934_s3 + $0x180] ss:$36 sps:$4 sm:$0xff]  }
 0x157   :  { %v2795_v19 = vld [vmem:[%s3934_s3 + $0x1c4] ss:$36 sps:$4 sm:$0xff]  }
 0x159   :  { %1637 = vmatpush1.bf16.msra.mxu0 %v2733_v28  ;;  %1743 = vmatpush1.bf16.msra.mxu1 %v2736_v8  ;;  %v2798_v28 = vld [vmem:[%s3934_s3 + $0x1cc] ss:$36 sps:$4 sm:$0xff]   ;;  %v2793_v8 = vld [vmem:[%s3934_s3 + $0x1c0] ss:$36 sps:$4 sm:$0xff]  }
 0x15a   :  { %1638 = vmatprep.subr.bf16.mxu0 %v2741_v15  ;;  %1744 = vmatprep.subr.bf16.mxu1 %v2744_v29  ;;  %v2796_v15 = vld [vmem:[%s3934_s3 + $0x1c8] ss:$36 sps:$4 sm:$0xff]  }
 0x15b   :  { %v2801_v29 = vld [vmem:[%s3934_s3 + $0x20c] ss:$36 sps:$4 sm:$0xff]  }
 0x15d   :  { %1639 = vmatpush1.bf16.msra.mxu0 %v2739_v32  ;;  %1745 = vmatpush1.bf16.msra.mxu1 %v2742_v34  ;;  %v2804_v32 = vld [vmem:[%s3934_s3 + $0x214] ss:$36 sps:$4 sm:$0xff]   ;;  %v2799_v34 = vld [vmem:[%s3934_s3 + $0x208] ss:$36 sps:$4 sm:$0xff]  }
 0x15e   :  { %1640 = vmatprep.subr.bf16.mxu0 %v2747_v35  ;;  %1746 = vmatprep.subr.bf16.mxu1 %v2750_v36  ;;  %v2802_v35 = vld [vmem:[%s3934_s3 + $0x210] ss:$36 sps:$4 sm:$0xff]  }
 0x15f   :  { %v2807_v36 = vld [vmem:[%s3934_s3 + $0x254] ss:$36 sps:$4 sm:$0xff]  }
 0x161   :  { %1641 = vmatpush1.bf16.msra.mxu0 %v2745_v62  ;;  %1747 = vmatpush1.bf16.msra.mxu1 %v2748_v40  ;;  %v2813_v62 = vld [vmem:[%s3934_s3 + $0x29c] ss:$36 sps:$4 sm:$0xff]   ;;  %v2816_v40 = vld [vmem:[%s3934_s3 + $0x2a4] ss:$36 sps:$4 sm:$0xff]  }
 0x162   :  { %1642 = vmatprep.subr.bf16.mxu0 %v2753_v22  ;;  %1748 = vmatprep.subr.bf16.mxu1 %v2756_v3  ;;  %v2811_v22 = vld [vmem:[%s3934_s3 + $0x298] ss:$36 sps:$4 sm:$0xff]   ;;  %v2814_v3 = vld [vmem:[%s3934_s3 + $0x2a0] ss:$36 sps:$4 sm:$0xff]  }
 0x165   :  { %1643 = vmatpush1.bf16.msra.mxu0 %v2751_v41  ;;  %1749 = vmatpush1.bf16.msra.mxu1 %v2754_v43  ;;  %v2820_v41 = vld [vmem:[%s3934_s3 + $0x2e8] ss:$36 sps:$4 sm:$0xff]  }
 0x166   :  { %1787 = vmatprep.subr.bf16.mxu0 %v2759_v45  ;;  %1893 = vmatprep.subr.bf16.mxu1 %v2762_v30  ;;  %v2825_v43 = vld [vmem:[%s3934_s3 + $0x32c] ss:$36 sps:$4 sm:$0xff]  }
 0x167   :  { %v2823_v45 = vld [vmem:[%s3934_s3 + $0x328] ss:$36 sps:$4 sm:$0xff]   ;;  %v2826_v30 = vld [vmem:[%s3934_s3 + $0x330] ss:$36 sps:$4 sm:$0xff]  }
 0x168   :  { %1661 = vmatmul.mubr.bf16.vlgmr.msra.gmra.mrb[0].mxu0 %v3479_v11  ;;  %1767 = vmatmul.mubr.bf16.vlgmr.msra.gmra.mrb[0].mxu1 %v3479_v11 }
 0x169   :  { %1788 = vmatpush1.bf16.msra.mxu0 %v2757_v21  ;;  %1894 = vmatpush1.bf16.msra.mxu1 %v2760_v20  ;;  %v2832_v21 = vld [vmem:[%s3934_s3 + $0x378] ss:$36 sps:$4 sm:$0xff]  }
 0x16a   :  { %1789 = vmatprep.subr.bf16.mxu0 %v2765_v26  ;;  %1895 = vmatprep.subr.bf16.mxu1 %v2768_v12  ;;  %v2837_v20 = vld [vmem:[%s3934_s3 + $0x3bc] ss:$36 sps:$4 sm:$0xff]   ;;  %v2840_v26 = vld [vmem:[%s3934_s3 + $0x3c4] ss:$36 sps:$4 sm:$0xff]  }
 0x16b   :  { %1670 = vmatprep.mubr.bf16.mxu0 %v2933_v27  ;;  %1776 = vmatprep.mubr.bf16.mxu1 %v2933_v27  ;;  %v2835_v12 = vld [vmem:[%s3934_s3 + $0x3b8] ss:$36 sps:$4 sm:$0xff]  }
 0x16d   :  { %1790 = vmatpush1.bf16.msra.mxu0 %v2763_v50  ;;  %1896 = vmatpush1.bf16.msra.mxu1 %v2766_v52  ;;  %v2846_v50 = vld [vmem:[%s3934_s3 + $0x40c] ss:$36 sps:$4 sm:$0xff]   ;;  %v2841_v52 = vld [vmem:[%s3934_s3 + $0x400] ss:$36 sps:$4 sm:$0xff]  }
 0x16e   :  { %1791 = vmatprep.subr.bf16.mxu0 %v2771_v7  ;;  %1897 = vmatprep.subr.bf16.mxu1 %v2774_v25  ;;  %v2849_v7 = vld [vmem:[%s3934_s3 + $0x44c] ss:$36 sps:$4 sm:$0xff]   ;;  %v2852_v25 = vld [vmem:[%s3934_s3 + $0x454] ss:$36 sps:$4 sm:$0xff]  }
 0x170   :  { %1671 = vmatmul.mubr.bf16.gmra.mrb[4].mxu0 %v3506_v55  ;;  %1777 = vmatmul.mubr.bf16.gmra.mrb[4].mxu1 %v3506_v55 }
 0x171   :  { %1792 = vmatpush1.bf16.msra.mxu0 %v2769_v54  ;;  %1819 = vmatprep.mubr.bf16.mxu0 %v3344_v49  ;;  %v2850_v54 = vld [vmem:[%s3934_s3 + $0x450] ss:$36 sps:$4 sm:$0xff]  }
 0x172   :  { %1898 = vmatpush1.bf16.msra.mxu1 %v2772_v57  ;;  %1925 = vmatprep.mubr.bf16.mxu1 %v3344_v49  ;;  %v2855_v57 = vld [vmem:[%s3934_s3 + $0x494] ss:$36 sps:$4 sm:$0xff]  }
 0x173   :  { %1793 = vmatprep.subr.bf16.mxu0 %v2777_v58  ;;  %1899 = vmatprep.subr.bf16.mxu1 %v2780_v59  ;;  %v2858_v58 = vld [vmem:[%s3934_s3 + $0x49c] ss:$36 sps:$4 sm:$0xff]   ;;  %v2853_v59 = vld [vmem:[%s3934_s3 + $0x490] ss:$36 sps:$4 sm:$0xff]  }
 0x175   :  { %1794 = vmatpush1.bf16.msra.mxu0 %v2775_v60  ;;  %v2856_v60 = vld [vmem:[%s3934_s3 + $0x498] ss:$36 sps:$4 sm:$0xff]  }
 0x176   :  { %1900 = vmatpush1.bf16.msra.mxu1 %v2778_v61  ;;  %1795 = vmatprep.subr.bf16.mxu0 %v2783_v16  ;;  %v2861_v61 = vld [vmem:[%s3934_s3 + $0x4dc] ss:$36 sps:$4 sm:$0xff]   ;;  %v2864_v16 = vld [vmem:[%s3934_s3 + $0x4e4] ss:$36 sps:$4 sm:$0xff]  }
 0x177   :  { %1901 = vmatprep.subr.bf16.mxu1 %v2786_v17  ;;  %v2859_v17 = vld [vmem:[%s3934_s3 + $0x4d8] ss:$36 sps:$4 sm:$0xff]  }
 0x179   :  { %1796 = vmatpush1.bf16.msra.mxu0 %v2781_v18  ;;  %v2862_v18 = vld [vmem:[%s3934_s3 + $0x4e0] ss:$36 sps:$4 sm:$0xff]  }
 0x17a   :  { %1902 = vmatpush1.bf16.msra.mxu1 %v2784_v1  ;;  %1797 = vmatprep.subr.bf16.mxu0 %v2789_v2  ;;  %v2867_v1 = vld [vmem:[%s3934_s3 + $0x524] ss:$36 sps:$4 sm:$0xff]   ;;  %v2870_v2 = vld [vmem:[%s3934_s3 + $0x52c] ss:$36 sps:$4 sm:$0xff]  }
 0x17b   :  { %1903 = vmatprep.subr.bf16.mxu1 %v2792_v4  ;;  %v2865_v4 = vld [vmem:[%s3934_s3 + $0x520] ss:$36 sps:$4 sm:$0xff]  }
 0x17d   :  { %1798 = vmatpush1.bf16.msra.mxu0 %v2787_v5  ;;  %v2868_v5 = vld [vmem:[%s3934_s3 + $0x528] ss:$36 sps:$4 sm:$0xff]  }
 0x17e   :  { %1904 = vmatpush1.bf16.msra.mxu1 %v2790_v6  ;;  %1799 = vmatprep.subr.bf16.mxu0 %v2795_v19  ;;  %v2873_v6 = vld [vmem:[%s3934_s3 + $0x56c] ss:$36 sps:$4 sm:$0xff]   ;;  %v2876_v19 = vld [vmem:[%s3934_s3 + $0x574] ss:$36 sps:$4 sm:$0xff]  }
 0x17f   :  { %1905 = vmatprep.subr.bf16.mxu1 %v2798_v28  ;;  %v2871_v28 = vld [vmem:[%s3934_s3 + $0x568] ss:$36 sps:$4 sm:$0xff]  }
 0x181   :  { %1800 = vmatpush1.bf16.msra.mxu0 %v2793_v8  ;;  %v2874_v8 = vld [vmem:[%s3934_s3 + $0x570] ss:$36 sps:$4 sm:$0xff]  }
 0x182   :  { %1906 = vmatpush1.bf16.msra.mxu1 %v2796_v15  ;;  %1801 = vmatprep.subr.bf16.mxu0 %v2801_v29  ;;  %v2879_v15 = vld [vmem:[%s3934_s3 + $0x5b4] ss:$36 sps:$4 sm:$0xff]   ;;  %v2882_v29 = vld [vmem:[%s3934_s3 + $0x5bc] ss:$36 sps:$4 sm:$0xff]  }
 0x183   :  { %1907 = vmatprep.subr.bf16.mxu1 %v2804_v32  ;;  %v2877_v32 = vld [vmem:[%s3934_s3 + $0x5b0] ss:$36 sps:$4 sm:$0xff]  }
 0x185   :  { %1802 = vmatpush1.bf16.msra.mxu0 %v2799_v34  ;;  %v2880_v34 = vld [vmem:[%s3934_s3 + $0x5b8] ss:$36 sps:$4 sm:$0xff]  }
 0x186   :  { %1908 = vmatpush1.bf16.msra.mxu1 %v2802_v35  ;;  %1803 = vmatprep.subr.bf16.mxu0 %v2807_v36  ;;  %v2885_v35 = vld [vmem:[%s3934_s3 + $0x5fc] ss:$36 sps:$4 sm:$0xff]   ;;  %v2888_v36 = vld [vmem:[%s3934_s3 + $0x604] ss:$36 sps:$4 sm:$0xff]  }
 0x187   :  { %1909 = vmatprep.subr.bf16.mxu1 %v2810_v37  ;;  %v2883_v37 = vld [vmem:[%s3934_s3 + $0x5f8] ss:$36 sps:$4 sm:$0xff]  }
 0x189   :  { %1804 = vmatpush1.bf16.msra.mxu0 %v2805_v39  ;;  %v2886_v39 = vld [vmem:[%s3934_s3 + $0x600] ss:$36 sps:$4 sm:$0xff]  }
 0x18a   :  { %1910 = vmatpush1.bf16.msra.mxu1 %v2808_v63  ;;  %1805 = vmatprep.subr.bf16.mxu0 %v2813_v62  ;;  %v2891_v63 = vld [vmem:[%s3934_s3 + $0x644] ss:$36 sps:$4 sm:$0xff]   ;;  %v2894_v62 = vld [vmem:[%s3934_s3 + $0x64c] ss:$36 sps:$4 sm:$0xff]  }
 0x18b   :  { %1911 = vmatprep.subr.bf16.mxu1 %v2816_v40  ;;  %v2889_v40 = vld [vmem:[%s3934_s3 + $0x640] ss:$36 sps:$4 sm:$0xff]  }
 0x18d   :  { %1806 = vmatpush1.bf16.msra.mxu0 %v2811_v22  ;;  %v2892_v22 = vld [vmem:[%s3934_s3 + $0x648] ss:$36 sps:$4 sm:$0xff]  }
 0x18e   :  { %1912 = vmatpush1.bf16.msra.mxu1 %v2814_v3  ;;  %1807 = vmatprep.subr.bf16.mxu0 %v2819_v13  ;;  %v2897_v3 = vld [vmem:[%s3934_s3 + $0x68c] ss:$36 sps:$4 sm:$0xff]   ;;  %v2900_v13 = vld [vmem:[%s3934_s3 + $0x694] ss:$36 sps:$4 sm:$0xff]  }
 0x18f   :  { %1913 = vmatprep.subr.bf16.mxu1 %v2822_v14  ;;  %v2895_v14 = vld [vmem:[%s3934_s3 + $0x688] ss:$36 sps:$4 sm:$0xff]  }
 0x191   :  { %1808 = vmatpush1.bf16.msra.mxu0 %v2817_v33  ;;  %v2898_v33 = vld [vmem:[%s3934_s3 + $0x690] ss:$36 sps:$4 sm:$0xff]  }
 0x192   :  { %1914 = vmatpush1.bf16.msra.mxu1 %v2820_v41  ;;  %1809 = vmatprep.subr.bf16.mxu0 %v2825_v43  ;;  %v2901_v41 = vld [vmem:[%s3934_s3 + $0x260] ss:$36 sps:$4 sm:$0xff]  }
 0x193   :  { %1915 = vmatprep.subr.bf16.mxu1 %v2828_v44  ;;  %v2902_v43 = vld [vmem:[%s3934_s3 + $0x4a0] ss:$36 sps:$4 sm:$0xff]  }
 0x194   :  { %v2903_v44 = vld [vmem:[%s3934_s3 + $0x20] ss:$36 sps:$4 sm:$0xff]  }
 0x195   :  { %1810 = vmatpush1.bf16.msra.mxu0 %v2823_v45  ;;  %v2904_v45 = vld [vmem:[%s3934_s3 + $0x2a8] ss:$36 sps:$4 sm:$0xff]  }
 0x196   :  { %1916 = vmatpush1.bf16.msra.mxu1 %v2826_v30  ;;  %1811 = vmatprep.subr.bf16.mxu0 %v2831_v46  ;;  %v2905_v30 = vld [vmem:[%s3934_s3 + $0x4e8] ss:$36 sps:$4 sm:$0xff]  }
 0x197   :  { %1917 = vmatprep.subr.bf16.mxu1 %v2834_v47  ;;  %v2906_v46 = vld [vmem:[%s3934_s3 + $0x68] ss:$36 sps:$4 sm:$0xff]   ;;  %v2907_v47 = vld [vmem:[%s3934_s3 + $0x2f0] ss:$36 sps:$4 sm:$0xff]  }
 0x199   :  { %1812 = vmatpush1.bf16.msra.mxu0 %v2829_v48  ;;  %v2908_v48 = vld [vmem:[%s3934_s3 + $0x530] ss:$36 sps:$4 sm:$0xff]  }
 0x19a   :  { %1918 = vmatpush1.bf16.msra.mxu1 %v2832_v21  ;;  %1813 = vmatprep.subr.bf16.mxu0 %v2837_v20  ;;  %v2909_v21 = vld [vmem:[%s3934_s3 + $0xb0] ss:$36 sps:$4 sm:$0xff]   ;;  %v2910_v20 = vld [vmem:[%s3934_s3 + $0x338] ss:$36 sps:$4 sm:$0xff]  }
 0x19b   :  { %1919 = vmatprep.subr.bf16.mxu1 %v2840_v26  ;;  %v2911_v26 = vld [vmem:[%s3934_s3 + $0x578] ss:$36 sps:$4 sm:$0xff]  }
 0x19d   :  { %1814 = vmatpush1.bf16.msra.mxu0 %v2835_v12  ;;  %v2913_v12 = vld [vmem:[%s3934_s3 + $0x380] ss:$36 sps:$4 sm:$0xff]  }
 0x19e   :  { %1920 = vmatpush1.bf16.msra.mxu1 %v2838_v38  ;;  %1815 = vmatprep.subr.bf16.mxu0 %v2843_v42  ;;  %v2914_v38 = vld [vmem:[%s3934_s3 + $0x5c0] ss:$36 sps:$4 sm:$0xff]  }
 0x19f   :  { %1921 = vmatprep.subr.bf16.mxu1 %v2846_v50  ;;  %v2915_v42 = vld [vmem:[%s3934_s3 + $0x140] ss:$36 sps:$4 sm:$0xff]   ;;  %v2918_v50 = vld [vmem:[%s3934_s3 + $0x188] ss:$36 sps:$4 sm:$0xff]  }
 0x1a1   :  { %1816 = vmatpush1.bf16.msra.mxu0 %v2841_v52  ;;  %v2919_v52 = vld [vmem:[%s3934_s3 + $0x410] ss:$36 sps:$4 sm:$0xff]  }
 0x1a2   :  { %1922 = vmatpush1.bf16.msra.mxu1 %v2844_v24  ;;  %1817 = vmatprep.subr.bf16.mxu0 %v2849_v7  ;;  %v2920_v24 = vld [vmem:[%s3934_s3 + $0x650] ss:$36 sps:$4 sm:$0xff]  }
 0x1a3   :  { %1923 = vmatprep.subr.bf16.mxu1 %v2852_v25  ;;  %v2921_v7 = vld [vmem:[%s3934_s3 + $0x1d0] ss:$36 sps:$4 sm:$0xff]   ;;  %v2922_v25 = vld [vmem:[%s3934_s3 + $0x458] ss:$36 sps:$4 sm:$0xff]  }
 0x1a5   :  { %1818 = vmatpush1.bf16.msra.mxu0 %v2847_v53  ;;  %v2923_v53 = vld [vmem:[%s3934_s3 + $0x698] ss:$36 sps:$4 sm:$0xff]  }
 0x1a6   :  { %1924 = vmatpush1.bf16.msra.mxu1 %v2850_v54  ;;  %1840 = vmatprep.subr.bf16.mxu0 %v2855_v57  ;;  %v2924_v54 = vld [vmem:[%s3934_s3 + $0x218] ss:$36 sps:$4 sm:$0xff]   ;;  %v422_v57 = vld [vmem:[%s3937_s4] sm:$0xff] }
 0x1a7   :  { %1946 = vmatprep.subr.bf16.mxu1 %v2858_v58  ;;  %v440_v58 = vsub.s32 3, %v3294_v23 }
 0x1a8   :  { %1820 = vmatmul.mubr.bf16.vlgmr.msra.gmra.mrb[8].mxu0 %v3352_v51 }
 0x1a9   :  { %1926 = vmatmul.mubr.bf16.vlgmr.msra.gmra.mrb[8].mxu1 %v3352_v51  ;;  %1829 = vmatprep.mubr.bf16.mxu0 %v3364_v56 }
 0x1aa   :  { %1841 = vmatpush1.bf16.msra.mxu0 %v2853_v59  ;;  %1935 = vmatprep.mubr.bf16.mxu1 %v3364_v56  ;;  %v429_v59 = vrot.slane %v422_v57, %v3300_v10 }
 0x1ab   :  { %1947 = vmatpush1.bf16.msra.mxu1 %v2856_v60  ;;  %1842 = vmatprep.subr.bf16.mxu0 %v2861_v61  ;;  %v437_v60 = vrot.slane %v422_v57, %v3423_v31  ;;  %v433_v61 = vrot.slane %v422_v57, %v3297_v9 }
 0x1ac   :  { %1948 = vmatprep.subr.bf16.mxu1 %v2864_v16  ;;  %v441_v16 = vrot.slane %v422_v57, %v440_v58 }
 0x1ae   :  { %1843 = vmatpush1.bf16.msra.mxu0 %v2859_v17 }
 0x1af   :  { %1949 = vmatpush1.bf16.msra.mxu1 %v2862_v18  ;;  %1844 = vmatprep.subr.bf16.mxu0 %v2867_v1 }
 0x1b0   :  { %1830 = vmatmul.mubr.bf16.gmra.mrb[12].mxu0 %v3386_v0  ;;  %1950 = vmatprep.subr.bf16.mxu1 %v2870_v2 }
 0x1b1   :  { %1936 = vmatmul.mubr.bf16.gmra.mrb[12].mxu1 %v3386_v0  ;;  %1872 = vmatprep.mubr.bf16.mxu0 %v2933_v27 }
 0x1b2   :  { %1845 = vmatpush1.bf16.msra.mxu0 %v2865_v4  ;;  %1978 = vmatprep.mubr.bf16.mxu1 %v2933_v27 }
 0x1b3   :  { %1951 = vmatpush1.bf16.msra.mxu1 %v2868_v5  ;;  %1846 = vmatprep.subr.bf16.mxu0 %v2873_v6 }
 0x1b4   :  { %1952 = vmatprep.subr.bf16.mxu1 %v2876_v19 }
 0x1b6   :  { %1847 = vmatpush1.bf16.msra.mxu0 %v2871_v28 }
 0x1b7   :  { %1953 = vmatpush1.bf16.msra.mxu1 %v2874_v8  ;;  %1848 = vmatprep.subr.bf16.mxu0 %v2879_v15 }
 0x1b8   :  { %1954 = vmatprep.subr.bf16.mxu1 %v2882_v29 }
 0x1ba   :  { %1849 = vmatpush1.bf16.msra.mxu0 %v2877_v32 }
 0x1bb   :  { %1955 = vmatpush1.bf16.msra.mxu1 %v2880_v34  ;;  %1850 = vmatprep.subr.bf16.mxu0 %v2885_v35 }
 0x1bc   :  { %1956 = vmatprep.subr.bf16.mxu1 %v2888_v36 }
 0x1be   :  { %1851 = vmatpush1.bf16.msra.mxu0 %v2883_v37 }
 0x1bf   :  { %1957 = vmatpush1.bf16.msra.mxu1 %v2886_v39  ;;  %1852 = vmatprep.subr.bf16.mxu0 %v2891_v63 }
 0x1c0   :  { %1958 = vmatprep.subr.bf16.mxu1 %v2894_v62 }
 0x1c2   :  { %1853 = vmatpush1.bf16.msra.mxu0 %v2889_v40 }
 0x1c3   :  { %1959 = vmatpush1.bf16.msra.mxu1 %v2892_v22  ;;  %1854 = vmatprep.subr.bf16.mxu0 %v2897_v3 }
 0x1c4   :  { %1960 = vmatprep.subr.bf16.mxu1 %v2900_v13 }
 0x1c6   :  { %1855 = vmatpush1.bf16.msra.mxu0 %v2895_v14 }
 0x1c7   :  { %1961 = vmatpush1.bf16.msra.mxu1 %v2898_v33  ;;  %2490 = vmatprep.subr.bf16.mxu0 %v2901_v41 }
 0x1c8   :  { %2528 = vmatprep.subr.bf16.mxu1 %v2902_v43 }
 0x1c9   :  { %1873 = vmatmul.mubr.bf16.vlgmr.msra.gmra.mrb[8].mxu0 %v3479_v11 }
 0x1ca   :  { %1979 = vmatmul.mubr.bf16.vlgmr.msra.gmra.mrb[8].mxu1 %v3479_v11  ;;  %2491 = vmatpush3.bf16.msra.mxu0 %v2903_v44 }
 0x1cb   :  { %2529 = vmatpush3.bf16.msra.mxu1 %v2902_v43  ;;  %2492 = vmatprep.subr.bf16.mxu0 %v2904_v45 }
 0x1cc   :  { %2530 = vmatprep.subr.bf16.mxu1 %v2905_v30  ;;  %1882 = vmatprep.mubr.bf16.mxu0 %v2933_v27 }
 0x1cd   :  { %1988 = vmatprep.mubr.bf16.mxu1 %v2933_v27  ;;  %v2912_v27 = vld [vmem:[%s3934_s3 + $0xf8] ss:$36 sps:$4 sm:$0xff]  }
 0x1ce   :  { %2493 = vmatpush3.bf16.msra.mxu0 %v2906_v46 }
 0x1cf   :  { %2531 = vmatpush3.bf16.msra.mxu1 %v2905_v30  ;;  %2494 = vmatprep.subr.bf16.mxu0 %v2907_v47 }
 0x1d0   :  { %2532 = vmatprep.subr.bf16.mxu1 %v2908_v48 }
 0x1d1   :  { %1883 = vmatmul.mubr.bf16.gmra.mrb[12].mxu0 %v3506_v55 }
 0x1d2   :  { %1989 = vmatmul.mubr.bf16.gmra.mrb[12].mxu1 %v3506_v55  ;;  %2495 = vmatpush3.bf16.msra.mxu0 %v2909_v21  ;;  %v452_v21 = vsub.s32 6, %v3294_v23 }
 0x1d3   :  { %2031 = vmatprep.mubr.bf16.mxu0 %v3344_v49  ;;  %2533 = vmatpush3.bf16.msra.mxu1 %v2908_v48  ;;  %v2916_v49 = vld [vmem:[%s3934_s3 + $0x3c8] ss:$36 sps:$4 sm:$0xff]   ;;  %v444_v48 = vsub.s32 4, %v3294_v23 }
 0x1d4   :  { %2544 = vmatprep.mubr.bf16.mxu1 %v3479_v11  ;;  %2496 = vmatprep.subr.bf16.mxu0 %v2910_v20  ;;  %v2917_v11 = vld [vmem:[%s3934_s3 + $0x608] ss:$36 sps:$4 sm:$0xff]   ;;  %v448_v20 = vsub.s32 5, %v3294_v23 }
 0x1d5   :  { %2534 = vmatprep.subr.bf16.mxu1 %v2911_v26 }
 0x1d6   :  { %2497 = vmatpush3.bf16.msra.mxu0 %v2912_v27  ;;  %v445_v27 = vrot.slane %v422_v57, %v444_v48 }
 0x1d7   :  { %2535 = vmatpush3.bf16.msra.mxu1 %v2911_v26  ;;  %2498 = vmatprep.subr.bf16.mxu0 %v2913_v12  ;;  %v456_v26 = vsub.s32 7, %v3294_v23  ;;  %v453_v12 = vrot.slane %v422_v57, %v452_v21 }
 0x1d8   :  { %2536 = vmatprep.subr.bf16.mxu1 %v2914_v38 }
 0x1da   :  { %2499 = vmatpush3.bf16.msra.mxu0 %v2915_v42  ;;  %v457_v42 = vrot.slane %v422_v57, %v456_v26 }
 0x1db   :  { %2537 = vmatpush3.bf16.msra.mxu1 %v2914_v38  ;;  %2500 = vmatprep.subr.bf16.mxu0 %v2916_v49  ;;  %v449_v38 = vrot.slane %v422_v57, %v448_v20 }
 0x1dc   :  { %2538 = vmatprep.subr.bf16.mxu1 %v2917_v11 }
 0x1de   :  { %2501 = vmatpush3.bf16.msra.mxu0 %v2918_v50 }
 0x1df   :  { %2539 = vmatpush3.bf16.msra.mxu1 %v2917_v11  ;;  %2502 = vmatprep.subr.bf16.mxu0 %v2919_v52 }
 0x1e0   :  { %2540 = vmatprep.subr.bf16.mxu1 %v2920_v24 }
 0x1e2   :  { %2503 = vmatpush3.bf16.msra.mxu0 %v2921_v7 }
 0x1e3   :  { %2541 = vmatpush3.bf16.msra.mxu1 %v2920_v24  ;;  %2504 = vmatprep.subr.bf16.mxu0 %v2922_v25 }
 0x1e4   :  { %2542 = vmatprep.subr.bf16.mxu1 %v2923_v53 }
 0x1e6   :  { %2505 = vmatpush3.bf16.msra.mxu0 %v2924_v54 }
 0x1e7   :  { %2543 = vmatpush3.bf16.msra.mxu1 %v2923_v53 }
 0x1e9   :  { %2032 = vmatmul.mubr.bf16.vlgmr.msra.gmra.mrb[16].mxu0 %v3352_v51 }
 0x1ea   :  { %2545 = vmatmul.mubr.bf16.vlgmr.msra.gmra.mrb[16].mxu1 %v3506_v55  ;;  %2039 = vmatprep.mubr.bf16.mxu0 %v3364_v56 }
 0x1f1   :  { %2040 = vmatmul.mubr.bf16.gmra.mrb[20].mxu0 %v3386_v0 }
 0x23b   :  { %v1662_v51 = vpop.f32.mrb[0].mxu0  ;;  %v1768_v17 = vpop.f32.mrb[0].mxu1 }
 0x23c   :  { %v2548_v55 = vadd.f32 %v1662_v51, %v429_v59  ;;  %v2556_v18 = vadd.f32 %v1768_v17, %v437_v60  ;;  %v1664_v56 = vpop.f32.mrb[1].mxu0  ;;  %v1770_v1 = vpop.f32.mrb[1].mxu1 }
 0x23d   :  { %v2549_v0 = vadd.f32 %v1664_v56, %v433_v61  ;;  %v2557_v2 = vadd.f32 %v1770_v1, %v441_v16  ;;  %v1666_v4 = vpop.f32.mrb[2].mxu0  ;;  %v1772_v5 = vpop.f32.mrb[2].mxu1 }
 0x23e   :  { %v2550_v6 = vadd.f32 %v1666_v4, %v429_v59  ;;  %v2558_v19 = vadd.f32 %v1772_v5, %v437_v60  ;;  %v1668_v28 = vpop.f32.mrb[3].mxu0  ;;  %v1774_v8 = vpop.f32.mrb[3].mxu1 }
 0x23f   :  { %v2470_v10 = vpack.c.bf16 %v2549_v0, %v2548_v55  ;;  %v2471_v15 = vpack.c.bf16 %v2557_v2, %v2556_v18  ;;  %v2551_v31 = vadd.f32 %v1668_v28, %v433_v61  ;;  %v2559_v29 = vadd.f32 %v1774_v8, %v441_v16 }
 0x241   :  { %2209 = vst [vmem:[%s3938_s5] sm:$0xff] %v2470_v10  ;;  %2210 = vst [vmem:[%s3938_s5 + $0x8] sm:$0xff] %v2471_v15  ;;  %v2475_v9 = vpack.c.bf16 %v2551_v31, %v2550_v6  ;;  %v2476_v32 = vpack.c.bf16 %v2559_v29, %v2558_v19 }
 0x243   :  { %2214 = vst [vmem:[%s3938_s5 + $0x24] sm:$0xff] %v2475_v9  ;;  %2215 = vst [vmem:[%s3938_s5 + $0x2c] sm:$0xff] %v2476_v32  ;;  %v1672_v34 = vpop.f32.mrb[4].mxu0  ;;  %v1778_v35 = vpop.f32.mrb[4].mxu1 }
 0x244   :  { %v2552_v36 = vadd.f32 %v1672_v34, %v429_v59  ;;  %v2560_v37 = vadd.f32 %v1778_v35, %v437_v60  ;;  %v1674_v39 = vpop.f32.mrb[5].mxu0  ;;  %v1780_v63 = vpop.f32.mrb[5].mxu1 }
 0x245   :  { %v2553_v62 = vadd.f32 %v1674_v39, %v433_v61  ;;  %v2561_v40 = vadd.f32 %v1780_v63, %v441_v16  ;;  %v1676_v22 = vpop.f32.mrb[6].mxu0  ;;  %v1782_v3 = vpop.f32.mrb[6].mxu1 }
 0x246   :  { %v2554_v13 = vadd.f32 %v1676_v22, %v429_v59  ;;  %v2562_v14 = vadd.f32 %v1782_v3, %v437_v60  ;;  %v1678_v33 = vpop.f32.mrb[7].mxu0  ;;  %v1784_v41 = vpop.f32.mrb[7].mxu1 }
 0x247   :  { %v2480_v43 = vpack.c.bf16 %v2553_v62, %v2552_v36  ;;  %v2481_v44 = vpack.c.bf16 %v2561_v40, %v2560_v37  ;;  %v2555_v45 = vadd.f32 %v1678_v33, %v433_v61  ;;  %v2563_v30 = vadd.f32 %v1784_v41, %v441_v16  ;;  %v2233_v40 = vld [vmem:[%s3937_s4 + $0x8] ss:$0 sm:$0xff] }
 0x249   :  { %2219 = vst [vmem:[%s3938_s5 + $0x48] sm:$0xff] %v2480_v43  ;;  %2220 = vst [vmem:[%s3938_s5 + $0x50] sm:$0xff] %v2481_v44  ;;  %v2485_v46 = vpack.c.bf16 %v2555_v45, %v2554_v13  ;;  %v2486_v47 = vpack.c.bf16 %v2563_v30, %v2562_v14 }
 0x24b   :  { %2224 = vst [vmem:[%s3938_s5 + $0x6c] sm:$0xff] %v2485_v46  ;;  %2225 = vst [vmem:[%s3938_s5 + $0x74] sm:$0xff] %v2486_v47 }
 0x29c   :  { %v1874_v49 = vpop.f32.mrb[8].mxu0 }
 0x29d   :  { %v2564_v11 = vadd.f32 %v1874_v49, %v445_v27  ;;  %v1980_v50 = vpop.f32.mrb[8].mxu1  ;;  %v1876_v52 = vpop.f32.mrb[9].mxu0 }
 0x29e   :  { %v2572_v24 = vadd.f32 %v1980_v50, %v453_v12  ;;  %v2565_v7 = vadd.f32 %v1876_v52, %v449_v38  ;;  %v1982_v25 = vpop.f32.mrb[9].mxu1  ;;  %v1878_v53 = vpop.f32.mrb[10].mxu0 }
 0x29f   :  { %v2573_v54 = vadd.f32 %v1982_v25, %v457_v42  ;;  %v2566_v58 = vadd.f32 %v1878_v53, %v445_v27  ;;  %v1984_v59 = vpop.f32.mrb[10].mxu1  ;;  %v1880_v60 = vpop.f32.mrb[11].mxu0 }
 0x2a0   :  { %v2472_v61 = vpack.c.bf16 %v2565_v7, %v2564_v11  ;;  %v2574_v16 = vadd.f32 %v1984_v59, %v453_v12  ;;  %v2567_v51 = vadd.f32 %v1880_v60, %v449_v38  ;;  %v1986_v23 = vpop.f32.mrb[11].mxu1 }
 0x2a1   :  { %v2473_v17 = vpack.c.bf16 %v2573_v54, %v2572_v24  ;;  %v2575_v55 = vadd.f32 %v1986_v23, %v457_v42 }
 0x2a2   :  { %2211 = vst [vmem:[%s3938_s5 + $0x10] sm:$0xff] %v2472_v61  ;;  %v2477_v57 = vpack.c.bf16 %v2567_v51, %v2566_v58 }
 0x2a3   :  { %2212 = vst [vmem:[%s3938_s5 + $0x18] sm:$0xff] %v2473_v17  ;;  %v2478_v18 = vpack.c.bf16 %v2575_v55, %v2574_v16 }
 0x2a4   :  { %2216 = vst [vmem:[%s3938_s5 + $0x34] sm:$0xff] %v2477_v57  ;;  %v1884_v56 = vpop.f32.mrb[12].mxu0 }
 0x2a5   :  { %2217 = vst [vmem:[%s3938_s5 + $0x3c] sm:$0xff] %v2478_v18  ;;  %v2568_v1 = vadd.f32 %v1884_v56, %v445_v27  ;;  %v1990_v0 = vpop.f32.mrb[12].mxu1  ;;  %v1886_v2 = vpop.f32.mrb[13].mxu0 }
 0x2a6   :  { %v2576_v4 = vadd.f32 %v1990_v0, %v453_v12  ;;  %v2569_v5 = vadd.f32 %v1886_v2, %v449_v38  ;;  %v1992_v6 = vpop.f32.mrb[13].mxu1  ;;  %v1888_v19 = vpop.f32.mrb[14].mxu0 }
 0x2a7   :  { %v2577_v28 = vadd.f32 %v1992_v6, %v457_v42  ;;  %v2570_v8 = vadd.f32 %v1888_v19, %v445_v27  ;;  %v1994_v10 = vpop.f32.mrb[14].mxu1  ;;  %v1890_v15 = vpop.f32.mrb[15].mxu0 }
 0x2a8   :  { %v2482_v31 = vpack.c.bf16 %v2569_v5, %v2568_v1  ;;  %v2578_v29 = vadd.f32 %v1994_v10, %v453_v12  ;;  %v2571_v9 = vadd.f32 %v1890_v15, %v449_v38  ;;  %v1996_v32 = vpop.f32.mrb[15].mxu1 }
 0x2a9   :  { %v2483_v34 = vpack.c.bf16 %v2577_v28, %v2576_v4  ;;  %v2579_v35 = vadd.f32 %v1996_v32, %v457_v42 }
 0x2aa   :  { %2221 = vst [vmem:[%s3938_s5 + $0x58] sm:$0xff] %v2482_v31  ;;  %v2487_v36 = vpack.c.bf16 %v2571_v9, %v2570_v8 }
 0x2ab   :  { %2222 = vst [vmem:[%s3938_s5 + $0x60] sm:$0xff] %v2483_v34  ;;  %v2488_v37 = vpack.c.bf16 %v2579_v35, %v2578_v29 }
 0x2ac   :  { %2226 = vst [vmem:[%s3938_s5 + $0x7c] sm:$0xff] %v2487_v36 }
 0x2ad   :  { %2227 = vst [vmem:[%s3938_s5 + $0x84] sm:$0xff] %v2488_v37 }
 0x2bc   :  { %v2506_v39 = vpop.f32.mrb[16].mxu0 }
 0x2bd   :  { %v2546_v63 = vpop.f32.mrb[16].mxu1  ;;  %v2507_v62 = vpop.f32.mrb[17].mxu0 }
 0x2be   :  { %v2508_v22 = vadd.f32 %v2507_v62, %v2506_v39  ;;  %v2082_v3 = vpop.f32.mrb[17].mxu1  ;;  %v2509_v13 = vpop.f32.mrb[18].mxu0 }
 0x2bf   :  { %v2547_v14 = vpop.f32.mrb[18].mxu1  ;;  %v2510_v33 = vpop.f32.mrb[19].mxu0 }
 0x2c0   :  { %v2034_v41 = vadd.f32 %v2508_v22, %v2233_v40  ;;  %v2511_v43 = vadd.f32 %v2510_v33, %v2509_v13  ;;  %v2085_v44 = vpop.f32.mrb[19].mxu1 }
 0x2c2   :  { %v2083_v45 = vadd.f32 %v2082_v3, %v2034_v41  ;;  %v2037_v30 = vadd.f32 %v2511_v43, %v2233_v40 }
 0x2c4   :  { %v2474_v46 = vpack.c.bf16 %v2083_v45, %v2083_v45  ;;  %v2086_v47 = vadd.f32 %v2085_v44, %v2037_v30  ;;  %v2512_v48 = vpop.f32.mrb[20].mxu0 }
 0x2c5   :  { %v2513_v21 = vpop.f32.mrb[21].mxu0 }
 0x2c6   :  { %2213 = vst [vmem:[%s3938_s5 + $0x20] sm:$0xf] %v2474_v46  ;;  %v2479_v20 = vpack.c.bf16 %v2086_v47, %v2086_v47  ;;  %v2514_v26 = vadd.f32 %v2513_v21, %v2512_v48  ;;  %v2515_v27 = vpop.f32.mrb[22].mxu0 }
 0x2c7   :  { %v2516_v12 = vpop.f32.mrb[23].mxu0 }
 0x2c8   :  { %2218 = vst [vmem:[%s3938_s5 + $0x44] sm:$0xf] %v2479_v20  ;;  %v2042_v38 = vadd.f32 %v2514_v26, %v2233_v40  ;;  %v2517_v42 = vadd.f32 %v2516_v12, %v2515_v27 }
 0x2ca   :  { %v2091_v49 = vadd.f32 %v2546_v63, %v2042_v38  ;;  %v2045_v11 = vadd.f32 %v2517_v42, %v2233_v40 }
 0x2cc   :  { %v2484_v50 = vpack.c.bf16 %v2091_v49, %v2091_v49  ;;  %v2094_v52 = vadd.f32 %v2547_v14, %v2045_v11 }
 0x2ce   :  { %2223 = vst [vmem:[%s3938_s5 + $0x68] sm:$0xf] %v2484_v50  ;;  %v2489_v24 = vpack.c.bf16 %v2094_v52, %v2094_v52 }
 0x2d0   :  { %2228 = vst [vmem:[%s3938_s5 + $0x8c] sm:$0xf] %v2489_v24 }

// kernel: dino_v2_forward.77
= control target key start
LH: loop header
LB: loop body
LE: loop exit
PB: predicated region body
PF: predicated region fallthrough
CT: control target
= control target key end

     0   :  { %v45_v2 = vlaneseq  ;;  %v1346_v5 = vmov 1983009808   ;;  %s1769_s0 = inlined_call_operand.vmem [shape: f32[2,384], index: 0, kind: input, shape index: {}]   ;;  %s1770_s1 = inlined_call_operand.vmem [shape: f32[1,384], index: 1, kind: input, shape index: {}]   ;;  %s1771_s2 = inlined_call_operand.vmem [shape: f32[1,384], index: 2, kind: input, shape index: {}]   ;;  %s1772_s3 = inlined_call_operand.vmem [shape: bf16[384,256], index: 3, kind: input, shape index: {}]   ;;  %s1773_s4 = inlined_call_operand.vmem [shape: f32[1,256], index: 4, kind: input, shape index: {}]   ;;  %s1774_s5 = inlined_call_operand.vmem [shape: bf16[256,128], index: 5, kind: input, shape index: {}]   ;;  %s1775_s6 = inlined_call_operand.vmem [shape: f32[1,128], index: 6, kind: input, shape index: {}]   ;;  %s1776_s7 = inlined_call_operand.hbm [shape: f32[2,128], index: 7, kind: output, shape index: {}]  }
   0x1   :  { %v30_v0 = vld [vmem:[%s1769_s0] sm:$0x3f]  ;;  %v31_v1 = vld [vmem:[%s1769_s0 + $0x6] sm:$0x3f]  ;;  %v32_v3 = vld [vmem:[%s1769_s0 + $0xc] sm:$0x3f]  ;;  %v43_v6 = vunpack.c.l.s4 %v1346_v5 }
   0x2   :  { %v33_v4 = vld [vmem:[%s1769_s0 + $0x12] sm:$0x3f]  ;;  %v1407_v7 = vshrl.u32 %v45_v2, 7 }
   0x3   :  { %12 = vsyncpa [#allocation3], 0  ;;  %v38_v8 = vcombine.low %v30_v0, %v31_v1  ;;  %v39_v9 = vcombine.high %v30_v0, %v31_v1  ;;  %v40_v10 = vcombine.low %v32_v3, %v33_v4  ;;  %v41_v11 = vcombine.high %v32_v3, %v33_v4 }
   0x4   :  { %v44_v12 = vunpack.c.0.s8 %v43_v6  ;;  %v1347_v23 = vmov 269488144   ;;  %v1348_v25 = vmov 842150450   ;;  %v1349_v27 = vmov 1414812756  }
   0x5   :  { %v84_v24 = vunpack.c.l.s4 %v1347_v23  ;;  %v91_v26 = vunpack.c.l.s4 %v1348_v25  ;;  %v98_v28 = vunpack.c.l.s4 %v1349_v27  ;;  %v1350_v29 = vmov 1987475062   ;;  %v28_v6 = vld [vmem:[%s1770_s1] sm:$0x7] }
   0x6   :  { %v1410_v13 = vsub.s32 %v44_v12, %v1407_v7  ;;  %v105_v30 = vunpack.c.l.s4 %v1350_v29  ;;  %v1453_v2 = vsub.s32 0, %v1407_v7 }
   0x7   :  { %v85_v31 = vunpack.c.0.s8 %v84_v24  ;;  %v92_v32 = vunpack.c.0.s8 %v91_v26  ;;  %v99_v33 = vunpack.c.0.s8 %v98_v28 }
   0x8   :  { %v48_v14 = vrot.slane %v38_v8, %v1410_v13  ;;  %v55_v15 = vrot.slane %v39_v9, %v1410_v13  ;;  %v62_v16 = vrot.slane %v40_v10, %v1410_v13  ;;  %v69_v17 = vrot.slane %v41_v11, %v1410_v13  ;;  %v29_v9 = vld [vmem:[%s1771_s2] sm:$0x7] }
   0x9   :  { %v106_v34 = vunpack.c.0.s8 %v105_v30  ;;  %v1417_v35 = vsub.s32 %v85_v31, %v1407_v7  ;;  %v1420_v36 = vsub.s32 %v92_v32, %v1407_v7  ;;  %v1423_v37 = vsub.s32 %v99_v33, %v1407_v7 }
   0xa   :  { %v70_v18 = vcombine.low %v48_v14, %v62_v16  ;;  %v71_v19 = vcombine.high %v48_v14, %v62_v16  ;;  %v72_v20 = vcombine.low %v55_v15, %v69_v17  ;;  %v213_v11 = vrot.slane %v28_v6, %v1453_v2 }
   0xb   :  { %v1426_v38 = vsub.s32 %v106_v34, %v1407_v7  ;;  %v269_v15 = vrot.slane %v29_v9, %v1453_v2 }
   0xc   :  { %v76_v21 = vadd.f32 %v71_v19, %v70_v18 }
   0xe   :  { %v77_v22 = vadd.f32 %v76_v21, %v72_v20 }
  0x10   :  { %78 = vadd.xlane.f32.xlu0 %v77_v22 }
  0x9d   :  { %v79_v39 = vpop.xlane.xlu0 %78 }
  0x9e   :  { %v81_v40 = vmul.f32 0.0026041667, %v79_v39 }
  0xa0   :  { %v89_v41 = vrot.slane %v81_v40, %v1417_v35  ;;  %v96_v42 = vrot.slane %v81_v40, %v1420_v36  ;;  %v103_v43 = vrot.slane %v81_v40, %v1423_v37  ;;  %v110_v44 = vrot.slane %v81_v40, %v1426_v38 }
  0xa2   :  { %v1432_v45 = vsub.f32 %v30_v0, %v89_v41  ;;  %v1434_v46 = vsub.f32 %v31_v1, %v96_v42  ;;  %v1436_v47 = vsub.f32 %v32_v3, %v103_v43  ;;  %v1438_v48 = vsub.f32 %v33_v4, %v110_v44 }
  0xa3   :  { %v1456_v3 = vsub.s32 1, %v1407_v7  ;;  %v220_v4 = vsub.s32 2, %v1407_v7 }
  0xa4   :  { %v119_v49 = vmul.f32 %v1432_v45, %v1432_v45  ;;  %v120_v50 = vmul.f32 %v1434_v46, %v1434_v46  ;;  %v121_v51 = vmul.f32 %v1436_v47, %v1436_v47  ;;  %v122_v52 = vmul.f32 %v1438_v48, %v1438_v48 }
  0xa5   :  { %v217_v12 = vrot.slane %v28_v6, %v1456_v3  ;;  %v221_v14 = vrot.slane %v28_v6, %v220_v4  ;;  %v273_v7 = vrot.slane %v29_v9, %v1456_v3  ;;  %v277_v16 = vrot.slane %v29_v9, %v220_v4 }
  0xa6   :  { %v127_v53 = vcombine.low %v119_v49, %v120_v50  ;;  %v128_v54 = vcombine.high %v119_v49, %v120_v50  ;;  %v129_v55 = vcombine.low %v121_v51, %v122_v52  ;;  %v130_v56 = vcombine.high %v121_v51, %v122_v52 }
  0xa7   :  { %v222_v17 = vcombine.low %v213_v11, %v217_v12  ;;  %v223_v18 = vcombine.high %v213_v11, %v217_v12  ;;  %v224_v19 = vcombine.high %v221_v14, %v221_v14  ;;  %v278_v20 = vcombine.low %v269_v15, %v273_v7  ;;  %v1230_v12 = vld [vmem:[%s1772_s3 + $0x4] ss:$8 sps:$4 sm:$0xff]  }
  0xa8   :  { %v137_v57 = vrot.slane %v127_v53, %v1410_v13  ;;  %v144_v58 = vrot.slane %v128_v54, %v1410_v13  ;;  %v151_v59 = vrot.slane %v129_v55, %v1410_v13  ;;  %v158_v60 = vrot.slane %v130_v56, %v1410_v13  ;;  %848 = vmatprep.subr.bf16.mxu0 %v1230_v12  ;;  %v1264_v12 = vld [vmem:[%s1772_s3 + $0x110] ss:$8 sps:$4 sm:$0xff]  }
  0xa9   :  { %v279_v21 = vcombine.high %v269_v15, %v273_v7  ;;  %v280_v22 = vcombine.high %v277_v16, %v277_v16  ;;  %v231_v23 = vrot.slane %v222_v17, %v1410_v13  ;;  %v238_v24 = vrot.slane %v223_v18, %v1410_v13  ;;  %v1233_v15 = vld [vmem:[%s1772_s3 + $0x14] ss:$8 sps:$4 sm:$0xff]   ;;  %v1235_v7 = vld [vmem:[%s1772_s3 + $0x10] ss:$8 sps:$4 sm:$0xff]   ;;  %v1254_v17 = vld [vmem:[%s1772_s3 + $0x104] ss:$8 sps:$4 sm:$0xff]  }
  0xaa   :  { %v159_v61 = vcombine.low %v137_v57, %v151_v59  ;;  %v160_v62 = vcombine.high %v137_v57, %v151_v59  ;;  %v161_v63 = vcombine.low %v144_v58, %v158_v60  ;;  %v245_v25 = vrot.slane %v221_v14, %v1410_v13  ;;  %v1232_v14 = vld [vmem:[%s1772_s3] ss:$8 sps:$4 sm:$0xff]   ;;  %889 = vmatprep.subr.bf16.mxu1 %v1254_v17 }
  0xab   :  { %v252_v26 = vrot.slane %v224_v19, %v1410_v13  ;;  %v287_v27 = vrot.slane %v278_v20, %v1410_v13  ;;  %v294_v28 = vrot.slane %v279_v21, %v1410_v13  ;;  %v301_v29 = vrot.slane %v277_v16, %v1410_v13  ;;  %849 = vmatpush1.bf16.msra.mxu0 %v1232_v14  ;;  %v1236_v16 = vld [vmem:[%s1772_s3 + $0x24] ss:$8 sps:$4 sm:$0xff]   ;;  %v1238_v18 = vld [vmem:[%s1772_s3 + $0x20] ss:$8 sps:$4 sm:$0xff]   ;;  %v1239_v19 = vld [vmem:[%s1772_s3 + $0x34] ss:$8 sps:$4 sm:$0xff]  }
  0xac   :  { %v165_v0 = vadd.f32 %v160_v62, %v159_v61  ;;  %v308_v30 = vrot.slane %v280_v22, %v1410_v13  ;;  %v1477_v32 = vcombine.low %v231_v23, %v245_v25  ;;  %v1479_v33 = vcombine.high %v231_v23, %v245_v25  ;;  %850 = vmatprep.subr.bf16.mxu0 %v1233_v15  ;;  %v1241_v20 = vld [vmem:[%s1772_s3 + $0x30] ss:$8 sps:$4 sm:$0xff]   ;;  %v1242_v21 = vld [vmem:[%s1772_s3 + $0x44] ss:$8 sps:$4 sm:$0xff]   ;;  %v1244_v22 = vld [vmem:[%s1772_s3 + $0x40] ss:$8 sps:$4 sm:$0xff]  }
  0xad   :  { %v1481_v34 = vcombine.low %v238_v24, %v252_v26  ;;  %v1483_v39 = vcombine.high %v238_v24, %v252_v26  ;;  %v1489_v44 = vcombine.low %v287_v27, %v301_v29  ;;  %v1491_v49 = vcombine.high %v287_v27, %v301_v29  ;;  %v1245_v23 = vld [vmem:[%s1772_s3 + $0x54] ss:$8 sps:$4 sm:$0xff]   ;;  %v1247_v24 = vld [vmem:[%s1772_s3 + $0x50] ss:$8 sps:$4 sm:$0xff]   ;;  %v1248_v25 = vld [vmem:[%s1772_s3 + $0x64] ss:$8 sps:$4 sm:$0xff]  }
  0xae   :  { %v166_v1 = vadd.f32 %v165_v0, %v161_v63  ;;  %v1493_v50 = vcombine.low %v294_v28, %v308_v30  ;;  %v1495_v51 = vcombine.high %v294_v28, %v308_v30  ;;  %v1250_v26 = vld [vmem:[%s1772_s3 + $0x60] ss:$8 sps:$4 sm:$0xff]   ;;  %v1251_v27 = vld [vmem:[%s1772_s3 + $0x74] ss:$8 sps:$4 sm:$0xff]   ;;  %v1253_v28 = vld [vmem:[%s1772_s3 + $0x70] ss:$8 sps:$4 sm:$0xff]  }
  0xaf   :  { %851 = vmatpush1.bf16.msra.mxu0 %v1235_v7  ;;  %v1265_v14 = vld [vmem:[%s1772_s3 + $0x90] ss:$8 sps:$4 sm:$0xff]   ;;  %v1266_v15 = vld [vmem:[%s1772_s3 + $0x124] ss:$8 sps:$4 sm:$0xff]   ;;  %v1271_v17 = vld [vmem:[%s1772_s3 + $0xa0] ss:$8 sps:$4 sm:$0xff]  }
  0xb0   :  { %167 = vadd.xlane.f32.xlu0 %v166_v1  ;;  %852 = vmatprep.subr.bf16.mxu0 %v1236_v16  ;;  %v1268_v7 = vld [vmem:[%s1772_s3 + $0xa4] ss:$8 sps:$4 sm:$0xff]   ;;  %v1270_v16 = vld [vmem:[%s1772_s3 + $0x120] ss:$8 sps:$4 sm:$0xff]  }
  0xb3   :  { %853 = vmatpush1.bf16.msra.mxu0 %v1238_v18  ;;  %v1272_v18 = vld [vmem:[%s1772_s3 + $0x134] ss:$8 sps:$4 sm:$0xff]  }
  0xb4   :  { %854 = vmatprep.subr.bf16.mxu0 %v1239_v19  ;;  %v1274_v19 = vld [vmem:[%s1772_s3 + $0xb4] ss:$8 sps:$4 sm:$0xff]  }
  0xb7   :  { %855 = vmatpush1.bf16.msra.mxu0 %v1241_v20  ;;  %v1276_v20 = vld [vmem:[%s1772_s3 + $0x130] ss:$8 sps:$4 sm:$0xff]  }
  0xb8   :  { %856 = vmatprep.subr.bf16.mxu0 %v1242_v21  ;;  %v1277_v21 = vld [vmem:[%s1772_s3 + $0xb0] ss:$8 sps:$4 sm:$0xff]  }
  0xbb   :  { %857 = vmatpush1.bf16.msra.mxu0 %v1244_v22  ;;  %v1278_v22 = vld [vmem:[%s1772_s3 + $0x144] ss:$8 sps:$4 sm:$0xff]  }
  0xbc   :  { %858 = vmatprep.subr.bf16.mxu0 %v1245_v23  ;;  %v1280_v23 = vld [vmem:[%s1772_s3 + $0xc4] ss:$8 sps:$4 sm:$0xff]  }
  0xbf   :  { %859 = vmatpush1.bf16.msra.mxu0 %v1247_v24  ;;  %v1282_v24 = vld [vmem:[%s1772_s3 + $0x140] ss:$8 sps:$4 sm:$0xff]  }
  0xc0   :  { %860 = vmatprep.subr.bf16.mxu0 %v1248_v25  ;;  %v1283_v25 = vld [vmem:[%s1772_s3 + $0xc0] ss:$8 sps:$4 sm:$0xff]  }
  0xc3   :  { %861 = vmatpush1.bf16.msra.mxu0 %v1250_v26  ;;  %v1284_v26 = vld [vmem:[%s1772_s3 + $0x154] ss:$8 sps:$4 sm:$0xff]  }
  0xc4   :  { %862 = vmatprep.subr.bf16.mxu0 %v1251_v27  ;;  %v1286_v27 = vld [vmem:[%s1772_s3 + $0xd4] ss:$8 sps:$4 sm:$0xff]  }
  0xc7   :  { %863 = vmatpush1.bf16.msra.mxu0 %v1253_v28  ;;  %v1351_v28 = vmov 0  }
  0xc8   :  { %921 = vmatprep.mubr.bf16.mxu1 %v1351_v28 }
 0x13d   :  { %v168_v5 = vpop.xlane.xlu0 %167 }
 0x13e   :  { %v169_v8 = vmul.f32 0.0026041667, %v168_v5 }
 0x140   :  { %v170_v10 = vadd.f32 1e-06, %v169_v8 }
 0x142   :  { %1318 = vrsqrt.f32 %v170_v10 }
 0x14c   :  { %v1319_v31 = vpop.eup %1318 }
 0x14d   :  { %v179_v40 = vrot.slane %v1319_v31, %v1417_v35  ;;  %v186_v41 = vrot.slane %v1319_v31, %v1420_v36  ;;  %v193_v42 = vrot.slane %v1319_v31, %v1423_v37  ;;  %v200_v43 = vrot.slane %v1319_v31, %v1426_v38 }
 0x14f   :  { %v205_v52 = vmul.f32 %v179_v40, %v1432_v45  ;;  %v206_v53 = vmul.f32 %v186_v41, %v1434_v46  ;;  %v207_v54 = vmul.f32 %v193_v42, %v1436_v47  ;;  %v208_v55 = vmul.f32 %v200_v43, %v1438_v48 }
 0x151   :  { %v261_v56 = vmul.f32 %v1477_v32, %v205_v52  ;;  %v262_v57 = vmul.f32 %v1479_v33, %v206_v53  ;;  %v263_v58 = vmul.f32 %v1481_v34, %v207_v54  ;;  %v264_v59 = vmul.f32 %v1483_v39, %v208_v55 }
 0x153   :  { %v317_v60 = vadd.f32 %v1489_v44, %v261_v56  ;;  %v318_v61 = vadd.f32 %v1491_v49, %v262_v57  ;;  %v319_v45 = vadd.f32 %v1493_v50, %v263_v58  ;;  %v320_v46 = vadd.f32 %v1495_v51, %v264_v59 }
 0x155   :  { %v325_v62 = vcombine.low %v317_v60, %v318_v61  ;;  %v326_v47 = vcombine.high %v317_v60, %v318_v61  ;;  %v327_v63 = vcombine.low %v319_v45, %v320_v46  ;;  %v328_v48 = vcombine.high %v319_v45, %v320_v46 }
 0x157   :  { %v335_v0 = vrot.slane %v325_v62, %v1410_v13  ;;  %v342_v1 = vrot.slane %v326_v47, %v1410_v13  ;;  %v349_v4 = vrot.slane %v327_v63, %v1410_v13  ;;  %v356_v5 = vrot.slane %v328_v48, %v1410_v13 }
 0x159   :  { %v357_v6 = vcombine.low %v335_v0, %v349_v4  ;;  %v358_v8 = vcombine.high %v335_v0, %v349_v4  ;;  %v359_v9 = vcombine.low %v342_v1, %v356_v5 }
 0x15b   :  { %v363_v10 = vadd.f32 %v358_v8, %v357_v6  ;;  %v1256_v6 = vld [vmem:[%s1772_s3 + $0x84] ss:$8 sps:$4 sm:$0xff]   ;;  %v1258_v8 = vld [vmem:[%s1772_s3 + $0x100] ss:$8 sps:$4 sm:$0xff]  }
 0x15c   :  { %864 = vmatprep.subr.bf16.mxu0 %v1256_v6  ;;  %890 = vmatpush1.bf16.msra.mxu1 %v1258_v8 }
 0x15d   :  { %v364_v11 = vadd.f32 %v363_v10, %v359_v9  ;;  %v1259_v9 = vld [vmem:[%s1772_s3 + $0x80] ss:$8 sps:$4 sm:$0xff]   ;;  %v1260_v10 = vld [vmem:[%s1772_s3 + $0x114] ss:$8 sps:$4 sm:$0xff]  }
 0x15e   :  { %865 = vmatpush1.bf16.msra.mxu0 %v1259_v9  ;;  %891 = vmatprep.subr.bf16.mxu1 %v1260_v10 }
 0x15f   :  { %365 = vadd.xlane.f32.xlu1 %v364_v11  ;;  %v1262_v11 = vld [vmem:[%s1772_s3 + $0x94] ss:$8 sps:$4 sm:$0xff]  }
 0x160   :  { %866 = vmatprep.subr.bf16.mxu0 %v1262_v11  ;;  %892 = vmatpush1.bf16.msra.mxu1 %v1264_v12 }
 0x161   :  { %893 = vmatprep.subr.bf16.mxu1 %v1266_v15  ;;  %v1304_v15 = vld [vmem:[%s1774_s5 + $0x48] sm:$0xff]  }
 0x162   :  { %867 = vmatpush1.bf16.msra.mxu0 %v1265_v14 }
 0x163   :  { %868 = vmatprep.subr.bf16.mxu0 %v1268_v7  ;;  %v1306_v7 = vld [vmem:[%s1774_s5 + $0x50] sm:$0xff]  }
 0x164   :  { %894 = vmatpush1.bf16.msra.mxu1 %v1270_v16  ;;  %v1307_v16 = vld [vmem:[%s1774_s5 + $0x10] sm:$0xff]  }
 0x165   :  { %895 = vmatprep.subr.bf16.mxu1 %v1272_v18  ;;  %v1309_v18 = vld [vmem:[%s1774_s5 + $0x18] sm:$0xff]  }
 0x166   :  { %869 = vmatpush1.bf16.msra.mxu0 %v1271_v17  ;;  %v1308_v17 = vld [vmem:[%s1774_s5 + $0x58] sm:$0xff]  }
 0x167   :  { %870 = vmatprep.subr.bf16.mxu0 %v1274_v19  ;;  %v1310_v19 = vld [vmem:[%s1774_s5 + $0x60] sm:$0xff]  }
 0x168   :  { %896 = vmatpush1.bf16.msra.mxu1 %v1276_v20  ;;  %v1311_v20 = vld [vmem:[%s1774_s5 + $0x20] sm:$0xff]  }
 0x169   :  { %897 = vmatprep.subr.bf16.mxu1 %v1278_v22  ;;  %v1313_v22 = vld [vmem:[%s1774_s5 + $0x28] sm:$0xff]  }
 0x16a   :  { %871 = vmatpush1.bf16.msra.mxu0 %v1277_v21  ;;  %v1312_v21 = vld [vmem:[%s1774_s5 + $0x68] sm:$0xff]  }
 0x16b   :  { %872 = vmatprep.subr.bf16.mxu0 %v1280_v23  ;;  %v1314_v23 = vld [vmem:[%s1774_s5 + $0x70] sm:$0xff]  }
 0x16c   :  { %898 = vmatpush1.bf16.msra.mxu1 %v1282_v24  ;;  %v1315_v24 = vld [vmem:[%s1774_s5 + $0x30] sm:$0xff]  }
 0x16d   :  { %899 = vmatprep.subr.bf16.mxu1 %v1284_v26  ;;  %v1317_v26 = vld [vmem:[%s1774_s5 + $0x38] sm:$0xff]  }
 0x16e   :  { %873 = vmatpush1.bf16.msra.mxu0 %v1283_v25  ;;  %v1316_v25 = vld [vmem:[%s1774_s5 + $0x78] sm:$0xff]  }
 0x16f   :  { %874 = vmatprep.subr.bf16.mxu0 %v1286_v27  ;;  %v596_v27 = vld [vmem:[%s1773_s4] sm:$0x3] }
 0x170   :  { %v601_v28 = vrot.slane %v596_v27, %v1453_v2 }
 0x1ec   :  { %v366_v29 = vpop.xlane.xlu1 %365 }
 0x1ed   :  { %v367_v30 = vmul.f32 0.0026041667, %v366_v29  ;;  %v1288_v29 = vld [vmem:[%s1772_s3 + $0x150] ss:$8 sps:$4 sm:$0xff]  }
 0x1ee   :  { %900 = vmatpush1.bf16.msra.mxu1 %v1288_v29  ;;  %v605_v29 = vrot.slane %v596_v27, %v1456_v3  ;;  %v1174_v3 = vld [vmem:[%s1775_s6] ss:$0 sm:$0xff] }
 0x1ef   :  { %v375_v31 = vrot.slane %v367_v30, %v1417_v35  ;;  %v382_v40 = vrot.slane %v367_v30, %v1420_v36  ;;  %v389_v41 = vrot.slane %v367_v30, %v1423_v37  ;;  %v396_v42 = vrot.slane %v367_v30, %v1426_v38  ;;  %v1289_v30 = vld [vmem:[%s1772_s3 + $0xd0] ss:$8 sps:$4 sm:$0xff]  }
 0x1f0   :  { %875 = vmatpush1.bf16.msra.mxu0 %v1289_v30 }
 0x1f1   :  { %v1568_v43 = vsub.f32 %v317_v60, %v375_v31  ;;  %v1570_v52 = vsub.f32 %v318_v61, %v382_v40  ;;  %v1572_v53 = vsub.f32 %v319_v45, %v389_v41  ;;  %v1574_v54 = vsub.f32 %v320_v46, %v396_v42  ;;  %v1290_v31 = vld [vmem:[%s1772_s3 + $0x164] ss:$8 sps:$4 sm:$0xff]   ;;  %v1294_v41 = vld [vmem:[%s1772_s3 + $0x160] ss:$8 sps:$4 sm:$0xff]  }
 0x1f2   :  { %v1292_v40 = vld [vmem:[%s1772_s3 + $0xe4] ss:$8 sps:$4 sm:$0xff]   ;;  %901 = vmatprep.subr.bf16.mxu1 %v1290_v31  ;;  %v1295_v42 = vld [vmem:[%s1772_s3 + $0xe0] ss:$8 sps:$4 sm:$0xff]  }
 0x1f3   :  { %v405_v55 = vmul.f32 %v1568_v43, %v1568_v43  ;;  %v406_v56 = vmul.f32 %v1570_v52, %v1570_v52  ;;  %v407_v57 = vmul.f32 %v1572_v53, %v1572_v53  ;;  %v408_v58 = vmul.f32 %v1574_v54, %v1574_v54  ;;  %876 = vmatprep.subr.bf16.mxu0 %v1292_v40 }
 0x1f4   :  { %902 = vmatpush1.bf16.msra.mxu1 %v1294_v41  ;;  %877 = vmatpush1.bf16.msra.mxu0 %v1295_v42 }
 0x1f5   :  { %v413_v59 = vcombine.low %v405_v55, %v406_v56  ;;  %v414_v60 = vcombine.high %v405_v55, %v406_v56  ;;  %v415_v61 = vcombine.low %v407_v57, %v408_v58  ;;  %v416_v62 = vcombine.high %v407_v57, %v408_v58  ;;  %v1296_v55 = vld [vmem:[%s1772_s3 + $0x174] ss:$8 sps:$4 sm:$0xff]   ;;  %v1300_v57 = vld [vmem:[%s1772_s3 + $0x170] ss:$8 sps:$4 sm:$0xff]  }
 0x1f6   :  { %v1298_v56 = vld [vmem:[%s1772_s3 + $0xf4] ss:$8 sps:$4 sm:$0xff]   ;;  %903 = vmatprep.subr.bf16.mxu1 %v1296_v55  ;;  %v1301_v58 = vld [vmem:[%s1772_s3 + $0xf0] ss:$8 sps:$4 sm:$0xff]  }
 0x1f7   :  { %v423_v45 = vrot.slane %v413_v59, %v1410_v13  ;;  %v430_v46 = vrot.slane %v414_v60, %v1410_v13  ;;  %v437_v47 = vrot.slane %v415_v61, %v1410_v13  ;;  %v444_v63 = vrot.slane %v416_v62, %v1410_v13  ;;  %878 = vmatprep.subr.bf16.mxu0 %v1298_v56  ;;  %v1302_v59 = vld [vmem:[%s1774_s5 + $0x40] sm:$0xff]  }
 0x1f8   :  { %904 = vmatpush1.bf16.msra.mxu1 %v1300_v57  ;;  %879 = vmatpush1.bf16.msra.mxu0 %v1301_v58 }
 0x1f9   :  { %v445_v48 = vcombine.low %v423_v45, %v437_v47  ;;  %v446_v0 = vcombine.high %v423_v45, %v437_v47  ;;  %v447_v1 = vcombine.low %v430_v46, %v444_v63  ;;  %1191 = vmatprep.subr.bf16.mxu1 %v1302_v59 }
 0x1fb   :  { %v451_v4 = vadd.f32 %v446_v0, %v445_v48 }
 0x1fd   :  { %v452_v5 = vadd.f32 %v451_v4, %v447_v1 }
 0x1ff   :  { %453 = vadd.xlane.f32.xlu1 %v452_v5 }
 0x28c   :  { %v454_v60 = vpop.xlane.xlu1 %453 }
 0x28d   :  { %v455_v61 = vmul.f32 0.0026041667, %v454_v60 }
 0x28f   :  { %v456_v62 = vadd.f32 1e-06, %v455_v61 }
 0x291   :  { %1320 = vrsqrt.f32 %v456_v62 }
 0x29b   :  { %v1321_v45 = vpop.eup %1320 }
 0x29c   :  { %v465_v46 = vrot.slane %v1321_v45, %v1417_v35  ;;  %v472_v47 = vrot.slane %v1321_v45, %v1420_v36  ;;  %v479_v63 = vrot.slane %v1321_v45, %v1423_v37  ;;  %v486_v48 = vrot.slane %v1321_v45, %v1426_v38 }
 0x29e   :  { %v491_v0 = vmul.f32 %v465_v46, %v1568_v43  ;;  %v492_v1 = vmul.f32 %v472_v47, %v1570_v52  ;;  %v493_v4 = vmul.f32 %v479_v63, %v1572_v53  ;;  %v494_v5 = vmul.f32 %v486_v48, %v1574_v54 }
 0x2a0   :  { %v495_v6 = vmul.f32 %v491_v0, %v1477_v32  ;;  %v496_v8 = vmul.f32 %v492_v1, %v1479_v33  ;;  %v497_v35 = vmul.f32 %v493_v4, %v1481_v34  ;;  %v498_v36 = vmul.f32 %v494_v5, %v1483_v39 }
 0x2a2   :  { %v499_v37 = vadd.f32 %v495_v6, %v1489_v44  ;;  %v500_v38 = vadd.f32 %v496_v8, %v1491_v49  ;;  %v501_v43 = vadd.f32 %v497_v35, %v1493_v50  ;;  %v502_v52 = vadd.f32 %v498_v36, %v1495_v51  ;;  %v1303_v49 = vld [vmem:[%s1774_s5] sm:$0xff]  }
 0x2a4   :  { %v507_v9 = vcombine.low %v499_v37, %v500_v38  ;;  %v509_v53 = vcombine.low %v501_v43, %v502_v52  ;;  %v508_v10 = vcombine.high %v499_v37, %v500_v38  ;;  %v510_v54 = vcombine.high %v501_v43, %v502_v52 }
 0x2a6   :  { %v517_v32 = vrot.slane %v507_v9, %v1410_v13  ;;  %v531_v33 = vrot.slane %v509_v53, %v1410_v13  ;;  %v524_v34 = vrot.slane %v508_v10, %v1410_v13  ;;  %v538_v39 = vrot.slane %v510_v54, %v1410_v13  ;;  %v1305_v13 = vld [vmem:[%s1774_s5 + $0x8] sm:$0xff]  }
 0x2a8   :  { %v540_v11 = vcombine.high %v517_v32, %v531_v33  ;;  %v541_v44 = vcombine.low %v524_v34, %v538_v39  ;;  %v539_v12 = vcombine.low %v517_v32, %v531_v33 }
 0x2aa   :  { %v546_v50 = vpack.c.bf16 %v540_v11, %v540_v11  ;;  %v547_v51 = vpack.c.bf16 %v541_v44, %v541_v44  ;;  %v545_v14 = vpack.c.bf16 %v539_v12, %v539_v12 }
 0x2ac   :  { %880 = vmatprep.mubr.bf16.mxu0 %v546_v50  ;;  %922 = vmatmul.mubr.bf16.vlgmr.msra.gmra.mrb[0].mxu1 %v547_v51 }
 0x2ad   :  { %881 = vmatmul.mubr.bf16.vlgmr.msra.gmra.mrb[0].mxu0 %v545_v14  ;;  %1192 = vmatpush3.bf16.msra.mxu1 %v1303_v49 }
 0x2ae   :  { %1193 = vmatprep.subr.bf16.mxu1 %v1304_v15 }
 0x2b1   :  { %1194 = vmatpush3.bf16.msra.mxu1 %v1305_v13 }
 0x2b2   :  { %1195 = vmatprep.subr.bf16.mxu1 %v1306_v7 }
 0x2b5   :  { %1196 = vmatpush3.bf16.msra.mxu1 %v1307_v16 }
 0x2b6   :  { %1197 = vmatprep.subr.bf16.mxu1 %v1308_v17 }
 0x2b9   :  { %1198 = vmatpush3.bf16.msra.mxu1 %v1309_v18 }
 0x2ba   :  { %1199 = vmatprep.subr.bf16.mxu1 %v1310_v19 }
 0x2bd   :  { %1200 = vmatpush3.bf16.msra.mxu1 %v1311_v20 }
 0x2be   :  { %1201 = vmatprep.subr.bf16.mxu1 %v1312_v21 }
 0x2c1   :  { %1202 = vmatpush3.bf16.msra.mxu1 %v1313_v22 }
 0x2c2   :  { %1203 = vmatprep.subr.bf16.mxu1 %v1314_v23 }
 0x2c5   :  { %1204 = vmatpush3.bf16.msra.mxu1 %v1315_v24 }
 0x2c6   :  { %1205 = vmatprep.subr.bf16.mxu1 %v1316_v25 }
 0x2c9   :  { %1206 = vmatpush3.bf16.msra.mxu1 %v1317_v26 }
 0x37f   :  { %v923_v30 = vpop.f32.mrb[0].mxu1 }
 0x380   :  { %v882_v31 = vpop.f32.mrb[0].mxu0  ;;  %v925_v40 = vpop.f32.mrb[1].mxu1 }
 0x381   :  { %v883_v41 = vadd.f32 %v882_v31, %v601_v28  ;;  %v884_v42 = vpop.f32.mrb[1].mxu0  ;;  %v927_v55 = vpop.f32.mrb[2].mxu1 }
 0x382   :  { %v885_v56 = vadd.f32 %v884_v42, %v605_v29  ;;  %v886_v57 = vpop.f32.mrb[2].mxu0  ;;  %v928_v58 = vpop.f32.mrb[3].mxu1 }
 0x383   :  { %v924_v59 = vadd.f32 %v923_v30, %v883_v41  ;;  %v887_v60 = vpop.f32.mrb[3].mxu0 }
 0x384   :  { %v926_v61 = vadd.f32 %v925_v40, %v885_v56 }
 0x385   :  { %v930_v62 = vmax.f32 %v924_v59, 0.0 }
 0x386   :  { %v931_v45 = vmax.f32 %v926_v61, 0.0 }
 0x387   :  { %v932_v47 = vpack.c.bf16 %v930_v62, %v930_v62 }
 0x388   :  { %v933_v46 = vpack.c.bf16 %v931_v45, %v931_v45 }
 0x38a   :  { %1101 = vmatprep.mubr.bf16.mxu1 %v933_v46 }
 0x38b   :  { %1102 = vmatmul.mubr.bf16.vlgmr.msra.gmra.mrb[4].mxu1 %v932_v47 }
 0x45e   :  { %v1207_v2 = vpop.f32.mrb[4].mxu1 }
 0x45f   :  { %v1208_v63 = vpop.f32.mrb[5].mxu1 }
 0x460   :  { %v1209_v48 = vadd.f32 %v1208_v63, %v1207_v2  ;;  %v1210_v0 = vpop.f32.mrb[6].mxu1 }
 0x461   :  { %v1211_v1 = vpop.f32.mrb[7].mxu1 }
 0x462   :  { %v1104_v4 = vadd.f32 %v1209_v48, %v1174_v3 }
 0x464   :  { %1109 = vst [vmem:[#allocation2] sm:$0xff] %v1104_v4 }
 0x465   :  { %1114 = vsyncadd [#allocation3], 96  ;;  %s1352_s10 = smov [#allocation2]  }
 0x466   :  { %s1115_s11 = sshll.u32 %s1352_s10, 4  ;;  %s1116_s11 = int_to_ptr.vmem [resolvable:$true] %s1115_s11 }
 0x467   :  { %s1322_s1 = scalar_lea.vmem %s1116_s11, 32  ;;  %s1326_s2 = scalar_lea.vmem %s1116_s11, 128 }
 0x468   :  { %p1323_p0 = scmp.ne.s32.totalorder %s1116_s11, %s1322_s1  ;;  %p1327_p1 = scmp.lt.s32.totalorder %s1116_s11, %s1116_s11 }
 0x469   :  { %p1328_p2 = scmp.lt.s32.totalorder %s1326_s2, %s1322_s1 }
 0x46b   :  { %p1329_p3 = por %p1328_p2, %p1327_p1 }
 0x46d   :  { %p1330_p4 = pnand %p1329_p3, %p1323_p0 }
 0x46f   :  { %1333 = shalt.err (!%p1330_p4)
}
 0x470   :  { %s1334_s13 = scalar_lea.hbm %s1776_s7, 32 }
 0x471   :  { %p1335_p5 = scmp.ne.s32.totalorder %s1776_s7, %s1334_s13  ;;  %p1338_p6 = scmp.lt.u32.totalorder %s1334_s13, %s1776_s7 }
 0x473   :  { %p1340_p7 = pnand %p1338_p6, %p1335_p5 }
 0x475   :  { %1343 = shalt.err (!%p1340_p7)
}
 0x476   :  { %s1353_s18 = smov 32   ;;  %s1354_s19 = smov 2  }
 0x477   :  { %1121 = dma.vmem_to_hbm [thread:$0]  %s1116_s11, 32, %s1776_s7, [#allocation3], %s1353_s18, %s1353_s18, %s1354_s19  }
 0x478   :  { %1344 = dma.done.wait [#allocation3], 128  }
 0x479   :  { %1345 = vsyncadd [#allocation3], 4294967168 }
 0x47a   :  { %1125 = vsyncpa [#allocation3], 1 }

// kernel: dino_v2_forward.42
= control target key start
LH: loop header
LB: loop body
LE: loop exit
PB: predicated region body
PF: predicated region fallthrough
CT: control target
= control target key end

     0   :  { %s7241_s1 = inlined_call_operand.vmem [shape: bf16[384,384], index: 1, kind: input, shape index: {}]   ;;  %s7242_s0 = inlined_call_operand.vmem [shape: bf16[32,384], index: 0, kind: input, shape index: {}]   ;;  %s7243_s2 = inlined_call_operand.vmem [shape: f32[1,384], index: 2, kind: input, shape index: {}]   ;;  %s7244_s3 = inlined_call_operand.vmem [shape: f32[1,384], index: 3, kind: input, shape index: {}]   ;;  %s7245_s4 = inlined_call_operand.vmem [shape: f32[32,384], index: 4, kind: input, shape index: {}]   ;;  %s7246_s9 = inlined_call_operand.vmem [shape: f32[32,384], index: 9, kind: output, shape index: {0}]   ;;  %s7247_s7 = inlined_call_operand.vmem [shape: bf16[384,1536], index: 7, kind: input, shape index: {}]   ;;  %s7248_s5 = inlined_call_operand.vmem [shape: f32[1,384], index: 5, kind: input, shape index: {}]   ;;  %s7249_s6 = inlined_call_operand.vmem [shape: f32[1,384], index: 6, kind: input, shape index: {}]   ;;  %s7250_s8 = inlined_call_operand.vmem [shape: f32[1,1536], index: 8, kind: input, shape index: {}]   ;;  %s7251_s10 = inlined_call_operand.vmem [shape: bf16[32,1536], index: 10, kind: output, shape index: {1}]  }
   0x1   :  { %v4627_v0 = vld [vmem:[%s7241_s1 + $0x4] ss:$12 sps:$4 sm:$0xff]   ;;  %v4629_v1 = vld [vmem:[%s7241_s1] ss:$12 sps:$4 sm:$0xff]   ;;  %v4630_v2 = vld [vmem:[%s7241_s1 + $0x1c] ss:$12 sps:$4 sm:$0xff]  }
   0x2   :  { %584 = vmatprep.subr.bf16.mxu0 %v4627_v0  ;;  %v4632_v3 = vld [vmem:[%s7241_s1 + $0xc8] ss:$12 sps:$4 sm:$0xff]   ;;  %v4633_v4 = vld [vmem:[%s7241_s1 + $0x18] ss:$12 sps:$4 sm:$0xff]   ;;  %v4637_v7 = vld [vmem:[%s7241_s1 + $0xe0] ss:$12 sps:$4 sm:$0xff]  }
   0x3   :  { %585 = vmatpush1.bf16.msra.mxu0 %v4629_v1  ;;  %v4634_v5 = vld [vmem:[%s7241_s1 + $0x8] ss:$12 sps:$4 sm:$0xff]   ;;  %4440 = vmatprep.subr.bf16.mxu1 %v4632_v3  ;;  %v4638_v8 = vld [vmem:[%s7241_s1 + $0x30] ss:$12 sps:$4 sm:$0xff]   ;;  %v4639_v9 = vld [vmem:[%s7241_s1 + $0x20] ss:$12 sps:$4 sm:$0xff]  }
   0x4   :  { %586 = vmatprep.subr.bf16.mxu0 %v4630_v2  ;;  %v4635_v6 = vld [vmem:[%s7241_s1 + $0x34] ss:$12 sps:$4 sm:$0xff]   ;;  %4441 = vmatpush3.bf16.msra.mxu1 %v4634_v5  ;;  %v4640_v10 = vld [vmem:[%s7241_s1 + $0x4c] ss:$12 sps:$4 sm:$0xff]   ;;  %v4645_v14 = vld [vmem:[%s7241_s1 + $0x64] ss:$12 sps:$4 sm:$0xff]  }
   0x5   :  { %4442 = vmatprep.subr.bf16.mxu1 %v4637_v7  ;;  %v4642_v11 = vld [vmem:[%s7241_s1 + $0xf8] ss:$12 sps:$4 sm:$0xff]   ;;  %v4643_v12 = vld [vmem:[%s7241_s1 + $0x48] ss:$12 sps:$4 sm:$0xff]   ;;  %v4647_v15 = vld [vmem:[%s7241_s1 + $0x110] ss:$12 sps:$4 sm:$0xff]  }
   0x6   :  { %v4644_v13 = vld [vmem:[%s7241_s1 + $0x38] ss:$12 sps:$4 sm:$0xff]   ;;  %v4649_v16 = vld [vmem:[%s7241_s1 + $0x50] ss:$12 sps:$4 sm:$0xff]   ;;  %v4648_v17 = vld [vmem:[%s7241_s1 + $0x60] ss:$12 sps:$4 sm:$0xff]  }
   0x7   :  { %587 = vmatpush1.bf16.msra.mxu0 %v4633_v4  ;;  %v4650_v18 = vld [vmem:[%s7241_s1 + $0x7c] ss:$12 sps:$4 sm:$0xff]   ;;  %v4653_v20 = vld [vmem:[%s7241_s1 + $0x78] ss:$12 sps:$4 sm:$0xff]   ;;  %v4657_v22 = vld [vmem:[%s7241_s1 + $0x140] ss:$12 sps:$4 sm:$0xff]  }
   0x8   :  { %588 = vmatprep.subr.bf16.mxu0 %v4635_v6  ;;  %4443 = vmatpush3.bf16.msra.mxu1 %v4639_v9  ;;  %v4652_v19 = vld [vmem:[%s7241_s1 + $0x128] ss:$12 sps:$4 sm:$0xff]   ;;  %v4659_v24 = vld [vmem:[%s7241_s1 + $0x80] ss:$12 sps:$4 sm:$0xff]   ;;  %v4658_v25 = vld [vmem:[%s7241_s1 + $0x90] ss:$12 sps:$4 sm:$0xff]  }
   0x9   :  { %4444 = vmatprep.subr.bf16.mxu1 %v4642_v11  ;;  %v4654_v21 = vld [vmem:[%s7241_s1 + $0x68] ss:$12 sps:$4 sm:$0xff]   ;;  %v4662_v26 = vld [vmem:[%s7241_s1 + $0x158] ss:$12 sps:$4 sm:$0xff]   ;;  %v4667_v30 = vld [vmem:[%s7241_s1 + $0x170] ss:$12 sps:$4 sm:$0xff]  }
   0xa   :  { %v4655_v23 = vld [vmem:[%s7241_s1 + $0x94] ss:$12 sps:$4 sm:$0xff]   ;;  %v4660_v27 = vld [vmem:[%s7241_s1 + $0xac] ss:$12 sps:$4 sm:$0xff]   ;;  %v4665_v31 = vld [vmem:[%s7241_s1 + $0xc4] ss:$12 sps:$4 sm:$0xff]  }
   0xb   :  { %589 = vmatpush1.bf16.msra.mxu0 %v4638_v8  ;;  %v4663_v28 = vld [vmem:[%s7241_s1 + $0xa8] ss:$12 sps:$4 sm:$0xff]   ;;  %v4664_v29 = vld [vmem:[%s7241_s1 + $0x98] ss:$12 sps:$4 sm:$0xff]   ;;  %v4669_v32 = vld [vmem:[%s7241_s1 + $0xb0] ss:$12 sps:$4 sm:$0xff]  }
   0xc   :  { %590 = vmatprep.subr.bf16.mxu0 %v4640_v10  ;;  %4445 = vmatpush3.bf16.msra.mxu1 %v4644_v13  ;;  %v4674_v33 = vld [vmem:[%s7242_s0 + $0x4] ss:$12 sps:$4 sm:$0xff]   ;;  %v4668_v34 = vld [vmem:[%s7241_s1 + $0xc0] ss:$12 sps:$4 sm:$0xff]   ;;  %v4675_v35 = vld [vmem:[%s7241_s1 + $0x188] ss:$12 sps:$4 sm:$0xff]  }
   0xd   :  { %4446 = vmatprep.subr.bf16.mxu1 %v4647_v15  ;;  %v4670_v36 = vld [vmem:[%s7241_s1 + $0xdc] ss:$12 sps:$4 sm:$0xff]   ;;  %722 = vmatprep.mubr.bf16.mxu1 %v4674_v33  ;;  %v5437_v37 = vld [vmem:[%s7242_s0] ss:$12 sps:$4 sm:$0xff]   ;;  %v4676_v38 = vld [vmem:[%s7241_s1 + $0xd8] ss:$12 sps:$4 sm:$0xff]  }
   0xe   :  { %616 = vmatprep.mubr.bf16.mxu0 %v4674_v33  ;;  %v4679_v39 = vld [vmem:[%s7241_s1 + $0x1a0] ss:$12 sps:$4 sm:$0xff]   ;;  %v4680_v41 = vld [vmem:[%s7241_s1 + $0xf0] ss:$12 sps:$4 sm:$0xff]   ;;  %v4683_v42 = vld [vmem:[%s7241_s1 + $0x1b8] ss:$12 sps:$4 sm:$0xff]  }
   0xf   :  { %591 = vmatpush1.bf16.msra.mxu0 %v4643_v12  ;;  %v4677_v40 = vld [vmem:[%s7241_s1 + $0xf4] ss:$12 sps:$4 sm:$0xff]   ;;  %v4681_v43 = vld [vmem:[%s7241_s1 + $0x10c] ss:$12 sps:$4 sm:$0xff]   ;;  %v4685_v45 = vld [vmem:[%s7241_s1 + $0x124] ss:$12 sps:$4 sm:$0xff]  }
  0x10   :  { %592 = vmatprep.subr.bf16.mxu0 %v4645_v14  ;;  %4447 = vmatpush3.bf16.msra.mxu1 %v4649_v16  ;;  %v4684_v44 = vld [vmem:[%s7241_s1 + $0x108] ss:$12 sps:$4 sm:$0xff]   ;;  %v4687_v46 = vld [vmem:[%s7241_s1 + $0x1d0] ss:$12 sps:$4 sm:$0xff]   ;;  %v4701_v48 = vld [vmem:[%s7242_s0 + $0x18] ss:$12 sps:$4 sm:$0xff]  }
  0x11   :  { %4448 = vmatprep.subr.bf16.mxu1 %v4652_v19  ;;  %v4697_v47 = vld [vmem:[%s7242_s0 + $0x1c] ss:$12 sps:$4 sm:$0xff]   ;;  %v4688_v49 = vld [vmem:[%s7241_s1 + $0x120] ss:$12 sps:$4 sm:$0xff]   ;;  %v4692_v53 = vld [vmem:[%s7241_s1 + $0x138] ss:$12 sps:$4 sm:$0xff]  }
  0x12   :  { %v4691_v50 = vld [vmem:[%s7241_s1 + $0x1e8] ss:$12 sps:$4 sm:$0xff]   ;;  %v4695_v54 = vld [vmem:[%s7241_s1 + $0x200] ss:$12 sps:$4 sm:$0xff]   ;;  %v4696_v56 = vld [vmem:[%s7241_s1 + $0x150] ss:$12 sps:$4 sm:$0xff]  }
  0x13   :  { %593 = vmatpush1.bf16.msra.mxu0 %v4648_v17  ;;  %v4689_v51 = vld [vmem:[%s7241_s1 + $0x13c] ss:$12 sps:$4 sm:$0xff]   ;;  %v4693_v55 = vld [vmem:[%s7241_s1 + $0x154] ss:$12 sps:$4 sm:$0xff]   ;;  %v4702_v57 = vld [vmem:[%s7241_s1 + $0x218] ss:$12 sps:$4 sm:$0xff]  }
  0x14   :  { %594 = vmatprep.subr.bf16.mxu0 %v4650_v18  ;;  %4449 = vmatpush3.bf16.msra.mxu1 %v4654_v21  ;;  %v5485_v52 = vld [vmem:[%s7242_s0 + $0x8] ss:$12 sps:$4 sm:$0xff]   ;;  %v4699_v58 = vld [vmem:[%s7241_s1 + $0x16c] ss:$12 sps:$4 sm:$0xff]   ;;  %v4707_v60 = vld [vmem:[%s7241_s1 + $0x230] ss:$12 sps:$4 sm:$0xff]  }
  0x15   :  { %4450 = vmatprep.subr.bf16.mxu1 %v4657_v22  ;;  %v4703_v59 = vld [vmem:[%s7241_s1 + $0x168] ss:$12 sps:$4 sm:$0xff]   ;;  %v4706_v61 = vld [vmem:[%s7241_s1 + $0x184] ss:$12 sps:$4 sm:$0xff]   ;;  %v4704_v62 = vld [vmem:[%s7241_s1 + $0x180] ss:$12 sps:$4 sm:$0xff]  }
  0x16   :  { %v4711_v63 = vld [vmem:[%s7241_s1 + $0x19c] ss:$12 sps:$4 sm:$0xff]   ;;  %v4712_v0 = vld [vmem:[%s7242_s0 + $0x20] ss:$12 sps:$4 sm:$0xff]   ;;  %v4709_v1 = vld [vmem:[%s7241_s1 + $0x198] ss:$12 sps:$4 sm:$0xff]  }
  0x17   :  { %595 = vmatpush1.bf16.msra.mxu0 %v4653_v20  ;;  %v4715_v2 = vld [vmem:[%s7241_s1 + $0x1b4] ss:$12 sps:$4 sm:$0xff]   ;;  %v4713_v3 = vld [vmem:[%s7241_s1 + $0x1b0] ss:$12 sps:$4 sm:$0xff]   ;;  %v4718_v4 = vld [vmem:[%s7241_s1 + $0x1cc] ss:$12 sps:$4 sm:$0xff]  }
  0x18   :  { %596 = vmatprep.subr.bf16.mxu0 %v4655_v23  ;;  %4451 = vmatpush3.bf16.msra.mxu1 %v4659_v24  ;;  %v4716_v5 = vld [vmem:[%s7241_s1 + $0x1c8] ss:$12 sps:$4 sm:$0xff]   ;;  %v5267_v6 = vmov 0   ;;  %v4721_v7 = vld [vmem:[%s7241_s1 + $0x1e4] ss:$12 sps:$4 sm:$0xff]  }
  0x19   :  { %4452 = vmatprep.subr.bf16.mxu1 %v4662_v26  ;;  %v4719_v8 = vld [vmem:[%s7241_s1 + $0x1e0] ss:$12 sps:$4 sm:$0xff]   ;;  %v4724_v9 = vld [vmem:[%s7241_s1 + $0x1fc] ss:$12 sps:$4 sm:$0xff]   ;;  %v4722_v10 = vld [vmem:[%s7241_s1 + $0x1f8] ss:$12 sps:$4 sm:$0xff]   ;;  %v153_v26 = vlaneseq }
  0x1a   :  { %v4727_v11 = vld [vmem:[%s7241_s1 + $0x214] ss:$12 sps:$4 sm:$0xff]   ;;  %v4725_v12 = vld [vmem:[%s7241_s1 + $0x210] ss:$12 sps:$4 sm:$0xff]   ;;  %v4730_v13 = vld [vmem:[%s7241_s1 + $0x22c] ss:$12 sps:$4 sm:$0xff]  }
  0x1b   :  { %597 = vmatpush1.bf16.msra.mxu0 %v4658_v25  ;;  %v4728_v14 = vld [vmem:[%s7241_s1 + $0x228] ss:$12 sps:$4 sm:$0xff]   ;;  %v788_v33 = vld [vmem:[%s7244_s3] sm:$0x7] }
  0x1c   :  { %598 = vmatprep.subr.bf16.mxu0 %v4660_v27  ;;  %4453 = vmatpush3.bf16.msra.mxu1 %v4664_v29 }
  0x1d   :  { %4454 = vmatprep.subr.bf16.mxu1 %v4667_v30  ;;  %v151_v30 = vld [vmem:[%s7243_s2] sm:$0x7] }
  0x1f   :  { %599 = vmatpush1.bf16.msra.mxu0 %v4663_v28  ;;  %v5567_v28 = vshrl.u32 %v153_v26, 7 }
  0x20   :  { %600 = vmatprep.subr.bf16.mxu0 %v4665_v31  ;;  %4455 = vmatpush3.bf16.msra.mxu1 %v4669_v32 }
  0x21   :  { %4478 = vmatprep.subr.bf16.mxu1 %v4675_v35  ;;  %v5570_v29 = vsub.s32 2, %v5567_v28 }
  0x23   :  { %601 = vmatpush1.bf16.msra.mxu0 %v4668_v34  ;;  %723 = vmatmul.mubr.bf16.vlgmr.msra.gmra.mrb[0].mxu1 %v5437_v37  ;;  %v164_v31 = vrot.slane %v151_v30, %v5570_v29 }
  0x24   :  { %602 = vmatprep.subr.bf16.mxu0 %v4670_v36  ;;  %4479 = vmatpush3.bf16.msra.mxu1 %v4675_v35 }
  0x25   :  { %4480 = vmatprep.subr.bf16.mxu1 %v4679_v39  ;;  %730 = vmatprep.mubr.bf16.mxu1 %v4697_v47 }
  0x27   :  { %603 = vmatpush1.bf16.msra.mxu0 %v4676_v38 }
  0x28   :  { %604 = vmatprep.subr.bf16.mxu0 %v4677_v40  ;;  %4481 = vmatpush3.bf16.msra.mxu1 %v4679_v39 }
  0x29   :  { %4482 = vmatprep.subr.bf16.mxu1 %v4683_v42 }
  0x2b   :  { %605 = vmatpush1.bf16.msra.mxu0 %v4680_v41  ;;  %731 = vmatmul.mubr.bf16.gmra.mrb[4].mxu1 %v4701_v48 }
  0x2c   :  { %606 = vmatprep.subr.bf16.mxu0 %v4681_v43  ;;  %4483 = vmatpush3.bf16.msra.mxu1 %v4683_v42  ;;  %v147_v43 = vld [vmem:[%s7245_s4 + $0x40] sm:$0xff] }
  0x2d   :  { %4484 = vmatprep.subr.bf16.mxu1 %v4687_v46  ;;  %4494 = vmatprep.mubr.bf16.mxu1 %v5485_v52 }
  0x2f   :  { %607 = vmatpush1.bf16.msra.mxu0 %v4684_v44 }
  0x30   :  { %608 = vmatprep.subr.bf16.mxu0 %v4685_v45  ;;  %4485 = vmatpush3.bf16.msra.mxu1 %v4687_v46 }
  0x31   :  { %4486 = vmatprep.subr.bf16.mxu1 %v4691_v50 }
  0x33   :  { %609 = vmatpush1.bf16.msra.mxu0 %v4688_v49  ;;  %v150_v49 = vld [vmem:[%s7245_s4 + $0x58] sm:$0xff] }
  0x34   :  { %610 = vmatprep.subr.bf16.mxu0 %v4689_v51  ;;  %4487 = vmatpush3.bf16.msra.mxu1 %v4691_v50 }
  0x35   :  { %4488 = vmatprep.subr.bf16.mxu1 %v4695_v54 }
  0x37   :  { %611 = vmatpush1.bf16.msra.mxu0 %v4692_v53 }
  0x38   :  { %612 = vmatprep.subr.bf16.mxu0 %v4693_v55  ;;  %4489 = vmatpush3.bf16.msra.mxu1 %v4695_v54 }
  0x39   :  { %4490 = vmatprep.subr.bf16.mxu1 %v4702_v57 }
  0x3b   :  { %613 = vmatpush1.bf16.msra.mxu0 %v4696_v56 }
  0x3c   :  { %614 = vmatprep.subr.bf16.mxu0 %v4699_v58  ;;  %4491 = vmatpush3.bf16.msra.mxu1 %v4702_v57  ;;  %v5617_v58 = vsub.s32 0, %v5567_v28 }
  0x3d   :  { %4492 = vmatprep.subr.bf16.mxu1 %v4707_v60 }
  0x3f   :  { %615 = vmatpush1.bf16.msra.mxu0 %v4703_v59  ;;  %v5620_v59 = vsub.s32 1, %v5567_v28 }
  0x40   :  { %637 = vmatprep.subr.bf16.mxu0 %v4706_v61  ;;  %4493 = vmatpush3.bf16.msra.mxu1 %v4707_v60  ;;  %v156_v60 = vrot.slane %v151_v30, %v5617_v58 }
  0x41   :  { %v160_v61 = vrot.slane %v151_v30, %v5620_v59 }
  0x42   :  { %617 = vmatmul.mubr.bf16.vlgmr.msra.gmra.mrb[0].mxu0 %v5437_v37  ;;  %v801_v37 = vrot.slane %v788_v33, %v5570_v29 }
  0x43   :  { %638 = vmatpush1.bf16.msra.mxu0 %v4704_v62  ;;  %626 = vmatprep.mubr.bf16.mxu0 %v4697_v47  ;;  %v141_v47 = vld [vmem:[%s7245_s4 + $0x10] sm:$0xff]  ;;  %v793_v62 = vrot.slane %v788_v33, %v5617_v58 }
  0x44   :  { %639 = vmatprep.subr.bf16.mxu0 %v4711_v63  ;;  %4495 = vmatmul.mubr.bf16.vlgmr.msra.gmra.mrb[8].mxu1 %v4712_v0 }
  0x47   :  { %640 = vmatpush1.bf16.msra.mxu0 %v4709_v1 }
  0x48   :  { %641 = vmatprep.subr.bf16.mxu0 %v4715_v2 }
  0x4a   :  { %627 = vmatmul.mubr.bf16.gmra.mrb[4].mxu0 %v4701_v48 }
  0x4b   :  { %642 = vmatpush1.bf16.msra.mxu0 %v4713_v3  ;;  %669 = vmatprep.mubr.bf16.mxu0 %v5267_v6  ;;  %v139_v3 = vld [vmem:[%s7245_s4] sm:$0xff] }
  0x4c   :  { %643 = vmatprep.subr.bf16.mxu0 %v4718_v4 }
  0x4f   :  { %644 = vmatpush1.bf16.msra.mxu0 %v4716_v5 }
  0x50   :  { %645 = vmatprep.subr.bf16.mxu0 %v4721_v7 }
  0x53   :  { %646 = vmatpush1.bf16.msra.mxu0 %v4719_v8  ;;  %v140_v8 = vld [vmem:[%s7245_s4 + $0x8] sm:$0xff] }
  0x54   :  { %647 = vmatprep.subr.bf16.mxu0 %v4724_v9 }
  0x57   :  { %648 = vmatpush1.bf16.msra.mxu0 %v4722_v10 }
  0x58   :  { %649 = vmatprep.subr.bf16.mxu0 %v4727_v11 }
  0x5b   :  { %650 = vmatpush1.bf16.msra.mxu0 %v4725_v12  ;;  %v142_v12 = vld [vmem:[%s7245_s4 + $0x18] sm:$0xff] }
  0x5c   :  { %651 = vmatprep.subr.bf16.mxu0 %v4730_v13 }
  0x5f   :  { %652 = vmatpush1.bf16.msra.mxu0 %v4728_v14 }
  0x62   :  { %670 = vmatmul.mubr.bf16.vlgmr.msra.gmra.mrb[0].mxu0 %v5485_v52  ;;  %v144_v52 = vld [vmem:[%s7245_s4 + $0x28] sm:$0xff] }
  0x63   :  { %679 = vmatprep.mubr.bf16.mxu0 %v5267_v6 }
  0x6a   :  { %680 = vmatmul.mubr.bf16.gmra.mrb[4].mxu0 %v4712_v0  ;;  %v797_v0 = vrot.slane %v788_v33, %v5620_v59  ;;  %v146_v33 = vld [vmem:[%s7245_s4 + $0x38] sm:$0xff] }
  0xf6   :  { %v4456_v15 = vpop.f32.mrb[0].mxu1 }
  0xf7   :  { %v4457_v16 = vpop.f32.mrb[1].mxu1 }
  0xf8   :  { %v4458_v17 = vadd.f32 %v4457_v16, %v4456_v15  ;;  %v4459_v18 = vpop.f32.mrb[2].mxu1  ;;  %v143_v16 = vld [vmem:[%s7245_s4 + $0x20] sm:$0xff] }
  0xf9   :  { %v4460_v19 = vpop.f32.mrb[3].mxu1 }
  0xfa   :  { %v4461_v20 = vadd.f32 %v4460_v19, %v4459_v18  ;;  %v725_v34 = vadd.f32 %v4458_v17, %v164_v31 }
  0xfc   :  { %v728_v38 = vadd.f32 %v4461_v20, %v164_v31 }
  0xfe   :  { %v4462_v21 = vpop.f32.mrb[4].mxu1 }
  0xff   :  { %v4463_v22 = vpop.f32.mrb[5].mxu1 }
 0x100   :  { %v4464_v23 = vadd.f32 %v4463_v22, %v4462_v21  ;;  %v4465_v24 = vpop.f32.mrb[6].mxu1 }
 0x101   :  { %v4466_v25 = vpop.f32.mrb[7].mxu1 }
 0x102   :  { %v4467_v27 = vadd.f32 %v4466_v25, %v4465_v24  ;;  %v733_v32 = vadd.f32 %v4464_v23, %v164_v31  ;;  %v145_v25 = vld [vmem:[%s7245_s4 + $0x30] sm:$0xff] }
 0x104   :  { %v736_v35 = vadd.f32 %v4467_v27, %v164_v31 }
 0x117   :  { %v4496_v36 = vpop.f32.mrb[8].mxu1 }
 0x118   :  { %v782_v39 = vadd.f32 %v4496_v36, %v733_v32  ;;  %v773_v40 = vpop.f32.mrb[9].mxu1 }
 0x119   :  { %v774_v41 = vadd.f32 %v773_v40, %v725_v34  ;;  %v4497_v42 = vpop.f32.mrb[10].mxu1 }
 0x11a   :  { %v813_v44 = vmul.f32 %v801_v37, %v782_v39  ;;  %v785_v45 = vadd.f32 %v4497_v42, %v736_v35  ;;  %v776_v46 = vpop.f32.mrb[11].mxu1 }
 0x11b   :  { %v807_v48 = vmul.f32 %v801_v37, %v774_v41  ;;  %v777_v50 = vadd.f32 %v776_v46, %v728_v38  ;;  %v149_v41 = vld [vmem:[%s7245_s4 + $0x50] sm:$0xff] }
 0x11c   :  { %v816_v51 = vmul.f32 %v801_v37, %v785_v45  ;;  %v5592_v53 = vadd.f32 %v813_v44, %v147_v43 }
 0x11d   :  { %v810_v54 = vmul.f32 %v801_v37, %v777_v50  ;;  %v5594_v55 = vadd.f32 %v807_v48, %v141_v47  ;;  %v148_v37 = vld [vmem:[%s7245_s4 + $0x48] sm:$0xff] }
 0x11e   :  { %v5596_v56 = vadd.f32 %v816_v51, %v150_v49  ;;  %837 = vst [vmem:[%s7246_s9 + $0x40] sm:$0xff] %v5592_v53  ;;  %v4731_v51 = vld [vmem:[%s7247_s7] ss:$48 sps:$4 sm:$0xff]  }
 0x11f   :  { %v5602_v57 = vadd.f32 %v810_v54, %v144_v52  ;;  %831 = vst [vmem:[%s7246_s9 + $0x10] sm:$0xff] %v5594_v55  ;;  %v4733_v52 = vld [vmem:[%s7247_s7 + $0x4] ss:$48 sps:$4 sm:$0xff]   ;;  %v4734_v54 = vld [vmem:[%s7247_s7 + $0x8] ss:$48 sps:$4 sm:$0xff]  }
 0x120   :  { %840 = vst [vmem:[%s7246_s9 + $0x58] sm:$0xff] %v5596_v56  ;;  %2782 = vmatprep.subr.bf16.mxu1 %v4733_v52 }
 0x121   :  { %834 = vst [vmem:[%s7246_s9 + $0x28] sm:$0xff] %v5602_v57  ;;  %2783 = vmatpush1.bf16.msra.mxu1 %v4731_v51 }
 0x135   :  { %v671_v63 = vpop.f32.mrb[0].mxu0 }
 0x136   :  { %v4514_v1 = vadd.f32 %v671_v63, %v156_v60  ;;  %v673_v2 = vpop.f32.mrb[1].mxu0  ;;  %v4740_v63 = vld [vmem:[%s7247_s7 + $0x68] ss:$48 sps:$4 sm:$0xff]  }
 0x137   :  { %v4515_v4 = vadd.f32 %v673_v2, %v160_v61  ;;  %v675_v5 = vpop.f32.mrb[2].mxu0  ;;  %v4743_v2 = vld [vmem:[%s7247_s7 + $0xc0] ss:$48 sps:$4 sm:$0xff]  }
 0x138   :  { %v805_v7 = vmul.f32 %v4514_v1, %v793_v62  ;;  %v4516_v9 = vadd.f32 %v675_v5, %v156_v60  ;;  %v677_v10 = vpop.f32.mrb[3].mxu0  ;;  %v4745_v1 = vld [vmem:[%s7247_s7 + $0xc4] ss:$48 sps:$4 sm:$0xff]  }
 0x139   :  { %v806_v11 = vmul.f32 %v4515_v4, %v797_v0  ;;  %v4517_v13 = vadd.f32 %v677_v10, %v160_v61  ;;  %v4746_v4 = vld [vmem:[%s7247_s7 + $0xc8] ss:$48 sps:$4 sm:$0xff]   ;;  %v4751_v5 = vld [vmem:[%s7247_s7 + $0x124] ss:$48 sps:$4 sm:$0xff]  }
 0x13a   :  { %v5635_v14 = vadd.f32 %v805_v7, %v139_v3  ;;  %v808_v15 = vmul.f32 %v4516_v9, %v793_v62  ;;  %v4748_v3 = vld [vmem:[%s7247_s7 + $0xcc] ss:$48 sps:$4 sm:$0xff]   ;;  %v4752_v9 = vld [vmem:[%s7247_s7 + $0x128] ss:$48 sps:$4 sm:$0xff]   ;;  %v4757_v10 = vld [vmem:[%s7247_s7 + $0x184] ss:$48 sps:$4 sm:$0xff]  }
 0x13b   :  { %v5640_v17 = vadd.f32 %v806_v11, %v140_v8  ;;  %v809_v18 = vmul.f32 %v4517_v13, %v797_v0  ;;  %v4754_v7 = vld [vmem:[%s7247_s7 + $0x12c] ss:$48 sps:$4 sm:$0xff]   ;;  %v4749_v8 = vld [vmem:[%s7247_s7 + $0x120] ss:$48 sps:$4 sm:$0xff]   ;;  %v4758_v13 = vld [vmem:[%s7247_s7 + $0x188] ss:$48 sps:$4 sm:$0xff]  }
 0x13c   :  { %829 = vst [vmem:[%s7246_s9] sm:$0xff] %v5635_v14  ;;  %v5646_v19 = vadd.f32 %v808_v15, %v142_v12  ;;  %v4760_v11 = vld [vmem:[%s7247_s7 + $0x18c] ss:$48 sps:$4 sm:$0xff]   ;;  %v4755_v12 = vld [vmem:[%s7247_s7 + $0x180] ss:$48 sps:$4 sm:$0xff]   ;;  %v4763_v15 = vld [vmem:[%s7247_s7 + $0x1e4] ss:$48 sps:$4 sm:$0xff]  }
 0x13d   :  { %830 = vst [vmem:[%s7246_s9 + $0x8] sm:$0xff] %v5640_v17  ;;  %v5652_v20 = vadd.f32 %v809_v18, %v143_v16  ;;  %v681_v21 = vpop.f32.mrb[4].mxu0  ;;  %v843_v22 = vadd.f32 %v5640_v17, %v5635_v14  ;;  %v4766_v16 = vld [vmem:[%s7247_s7 + $0x1ec] ss:$48 sps:$4 sm:$0xff]   ;;  %v4761_v18 = vld [vmem:[%s7247_s7 + $0x1e0] ss:$48 sps:$4 sm:$0xff]  }
 0x13e   :  { %832 = vst [vmem:[%s7246_s9 + $0x18] sm:$0xff] %v5646_v19  ;;  %v4518_v23 = vadd.f32 %v681_v21, %v156_v60  ;;  %v683_v24 = vpop.f32.mrb[5].mxu0  ;;  %v4764_v21 = vld [vmem:[%s7247_s7 + $0x1e8] ss:$48 sps:$4 sm:$0xff]  }
 0x13f   :  { %833 = vst [vmem:[%s7246_s9 + $0x20] sm:$0xff] %v5652_v20  ;;  %v4519_v26 = vadd.f32 %v683_v24, %v160_v61  ;;  %v685_v27 = vpop.f32.mrb[6].mxu0  ;;  %v844_v30 = vadd.f32 %v843_v22, %v5594_v55  ;;  %v847_v31 = vadd.f32 %v5652_v20, %v5646_v19  ;;  %v4769_v22 = vld [vmem:[%s7247_s7 + $0x244] ss:$48 sps:$4 sm:$0xff]   ;;  %v4767_v24 = vld [vmem:[%s7247_s7 + $0x240] ss:$48 sps:$4 sm:$0xff]  }
 0x140   :  { %v811_v32 = vmul.f32 %v4518_v23, %v793_v62  ;;  %v4520_v34 = vadd.f32 %v685_v27, %v156_v60  ;;  %v687_v35 = vpop.f32.mrb[7].mxu0  ;;  %v4736_v60 = vld [vmem:[%s7247_s7 + $0xc] ss:$48 sps:$4 sm:$0xff]   ;;  %v4773_v27 = vld [vmem:[%s7247_s7 + $0x2a0] ss:$48 sps:$4 sm:$0xff]  }
 0x141   :  { %v812_v36 = vmul.f32 %v4519_v26, %v797_v0  ;;  %v4521_v38 = vadd.f32 %v687_v35, %v160_v61  ;;  %845 = vadd.xlane.f32.xlu0 %v844_v30  ;;  %v848_v44 = vadd.f32 %v847_v31, %v5602_v57  ;;  %v4737_v61 = vld [vmem:[%s7247_s7 + $0x60] ss:$48 sps:$4 sm:$0xff]   ;;  %2888 = vmatprep.subr.bf16.mxu0 %v4736_v60  ;;  %v4772_v23 = vld [vmem:[%s7247_s7 + $0x24c] ss:$48 sps:$4 sm:$0xff]   ;;  %v4775_v26 = vld [vmem:[%s7247_s7 + $0x2a4] ss:$48 sps:$4 sm:$0xff]  }
 0x142   :  { %v5676_v39 = vadd.f32 %v811_v32, %v145_v25  ;;  %v814_v40 = vmul.f32 %v4520_v34, %v793_v62  ;;  %v4739_v62 = vld [vmem:[%s7247_s7 + $0x64] ss:$48 sps:$4 sm:$0xff]   ;;  %2889 = vmatpush1.bf16.msra.mxu0 %v4734_v54  ;;  %v4770_v25 = vld [vmem:[%s7247_s7 + $0x248] ss:$48 sps:$4 sm:$0xff]   ;;  %v4778_v30 = vld [vmem:[%s7247_s7 + $0x2ac] ss:$48 sps:$4 sm:$0xff]  }
 0x143   :  { %v5681_v42 = vadd.f32 %v812_v36, %v146_v33  ;;  %v815_v43 = vmul.f32 %v4521_v38, %v797_v0  ;;  %2784 = vmatprep.subr.bf16.mxu1 %v4739_v62  ;;  %v4742_v0 = vld [vmem:[%s7247_s7 + $0x6c] ss:$48 sps:$4 sm:$0xff]   ;;  %v4776_v31 = vld [vmem:[%s7247_s7 + $0x2a8] ss:$48 sps:$4 sm:$0xff]   ;;  %v4781_v32 = vld [vmem:[%s7247_s7 + $0x304] ss:$48 sps:$4 sm:$0xff]  }
 0x144   :  { %835 = vst [vmem:[%s7246_s9 + $0x30] sm:$0xff] %v5676_v39  ;;  %v5688_v45 = vadd.f32 %v814_v40, %v148_v37  ;;  %2890 = vmatprep.subr.bf16.mxu0 %v4742_v0  ;;  %2785 = vmatpush1.bf16.msra.mxu1 %v4737_v61  ;;  %v4784_v33 = vld [vmem:[%s7247_s7 + $0x30c] ss:$48 sps:$4 sm:$0xff]   ;;  %v4779_v34 = vld [vmem:[%s7247_s7 + $0x300] ss:$48 sps:$4 sm:$0xff]  }
 0x145   :  { %836 = vst [vmem:[%s7246_s9 + $0x38] sm:$0xff] %v5681_v42  ;;  %v5694_v46 = vadd.f32 %v815_v43, %v149_v41  ;;  %849 = vadd.xlane.f32.xlu0 %v848_v44  ;;  %v851_v47 = vadd.f32 %v5681_v42, %v5676_v39  ;;  %2786 = vmatprep.subr.bf16.mxu1 %v4745_v1  ;;  %v4782_v35 = vld [vmem:[%s7247_s7 + $0x308] ss:$48 sps:$4 sm:$0xff]   ;;  %v4787_v36 = vld [vmem:[%s7247_s7 + $0x364] ss:$48 sps:$4 sm:$0xff]  }
 0x146   :  { %838 = vst [vmem:[%s7246_s9 + $0x48] sm:$0xff] %v5688_v45  ;;  %2891 = vmatpush1.bf16.msra.mxu0 %v4740_v63  ;;  %v4790_v37 = vld [vmem:[%s7247_s7 + $0x36c] ss:$48 sps:$4 sm:$0xff]   ;;  %v4785_v38 = vld [vmem:[%s7247_s7 + $0x360] ss:$48 sps:$4 sm:$0xff]  }
 0x147   :  { %839 = vst [vmem:[%s7246_s9 + $0x50] sm:$0xff] %v5694_v46  ;;  %v852_v48 = vadd.f32 %v851_v47, %v5592_v53  ;;  %v855_v49 = vadd.f32 %v5694_v46, %v5688_v45  ;;  %2892 = vmatprep.subr.bf16.mxu0 %v4748_v3  ;;  %v4788_v40 = vld [vmem:[%s7247_s7 + $0x368] ss:$48 sps:$4 sm:$0xff]  }
 0x148   :  { %2787 = vmatpush1.bf16.msra.mxu1 %v4743_v2 }
 0x149   :  { %853 = vadd.xlane.f32.xlu1 %v852_v48  ;;  %v856_v50 = vadd.f32 %v855_v49, %v5596_v56  ;;  %2788 = vmatprep.subr.bf16.mxu1 %v4751_v5 }
 0x14a   :  { %2893 = vmatpush1.bf16.msra.mxu0 %v4746_v4 }
 0x14b   :  { %2894 = vmatprep.subr.bf16.mxu0 %v4754_v7 }
 0x14c   :  { %2789 = vmatpush1.bf16.msra.mxu1 %v4749_v8 }
 0x14d   :  { %857 = vadd.xlane.f32.xlu1 %v856_v50  ;;  %2790 = vmatprep.subr.bf16.mxu1 %v4757_v10 }
 0x14e   :  { %2895 = vmatpush1.bf16.msra.mxu0 %v4752_v9 }
 0x14f   :  { %2896 = vmatprep.subr.bf16.mxu0 %v4760_v11 }
 0x150   :  { %2791 = vmatpush1.bf16.msra.mxu1 %v4755_v12 }
 0x151   :  { %2792 = vmatprep.subr.bf16.mxu1 %v4763_v15 }
 0x152   :  { %2897 = vmatpush1.bf16.msra.mxu0 %v4758_v13 }
 0x153   :  { %2898 = vmatprep.subr.bf16.mxu0 %v4766_v16 }
 0x154   :  { %2793 = vmatpush1.bf16.msra.mxu1 %v4761_v18 }
 0x155   :  { %2794 = vmatprep.subr.bf16.mxu1 %v4769_v22  ;;  %v4794_v22 = vld [vmem:[%s7247_s7 + $0x3c8] ss:$48 sps:$4 sm:$0xff]  }
 0x156   :  { %2899 = vmatpush1.bf16.msra.mxu0 %v4764_v21  ;;  %v4791_v21 = vld [vmem:[%s7247_s7 + $0x3c0] ss:$48 sps:$4 sm:$0xff]  }
 0x157   :  { %2900 = vmatprep.subr.bf16.mxu0 %v4772_v23  ;;  %v4799_v23 = vld [vmem:[%s7247_s7 + $0x424] ss:$48 sps:$4 sm:$0xff]  }
 0x158   :  { %2795 = vmatpush1.bf16.msra.mxu1 %v4767_v24  ;;  %v4802_v24 = vld [vmem:[%s7247_s7 + $0x42c] ss:$48 sps:$4 sm:$0xff]  }
 0x159   :  { %2796 = vmatprep.subr.bf16.mxu1 %v4775_v26  ;;  %v4800_v26 = vld [vmem:[%s7247_s7 + $0x428] ss:$48 sps:$4 sm:$0xff]  }
 0x15a   :  { %2901 = vmatpush1.bf16.msra.mxu0 %v4770_v25  ;;  %v4797_v25 = vld [vmem:[%s7247_s7 + $0x420] ss:$48 sps:$4 sm:$0xff]  }
 0x15b   :  { %2902 = vmatprep.subr.bf16.mxu0 %v4778_v30  ;;  %v4808_v30 = vld [vmem:[%s7247_s7 + $0x48c] ss:$48 sps:$4 sm:$0xff]  }
 0x15c   :  { %2797 = vmatpush1.bf16.msra.mxu1 %v4773_v27  ;;  %v4805_v27 = vld [vmem:[%s7247_s7 + $0x484] ss:$48 sps:$4 sm:$0xff]  }
 0x15d   :  { %2798 = vmatprep.subr.bf16.mxu1 %v4781_v32  ;;  %v4806_v32 = vld [vmem:[%s7247_s7 + $0x488] ss:$48 sps:$4 sm:$0xff]  }
 0x15e   :  { %2903 = vmatpush1.bf16.msra.mxu0 %v4776_v31  ;;  %v4803_v31 = vld [vmem:[%s7247_s7 + $0x480] ss:$48 sps:$4 sm:$0xff]  }
 0x15f   :  { %2904 = vmatprep.subr.bf16.mxu0 %v4784_v33  ;;  %v4811_v33 = vld [vmem:[%s7247_s7 + $0x4e4] ss:$48 sps:$4 sm:$0xff]  }
 0x160   :  { %2799 = vmatpush1.bf16.msra.mxu1 %v4779_v34  ;;  %v4814_v34 = vld [vmem:[%s7247_s7 + $0x4ec] ss:$48 sps:$4 sm:$0xff]  }
 0x161   :  { %2800 = vmatprep.subr.bf16.mxu1 %v4787_v36  ;;  %v4812_v36 = vld [vmem:[%s7247_s7 + $0x4e8] ss:$48 sps:$4 sm:$0xff]  }
 0x162   :  { %2905 = vmatpush1.bf16.msra.mxu0 %v4782_v35  ;;  %v4809_v35 = vld [vmem:[%s7247_s7 + $0x4e0] ss:$48 sps:$4 sm:$0xff]  }
 0x163   :  { %2906 = vmatprep.subr.bf16.mxu0 %v4790_v37  ;;  %v4817_v37 = vld [vmem:[%s7247_s7 + $0x544] ss:$48 sps:$4 sm:$0xff]  }
 0x164   :  { %2801 = vmatpush1.bf16.msra.mxu1 %v4785_v38  ;;  %v4815_v38 = vld [vmem:[%s7247_s7 + $0x540] ss:$48 sps:$4 sm:$0xff]  }
 0x166   :  { %2907 = vmatpush1.bf16.msra.mxu0 %v4788_v40  ;;  %v4818_v40 = vld [vmem:[%s7247_s7 + $0x548] ss:$48 sps:$4 sm:$0xff]  }
 0x1ce   :  { %v846_v41 = vpop.xlane.xlu0 %845 }
 0x1cf   :  { %v860_v43 = vmul.f32 0.0026041667, %v846_v41  ;;  %v4820_v41 = vld [vmem:[%s7247_s7 + $0x54c] ss:$48 sps:$4 sm:$0xff]  }
 0x1d1   :  { %v5831_v44 = vsub.f32 %v5635_v14, %v860_v43  ;;  %v5834_v47 = vsub.f32 %v5640_v17, %v860_v43  ;;  %v5837_v48 = vsub.f32 %v5594_v55, %v860_v43  ;;  %v4823_v43 = vld [vmem:[%s7247_s7 + $0x5a4] ss:$48 sps:$4 sm:$0xff]  }
 0x1d2   :  { %v850_v49 = vpop.xlane.xlu0 %849 }
 0x1d3   :  { %v861_v50 = vmul.f32 0.0026041667, %v850_v49  ;;  %v876_v51 = vmul.f32 %v5831_v44, %v5831_v44  ;;  %v877_v52 = vmul.f32 %v5834_v47, %v5834_v47  ;;  %v878_v54 = vmul.f32 %v5837_v48, %v5837_v48  ;;  %v4826_v49 = vld [vmem:[%s7247_s7 + $0x5ac] ss:$48 sps:$4 sm:$0xff]  }
 0x1d5   :  { %v5846_v14 = vsub.f32 %v5646_v19, %v861_v50  ;;  %v5849_v17 = vsub.f32 %v5652_v20, %v861_v50  ;;  %v5852_v55 = vsub.f32 %v5602_v57, %v861_v50  ;;  %v888_v60 = vadd.f32 %v877_v52, %v876_v51  ;;  %v4821_v50 = vld [vmem:[%s7247_s7 + $0x5a0] ss:$48 sps:$4 sm:$0xff]   ;;  %v4824_v51 = vld [vmem:[%s7247_s7 + $0x5a8] ss:$48 sps:$4 sm:$0xff]   ;;  %v4829_v52 = vld [vmem:[%s7247_s7 + $0x604] ss:$48 sps:$4 sm:$0xff]  }
 0x1d6   :  { %v854_v61 = vpop.xlane.xlu1 %853 }
 0x1d7   :  { %v862_v62 = vmul.f32 0.0026041667, %v854_v61  ;;  %v889_v63 = vadd.f32 %v888_v60, %v878_v54  ;;  %v879_v0 = vmul.f32 %v5846_v14, %v5846_v14  ;;  %v880_v1 = vmul.f32 %v5849_v17, %v5849_v17  ;;  %v4832_v54 = vld [vmem:[%s7247_s7 + $0x60c] ss:$48 sps:$4 sm:$0xff]  }
 0x1d8   :  { %v881_v19 = vmul.f32 %v5852_v55, %v5852_v55 }
 0x1d9   :  { %v5861_v2 = vsub.f32 %v5676_v39, %v862_v62  ;;  %v5864_v20 = vsub.f32 %v5681_v42, %v862_v62  ;;  %v5867_v57 = vsub.f32 %v5592_v53, %v862_v62  ;;  %890 = vadd.xlane.f32.xlu0 %v889_v63  ;;  %v892_v3 = vadd.f32 %v880_v1, %v879_v0 }
 0x1da   :  { %v858_v4 = vpop.xlane.xlu1 %857 }
 0x1db   :  { %v863_v5 = vmul.f32 0.0026041667, %v858_v4  ;;  %v893_v7 = vadd.f32 %v892_v3, %v881_v19  ;;  %v882_v8 = vmul.f32 %v5861_v2, %v5861_v2  ;;  %v883_v9 = vmul.f32 %v5864_v20, %v5864_v20 }
 0x1dc   :  { %v884_v39 = vmul.f32 %v5867_v57, %v5867_v57 }
 0x1dd   :  { %v5876_v42 = vsub.f32 %v5688_v45, %v863_v5  ;;  %v5879_v53 = vsub.f32 %v5694_v46, %v863_v5  ;;  %v5882_v10 = vsub.f32 %v5596_v56, %v863_v5  ;;  %894 = vadd.xlane.f32.xlu1 %v893_v7  ;;  %v896_v11 = vadd.f32 %v883_v9, %v882_v8  ;;  %v4793_v56 = vld [vmem:[%s7247_s7 + $0x3c4] ss:$48 sps:$4 sm:$0xff]   ;;  %v4796_v46 = vld [vmem:[%s7247_s7 + $0x3cc] ss:$48 sps:$4 sm:$0xff]   ;;  %v5971_v7 = vld [vmem:[%s7248_s5] sm:$0x7] }
 0x1de   :  { %2802 = vmatprep.subr.bf16.mxu1 %v4793_v56  ;;  %2908 = vmatprep.subr.bf16.mxu0 %v4796_v46 }
 0x1df   :  { %v897_v12 = vadd.f32 %v896_v11, %v884_v39  ;;  %v885_v13 = vmul.f32 %v5876_v42, %v5876_v42  ;;  %v886_v15 = vmul.f32 %v5879_v53, %v5879_v53  ;;  %v887_v45 = vmul.f32 %v5882_v10, %v5882_v10  ;;  %2803 = vmatpush1.bf16.msra.mxu1 %v4791_v21 }
 0x1e0   :  { %2909 = vmatpush1.bf16.msra.mxu0 %v4794_v22  ;;  %2804 = vmatprep.subr.bf16.mxu1 %v4799_v23  ;;  %v936_v11 = vrot.slane %v5971_v7, %v5620_v59 }
 0x1e1   :  { %898 = vadd.xlane.f32.xlu0 %v897_v12  ;;  %v900_v16 = vadd.f32 %v886_v15, %v885_v13  ;;  %2910 = vmatprep.subr.bf16.mxu0 %v4802_v24  ;;  %v932_v12 = vrot.slane %v5971_v7, %v5617_v58  ;;  %v5982_v13 = vld [vmem:[%s7249_s6] sm:$0x7] }
 0x1e2   :  { %v964_v56 = vrot.slane %v5982_v13, %v5620_v59  ;;  %v960_v21 = vrot.slane %v5982_v13, %v5617_v58 }
 0x1e3   :  { %v901_v18 = vadd.f32 %v900_v16, %v887_v45  ;;  %2805 = vmatpush1.bf16.msra.mxu1 %v4797_v25 }
 0x1e4   :  { %2911 = vmatpush1.bf16.msra.mxu0 %v4800_v26  ;;  %2806 = vmatprep.subr.bf16.mxu1 %v4805_v27 }
 0x1e5   :  { %902 = vadd.xlane.f32.xlu1 %v901_v18  ;;  %2912 = vmatprep.subr.bf16.mxu0 %v4808_v30 }
 0x1e7   :  { %2807 = vmatpush1.bf16.msra.mxu1 %v4803_v31 }
 0x1e8   :  { %2913 = vmatpush1.bf16.msra.mxu0 %v4806_v32  ;;  %2808 = vmatprep.subr.bf16.mxu1 %v4811_v33 }
 0x1e9   :  { %2914 = vmatprep.subr.bf16.mxu0 %v4814_v34 }
 0x1eb   :  { %2809 = vmatpush1.bf16.msra.mxu1 %v4809_v35 }
 0x1ec   :  { %2915 = vmatpush1.bf16.msra.mxu0 %v4812_v36  ;;  %2810 = vmatprep.subr.bf16.mxu1 %v4817_v37 }
 0x1ed   :  { %2916 = vmatprep.subr.bf16.mxu0 %v4820_v41  ;;  %v4833_v41 = vld [vmem:[%s7247_s7 + $0x660] ss:$48 sps:$4 sm:$0xff]  }
 0x1ef   :  { %2811 = vmatpush1.bf16.msra.mxu1 %v4815_v38 }
 0x1f0   :  { %2917 = vmatpush1.bf16.msra.mxu0 %v4818_v40  ;;  %2812 = vmatprep.subr.bf16.mxu1 %v4823_v43  ;;  %v4836_v43 = vld [vmem:[%s7247_s7 + $0x668] ss:$48 sps:$4 sm:$0xff]  }
 0x1f1   :  { %2918 = vmatprep.subr.bf16.mxu0 %v4826_v49 }
 0x1f3   :  { %2813 = vmatpush1.bf16.msra.mxu1 %v4821_v50  ;;  %v4844_v50 = vld [vmem:[%s7247_s7 + $0x6cc] ss:$48 sps:$4 sm:$0xff]  }
 0x1f4   :  { %2919 = vmatpush1.bf16.msra.mxu0 %v4824_v51  ;;  %2835 = vmatprep.subr.bf16.mxu1 %v4829_v52 }
 0x1f5   :  { %2941 = vmatprep.subr.bf16.mxu0 %v4832_v54 }
 0x266   :  { %v891_v60 = vpop.xlane.xlu0 %890 }
 0x267   :  { %v904_v61 = vmul.f32 0.0026041667, %v891_v60 }
 0x269   :  { %v908_v62 = vadd.f32 1e-06, %v904_v61 }
 0x26a   :  { %v895_v63 = vpop.xlane.xlu1 %894 }
 0x26b   :  { %5163 = vrsqrt.f32 %v908_v62  ;;  %v905_v0 = vmul.f32 0.0026041667, %v895_v63  ;;  %v4839_v62 = vld [vmem:[%s7247_s7 + $0x6c0] ss:$48 sps:$4 sm:$0xff]   ;;  %v4842_v63 = vld [vmem:[%s7247_s7 + $0x6c8] ss:$48 sps:$4 sm:$0xff]  }
 0x26d   :  { %v909_v1 = vadd.f32 1e-06, %v905_v0 }
 0x26e   :  { %v899_v19 = vpop.xlane.xlu0 %898 }
 0x26f   :  { %5165 = vrsqrt.f32 %v909_v1  ;;  %v906_v3 = vmul.f32 0.0026041667, %v899_v19  ;;  %v4847_v1 = vld [vmem:[%s7247_s7 + $0x724] ss:$48 sps:$4 sm:$0xff]   ;;  %v4850_v19 = vld [vmem:[%s7247_s7 + $0x72c] ss:$48 sps:$4 sm:$0xff]  }
 0x271   :  { %v910_v4 = vadd.f32 1e-06, %v906_v3  ;;  %v4845_v3 = vld [vmem:[%s7247_s7 + $0x720] ss:$48 sps:$4 sm:$0xff]  }
 0x272   :  { %v903_v5 = vpop.xlane.xlu1 %902 }
 0x273   :  { %5167 = vrsqrt.f32 %v910_v4  ;;  %v907_v8 = vmul.f32 0.0026041667, %v903_v5  ;;  %v4848_v4 = vld [vmem:[%s7247_s7 + $0x728] ss:$48 sps:$4 sm:$0xff]   ;;  %v4853_v5 = vld [vmem:[%s7247_s7 + $0x784] ss:$48 sps:$4 sm:$0xff]  }
 0x275   :  { %v5973_v9 = vpop.eup %5163  ;;  %v911_v39 = vadd.f32 1e-06, %v907_v8  ;;  %v4856_v8 = vld [vmem:[%s7247_s7 + $0x78c] ss:$48 sps:$4 sm:$0xff]  }
 0x276   :  { %v917_v15 = vmul.f32 %v5973_v9, %v5834_v47  ;;  %v916_v45 = vmul.f32 %v5973_v9, %v5831_v44 }
 0x277   :  { %5169 = vrsqrt.f32 %v911_v39  ;;  %v4851_v39 = vld [vmem:[%s7247_s7 + $0x780] ss:$48 sps:$4 sm:$0xff]  }
 0x278   :  { %v945_v18 = vmul.f32 %v936_v11, %v917_v15  ;;  %v944_v46 = vmul.f32 %v932_v12, %v916_v45  ;;  %v4862_v15 = vld [vmem:[%s7247_s7 + $0x7ec] ss:$48 sps:$4 sm:$0xff]   ;;  %v4857_v45 = vld [vmem:[%s7247_s7 + $0x7e0] ss:$48 sps:$4 sm:$0xff]  }
 0x279   :  { %v5988_v16 = vpop.eup %5165 }
 0x27a   :  { %v920_v22 = vmul.f32 %v5988_v16, %v5849_v17  ;;  %v919_v47 = vmul.f32 %v5988_v16, %v5846_v14  ;;  %v973_v25 = vadd.f32 %v964_v56, %v945_v18  ;;  %v972_v26 = vadd.f32 %v960_v21, %v944_v46  ;;  %v4827_v14 = vld [vmem:[%s7247_s7 + $0x600] ss:$48 sps:$4 sm:$0xff]   ;;  %v4830_v17 = vld [vmem:[%s7247_s7 + $0x608] ss:$48 sps:$4 sm:$0xff]   ;;  %v4868_v46 = vld [vmem:[%s7247_s7 + $0x84c] ss:$48 sps:$4 sm:$0xff]  }
 0x27b   :  { %v4860_v18 = vld [vmem:[%s7247_s7 + $0x7e8] ss:$48 sps:$4 sm:$0xff]  }
 0x27c   :  { %v948_v23 = vmul.f32 %v936_v11, %v920_v22  ;;  %v947_v24 = vmul.f32 %v932_v12, %v919_v47  ;;  %v918_v22 = vmul.f32 %v5973_v9, %v5837_v48  ;;  %v940_v47 = vrot.slane %v5971_v7, %v5570_v29  ;;  %v4874_v48 = vld [vmem:[%s7247_s7 + $0x8ac] ss:$48 sps:$4 sm:$0xff]  }
 0x27d   :  { %v5998_v44 = vpop.eup %5167 }
 0x27e   :  { %v976_v27 = vadd.f32 %v964_v56, %v948_v23  ;;  %v975_v30 = vadd.f32 %v960_v21, %v947_v24  ;;  %v923_v31 = vmul.f32 %v5998_v44, %v5864_v20  ;;  %v922_v32 = vmul.f32 %v5998_v44, %v5861_v2  ;;  %v4835_v20 = vld [vmem:[%s7247_s7 + $0x664] ss:$48 sps:$4 sm:$0xff]   ;;  %v4838_v2 = vld [vmem:[%s7247_s7 + $0x66c] ss:$48 sps:$4 sm:$0xff]   ;;  %v4863_v23 = vld [vmem:[%s7247_s7 + $0x840] ss:$48 sps:$4 sm:$0xff]  }
 0x27f   :  { %v4866_v24 = vld [vmem:[%s7247_s7 + $0x848] ss:$48 sps:$4 sm:$0xff]   ;;  %v946_v9 = vmul.f32 %v940_v47, %v918_v22  ;;  %v4923_v22 = vld [vmem:[%s7247_s7 + $0x310] ss:$48 sps:$4 sm:$0xff]  }
 0x280   :  { %v6004_v33 = vpack.c.bf16 %v976_v27, %v973_v25  ;;  %v6012_v34 = vpack.c.bf16 %v975_v30, %v972_v26  ;;  %v951_v36 = vmul.f32 %v936_v11, %v923_v31  ;;  %v950_v40 = vmul.f32 %v932_v12, %v922_v32  ;;  %v4869_v25 = vld [vmem:[%s7247_s7 + $0x8a0] ss:$48 sps:$4 sm:$0xff]   ;;  %v4872_v26 = vld [vmem:[%s7247_s7 + $0x8a8] ss:$48 sps:$4 sm:$0xff]   ;;  %v4877_v30 = vld [vmem:[%s7247_s7 + $0x14] ss:$48 sps:$4 sm:$0xff]  }
 0x281   :  { %v6014_v35 = vpop.eup %5169 }
 0x282   :  { %2814 = vmatprep.mubr.bf16.mxu1 %v6004_v33  ;;  %2920 = vmatprep.mubr.bf16.mxu0 %v6004_v33  ;;  %v926_v37 = vmul.f32 %v6014_v35, %v5879_v53  ;;  %v925_v38 = vmul.f32 %v6014_v35, %v5876_v42  ;;  %v4841_v42 = vld [vmem:[%s7247_s7 + $0x6c4] ss:$48 sps:$4 sm:$0xff]   ;;  %v979_v51 = vadd.f32 %v964_v56, %v951_v36  ;;  %v4881_v36 = vld [vmem:[%s7247_s7 + $0x70] ss:$48 sps:$4 sm:$0xff]  }
 0x283   :  { %2815 = vmatmul.mubr.bf16.vlgmr.msra.gmra.mrb[12].mxu1 %v6012_v34  ;;  %2921 = vmatmul.mubr.bf16.vlgmr.msra.gmra.mrb[8].mxu0 %v6012_v34  ;;  %v978_v54 = vadd.f32 %v960_v21, %v950_v40  ;;  %v927_v31 = vmul.f32 %v6014_v35, %v5882_v10  ;;  %v4883_v10 = vld [vmem:[%s7247_s7 + $0x74] ss:$48 sps:$4 sm:$0xff]  }
 0x284   :  { %2836 = vmatpush1.bf16.msra.mxu1 %v4827_v14  ;;  %2942 = vmatpush1.bf16.msra.mxu0 %v4830_v17  ;;  %v954_v49 = vmul.f32 %v936_v11, %v926_v37  ;;  %v953_v53 = vmul.f32 %v932_v12, %v925_v38  ;;  %v4854_v11 = vld [vmem:[%s7247_s7 + $0x788] ss:$48 sps:$4 sm:$0xff]   ;;  %v4859_v12 = vld [vmem:[%s7247_s7 + $0x7e4] ss:$48 sps:$4 sm:$0xff]   ;;  %v924_v14 = vmul.f32 %v5998_v44, %v5867_v57  ;;  %v4875_v17 = vld [vmem:[%s7247_s7 + $0x10] ss:$48 sps:$4 sm:$0xff]  }
 0x285   :  { %2837 = vmatprep.subr.bf16.mxu1 %v4835_v20  ;;  %2943 = vmatprep.subr.bf16.mxu0 %v4838_v2  ;;  %v4878_v20 = vld [vmem:[%s7247_s7 + $0x18] ss:$48 sps:$4 sm:$0xff]   ;;  %v4886_v57 = vld [vmem:[%s7247_s7 + $0x7c] ss:$48 sps:$4 sm:$0xff]   ;;  %v955_v44 = vmul.f32 %v940_v47, %v927_v31  ;;  %v4889_v40 = vld [vmem:[%s7247_s7 + $0xd4] ss:$48 sps:$4 sm:$0xff]  }
 0x286   :  { %v982_v52 = vadd.f32 %v964_v56, %v954_v49  ;;  %v981_v60 = vadd.f32 %v960_v21, %v953_v53  ;;  %v4865_v56 = vld [vmem:[%s7247_s7 + $0x844] ss:$48 sps:$4 sm:$0xff]   ;;  %v921_v21 = vmul.f32 %v5988_v16, %v5852_v55  ;;  %v968_v16 = vrot.slane %v5982_v13, %v5570_v29  ;;  %v4880_v13 = vld [vmem:[%s7247_s7 + $0x1c] ss:$48 sps:$4 sm:$0xff]   ;;  %v4884_v37 = vld [vmem:[%s7247_s7 + $0x78] ss:$48 sps:$4 sm:$0xff]  }
 0x287   :  { %v4871_v55 = vld [vmem:[%s7247_s7 + $0x8a4] ss:$48 sps:$4 sm:$0xff]   ;;  %v952_v35 = vmul.f32 %v940_v47, %v924_v14  ;;  %v4887_v49 = vld [vmem:[%s7247_s7 + $0xd0] ss:$48 sps:$4 sm:$0xff]  }
 0x288   :  { %2838 = vmatpush1.bf16.msra.mxu1 %v4833_v41  ;;  %2944 = vmatpush1.bf16.msra.mxu0 %v4836_v43  ;;  %v6042_v61 = vpack.c.bf16 %v982_v52, %v979_v51  ;;  %v6050_v0 = vpack.c.bf16 %v981_v60, %v978_v54  ;;  %v949_v7 = vmul.f32 %v940_v47, %v921_v21  ;;  %v4892_v41 = vld [vmem:[%s7247_s7 + $0xdc] ss:$48 sps:$4 sm:$0xff]   ;;  %v4893_v52 = vld [vmem:[%s7247_s7 + $0x130] ss:$48 sps:$4 sm:$0xff]   ;;  %v4896_v54 = vld [vmem:[%s7247_s7 + $0x138] ss:$48 sps:$4 sm:$0xff]  }
 0x289   :  { %2839 = vmatprep.subr.bf16.mxu1 %v4841_v42  ;;  %2945 = vmatprep.subr.bf16.mxu0 %v4844_v50  ;;  %v974_v32 = vadd.f32 %v968_v16, %v946_v9  ;;  %v983_v38 = vadd.f32 %v968_v16, %v955_v44  ;;  %v980_v43 = vadd.f32 %v968_v16, %v952_v35  ;;  %v4890_v42 = vld [vmem:[%s7247_s7 + $0xd8] ss:$48 sps:$4 sm:$0xff]   ;;  %v4895_v50 = vld [vmem:[%s7247_s7 + $0x134] ss:$48 sps:$4 sm:$0xff]   ;;  %v4898_v51 = vld [vmem:[%s7247_s7 + $0x13c] ss:$48 sps:$4 sm:$0xff]  }
 0x28a   :  { %2824 = vmatprep.mubr.bf16.mxu1 %v6042_v61  ;;  %2930 = vmatprep.mubr.bf16.mxu0 %v6042_v61  ;;  %v977_v27 = vadd.f32 %v968_v16, %v949_v7  ;;  %v4901_v60 = vld [vmem:[%s7247_s7 + $0x194] ss:$48 sps:$4 sm:$0xff]   ;;  %v4928_v21 = vld [vmem:[%s7247_s7 + $0x31c] ss:$48 sps:$4 sm:$0xff]   ;;  %v4926_v47 = vld [vmem:[%s7247_s7 + $0x318] ss:$48 sps:$4 sm:$0xff]  }
 0x28b   :  { %2825 = vmatmul.mubr.bf16.gmra.mrb[16].mxu1 %v6050_v0  ;;  %2931 = vmatmul.mubr.bf16.gmra.mrb[12].mxu0 %v6050_v0  ;;  %v6169_v53 = vpack.c.bf16 %v983_v38, %v980_v43  ;;  %v4937_v7 = vld [vmem:[%s7247_s7 + $0x3d4] ss:$48 sps:$4 sm:$0xff]   ;;  %v4940_v9 = vld [vmem:[%s7247_s7 + $0x3dc] ss:$48 sps:$4 sm:$0xff]   ;;  %v4935_v16 = vld [vmem:[%s7247_s7 + $0x3d0] ss:$48 sps:$4 sm:$0xff]  }
 0x28c   :  { %2840 = vmatpush1.bf16.msra.mxu1 %v4839_v62  ;;  %2946 = vmatpush1.bf16.msra.mxu0 %v4842_v63  ;;  %v6142_v2 = vpack.c.bf16 %v977_v27, %v974_v32  ;;  %v4904_v62 = vld [vmem:[%s7247_s7 + $0x19c] ss:$48 sps:$4 sm:$0xff]   ;;  %v4899_v63 = vld [vmem:[%s7247_s7 + $0x190] ss:$48 sps:$4 sm:$0xff]   ;;  %v4949_v31 = vld [vmem:[%s7247_s7 + $0x494] ss:$48 sps:$4 sm:$0xff]  }
 0x28d   :  { %2841 = vmatprep.subr.bf16.mxu1 %v4847_v1  ;;  %2947 = vmatprep.subr.bf16.mxu0 %v4850_v19  ;;  %v4902_v1 = vld [vmem:[%s7247_s7 + $0x198] ss:$48 sps:$4 sm:$0xff]   ;;  %v4907_v19 = vld [vmem:[%s7247_s7 + $0x1f4] ss:$48 sps:$4 sm:$0xff]   ;;  %v4946_v27 = vld [vmem:[%s7247_s7 + $0x43c] ss:$48 sps:$4 sm:$0xff]  }
 0x28e   :  { %2867 = vmatprep.mubr.bf16.mxu1 %v5267_v6  ;;  %2973 = vmatprep.mubr.bf16.mxu0 %v5267_v6  ;;  %v4952_v32 = vld [vmem:[%s7247_s7 + $0x49c] ss:$48 sps:$4 sm:$0xff]   ;;  %v4947_v14 = vld [vmem:[%s7247_s7 + $0x490] ss:$48 sps:$4 sm:$0xff]   ;;  %v4956_v44 = vld [vmem:[%s7247_s7 + $0x4f8] ss:$48 sps:$4 sm:$0xff]  }
 0x28f   :  { %v4961_v35 = vld [vmem:[%s7247_s7 + $0x554] ss:$48 sps:$4 sm:$0xff]   ;;  %v4962_v38 = vld [vmem:[%s7247_s7 + $0x558] ss:$48 sps:$4 sm:$0xff]   ;;  %v4965_v43 = vld [vmem:[%s7247_s7 + $0x5b0] ss:$48 sps:$4 sm:$0xff]  }
 0x290   :  { %2842 = vmatpush1.bf16.msra.mxu1 %v4845_v3  ;;  %2948 = vmatpush1.bf16.msra.mxu0 %v4848_v4  ;;  %v4910_v3 = vld [vmem:[%s7247_s7 + $0x1fc] ss:$48 sps:$4 sm:$0xff]   ;;  %v4905_v4 = vld [vmem:[%s7247_s7 + $0x1f0] ss:$48 sps:$4 sm:$0xff]  }
 0x291   :  { %2843 = vmatprep.subr.bf16.mxu1 %v4853_v5  ;;  %2949 = vmatprep.subr.bf16.mxu0 %v4856_v8  ;;  %v4908_v5 = vld [vmem:[%s7247_s7 + $0x1f8] ss:$48 sps:$4 sm:$0xff]   ;;  %v4913_v8 = vld [vmem:[%s7247_s7 + $0x254] ss:$48 sps:$4 sm:$0xff]  }
 0x294   :  { %2844 = vmatpush1.bf16.msra.mxu1 %v4851_v39  ;;  %2950 = vmatpush1.bf16.msra.mxu0 %v4854_v11  ;;  %v4916_v39 = vld [vmem:[%s7247_s7 + $0x25c] ss:$48 sps:$4 sm:$0xff]   ;;  %v4911_v11 = vld [vmem:[%s7247_s7 + $0x250] ss:$48 sps:$4 sm:$0xff]  }
 0x295   :  { %2845 = vmatprep.subr.bf16.mxu1 %v4859_v12  ;;  %2951 = vmatprep.subr.bf16.mxu0 %v4862_v15  ;;  %v4914_v12 = vld [vmem:[%s7247_s7 + $0x258] ss:$48 sps:$4 sm:$0xff]   ;;  %v4919_v15 = vld [vmem:[%s7247_s7 + $0x2b4] ss:$48 sps:$4 sm:$0xff]  }
 0x298   :  { %2846 = vmatpush1.bf16.msra.mxu1 %v4857_v45  ;;  %2952 = vmatpush1.bf16.msra.mxu0 %v4860_v18  ;;  %v4922_v45 = vld [vmem:[%s7247_s7 + $0x2bc] ss:$48 sps:$4 sm:$0xff]   ;;  %v4917_v18 = vld [vmem:[%s7247_s7 + $0x2b0] ss:$48 sps:$4 sm:$0xff]  }
 0x299   :  { %2847 = vmatprep.subr.bf16.mxu1 %v4865_v56  ;;  %2953 = vmatprep.subr.bf16.mxu0 %v4868_v46  ;;  %v4920_v56 = vld [vmem:[%s7247_s7 + $0x2b8] ss:$48 sps:$4 sm:$0xff]   ;;  %v4925_v46 = vld [vmem:[%s7247_s7 + $0x314] ss:$48 sps:$4 sm:$0xff]  }
 0x29c   :  { %2848 = vmatpush1.bf16.msra.mxu1 %v4863_v23  ;;  %2954 = vmatpush1.bf16.msra.mxu0 %v4866_v24  ;;  %v4931_v23 = vld [vmem:[%s7247_s7 + $0x374] ss:$48 sps:$4 sm:$0xff]   ;;  %v4934_v24 = vld [vmem:[%s7247_s7 + $0x37c] ss:$48 sps:$4 sm:$0xff]  }
 0x29d   :  { %2849 = vmatprep.subr.bf16.mxu1 %v4871_v55  ;;  %2955 = vmatprep.subr.bf16.mxu0 %v4874_v48  ;;  %v4929_v55 = vld [vmem:[%s7247_s7 + $0x370] ss:$48 sps:$4 sm:$0xff]   ;;  %v4932_v48 = vld [vmem:[%s7247_s7 + $0x378] ss:$48 sps:$4 sm:$0xff]  }
 0x2a0   :  { %2850 = vmatpush1.bf16.msra.mxu1 %v4869_v25  ;;  %2956 = vmatpush1.bf16.msra.mxu0 %v4872_v26  ;;  %v4938_v25 = vld [vmem:[%s7247_s7 + $0x3d8] ss:$48 sps:$4 sm:$0xff]   ;;  %v4943_v26 = vld [vmem:[%s7247_s7 + $0x434] ss:$48 sps:$4 sm:$0xff]  }
 0x2a1   :  { %2994 = vmatprep.subr.bf16.mxu1 %v4877_v30  ;;  %3100 = vmatprep.subr.bf16.mxu0 %v4880_v13  ;;  %v4941_v30 = vld [vmem:[%s7247_s7 + $0x430] ss:$48 sps:$4 sm:$0xff]   ;;  %v4944_v13 = vld [vmem:[%s7247_s7 + $0x438] ss:$48 sps:$4 sm:$0xff]  }
 0x2a3   :  { %2868 = vmatmul.mubr.bf16.vlgmr.msra.gmra.mrb[12].mxu1 %v6142_v2  ;;  %2974 = vmatmul.mubr.bf16.vlgmr.msra.gmra.mrb[8].mxu0 %v6142_v2 }
 0x2a4   :  { %2995 = vmatpush1.bf16.msra.mxu1 %v4875_v17  ;;  %3101 = vmatpush1.bf16.msra.mxu0 %v4878_v20  ;;  %v4950_v17 = vld [vmem:[%s7247_s7 + $0x498] ss:$48 sps:$4 sm:$0xff]   ;;  %v4955_v20 = vld [vmem:[%s7247_s7 + $0x4f4] ss:$48 sps:$4 sm:$0xff]  }
 0x2a5   :  { %2996 = vmatprep.subr.bf16.mxu1 %v4883_v10  ;;  %3102 = vmatprep.subr.bf16.mxu0 %v4886_v57  ;;  %v4958_v10 = vld [vmem:[%s7247_s7 + $0x4fc] ss:$48 sps:$4 sm:$0xff]   ;;  %v4953_v57 = vld [vmem:[%s7247_s7 + $0x4f0] ss:$48 sps:$4 sm:$0xff]  }
 0x2a6   :  { %2877 = vmatprep.mubr.bf16.mxu1 %v5267_v6  ;;  %2983 = vmatprep.mubr.bf16.mxu0 %v5267_v6 }
 0x2a8   :  { %2997 = vmatpush1.bf16.msra.mxu1 %v4881_v36  ;;  %3103 = vmatpush1.bf16.msra.mxu0 %v4884_v37  ;;  %v4964_v36 = vld [vmem:[%s7247_s7 + $0x55c] ss:$48 sps:$4 sm:$0xff]   ;;  %v4959_v37 = vld [vmem:[%s7247_s7 + $0x550] ss:$48 sps:$4 sm:$0xff]  }
 0x2a9   :  { %2998 = vmatprep.subr.bf16.mxu1 %v4889_v40  ;;  %3104 = vmatprep.subr.bf16.mxu0 %v4892_v41  ;;  %v4967_v40 = vld [vmem:[%s7247_s7 + $0x5b4] ss:$48 sps:$4 sm:$0xff]   ;;  %v4970_v41 = vld [vmem:[%s7247_s7 + $0x5bc] ss:$48 sps:$4 sm:$0xff]  }
 0x2ab   :  { %2878 = vmatmul.mubr.bf16.gmra.mrb[16].mxu1 %v6169_v53  ;;  %2984 = vmatmul.mubr.bf16.gmra.mrb[12].mxu0 %v6169_v53 }
 0x2ac   :  { %2999 = vmatpush1.bf16.msra.mxu1 %v4887_v49  ;;  %3026 = vmatprep.mubr.bf16.mxu1 %v6004_v33  ;;  %v4968_v49 = vld [vmem:[%s7247_s7 + $0x5b8] ss:$48 sps:$4 sm:$0xff]  }
 0x2ad   :  { %3105 = vmatpush1.bf16.msra.mxu0 %v4890_v42  ;;  %3132 = vmatprep.mubr.bf16.mxu0 %v6004_v33  ;;  %v4973_v42 = vld [vmem:[%s7247_s7 + $0x614] ss:$48 sps:$4 sm:$0xff]  }
 0x2ae   :  { %3000 = vmatprep.subr.bf16.mxu1 %v4895_v50  ;;  %3106 = vmatprep.subr.bf16.mxu0 %v4898_v51  ;;  %v4976_v50 = vld [vmem:[%s7247_s7 + $0x61c] ss:$48 sps:$4 sm:$0xff]   ;;  %v4971_v51 = vld [vmem:[%s7247_s7 + $0x610] ss:$48 sps:$4 sm:$0xff]  }
 0x2b0   :  { %3001 = vmatpush1.bf16.msra.mxu1 %v4893_v52  ;;  %v4974_v52 = vld [vmem:[%s7247_s7 + $0x618] ss:$48 sps:$4 sm:$0xff]  }
 0x2b1   :  { %3107 = vmatpush1.bf16.msra.mxu0 %v4896_v54  ;;  %3002 = vmatprep.subr.bf16.mxu1 %v4901_v60  ;;  %v4979_v54 = vld [vmem:[%s7247_s7 + $0x674] ss:$48 sps:$4 sm:$0xff]   ;;  %v4982_v60 = vld [vmem:[%s7247_s7 + $0x67c] ss:$48 sps:$4 sm:$0xff]  }
 0x2b2   :  { %3108 = vmatprep.subr.bf16.mxu0 %v4904_v62  ;;  %v4977_v62 = vld [vmem:[%s7247_s7 + $0x670] ss:$48 sps:$4 sm:$0xff]  }
 0x2b4   :  { %3003 = vmatpush1.bf16.msra.mxu1 %v4899_v63  ;;  %v4980_v63 = vld [vmem:[%s7247_s7 + $0x678] ss:$48 sps:$4 sm:$0xff]  }
 0x2b5   :  { %3109 = vmatpush1.bf16.msra.mxu0 %v4902_v1  ;;  %3004 = vmatprep.subr.bf16.mxu1 %v4907_v19  ;;  %v4985_v1 = vld [vmem:[%s7247_s7 + $0x6d4] ss:$48 sps:$4 sm:$0xff]   ;;  %v4988_v19 = vld [vmem:[%s7247_s7 + $0x6dc] ss:$48 sps:$4 sm:$0xff]  }
 0x2b6   :  { %3110 = vmatprep.subr.bf16.mxu0 %v4910_v3  ;;  %v4983_v3 = vld [vmem:[%s7247_s7 + $0x6d0] ss:$48 sps:$4 sm:$0xff]  }
 0x2b8   :  { %3005 = vmatpush1.bf16.msra.mxu1 %v4905_v4  ;;  %v4986_v4 = vld [vmem:[%s7247_s7 + $0x6d8] ss:$48 sps:$4 sm:$0xff]  }
 0x2b9   :  { %3111 = vmatpush1.bf16.msra.mxu0 %v4908_v5  ;;  %3006 = vmatprep.subr.bf16.mxu1 %v4913_v8  ;;  %v4991_v5 = vld [vmem:[%s7247_s7 + $0x734] ss:$48 sps:$4 sm:$0xff]   ;;  %v4994_v8 = vld [vmem:[%s7247_s7 + $0x73c] ss:$48 sps:$4 sm:$0xff]  }
 0x2ba   :  { %3112 = vmatprep.subr.bf16.mxu0 %v4916_v39  ;;  %v4989_v39 = vld [vmem:[%s7247_s7 + $0x730] ss:$48 sps:$4 sm:$0xff]  }
 0x2bc   :  { %3007 = vmatpush1.bf16.msra.mxu1 %v4911_v11  ;;  %v4992_v11 = vld [vmem:[%s7247_s7 + $0x738] ss:$48 sps:$4 sm:$0xff]  }
 0x2bd   :  { %3113 = vmatpush1.bf16.msra.mxu0 %v4914_v12  ;;  %3008 = vmatprep.subr.bf16.mxu1 %v4919_v15  ;;  %v4997_v12 = vld [vmem:[%s7247_s7 + $0x794] ss:$48 sps:$4 sm:$0xff]   ;;  %v5000_v15 = vld [vmem:[%s7247_s7 + $0x79c] ss:$48 sps:$4 sm:$0xff]  }
 0x2be   :  { %3114 = vmatprep.subr.bf16.mxu0 %v4922_v45  ;;  %v4995_v45 = vld [vmem:[%s7247_s7 + $0x790] ss:$48 sps:$4 sm:$0xff]  }
 0x2c0   :  { %3009 = vmatpush1.bf16.msra.mxu1 %v4917_v18  ;;  %v4998_v18 = vld [vmem:[%s7247_s7 + $0x798] ss:$48 sps:$4 sm:$0xff]  }
 0x2c1   :  { %3115 = vmatpush1.bf16.msra.mxu0 %v4920_v56  ;;  %3010 = vmatprep.subr.bf16.mxu1 %v4925_v46  ;;  %v5003_v56 = vld [vmem:[%s7247_s7 + $0x7f4] ss:$48 sps:$4 sm:$0xff]   ;;  %v5006_v46 = vld [vmem:[%s7247_s7 + $0x7fc] ss:$48 sps:$4 sm:$0xff]  }
 0x2c2   :  { %3116 = vmatprep.subr.bf16.mxu0 %v4928_v21  ;;  %v5001_v21 = vld [vmem:[%s7247_s7 + $0x7f0] ss:$48 sps:$4 sm:$0xff]  }
 0x2c4   :  { %3011 = vmatpush1.bf16.msra.mxu1 %v4923_v22  ;;  %v5004_v22 = vld [vmem:[%s7247_s7 + $0x7f8] ss:$48 sps:$4 sm:$0xff]  }
 0x2c5   :  { %3117 = vmatpush1.bf16.msra.mxu0 %v4926_v47  ;;  %3012 = vmatprep.subr.bf16.mxu1 %v4931_v23  ;;  %v5009_v47 = vld [vmem:[%s7247_s7 + $0x854] ss:$48 sps:$4 sm:$0xff]   ;;  %v5012_v23 = vld [vmem:[%s7247_s7 + $0x85c] ss:$48 sps:$4 sm:$0xff]  }
 0x2c6   :  { %3118 = vmatprep.subr.bf16.mxu0 %v4934_v24  ;;  %v5007_v24 = vld [vmem:[%s7247_s7 + $0x850] ss:$48 sps:$4 sm:$0xff]  }
 0x2c8   :  { %3013 = vmatpush1.bf16.msra.mxu1 %v4929_v55  ;;  %v5010_v55 = vld [vmem:[%s7247_s7 + $0x858] ss:$48 sps:$4 sm:$0xff]  }
 0x2c9   :  { %3119 = vmatpush1.bf16.msra.mxu0 %v4932_v48  ;;  %3014 = vmatprep.subr.bf16.mxu1 %v4937_v7  ;;  %v5015_v48 = vld [vmem:[%s7247_s7 + $0x8b4] ss:$48 sps:$4 sm:$0xff]   ;;  %v5018_v7 = vld [vmem:[%s7247_s7 + $0x8bc] ss:$48 sps:$4 sm:$0xff]  }
 0x2ca   :  { %3120 = vmatprep.subr.bf16.mxu0 %v4940_v9  ;;  %v5013_v9 = vld [vmem:[%s7247_s7 + $0x8b0] ss:$48 sps:$4 sm:$0xff]  }
 0x2cc   :  { %3015 = vmatpush1.bf16.msra.mxu1 %v4935_v16  ;;  %v5016_v16 = vld [vmem:[%s7247_s7 + $0x8b8] ss:$48 sps:$4 sm:$0xff]  }
 0x2cd   :  { %3121 = vmatpush1.bf16.msra.mxu0 %v4938_v25  ;;  %3016 = vmatprep.subr.bf16.mxu1 %v4943_v26  ;;  %v5021_v25 = vld [vmem:[%s7247_s7 + $0x24] ss:$48 sps:$4 sm:$0xff]   ;;  %v5024_v26 = vld [vmem:[%s7247_s7 + $0x2c] ss:$48 sps:$4 sm:$0xff]  }
 0x2ce   :  { %3122 = vmatprep.subr.bf16.mxu0 %v4946_v27  ;;  %v5019_v27 = vld [vmem:[%s7247_s7 + $0x20] ss:$48 sps:$4 sm:$0xff]  }
 0x2d0   :  { %3017 = vmatpush1.bf16.msra.mxu1 %v4941_v30  ;;  %v5022_v30 = vld [vmem:[%s7247_s7 + $0x28] ss:$48 sps:$4 sm:$0xff]  }
 0x2d1   :  { %3123 = vmatpush1.bf16.msra.mxu0 %v4944_v13  ;;  %3018 = vmatprep.subr.bf16.mxu1 %v4949_v31  ;;  %v5027_v13 = vld [vmem:[%s7247_s7 + $0x84] ss:$48 sps:$4 sm:$0xff]   ;;  %v5030_v31 = vld [vmem:[%s7247_s7 + $0x8c] ss:$48 sps:$4 sm:$0xff]  }
 0x2d2   :  { %3124 = vmatprep.subr.bf16.mxu0 %v4952_v32  ;;  %v5025_v32 = vld [vmem:[%s7247_s7 + $0x80] ss:$48 sps:$4 sm:$0xff]  }
 0x2d4   :  { %3019 = vmatpush1.bf16.msra.mxu1 %v4947_v14  ;;  %v5028_v14 = vld [vmem:[%s7247_s7 + $0x88] ss:$48 sps:$4 sm:$0xff]  }
 0x2d5   :  { %3125 = vmatpush1.bf16.msra.mxu0 %v4950_v17  ;;  %3020 = vmatprep.subr.bf16.mxu1 %v4955_v20  ;;  %v5033_v17 = vld [vmem:[%s7247_s7 + $0xe4] ss:$48 sps:$4 sm:$0xff]   ;;  %v5036_v20 = vld [vmem:[%s7247_s7 + $0xec] ss:$48 sps:$4 sm:$0xff]  }
 0x2d6   :  { %3126 = vmatprep.subr.bf16.mxu0 %v4958_v10  ;;  %v5031_v10 = vld [vmem:[%s7247_s7 + $0xe0] ss:$48 sps:$4 sm:$0xff]  }
 0x2d8   :  { %3021 = vmatpush1.bf16.msra.mxu1 %v4953_v57  ;;  %v5034_v57 = vld [vmem:[%s7247_s7 + $0xe8] ss:$48 sps:$4 sm:$0xff]  }
 0x2d9   :  { %3127 = vmatpush1.bf16.msra.mxu0 %v4956_v44  ;;  %3022 = vmatprep.subr.bf16.mxu1 %v4961_v35  ;;  %v5039_v44 = vld [vmem:[%s7247_s7 + $0x144] ss:$48 sps:$4 sm:$0xff]   ;;  %v5042_v35 = vld [vmem:[%s7247_s7 + $0x14c] ss:$48 sps:$4 sm:$0xff]  }
 0x2da   :  { %3128 = vmatprep.subr.bf16.mxu0 %v4964_v36  ;;  %v5037_v36 = vld [vmem:[%s7247_s7 + $0x140] ss:$48 sps:$4 sm:$0xff]  }
 0x2dc   :  { %3023 = vmatpush1.bf16.msra.mxu1 %v4959_v37  ;;  %v5040_v37 = vld [vmem:[%s7247_s7 + $0x148] ss:$48 sps:$4 sm:$0xff]  }
 0x2dd   :  { %3129 = vmatpush1.bf16.msra.mxu0 %v4962_v38  ;;  %3024 = vmatprep.subr.bf16.mxu1 %v4967_v40  ;;  %v5045_v38 = vld [vmem:[%s7247_s7 + $0x1a4] ss:$48 sps:$4 sm:$0xff]   ;;  %v5048_v40 = vld [vmem:[%s7247_s7 + $0x1ac] ss:$48 sps:$4 sm:$0xff]  }
 0x2de   :  { %3130 = vmatprep.subr.bf16.mxu0 %v4970_v41  ;;  %v5043_v41 = vld [vmem:[%s7247_s7 + $0x1a0] ss:$48 sps:$4 sm:$0xff]  }
 0x2e0   :  { %3025 = vmatpush1.bf16.msra.mxu1 %v4965_v43  ;;  %v5046_v43 = vld [vmem:[%s7247_s7 + $0x1a8] ss:$48 sps:$4 sm:$0xff]  }
 0x2e1   :  { %3131 = vmatpush1.bf16.msra.mxu0 %v4968_v49  ;;  %3047 = vmatprep.subr.bf16.mxu1 %v4973_v42  ;;  %v5054_v49 = vld [vmem:[%s7247_s7 + $0x20c] ss:$48 sps:$4 sm:$0xff]   ;;  %v5049_v42 = vld [vmem:[%s7247_s7 + $0x200] ss:$48 sps:$4 sm:$0xff]  }
 0x2e2   :  { %3153 = vmatprep.subr.bf16.mxu0 %v4976_v50  ;;  %v5052_v50 = vld [vmem:[%s7247_s7 + $0x208] ss:$48 sps:$4 sm:$0xff]  }
 0x2e3   :  { %3027 = vmatmul.mubr.bf16.vlgmr.msra.gmra.mrb[20].mxu1 %v6012_v34 }
 0x2e4   :  { %3133 = vmatmul.mubr.bf16.vlgmr.msra.gmra.mrb[16].mxu0 %v6012_v34  ;;  %3036 = vmatprep.mubr.bf16.mxu1 %v6042_v61 }
 0x2e5   :  { %3048 = vmatpush1.bf16.msra.mxu1 %v4971_v51  ;;  %3142 = vmatprep.mubr.bf16.mxu0 %v6042_v61  ;;  %v5057_v51 = vld [vmem:[%s7247_s7 + $0x264] ss:$48 sps:$4 sm:$0xff]  }
 0x2e6   :  { %3154 = vmatpush1.bf16.msra.mxu0 %v4974_v52  ;;  %3049 = vmatprep.subr.bf16.mxu1 %v4979_v54  ;;  %v5060_v52 = vld [vmem:[%s7247_s7 + $0x26c] ss:$48 sps:$4 sm:$0xff]   ;;  %v5055_v54 = vld [vmem:[%s7247_s7 + $0x260] ss:$48 sps:$4 sm:$0xff]  }
 0x2e7   :  { %3155 = vmatprep.subr.bf16.mxu0 %v4982_v60  ;;  %v5058_v60 = vld [vmem:[%s7247_s7 + $0x268] ss:$48 sps:$4 sm:$0xff]  }
 0x2e9   :  { %3050 = vmatpush1.bf16.msra.mxu1 %v4977_v62  ;;  %v5063_v62 = vld [vmem:[%s7247_s7 + $0x2c4] ss:$48 sps:$4 sm:$0xff]  }
 0x2ea   :  { %3156 = vmatpush1.bf16.msra.mxu0 %v4980_v63  ;;  %3051 = vmatprep.subr.bf16.mxu1 %v4985_v1  ;;  %v5066_v63 = vld [vmem:[%s7247_s7 + $0x2cc] ss:$48 sps:$4 sm:$0xff]   ;;  %v5061_v1 = vld [vmem:[%s7247_s7 + $0x2c0] ss:$48 sps:$4 sm:$0xff]  }
 0x2eb   :  { %3037 = vmatmul.mubr.bf16.gmra.mrb[24].mxu1 %v6050_v0  ;;  %3157 = vmatprep.subr.bf16.mxu0 %v4988_v19  ;;  %v5064_v19 = vld [vmem:[%s7247_s7 + $0x2c8] ss:$48 sps:$4 sm:$0xff]  }
 0x2ec   :  { %3143 = vmatmul.mubr.bf16.gmra.mrb[20].mxu0 %v6050_v0  ;;  %3079 = vmatprep.mubr.bf16.mxu1 %v5267_v6 }
 0x2ed   :  { %3052 = vmatpush1.bf16.msra.mxu1 %v4983_v3  ;;  %3185 = vmatprep.mubr.bf16.mxu0 %v5267_v6  ;;  %v5069_v3 = vld [vmem:[%s7247_s7 + $0x324] ss:$48 sps:$4 sm:$0xff]  }
 0x2ee   :  { %3158 = vmatpush1.bf16.msra.mxu0 %v4986_v4  ;;  %3053 = vmatprep.subr.bf16.mxu1 %v4991_v5  ;;  %v5072_v4 = vld [vmem:[%s7247_s7 + $0x32c] ss:$48 sps:$4 sm:$0xff]   ;;  %v5067_v5 = vld [vmem:[%s7247_s7 + $0x320] ss:$48 sps:$4 sm:$0xff]  }
 0x2ef   :  { %3159 = vmatprep.subr.bf16.mxu0 %v4994_v8  ;;  %v5070_v8 = vld [vmem:[%s7247_s7 + $0x328] ss:$48 sps:$4 sm:$0xff]  }
 0x2f1   :  { %3054 = vmatpush1.bf16.msra.mxu1 %v4989_v39  ;;  %v5075_v39 = vld [vmem:[%s7247_s7 + $0x384] ss:$48 sps:$4 sm:$0xff]  }
 0x2f2   :  { %3160 = vmatpush1.bf16.msra.mxu0 %v4992_v11  ;;  %3055 = vmatprep.subr.bf16.mxu1 %v4997_v12  ;;  %v5078_v11 = vld [vmem:[%s7247_s7 + $0x38c] ss:$48 sps:$4 sm:$0xff]   ;;  %v5073_v12 = vld [vmem:[%s7247_s7 + $0x380] ss:$48 sps:$4 sm:$0xff]  }
 0x2f3   :  { %3161 = vmatprep.subr.bf16.mxu0 %v5000_v15  ;;  %v5076_v15 = vld [vmem:[%s7247_s7 + $0x388] ss:$48 sps:$4 sm:$0xff]  }
 0x2f5   :  { %3056 = vmatpush1.bf16.msra.mxu1 %v4995_v45  ;;  %v5081_v45 = vld [vmem:[%s7247_s7 + $0x3e4] ss:$48 sps:$4 sm:$0xff]  }
 0x2f6   :  { %3162 = vmatpush1.bf16.msra.mxu0 %v4998_v18  ;;  %3057 = vmatprep.subr.bf16.mxu1 %v5003_v56  ;;  %v5084_v18 = vld [vmem:[%s7247_s7 + $0x3ec] ss:$48 sps:$4 sm:$0xff]   ;;  %v5079_v56 = vld [vmem:[%s7247_s7 + $0x3e0] ss:$48 sps:$4 sm:$0xff]  }
 0x2f7   :  { %3163 = vmatprep.subr.bf16.mxu0 %v5006_v46  ;;  %v5082_v46 = vld [vmem:[%s7247_s7 + $0x3e8] ss:$48 sps:$4 sm:$0xff]  }
 0x2f9   :  { %3058 = vmatpush1.bf16.msra.mxu1 %v5001_v21  ;;  %v5087_v21 = vld [vmem:[%s7247_s7 + $0x444] ss:$48 sps:$4 sm:$0xff]  }
 0x2fa   :  { %3164 = vmatpush1.bf16.msra.mxu0 %v5004_v22  ;;  %3059 = vmatprep.subr.bf16.mxu1 %v5009_v47  ;;  %v5090_v22 = vld [vmem:[%s7247_s7 + $0x44c] ss:$48 sps:$4 sm:$0xff]   ;;  %v5085_v47 = vld [vmem:[%s7247_s7 + $0x440] ss:$48 sps:$4 sm:$0xff]  }
 0x2fb   :  { %3165 = vmatprep.subr.bf16.mxu0 %v5012_v23  ;;  %v5088_v23 = vld [vmem:[%s7247_s7 + $0x448] ss:$48 sps:$4 sm:$0xff]  }
 0x2fd   :  { %3060 = vmatpush1.bf16.msra.mxu1 %v5007_v24  ;;  %v5093_v24 = vld [vmem:[%s7247_s7 + $0x4a4] ss:$48 sps:$4 sm:$0xff]  }
 0x2fe   :  { %3166 = vmatpush1.bf16.msra.mxu0 %v5010_v55  ;;  %3061 = vmatprep.subr.bf16.mxu1 %v5015_v48  ;;  %v5096_v55 = vld [vmem:[%s7247_s7 + $0x4ac] ss:$48 sps:$4 sm:$0xff]   ;;  %v5091_v48 = vld [vmem:[%s7247_s7 + $0x4a0] ss:$48 sps:$4 sm:$0xff]  }
 0x2ff   :  { %3167 = vmatprep.subr.bf16.mxu0 %v5018_v7  ;;  %v5094_v7 = vld [vmem:[%s7247_s7 + $0x4a8] ss:$48 sps:$4 sm:$0xff]  }
 0x301   :  { %3062 = vmatpush1.bf16.msra.mxu1 %v5013_v9  ;;  %v5099_v9 = vld [vmem:[%s7247_s7 + $0x504] ss:$48 sps:$4 sm:$0xff]  }
 0x302   :  { %3168 = vmatpush1.bf16.msra.mxu0 %v5016_v16  ;;  %3206 = vmatprep.subr.bf16.mxu1 %v5021_v25  ;;  %v5102_v16 = vld [vmem:[%s7247_s7 + $0x50c] ss:$48 sps:$4 sm:$0xff]   ;;  %v5097_v25 = vld [vmem:[%s7247_s7 + $0x500] ss:$48 sps:$4 sm:$0xff]  }
 0x303   :  { %3312 = vmatprep.subr.bf16.mxu0 %v5024_v26  ;;  %v5100_v26 = vld [vmem:[%s7247_s7 + $0x508] ss:$48 sps:$4 sm:$0xff]  }
 0x304   :  { %3080 = vmatmul.mubr.bf16.vlgmr.msra.gmra.mrb[20].mxu1 %v6142_v2 }
 0x305   :  { %3186 = vmatmul.mubr.bf16.vlgmr.msra.gmra.mrb[16].mxu0 %v6142_v2  ;;  %3207 = vmatpush1.bf16.msra.mxu1 %v5019_v27  ;;  %v5105_v27 = vld [vmem:[%s7247_s7 + $0x564] ss:$48 sps:$4 sm:$0xff]  }
 0x306   :  { %3313 = vmatpush1.bf16.msra.mxu0 %v5022_v30  ;;  %3208 = vmatprep.subr.bf16.mxu1 %v5027_v13  ;;  %v5108_v30 = vld [vmem:[%s7247_s7 + $0x56c] ss:$48 sps:$4 sm:$0xff]   ;;  %v5103_v13 = vld [vmem:[%s7247_s7 + $0x560] ss:$48 sps:$4 sm:$0xff]  }
 0x307   :  { %3314 = vmatprep.subr.bf16.mxu0 %v5030_v31  ;;  %3089 = vmatprep.mubr.bf16.mxu1 %v5267_v6  ;;  %v5106_v31 = vld [vmem:[%s7247_s7 + $0x568] ss:$48 sps:$4 sm:$0xff]  }
 0x308   :  { %3195 = vmatprep.mubr.bf16.mxu0 %v5267_v6 }
 0x309   :  { %3209 = vmatpush1.bf16.msra.mxu1 %v5025_v32  ;;  %v5111_v32 = vld [vmem:[%s7247_s7 + $0x5c4] ss:$48 sps:$4 sm:$0xff]  }
 0x30a   :  { %3315 = vmatpush1.bf16.msra.mxu0 %v5028_v14  ;;  %3210 = vmatprep.subr.bf16.mxu1 %v5033_v17  ;;  %v5114_v14 = vld [vmem:[%s7247_s7 + $0x5cc] ss:$48 sps:$4 sm:$0xff]   ;;  %v5109_v17 = vld [vmem:[%s7247_s7 + $0x5c0] ss:$48 sps:$4 sm:$0xff]  }
 0x30b   :  { %3316 = vmatprep.subr.bf16.mxu0 %v5036_v20  ;;  %v5112_v20 = vld [vmem:[%s7247_s7 + $0x5c8] ss:$48 sps:$4 sm:$0xff]  }
 0x30c   :  { %3090 = vmatmul.mubr.bf16.gmra.mrb[24].mxu1 %v6169_v53 }
 0x30d   :  { %3196 = vmatmul.mubr.bf16.gmra.mrb[20].mxu0 %v6169_v53  ;;  %3211 = vmatpush1.bf16.msra.mxu1 %v5031_v10  ;;  %v5117_v10 = vld [vmem:[%s7247_s7 + $0x624] ss:$48 sps:$4 sm:$0xff]  }
 0x30e   :  { %3238 = vmatprep.mubr.bf16.mxu1 %v6004_v33  ;;  %3317 = vmatpush1.bf16.msra.mxu0 %v5034_v57  ;;  %v6644_v57 = vld [vmem:[%s7247_s7 + $0x62c] ss:$48 sps:$4 sm:$0xff]  }
 0x30f   :  { %3344 = vmatprep.mubr.bf16.mxu0 %v6004_v33  ;;  %3212 = vmatprep.subr.bf16.mxu1 %v5039_v44  ;;  %v5051_v33 = vld [vmem:[%s7247_s7 + $0x204] ss:$48 sps:$4 sm:$0xff]   ;;  %v5115_v44 = vld [vmem:[%s7247_s7 + $0x620] ss:$48 sps:$4 sm:$0xff]  }
 0x310   :  { %3318 = vmatprep.subr.bf16.mxu0 %v5042_v35  ;;  %v6652_v35 = vld [vmem:[%s7247_s7 + $0x628] ss:$48 sps:$4 sm:$0xff]  }
 0x311   :  { %3213 = vmatpush1.bf16.msra.mxu1 %v5037_v36  ;;  %v5123_v36 = vld [vmem:[%s7247_s7 + $0x684] ss:$48 sps:$4 sm:$0xff]  }
 0x312   :  { %3319 = vmatpush1.bf16.msra.mxu0 %v5040_v37  ;;  %3214 = vmatprep.subr.bf16.mxu1 %v5045_v38  ;;  %v6662_v37 = vld [vmem:[%s7247_s7 + $0x68c] ss:$48 sps:$4 sm:$0xff]   ;;  %v5121_v38 = vld [vmem:[%s7247_s7 + $0x680] ss:$48 sps:$4 sm:$0xff]  }
 0x313   :  { %3320 = vmatprep.subr.bf16.mxu0 %v5048_v40  ;;  %v5124_v40 = vld [vmem:[%s7247_s7 + $0x688] ss:$48 sps:$4 sm:$0xff]  }
 0x315   :  { %3215 = vmatpush1.bf16.msra.mxu1 %v5043_v41  ;;  %v5127_v41 = vld [vmem:[%s7247_s7 + $0x6e0] ss:$48 sps:$4 sm:$0xff]  }
 0x316   :  { %3321 = vmatpush1.bf16.msra.mxu0 %v5046_v43  ;;  %3216 = vmatprep.subr.bf16.mxu1 %v5051_v33  ;;  %v5130_v43 = vld [vmem:[%s7247_s7 + $0x6e8] ss:$48 sps:$4 sm:$0xff]   ;;  %v5135_v33 = vld [vmem:[%s7247_s7 + $0x744] ss:$48 sps:$4 sm:$0xff]  }
 0x317   :  { %3322 = vmatprep.subr.bf16.mxu0 %v5054_v49  ;;  %v5138_v49 = vld [vmem:[%s7247_s7 + $0x74c] ss:$48 sps:$4 sm:$0xff]  }
 0x319   :  { %3217 = vmatpush1.bf16.msra.mxu1 %v5049_v42  ;;  %v5133_v42 = vld [vmem:[%s7247_s7 + $0x740] ss:$48 sps:$4 sm:$0xff]  }
 0x31a   :  { %3323 = vmatpush1.bf16.msra.mxu0 %v5052_v50  ;;  %3218 = vmatprep.subr.bf16.mxu1 %v5057_v51  ;;  %v5136_v50 = vld [vmem:[%s7247_s7 + $0x748] ss:$48 sps:$4 sm:$0xff]   ;;  %v5141_v51 = vld [vmem:[%s7247_s7 + $0x7a4] ss:$48 sps:$4 sm:$0xff]  }
 0x31b   :  { %3324 = vmatprep.subr.bf16.mxu0 %v5060_v52  ;;  %v5139_v52 = vld [vmem:[%s7247_s7 + $0x7a0] ss:$48 sps:$4 sm:$0xff]  }
 0x31d   :  { %3219 = vmatpush1.bf16.msra.mxu1 %v5055_v54  ;;  %v5142_v54 = vld [vmem:[%s7247_s7 + $0x7a8] ss:$48 sps:$4 sm:$0xff]  }
 0x31e   :  { %3325 = vmatpush1.bf16.msra.mxu0 %v5058_v60  ;;  %3220 = vmatprep.subr.bf16.mxu1 %v5063_v62  ;;  %v5147_v60 = vld [vmem:[%s7247_s7 + $0x804] ss:$48 sps:$4 sm:$0xff]   ;;  %v5150_v62 = vld [vmem:[%s7247_s7 + $0x80c] ss:$48 sps:$4 sm:$0xff]  }
 0x31f   :  { %3326 = vmatprep.subr.bf16.mxu0 %v5066_v63  ;;  %v5145_v63 = vld [vmem:[%s7247_s7 + $0x800] ss:$48 sps:$4 sm:$0xff]  }
 0x321   :  { %3221 = vmatpush1.bf16.msra.mxu1 %v5061_v1  ;;  %v5148_v1 = vld [vmem:[%s7247_s7 + $0x808] ss:$48 sps:$4 sm:$0xff]  }
 0x322   :  { %3327 = vmatpush1.bf16.msra.mxu0 %v5064_v19  ;;  %3222 = vmatprep.subr.bf16.mxu1 %v5069_v3  ;;  %v5153_v19 = vld [vmem:[%s7247_s7 + $0x864] ss:$48 sps:$4 sm:$0xff]   ;;  %v5156_v3 = vld [vmem:[%s7247_s7 + $0x86c] ss:$48 sps:$4 sm:$0xff]  }
 0x323   :  { %3328 = vmatprep.subr.bf16.mxu0 %v5072_v4  ;;  %v5151_v4 = vld [vmem:[%s7247_s7 + $0x860] ss:$48 sps:$4 sm:$0xff]  }
 0x325   :  { %3223 = vmatpush1.bf16.msra.mxu1 %v5067_v5  ;;  %v6739_v5 = vld [vmem:[%s7247_s7 + $0x868] ss:$48 sps:$4 sm:$0xff]  }
 0x326   :  { %3329 = vmatpush1.bf16.msra.mxu0 %v5070_v8  ;;  %3224 = vmatprep.subr.bf16.mxu1 %v5075_v39  ;;  %v5159_v8 = vld [vmem:[%s7247_s7 + $0x8c4] ss:$48 sps:$4 sm:$0xff]   ;;  %v6747_v39 = vld [vmem:[%s7247_s7 + $0x8cc] ss:$48 sps:$4 sm:$0xff]  }
 0x327   :  { %3330 = vmatprep.subr.bf16.mxu0 %v5078_v11  ;;  %v5157_v11 = vld [vmem:[%s7247_s7 + $0x8c0] ss:$48 sps:$4 sm:$0xff]  }
 0x329   :  { %3225 = vmatpush1.bf16.msra.mxu1 %v5073_v12  ;;  %v6756_v12 = vld [vmem:[%s7247_s7 + $0x8c8] ss:$48 sps:$4 sm:$0xff]  }
 0x32a   :  { %3331 = vmatpush1.bf16.msra.mxu0 %v5076_v15  ;;  %3226 = vmatprep.subr.bf16.mxu1 %v5081_v45  ;;  %v6771_v15 = vld [vmem:[%s7250_s8] sm:$0xff] }
 0x32b   :  { %3332 = vmatprep.subr.bf16.mxu0 %v5084_v18  ;;  %v6776_v45 = vrot.slane %v6771_v15, %v5617_v58  ;;  %v6780_v18 = vrot.slane %v6771_v15, %v5570_v29 }
 0x32d   :  { %3227 = vmatpush1.bf16.msra.mxu1 %v5079_v56 }
 0x32e   :  { %3333 = vmatpush1.bf16.msra.mxu0 %v5082_v46  ;;  %3228 = vmatprep.subr.bf16.mxu1 %v5087_v21 }
 0x32f   :  { %3334 = vmatprep.subr.bf16.mxu0 %v5090_v22 }
 0x331   :  { %3229 = vmatpush1.bf16.msra.mxu1 %v5085_v47 }
 0x332   :  { %3335 = vmatpush1.bf16.msra.mxu0 %v5088_v23  ;;  %3230 = vmatprep.subr.bf16.mxu1 %v5093_v24 }
 0x333   :  { %3336 = vmatprep.subr.bf16.mxu0 %v5096_v55 }
 0x335   :  { %3231 = vmatpush1.bf16.msra.mxu1 %v5091_v48 }
 0x336   :  { %3337 = vmatpush1.bf16.msra.mxu0 %v5094_v7  ;;  %3232 = vmatprep.subr.bf16.mxu1 %v5099_v9 }
 0x337   :  { %3338 = vmatprep.subr.bf16.mxu0 %v5102_v16 }
 0x339   :  { %3233 = vmatpush1.bf16.msra.mxu1 %v5097_v25 }
 0x33a   :  { %3339 = vmatpush1.bf16.msra.mxu0 %v5100_v26  ;;  %3234 = vmatprep.subr.bf16.mxu1 %v5105_v27 }
 0x33b   :  { %3340 = vmatprep.subr.bf16.mxu0 %v5108_v30 }
 0x33d   :  { %3235 = vmatpush1.bf16.msra.mxu1 %v5103_v13 }
 0x33e   :  { %3341 = vmatpush1.bf16.msra.mxu0 %v5106_v31  ;;  %3236 = vmatprep.subr.bf16.mxu1 %v5111_v32 }
 0x33f   :  { %3342 = vmatprep.subr.bf16.mxu0 %v5114_v14 }
 0x341   :  { %3237 = vmatpush1.bf16.msra.mxu1 %v5109_v17 }
 0x342   :  { %3343 = vmatpush1.bf16.msra.mxu0 %v5112_v20  ;;  %3259 = vmatprep.subr.bf16.mxu1 %v5117_v10 }
 0x343   :  { %3365 = vmatprep.subr.bf16.mxu0 %v6644_v57 }
 0x344   :  { %3239 = vmatmul.mubr.bf16.vlgmr.msra.gmra.mrb[28].mxu1 %v6012_v34 }
 0x345   :  { %3345 = vmatmul.mubr.bf16.vlgmr.msra.gmra.mrb[24].mxu0 %v6012_v34  ;;  %3248 = vmatprep.mubr.bf16.mxu1 %v6042_v61  ;;  %v5129_v34 = vld [vmem:[%s7247_s7 + $0x6e4] ss:$48 sps:$4 sm:$0xff]  }
 0x346   :  { %3260 = vmatpush1.bf16.msra.mxu1 %v5115_v44  ;;  %3354 = vmatprep.mubr.bf16.mxu0 %v6042_v61  ;;  %v5132_v61 = vld [vmem:[%s7247_s7 + $0x6ec] ss:$48 sps:$4 sm:$0xff]  }
 0x347   :  { %3366 = vmatpush1.bf16.msra.mxu0 %v6652_v35  ;;  %3261 = vmatprep.subr.bf16.mxu1 %v5123_v36 }
 0x348   :  { %3367 = vmatprep.subr.bf16.mxu0 %v6662_v37 }
 0x34a   :  { %3262 = vmatpush1.bf16.msra.mxu1 %v5121_v38 }
 0x34b   :  { %3368 = vmatpush1.bf16.msra.mxu0 %v5124_v40  ;;  %3263 = vmatprep.subr.bf16.mxu1 %v5129_v34 }
 0x34c   :  { %3249 = vmatmul.mubr.bf16.gmra.mrb[32].mxu1 %v6050_v0  ;;  %3369 = vmatprep.subr.bf16.mxu0 %v5132_v61 }
 0x34d   :  { %3355 = vmatmul.mubr.bf16.gmra.mrb[28].mxu0 %v6050_v0  ;;  %3291 = vmatprep.mubr.bf16.mxu1 %v5267_v6  ;;  %v5144_v0 = vld [vmem:[%s7247_s7 + $0x7ac] ss:$48 sps:$4 sm:$0xff]  }
 0x34e   :  { %3264 = vmatpush1.bf16.msra.mxu1 %v5127_v41  ;;  %3397 = vmatprep.mubr.bf16.mxu0 %v5267_v6 }
 0x34f   :  { %3370 = vmatpush1.bf16.msra.mxu0 %v5130_v43  ;;  %3265 = vmatprep.subr.bf16.mxu1 %v5135_v33 }
 0x350   :  { %3371 = vmatprep.subr.bf16.mxu0 %v5138_v49 }
 0x352   :  { %3266 = vmatpush1.bf16.msra.mxu1 %v5133_v42 }
 0x353   :  { %3372 = vmatpush1.bf16.msra.mxu0 %v5136_v50  ;;  %3267 = vmatprep.subr.bf16.mxu1 %v5141_v51 }
 0x354   :  { %3373 = vmatprep.subr.bf16.mxu0 %v5144_v0 }
 0x356   :  { %3268 = vmatpush1.bf16.msra.mxu1 %v5139_v52 }
 0x357   :  { %3374 = vmatpush1.bf16.msra.mxu0 %v5142_v54  ;;  %3269 = vmatprep.subr.bf16.mxu1 %v5147_v60 }
 0x358   :  { %3375 = vmatprep.subr.bf16.mxu0 %v5150_v62 }
 0x35a   :  { %3270 = vmatpush1.bf16.msra.mxu1 %v5145_v63 }
 0x35b   :  { %3376 = vmatpush1.bf16.msra.mxu0 %v5148_v1  ;;  %3271 = vmatprep.subr.bf16.mxu1 %v5153_v19 }
 0x35c   :  { %3377 = vmatprep.subr.bf16.mxu0 %v5156_v3 }
 0x35e   :  { %3272 = vmatpush1.bf16.msra.mxu1 %v5151_v4 }
 0x35f   :  { %3378 = vmatpush1.bf16.msra.mxu0 %v6739_v5  ;;  %3273 = vmatprep.subr.bf16.mxu1 %v5159_v8 }
 0x360   :  { %3379 = vmatprep.subr.bf16.mxu0 %v6747_v39 }
 0x362   :  { %3274 = vmatpush1.bf16.msra.mxu1 %v5157_v11 }
 0x363   :  { %3380 = vmatpush1.bf16.msra.mxu0 %v6756_v12  ;;  %4498 = vmatprep.subr.bf16.mxu1 %v6644_v57 }
 0x365   :  { %3292 = vmatmul.mubr.bf16.vlgmr.msra.gmra.mrb[28].mxu1 %v6142_v2 }
 0x366   :  { %3398 = vmatmul.mubr.bf16.vlgmr.msra.gmra.mrb[24].mxu0 %v6142_v2  ;;  %4506 = vmatpush1.bf16.msra.mxu1 %v6652_v35  ;;  %v1296_v2 = vsub.s32 3, %v5567_v28 }
 0x367   :  { %4499 = vmatprep.subr.bf16.mxu1 %v6662_v37  ;;  %3301 = vmatprep.mubr.bf16.mxu1 %v5267_v6 }
 0x368   :  { %v6789_v56 = vrot.slane %v6771_v15, %v1296_v2 }
 0x36a   :  { %4507 = vmatpush1.bf16.msra.mxu1 %v5124_v40 }
 0x36b   :  { %4500 = vmatprep.subr.bf16.mxu1 %v5132_v61 }
 0x36d   :  { %3302 = vmatmul.mubr.bf16.gmra.mrb[32].mxu1 %v6169_v53 }
 0x36e   :  { %4508 = vmatpush1.bf16.msra.mxu1 %v5130_v43  ;;  %3407 = vmatprep.mubr.bf16.mxu1 %v5267_v6  ;;  %v6784_v6 = vrot.slane %v6771_v15, %v5620_v59 }
 0x36f   :  { %4501 = vmatprep.subr.bf16.mxu1 %v5138_v49 }
 0x372   :  { %4509 = vmatpush1.bf16.msra.mxu1 %v5136_v50 }
 0x373   :  { %4502 = vmatprep.subr.bf16.mxu1 %v5144_v0 }
 0x376   :  { %4510 = vmatpush1.bf16.msra.mxu1 %v5142_v54  ;;  %v2869_v46 = vpop.f32.mrb[12].mxu1  ;;  %v2975_v21 = vpop.f32.mrb[8].mxu0 }
 0x377   :  { %v4522_v22 = vadd.f32 %v2869_v46, %v6776_v45  ;;  %v6793_v47 = vadd.f32 %v2975_v21, %v6780_v18  ;;  %v2871_v23 = vpop.f32.mrb[13].mxu1  ;;  %v2977_v24 = vpop.f32.mrb[9].mxu0  ;;  %4503 = vmatprep.subr.bf16.mxu1 %v5150_v62 }
 0x378   :  { %v6796_v55 = vadd.f32 %v2871_v23, %v6784_v6  ;;  %v6799_v48 = vadd.f32 %v2977_v24, %v6789_v56  ;;  %v2873_v7 = vpop.f32.mrb[14].mxu1  ;;  %v2979_v9 = vpop.f32.mrb[10].mxu0 }
 0x379   :  { %v3466_v16 = vmul.f32 %v4522_v22, %v4522_v22  ;;  %v3468_v25 = vmul.f32 %v6793_v47, %v6793_v47  ;;  %v2875_v26 = vpop.f32.mrb[15].mxu1  ;;  %v2981_v27 = vpop.f32.mrb[11].mxu0  ;;  %v6809_v14 = vadd.f32 %v2873_v7, %v6776_v45  ;;  %v6812_v17 = vadd.f32 %v2979_v9, %v6780_v18 }
 0x37a   :  { %v3467_v30 = vmul.f32 %v6796_v55, %v6796_v55  ;;  %v3469_v13 = vmul.f32 %v6799_v48, %v6799_v48  ;;  %4511 = vmatpush1.bf16.msra.mxu1 %v5148_v1  ;;  %v6817_v57 = vadd.f32 %v2875_v26, %v6784_v6  ;;  %v6822_v37 = vadd.f32 %v2981_v27, %v6789_v56 }
 0x37b   :  { %v3514_v31 = vmul.f32 %v4522_v22, %v3466_v16  ;;  %v3516_v32 = vmul.f32 %v6793_v47, %v3468_v25  ;;  %4504 = vmatprep.subr.bf16.mxu1 %v5156_v3  ;;  %v3478_v36 = vmul.f32 %v6809_v14, %v6809_v14  ;;  %v3480_v34 = vmul.f32 %v6812_v17, %v6812_v17 }
 0x37c   :  { %v3515_v20 = vmul.f32 %v6796_v55, %v3467_v30  ;;  %v3517_v10 = vmul.f32 %v6799_v48, %v3469_v13  ;;  %v3479_v52 = vmul.f32 %v6817_v57, %v6817_v57  ;;  %v3481_v19 = vmul.f32 %v6822_v37, %v6822_v37 }
 0x37d   :  { %v3562_v44 = vmul.f32 0.044715, %v3514_v31  ;;  %v3564_v35 = vmul.f32 0.044715, %v3516_v32  ;;  %v3526_v33 = vmul.f32 %v6809_v14, %v3478_v36  ;;  %v3528_v0 = vmul.f32 %v6812_v17, %v3480_v34 }
 0x37e   :  { %v3563_v38 = vmul.f32 0.044715, %v3515_v20  ;;  %v3565_v40 = vmul.f32 0.044715, %v3517_v10  ;;  %4512 = vmatpush1.bf16.msra.mxu1 %v6739_v5  ;;  %v2879_v61 = vpop.f32.mrb[16].mxu1  ;;  %v2985_v49 = vpop.f32.mrb[12].mxu0  ;;  %v3527_v8 = vmul.f32 %v6817_v57, %v3479_v52  ;;  %v3529_v46 = vmul.f32 %v6822_v37, %v3481_v19 }
 0x37f   :  { %v3610_v41 = vadd.f32 %v4522_v22, %v3562_v44  ;;  %v3612_v43 = vadd.f32 %v6793_v47, %v3564_v35  ;;  %v2881_v42 = vpop.f32.mrb[17].mxu1  ;;  %4505 = vmatprep.subr.bf16.mxu1 %v6747_v39  ;;  %v2987_v54 = vpop.f32.mrb[13].mxu0  ;;  %v3574_v1 = vmul.f32 0.044715, %v3526_v33  ;;  %v3576_v5 = vmul.f32 0.044715, %v3528_v0 }
 0x380   :  { %v3611_v50 = vadd.f32 %v6796_v55, %v3563_v38  ;;  %v3613_v51 = vadd.f32 %v6799_v48, %v3565_v40  ;;  %v2883_v60 = vpop.f32.mrb[18].mxu1  ;;  %v3418_v39 = vmul.f32 0.5, %v4522_v22  ;;  %v2989_v21 = vpop.f32.mrb[14].mxu0  ;;  %v3575_v7 = vmul.f32 0.044715, %v3527_v8 }
 0x381   :  { %v3658_v62 = vmul.f32 0.7978846, %v3610_v41  ;;  %v3660_v63 = vmul.f32 0.7978846, %v3612_v43  ;;  %v3622_v11 = vadd.f32 %v6809_v14, %v3574_v1  ;;  %v2885_v23 = vpop.f32.mrb[19].mxu1  ;;  %v3624_v24 = vadd.f32 %v6812_v17, %v3576_v5  ;;  %v6845_v16 = vpop.f32.mrb[15].mxu0 }
 0x382   :  { %v3659_v3 = vmul.f32 0.7978846, %v3611_v50  ;;  %v3661_v4 = vmul.f32 0.7978846, %v3613_v51  ;;  %4513 = vmatpush1.bf16.msra.mxu1 %v6756_v12  ;;  %v6843_v9 = vadd.f32 %v2879_v61, %v6776_v45  ;;  %v3577_v12 = vmul.f32 0.044715, %v3529_v46 }
 0x383   :  { %5171 = vtanh.f32 %v3658_v62  ;;  %v3670_v25 = vmul.f32 0.7978846, %v3622_v11  ;;  %v6848_v22 = vadd.f32 %v2985_v49, %v6780_v18  ;;  %v3420_v26 = vmul.f32 0.5, %v6793_v47 }
 0x384   :  { %5173 = vtanh.f32 %v3660_v63  ;;  %v3672_v27 = vmul.f32 0.7978846, %v3624_v24  ;;  %v3623_v30 = vadd.f32 %v6817_v57, %v3575_v7  ;;  %v3419_v13 = vmul.f32 0.5, %v6796_v55 }
 0x385   :  { %5175 = vtanh.f32 %v3659_v3  ;;  %3408 = vmatmul.mubr.bf16.vlgmr.msra.gmra.mrb[36].mxu1 %v6169_v53  ;;  %v3625_v31 = vadd.f32 %v6822_v37, %v3577_v12  ;;  %v3490_v32 = vmul.f32 %v6843_v9, %v6843_v9  ;;  %v3492_v10 = vmul.f32 %v6848_v22, %v6848_v22 }
 0x386   :  { %5177 = vtanh.f32 %v3661_v4  ;;  %v3671_v20 = vmul.f32 0.7978846, %v3623_v30  ;;  %v6860_v53 = vadd.f32 %v2881_v42, %v6784_v6  ;;  %v6864_v35 = vadd.f32 %v2987_v54, %v6789_v56 }
 0x387   :  { %5179 = vtanh.f32 %v3670_v25  ;;  %v3673_v47 = vmul.f32 0.7978846, %v3625_v31  ;;  %v3538_v44 = vmul.f32 %v6843_v9, %v3490_v32  ;;  %v6867_v55 = vadd.f32 %v2883_v60, %v6776_v45 }
 0x388   :  { %5181 = vtanh.f32 %v3672_v27  ;;  %v3421_v36 = vmul.f32 0.5, %v6799_v48  ;;  %v3540_v38 = vmul.f32 %v6848_v22, %v3492_v10  ;;  %v3491_v40 = vmul.f32 %v6860_v53, %v6860_v53 }
 0x389   :  { %5183 = vtanh.f32 %v3671_v20  ;;  %v3430_v34 = vmul.f32 0.5, %v6809_v14  ;;  %v3586_v61 = vmul.f32 0.044715, %v3538_v44  ;;  %v3493_v41 = vmul.f32 %v6864_v35, %v6864_v35 }
 0x38a   :  { %5185 = vtanh.f32 %v3673_v47  ;;  %v3432_v43 = vmul.f32 0.5, %v6812_v17  ;;  %v3588_v33 = vmul.f32 0.044715, %v3540_v38  ;;  %v3539_v45 = vmul.f32 %v6860_v53, %v3491_v40 }
 0x38b   :  { %v3502_v48 = vmul.f32 %v6867_v55, %v6867_v55  ;;  %v3431_v42 = vmul.f32 0.5, %v6817_v57  ;;  %v3634_v50 = vadd.f32 %v6843_v9, %v3586_v61  ;;  %v3541_v14 = vmul.f32 %v6864_v35, %v3493_v41 }
 0x38c   :  { %v6884_v51 = vadd.f32 %v2989_v21, %v6780_v18  ;;  %v3636_v17 = vadd.f32 %v6848_v22, %v3588_v33  ;;  %v3587_v54 = vmul.f32 0.044715, %v3539_v45  ;;  %v6888_v60 = vadd.f32 %v2885_v23, %v6784_v6 }
 0x38d   :  { %v5172_v49 = vpop.eup %5171  ;;  %v3682_v1 = vmul.f32 0.7978846, %v3634_v50  ;;  %v3589_v19 = vmul.f32 0.044715, %v3541_v14  ;;  %v3550_v57 = vmul.f32 %v6867_v55, %v3502_v48  ;;  %v3433_v20 = vmul.f32 0.5, %v6822_v37 }
 0x38e   :  { %v5174_v0 = vpop.eup %5173  ;;  %v3754_v52 = vadd.f32 1.0, %v5172_v49  ;;  %v3684_v8 = vmul.f32 0.7978846, %v3636_v17  ;;  %v3635_v18 = vadd.f32 %v6860_v53, %v3587_v54  ;;  %v4537_v41 = vadd.f32 %v6845_v16, %v6789_v56 }
 0x38f   :  { %v5176_v62 = vpop.eup %5175  ;;  %v3756_v63 = vadd.f32 1.0, %v5174_v0  ;;  %5187 = vtanh.f32 %v3682_v1  ;;  %v3637_v24 = vadd.f32 %v6864_v35, %v3589_v19  ;;  %v3598_v31 = vmul.f32 0.044715, %v3550_v57 }
 0x390   :  { %v5178_v3 = vpop.eup %5177  ;;  %v3802_v4 = vmul.f32 %v3754_v52, %v3418_v39  ;;  %v3755_v5 = vadd.f32 1.0, %v5176_v62  ;;  %5189 = vtanh.f32 %v3684_v8  ;;  %v3683_v25 = vmul.f32 0.7978846, %v3635_v18 }
 0x391   :  { %v5180_v11 = vpop.eup %5179  ;;  %v3804_v46 = vmul.f32 %v3756_v63, %v3420_v26  ;;  %v3757_v21 = vadd.f32 1.0, %v5178_v3  ;;  %v3685_v30 = vmul.f32 0.7978846, %v3637_v24  ;;  %v3504_v26 = vmul.f32 %v6884_v51, %v6884_v51 }
 0x392   :  { %v5182_v6 = vpop.eup %5181  ;;  %v3803_v23 = vmul.f32 %v3755_v5, %v3419_v13  ;;  %v3766_v7 = vadd.f32 1.0, %v5180_v11  ;;  %5191 = vtanh.f32 %v3683_v25  ;;  %v3646_v40 = vadd.f32 %v6867_v55, %v3598_v31 }
 0x393   :  { %v3805_v12 = vmul.f32 %v3757_v21, %v3421_v36  ;;  %v3768_v27 = vadd.f32 1.0, %v5182_v6  ;;  %v5184_v39 = vpop.eup %5183  ;;  %5193 = vtanh.f32 %v3685_v30  ;;  %v3552_v61 = vmul.f32 %v6884_v51, %v3504_v26 }
 0x394   :  { %v4416_v32 = vpack.c.bf16 %v3803_v23, %v3802_v4  ;;  %v5186_v10 = vpop.eup %5185  ;;  %v3814_v44 = vmul.f32 %v3766_v7, %v3430_v34  ;;  %v3767_v38 = vadd.f32 1.0, %v5184_v39  ;;  %v3503_v34 = vmul.f32 %v6888_v60, %v6888_v60 }
 0x395   :  { %v4417_v47 = vpack.c.bf16 %v3805_v12, %v3804_v46  ;;  %v3816_v13 = vmul.f32 %v3768_v27, %v3432_v43  ;;  %v3769_v36 = vadd.f32 1.0, %v5186_v10  ;;  %v3694_v45 = vmul.f32 0.7978846, %v3646_v40 }
 0x396   :  { %3994 = vst [vmem:[%s7251_s10] sm:$0xff] %v4416_v32  ;;  %v3815_v37 = vmul.f32 %v3767_v38, %v3431_v42  ;;  %v3600_v48 = vmul.f32 0.044715, %v3552_v61  ;;  %v3551_v49 = vmul.f32 %v6888_v60, %v3503_v34  ;;  %v3505_v50 = vmul.f32 %v4537_v41, %v4537_v41 }
 0x397   :  { %3995 = vst [vmem:[%s7251_s10 + $0x8] sm:$0xff] %v4417_v47  ;;  %v3817_v33 = vmul.f32 %v3769_v36, %v3433_v20  ;;  %5195 = vtanh.f32 %v3694_v45  ;;  %v3442_v62 = vmul.f32 0.5, %v6843_v9  ;;  %v3444_v3 = vmul.f32 0.5, %v6848_v22 }
 0x398   :  { %v4422_v43 = vpack.c.bf16 %v3815_v37, %v3814_v44  ;;  %v3648_v0 = vadd.f32 %v6884_v51, %v3600_v48  ;;  %v3599_v42 = vmul.f32 0.044715, %v3551_v49  ;;  %v3553_v17 = vmul.f32 %v4537_v41, %v3505_v50 }
 0x399   :  { %v4423_v14 = vpack.c.bf16 %v3817_v33, %v3816_v13  ;;  %v5188_v52 = vpop.eup %5187  ;;  %v3443_v4 = vmul.f32 0.5, %v6860_v53  ;;  %v3445_v24 = vmul.f32 0.5, %v6864_v35  ;;  %v3454_v35 = vmul.f32 0.5, %v6867_v55 }
 0x39a   :  { %4000 = vst [vmem:[%s7251_s10 + $0x30] sm:$0xff] %v4422_v43  ;;  %v5190_v54 = vpop.eup %5189  ;;  %v3778_v56 = vadd.f32 1.0, %v5188_v52  ;;  %v3696_v16 = vmul.f32 0.7978846, %v3648_v0  ;;  %v3647_v1 = vadd.f32 %v6888_v60, %v3599_v42  ;;  %v3601_v19 = vmul.f32 0.044715, %v3553_v17 }
 0x39b   :  { %4001 = vst [vmem:[%s7251_s10 + $0x38] sm:$0xff] %v4423_v14  ;;  %v3780_v63 = vadd.f32 1.0, %v5190_v54  ;;  %v3456_v32 = vmul.f32 0.5, %v6884_v51  ;;  %v3455_v20 = vmul.f32 0.5, %v6888_v60  ;;  %v3457_v38 = vmul.f32 0.5, %v4537_v41 }
 0x39c   :  { %v5192_v57 = vpop.eup %5191  ;;  %5197 = vtanh.f32 %v3696_v16  ;;  %v3826_v8 = vmul.f32 %v3778_v56, %v3442_v62  ;;  %v3695_v11 = vmul.f32 0.7978846, %v3647_v1  ;;  %v3649_v46 = vadd.f32 %v4537_v41, %v3601_v19 }
 0x39d   :  { %v5194_v5 = vpop.eup %5193  ;;  %v3779_v18 = vadd.f32 1.0, %v5192_v57  ;;  %v3828_v21 = vmul.f32 %v3780_v63, %v3444_v3  ;;  %v1300_v51 = vsub.s32 4, %v5567_v28  ;;  %v1308_v60 = vsub.s32 6, %v5567_v28 }
 0x39e   :  { %v3781_v6 = vadd.f32 1.0, %v5194_v5  ;;  %5199 = vtanh.f32 %v3695_v11  ;;  %v3697_v23 = vmul.f32 0.7978846, %v3649_v46  ;;  %v1304_v61 = vsub.s32 5, %v5567_v28 }
 0x39f   :  { %v3827_v9 = vmul.f32 %v3779_v18, %v3443_v4  ;;  %v1312_v37 = vsub.s32 7, %v5567_v28  ;;  %v6941_v34 = vrot.slane %v6771_v15, %v1300_v51  ;;  %v6944_v41 = vrot.slane %v6771_v15, %v1308_v60 }
 0x3a0   :  { %v3829_v7 = vmul.f32 %v3781_v6, %v3445_v24  ;;  %5201 = vtanh.f32 %v3697_v23  ;;  %v6947_v33 = vrot.slane %v6771_v15, %v1304_v61 }
 0x3a1   :  { %v4428_v25 = vpack.c.bf16 %v3827_v9, %v3826_v8  ;;  %v5196_v22 = vpop.eup %5195  ;;  %v6950_v45 = vrot.slane %v6771_v15, %v1312_v37 }
 0x3a2   :  { %v4429_v12 = vpack.c.bf16 %v3829_v7, %v3828_v21  ;;  %v3790_v27 = vadd.f32 1.0, %v5196_v22 }
 0x3a3   :  { %4006 = vst [vmem:[%s7251_s10 + $0x60] sm:$0xff] %v4428_v25 }
 0x3a4   :  { %4007 = vst [vmem:[%s7251_s10 + $0x68] sm:$0xff] %v4429_v12  ;;  %v3838_v39 = vmul.f32 %v3790_v27, %v3454_v35 }
 0x3a6   :  { %v5198_v53 = vpop.eup %5197 }
 0x3a7   :  { %v3792_v30 = vadd.f32 1.0, %v5198_v53 }
 0x3a8   :  { %v5200_v31 = vpop.eup %5199 }
 0x3a9   :  { %v3791_v26 = vadd.f32 1.0, %v5200_v31  ;;  %v3840_v47 = vmul.f32 %v3792_v30, %v3456_v32 }
 0x3aa   :  { %v5202_v10 = vpop.eup %5201 }
 0x3ab   :  { %v3839_v44 = vmul.f32 %v3791_v26, %v3455_v20  ;;  %v3793_v13 = vadd.f32 1.0, %v5202_v10 }
 0x3ad   :  { %v4434_v36 = vpack.c.bf16 %v3839_v44, %v3838_v39  ;;  %v3841_v40 = vmul.f32 %v3793_v13, %v3457_v38 }
 0x3af   :  { %4012 = vst [vmem:[%s7251_s10 + $0x90] sm:$0xff] %v4434_v36  ;;  %v4435_v55 = vpack.c.bf16 %v3841_v40, %v3840_v47 }
 0x3b1   :  { %4013 = vst [vmem:[%s7251_s10 + $0x98] sm:$0xff] %v4435_v55 }
 0x3d7   :  { %v3081_v48 = vpop.f32.mrb[20].mxu1 }
 0x3d8   :  { %v4538_v43 = vadd.f32 %v3081_v48, %v6941_v34  ;;  %v3187_v49 = vpop.f32.mrb[16].mxu0  ;;  %v3083_v50 = vpop.f32.mrb[21].mxu1 }
 0x3d9   :  { %v6954_v14 = vadd.f32 %v3187_v49, %v6944_v41  ;;  %v6957_v0 = vadd.f32 %v3083_v50, %v6947_v33  ;;  %v3189_v52 = vpop.f32.mrb[17].mxu0  ;;  %v3085_v42 = vpop.f32.mrb[22].mxu1 }
 0x3da   :  { %v3470_v17 = vmul.f32 %v4538_v43, %v4538_v43  ;;  %v6960_v54 = vadd.f32 %v3189_v52, %v6950_v45  ;;  %v6963_v15 = vadd.f32 %v3085_v42, %v6941_v34  ;;  %v3191_v56 = vpop.f32.mrb[18].mxu0  ;;  %v3087_v16 = vpop.f32.mrb[23].mxu1 }
 0x3db   :  { %v3472_v62 = vmul.f32 %v6954_v14, %v6954_v14  ;;  %v3471_v63 = vmul.f32 %v6957_v0, %v6957_v0  ;;  %v3193_v1 = vpop.f32.mrb[19].mxu0  ;;  %v6976_v8 = vadd.f32 %v3191_v56, %v6944_v41  ;;  %v6980_v46 = vadd.f32 %v3087_v16, %v6947_v33 }
 0x3dc   :  { %v3518_v19 = vmul.f32 %v4538_v43, %v3470_v17  ;;  %v3473_v57 = vmul.f32 %v6960_v54, %v6960_v54  ;;  %v3482_v5 = vmul.f32 %v6963_v15, %v6963_v15  ;;  %v6986_v12 = vadd.f32 %v3193_v1, %v6950_v45 }
 0x3dd   :  { %v3520_v3 = vmul.f32 %v6954_v14, %v3472_v62  ;;  %v3519_v4 = vmul.f32 %v6957_v0, %v3471_v63  ;;  %v3484_v25 = vmul.f32 %v6976_v8, %v6976_v8  ;;  %v3483_v31 = vmul.f32 %v6980_v46, %v6980_v46 }
 0x3de   :  { %v3566_v18 = vmul.f32 0.044715, %v3518_v19  ;;  %v3521_v11 = vmul.f32 %v6960_v54, %v3473_v57  ;;  %v3530_v6 = vmul.f32 %v6963_v15, %v3482_v5  ;;  %v3485_v61 = vmul.f32 %v6986_v12, %v6986_v12 }
 0x3df   :  { %v3568_v21 = vmul.f32 0.044715, %v3520_v3  ;;  %v3567_v24 = vmul.f32 0.044715, %v3519_v4  ;;  %v3091_v9 = vpop.f32.mrb[24].mxu1  ;;  %v3532_v10 = vmul.f32 %v6976_v8, %v3484_v25  ;;  %v3531_v40 = vmul.f32 %v6980_v46, %v3483_v31 }
 0x3e0   :  { %v3614_v23 = vadd.f32 %v4538_v43, %v3566_v18  ;;  %v3569_v7 = vmul.f32 0.044715, %v3521_v11  ;;  %v3197_v22 = vpop.f32.mrb[20].mxu0  ;;  %v3093_v53 = vpop.f32.mrb[25].mxu1  ;;  %v3578_v30 = vmul.f32 0.044715, %v3530_v6  ;;  %v7003_v49 = vadd.f32 %v3091_v9, %v6941_v34 }
 0x3e1   :  { %v3616_v27 = vadd.f32 %v6954_v14, %v3568_v21  ;;  %v3615_v35 = vadd.f32 %v6957_v0, %v3567_v24  ;;  %v3199_v39 = vpop.f32.mrb[21].mxu0  ;;  %v3095_v32 = vpop.f32.mrb[26].mxu1  ;;  %v3580_v60 = vmul.f32 0.044715, %v3532_v10  ;;  %v3579_v48 = vmul.f32 0.044715, %v3531_v40 }
 0x3e2   :  { %v3662_v20 = vmul.f32 0.7978846, %v3614_v23  ;;  %v3617_v26 = vadd.f32 %v6960_v54, %v3569_v7  ;;  %v3201_v47 = vpop.f32.mrb[22].mxu0  ;;  %v6994_v44 = vpop.f32.mrb[27].mxu1  ;;  %v3626_v36 = vadd.f32 %v6963_v15, %v3578_v30  ;;  %v3533_v52 = vmul.f32 %v6986_v12, %v3485_v61 }
 0x3e3   :  { %v3664_v38 = vmul.f32 0.7978846, %v3616_v27  ;;  %v3663_v13 = vmul.f32 0.7978846, %v3615_v35  ;;  %v6998_v55 = vpop.f32.mrb[23].mxu0  ;;  %v3628_v50 = vadd.f32 %v6976_v8, %v3580_v60  ;;  %v7008_v42 = vadd.f32 %v3197_v22, %v6944_v41 }
 0x3e4   :  { %5203 = vtanh.f32 %v3662_v20  ;;  %v3665_v51 = vmul.f32 0.7978846, %v3617_v26  ;;  %v3674_v37 = vmul.f32 0.7978846, %v3626_v36  ;;  %v3422_v17 = vmul.f32 0.5, %v4538_v43 }
 0x3e5   :  { %5205 = vtanh.f32 %v3664_v38  ;;  %v3627_v56 = vadd.f32 %v6980_v46, %v3579_v48  ;;  %v3494_v16 = vmul.f32 %v7003_v49, %v7003_v49  ;;  %v3424_v62 = vmul.f32 0.5, %v6954_v14 }
 0x3e6   :  { %5207 = vtanh.f32 %v3663_v13  ;;  %v3676_v63 = vmul.f32 0.7978846, %v3628_v50  ;;  %v3581_v1 = vmul.f32 0.044715, %v3533_v52  ;;  %v3496_v3 = vmul.f32 %v7008_v42, %v7008_v42 }
 0x3e7   :  { %5209 = vtanh.f32 %v3665_v51  ;;  %v3675_v19 = vmul.f32 0.7978846, %v3627_v56  ;;  %v3542_v57 = vmul.f32 %v7003_v49, %v3494_v16  ;;  %v7018_v4 = vadd.f32 %v3093_v53, %v6947_v33 }
 0x3e8   :  { %5211 = vtanh.f32 %v3674_v37  ;;  %v3629_v43 = vadd.f32 %v6986_v12, %v3581_v1  ;;  %v7022_v5 = vadd.f32 %v3199_v39, %v6950_v45  ;;  %v7025_v14 = vadd.f32 %v3095_v32, %v6941_v34 }
 0x3e9   :  { %5213 = vtanh.f32 %v3676_v63  ;;  %v3423_v18 = vmul.f32 0.5, %v6957_v0  ;;  %v3590_v11 = vmul.f32 0.044715, %v3542_v57  ;;  %v3544_v21 = vmul.f32 %v7008_v42, %v3496_v3 }
 0x3ea   :  { %5215 = vtanh.f32 %v3675_v19  ;;  %v3425_v24 = vmul.f32 0.5, %v6960_v54  ;;  %v3677_v6 = vmul.f32 0.7978846, %v3629_v43  ;;  %v3495_v9 = vmul.f32 %v7018_v4, %v7018_v4 }
 0x3eb   :  { %v3497_v23 = vmul.f32 %v7022_v5, %v7022_v5  ;;  %v3434_v7 = vmul.f32 0.5, %v6963_v15  ;;  %v3638_v34 = vadd.f32 %v7003_v49, %v3590_v11  ;;  %v3592_v25 = vmul.f32 0.044715, %v3544_v21 }
 0x3ec   :  { %v3506_v0 = vmul.f32 %v7025_v14, %v7025_v14  ;;  %v3435_v53 = vmul.f32 0.5, %v6980_v46  ;;  %5217 = vtanh.f32 %v3677_v6  ;;  %v3543_v54 = vmul.f32 %v7018_v4, %v3495_v9 }
 0x3ed   :  { %v3545_v27 = vmul.f32 %v7022_v5, %v3497_v23  ;;  %v3686_v31 = vmul.f32 0.7978846, %v3638_v34  ;;  %v3640_v39 = vadd.f32 %v7008_v42, %v3592_v25  ;;  %v7044_v38 = vadd.f32 %v3201_v47, %v6944_v41 }
 0x3ee   :  { %v5204_v22 = vpop.eup %5203  ;;  %v3554_v15 = vmul.f32 %v7025_v14, %v3506_v0  ;;  %v3591_v26 = vmul.f32 0.044715, %v3543_v54  ;;  %v3436_v21 = vmul.f32 0.5, %v6976_v8  ;;  %v3437_v23 = vmul.f32 0.5, %v6986_v12 }
 0x3ef   :  { %v5206_v35 = vpop.eup %5205  ;;  %v3758_v30 = vadd.f32 1.0, %v5204_v22  ;;  %v3593_v10 = vmul.f32 0.044715, %v3545_v27  ;;  %5219 = vtanh.f32 %v3686_v31  ;;  %v3688_v40 = vmul.f32 0.7978846, %v3640_v39 }
 0x3f0   :  { %v5208_v32 = vpop.eup %5207  ;;  %v3760_v20 = vadd.f32 1.0, %v5206_v35  ;;  %v3639_v37 = vadd.f32 %v7018_v4, %v3591_v26  ;;  %v3602_v56 = vmul.f32 0.044715, %v3554_v15  ;;  %v4553_v34 = vadd.f32 %v6998_v55, %v6950_v45 }
 0x3f1   :  { %v5210_v46 = vpop.eup %5209  ;;  %v3806_v13 = vmul.f32 %v3758_v30, %v3422_v17  ;;  %v3759_v36 = vadd.f32 1.0, %v5208_v32  ;;  %v3641_v48 = vadd.f32 %v7022_v5, %v3593_v10  ;;  %5221 = vtanh.f32 %v3688_v40 }
 0x3f2   :  { %v5212_v51 = vpop.eup %5211  ;;  %v3808_v60 = vmul.f32 %v3760_v20, %v3424_v62  ;;  %v3761_v61 = vadd.f32 1.0, %v5210_v46  ;;  %v3687_v41 = vmul.f32 0.7978846, %v3639_v37  ;;  %v3508_v17 = vmul.f32 %v7044_v38, %v7044_v38 }
 0x3f3   :  { %v3807_v50 = vmul.f32 %v3759_v36, %v3423_v18  ;;  %v3770_v52 = vadd.f32 1.0, %v5212_v51  ;;  %v5214_v16 = vpop.eup %5213  ;;  %v3689_v47 = vmul.f32 0.7978846, %v3641_v48  ;;  %v3650_v3 = vadd.f32 %v7025_v14, %v3602_v56 }
 0x3f4   :  { %v3809_v63 = vmul.f32 %v3761_v61, %v3425_v24  ;;  %v5216_v1 = vpop.eup %5215  ;;  %v3772_v62 = vadd.f32 1.0, %v5214_v16  ;;  %5223 = vtanh.f32 %v3687_v41  ;;  %v3556_v18 = vmul.f32 %v7044_v38, %v3508_v17 }
 0x3f5   :  { %v4418_v19 = vpack.c.bf16 %v3807_v50, %v3806_v13  ;;  %v3818_v57 = vmul.f32 %v3770_v52, %v3434_v7  ;;  %v3771_v11 = vadd.f32 1.0, %v5216_v1  ;;  %5225 = vtanh.f32 %v3689_v47 }
 0x3f6   :  { %v4419_v43 = vpack.c.bf16 %v3809_v63, %v3808_v60  ;;  %v4545_v24 = vadd.f32 %v6994_v44, %v6947_v33  ;;  %v5218_v6 = vpop.eup %5217  ;;  %v3604_v7 = vmul.f32 0.044715, %v3556_v18  ;;  %v3820_v25 = vmul.f32 %v3772_v62, %v3436_v21 }
 0x3f7   :  { %3996 = vst [vmem:[%s7251_s10 + $0x10] sm:$0xff] %v4418_v19  ;;  %v3819_v9 = vmul.f32 %v3771_v11, %v3435_v53  ;;  %v3773_v0 = vadd.f32 1.0, %v5218_v6  ;;  %v3698_v22 = vmul.f32 0.7978846, %v3650_v3  ;;  %v3509_v33 = vmul.f32 %v4553_v34, %v4553_v34 }
 0x3f8   :  { %3997 = vst [vmem:[%s7251_s10 + $0x18] sm:$0xff] %v4419_v43  ;;  %v3507_v8 = vmul.f32 %v4545_v24, %v4545_v24  ;;  %v3652_v27 = vadd.f32 %v7044_v38, %v3604_v7  ;;  %v3446_v20 = vmul.f32 0.5, %v7003_v49  ;;  %v3448_v46 = vmul.f32 0.5, %v7008_v42 }
 0x3f9   :  { %v4424_v54 = vpack.c.bf16 %v3819_v9, %v3818_v57  ;;  %v5220_v44 = vpop.eup %5219  ;;  %v3821_v35 = vmul.f32 %v3773_v0, %v3437_v23  ;;  %v3557_v53 = vmul.f32 %v4553_v34, %v3509_v33  ;;  %5227 = vtanh.f32 %v3698_v22 }
 0x3fa   :  { %v3555_v30 = vmul.f32 %v4545_v24, %v3507_v8  ;;  %v3700_v12 = vmul.f32 0.7978846, %v3652_v27  ;;  %v3782_v45 = vadd.f32 1.0, %v5220_v44  ;;  %v3447_v51 = vmul.f32 0.5, %v7018_v4 }
 0x3fb   :  { %4002 = vst [vmem:[%s7251_s10 + $0x40] sm:$0xff] %v4424_v54  ;;  %v5222_v31 = vpop.eup %5221  ;;  %v4425_v39 = vpack.c.bf16 %v3821_v35, %v3820_v25  ;;  %v3605_v32 = vmul.f32 0.044715, %v3557_v53  ;;  %v3449_v48 = vmul.f32 0.5, %v7022_v5  ;;  %v3458_v47 = vmul.f32 0.5, %v7025_v14 }
 0x3fc   :  { %v3603_v55 = vmul.f32 0.044715, %v3555_v30  ;;  %v3784_v15 = vadd.f32 1.0, %v5222_v31  ;;  %5229 = vtanh.f32 %v3700_v12  ;;  %v3830_v40 = vmul.f32 %v3782_v45, %v3446_v20 }
 0x3fd   :  { %4003 = vst [vmem:[%s7251_s10 + $0x48] sm:$0xff] %v4425_v39  ;;  %v3653_v13 = vadd.f32 %v4553_v34, %v3605_v32  ;;  %v3460_v1 = vmul.f32 0.5, %v7044_v38  ;;  %v3459_v62 = vmul.f32 0.5, %v4545_v24  ;;  %v3461_v11 = vmul.f32 0.5, %v4553_v34  ;;  %v1279_v34 = vld [vmem:[%s7250_s8 + $0x8] sm:$0xf] }
 0x3fe   :  { %v3651_v26 = vadd.f32 %v4545_v24, %v3603_v55  ;;  %v5224_v10 = vpop.eup %5223  ;;  %v3832_v37 = vmul.f32 %v3784_v15, %v3448_v46  ;;  %v7101_v25 = vrot.slane %v1279_v34, %v5617_v58  ;;  %v7104_v0 = vrot.slane %v1279_v34, %v5620_v59 }
 0x3ff   :  { %v5226_v36 = vpop.eup %5225  ;;  %v3783_v60 = vadd.f32 1.0, %v5224_v10  ;;  %v3701_v52 = vmul.f32 0.7978846, %v3653_v13  ;;  %v7107_v22 = vrot.slane %v1279_v34, %v5570_v29  ;;  %v7111_v54 = vrot.slane %v1279_v34, %v1296_v2 }
 0x400   :  { %v3699_v61 = vmul.f32 0.7978846, %v3651_v26  ;;  %v3785_v50 = vadd.f32 1.0, %v5226_v36 }
 0x401   :  { %v3831_v56 = vmul.f32 %v3783_v60, %v3447_v51 }
 0x402   :  { %5231 = vtanh.f32 %v3699_v61  ;;  %v3833_v16 = vmul.f32 %v3785_v50, %v3449_v48 }
 0x403   :  { %5233 = vtanh.f32 %v3701_v52  ;;  %v4430_v49 = vpack.c.bf16 %v3831_v56, %v3830_v40  ;;  %v5228_v41 = vpop.eup %5227 }
 0x404   :  { %v4431_v63 = vpack.c.bf16 %v3833_v16, %v3832_v37  ;;  %v3794_v4 = vadd.f32 1.0, %v5228_v41 }
 0x405   :  { %4008 = vst [vmem:[%s7251_s10 + $0x70] sm:$0xff] %v4430_v49 }
 0x406   :  { %v5230_v42 = vpop.eup %5229  ;;  %4009 = vst [vmem:[%s7251_s10 + $0x78] sm:$0xff] %v4431_v63  ;;  %v3842_v57 = vmul.f32 %v3794_v4, %v3458_v47 }
 0x407   :  { %v3796_v5 = vadd.f32 1.0, %v5230_v42 }
 0x409   :  { %v3844_v43 = vmul.f32 %v3796_v5, %v3460_v1 }
 0x40c   :  { %v5232_v17 = vpop.eup %5231 }
 0x40d   :  { %v5234_v19 = vpop.eup %5233  ;;  %v3795_v3 = vadd.f32 1.0, %v5232_v17 }
 0x40e   :  { %v3797_v18 = vadd.f32 1.0, %v5234_v19 }
 0x40f   :  { %v3843_v21 = vmul.f32 %v3795_v3, %v3459_v62 }
 0x410   :  { %v3845_v6 = vmul.f32 %v3797_v18, %v3461_v11 }
 0x411   :  { %v4436_v9 = vpack.c.bf16 %v3843_v21, %v3842_v57 }
 0x412   :  { %v4437_v23 = vpack.c.bf16 %v3845_v6, %v3844_v43 }
 0x413   :  { %4014 = vst [vmem:[%s7251_s10 + $0xa0] sm:$0xff] %v4436_v9 }
 0x414   :  { %4015 = vst [vmem:[%s7251_s10 + $0xa8] sm:$0xff] %v4437_v23 }
 0x420   :  { %v7089_v14 = vpop.f32.mrb[28].mxu0 }
 0x421   :  { %v7091_v38 = vpop.f32.mrb[29].mxu0 }
 0x422   :  { %v7093_v24 = vpop.f32.mrb[30].mxu0 }
 0x423   :  { %v7095_v7 = vpop.f32.mrb[31].mxu0 }
 0x438   :  { %v3293_v8 = vpop.f32.mrb[28].mxu1 }
 0x439   :  { %v7114_v27 = vadd.f32 %v3293_v8, %v7101_v25  ;;  %v3399_v33 = vpop.f32.mrb[24].mxu0  ;;  %v3295_v44 = vpop.f32.mrb[29].mxu1 }
 0x43a   :  { %v7117_v35 = vadd.f32 %v3399_v33, %v7107_v22  ;;  %v7120_v58 = vadd.f32 %v3295_v44, %v7104_v0  ;;  %v3401_v59 = vpop.f32.mrb[25].mxu0  ;;  %v3297_v30 = vpop.f32.mrb[30].mxu1 }
 0x43b   :  { %v3474_v29 = vmul.f32 %v7114_v27, %v7114_v27  ;;  %v7125_v28 = vadd.f32 %v3401_v59, %v7111_v54  ;;  %v7128_v2 = vadd.f32 %v3297_v30, %v7101_v25  ;;  %v3403_v12 = vpop.f32.mrb[26].mxu0  ;;  %v3299_v53 = vpop.f32.mrb[31].mxu1 }
 0x43c   :  { %v3476_v31 = vmul.f32 %v7117_v35, %v7117_v35  ;;  %v3475_v39 = vmul.f32 %v7120_v58, %v7120_v58  ;;  %v3405_v45 = vpop.f32.mrb[27].mxu0  ;;  %v7142_v10 = vadd.f32 %v3403_v12, %v7107_v22  ;;  %v7146_v36 = vadd.f32 %v3299_v53, %v7104_v0 }
 0x43d   :  { %v3522_v55 = vmul.f32 %v7114_v27, %v3474_v29  ;;  %v3477_v15 = vmul.f32 %v7125_v28, %v7125_v28  ;;  %v3486_v26 = vmul.f32 %v7128_v2, %v7128_v2  ;;  %v7153_v52 = vadd.f32 %v3405_v45, %v7111_v54 }
 0x43e   :  { %v3524_v32 = vmul.f32 %v7117_v35, %v3476_v31  ;;  %v3523_v20 = vmul.f32 %v7120_v58, %v3475_v39  ;;  %v3488_v50 = vmul.f32 %v7142_v10, %v7142_v10  ;;  %v3487_v41 = vmul.f32 %v7146_v36, %v7146_v36 }
 0x43f   :  { %v3570_v46 = vmul.f32 0.044715, %v3522_v55  ;;  %v3525_v13 = vmul.f32 %v7125_v28, %v3477_v15  ;;  %v3534_v60 = vmul.f32 %v7128_v2, %v3486_v26  ;;  %v3489_v11 = vmul.f32 %v7153_v52, %v7153_v52 }
 0x440   :  { %v3572_v40 = vmul.f32 0.044715, %v3524_v32  ;;  %v3571_v51 = vmul.f32 0.044715, %v3523_v20  ;;  %v3303_v61 = vpop.f32.mrb[32].mxu1  ;;  %v3536_v47 = vmul.f32 %v7142_v10, %v3488_v50  ;;  %v3535_v62 = vmul.f32 %v7146_v36, %v3487_v41 }
 0x441   :  { %v3618_v37 = vadd.f32 %v7114_v27, %v3570_v46  ;;  %v3573_v48 = vmul.f32 0.044715, %v3525_v13  ;;  %v3305_v56 = vpop.f32.mrb[33].mxu1  ;;  %v3582_v63 = vmul.f32 0.044715, %v3534_v60  ;;  %v7166_v6 = vadd.f32 %v3303_v61, %v7101_v25 }
 0x442   :  { %v3620_v16 = vadd.f32 %v7117_v35, %v3572_v40  ;;  %v3619_v49 = vadd.f32 %v7120_v58, %v3571_v51  ;;  %v3307_v42 = vpop.f32.mrb[34].mxu1  ;;  %v3584_v43 = vmul.f32 0.044715, %v3536_v47  ;;  %v3583_v21 = vmul.f32 0.044715, %v3535_v62 }
 0x443   :  { %v3666_v4 = vmul.f32 0.7978846, %v3618_v37  ;;  %v3621_v5 = vadd.f32 %v7125_v28, %v3573_v48  ;;  %v3309_v17 = vpop.f32.mrb[35].mxu1  ;;  %v3630_v57 = vadd.f32 %v7128_v2, %v3582_v63  ;;  %v3537_v23 = vmul.f32 %v7153_v52, %v3489_v11 }
 0x444   :  { %v3668_v1 = vmul.f32 0.7978846, %v3620_v16  ;;  %v3667_v19 = vmul.f32 0.7978846, %v3619_v49  ;;  %v3632_v9 = vadd.f32 %v7142_v10, %v3584_v43  ;;  %v7171_v34 = vadd.f32 %v3305_v56, %v7104_v0 }
 0x445   :  { %5235 = vtanh.f32 %v3666_v4  ;;  %v3669_v3 = vmul.f32 0.7978846, %v3621_v5  ;;  %v3678_v18 = vmul.f32 0.7978846, %v3630_v57  ;;  %v3631_v8 = vadd.f32 %v7146_v36, %v3583_v21 }
 0x446   :  { %5237 = vtanh.f32 %v3668_v1  ;;  %v3498_v33 = vmul.f32 %v7166_v6, %v7166_v6  ;;  %v3680_v44 = vmul.f32 0.7978846, %v3632_v9  ;;  %v3585_v59 = vmul.f32 0.044715, %v3537_v23 }
 0x447   :  { %5239 = vtanh.f32 %v3667_v19  ;;  %v3679_v30 = vmul.f32 0.7978846, %v3631_v8  ;;  %v3499_v12 = vmul.f32 %v7171_v34, %v7171_v34  ;;  %v7180_v53 = vadd.f32 %v3307_v42, %v7101_v25 }
 0x448   :  { %5241 = vtanh.f32 %v3669_v3  ;;  %v3546_v29 = vmul.f32 %v7166_v6, %v3498_v33  ;;  %v3633_v31 = vadd.f32 %v7153_v52, %v3585_v59  ;;  %v7184_v39 = vadd.f32 %v3309_v17, %v7104_v0 }
 0x449   :  { %5243 = vtanh.f32 %v3678_v18  ;;  %v3547_v55 = vmul.f32 %v7171_v34, %v3499_v12  ;;  %v3510_v32 = vmul.f32 %v7180_v53, %v7180_v53  ;;  %v3426_v25 = vmul.f32 0.5, %v7114_v27 }
 0x44a   :  { %5245 = vtanh.f32 %v3680_v44  ;;  %v3594_v45 = vmul.f32 0.044715, %v3546_v29  ;;  %v3681_v15 = vmul.f32 0.7978846, %v3633_v31  ;;  %v3511_v20 = vmul.f32 %v7184_v39, %v7184_v39 }
 0x44b   :  { %5247 = vtanh.f32 %v3679_v30  ;;  %v3595_v46 = vmul.f32 0.044715, %v3547_v55  ;;  %v3428_v0 = vmul.f32 0.5, %v7117_v35  ;;  %v3558_v40 = vmul.f32 %v7180_v53, %v3510_v32 }
 0x44c   :  { %v3642_v26 = vadd.f32 %v7166_v6, %v3594_v45  ;;  %5249 = vtanh.f32 %v3681_v15  ;;  %v3559_v51 = vmul.f32 %v7184_v39, %v3511_v20  ;;  %v3427_v37 = vmul.f32 0.5, %v7120_v58 }
 0x44d   :  { %v3643_v50 = vadd.f32 %v7171_v34, %v3595_v46  ;;  %v3429_v16 = vmul.f32 0.5, %v7125_v28  ;;  %v3606_v49 = vmul.f32 0.044715, %v3558_v40  ;;  %v3438_v28 = vmul.f32 0.5, %v7128_v2 }
 0x44e   :  { %v3690_v48 = vmul.f32 0.7978846, %v3642_v26  ;;  %v3607_v63 = vmul.f32 0.044715, %v3559_v51  ;;  %v3357_v21 = vadd.f32 %v7089_v14, %v7107_v22  ;;  %v3439_v8 = vmul.f32 0.5, %v7146_v36 }
 0x44f   :  { %v5236_v13 = vpop.eup %5235  ;;  %v3691_v4 = vmul.f32 0.7978846, %v3643_v50  ;;  %v3654_v1 = vadd.f32 %v7180_v53, %v3606_v49  ;;  %v3359_v30 = vadd.f32 %v7091_v38, %v7111_v54  ;;  %v3440_v2 = vmul.f32 0.5, %v7142_v10 }
 0x450   :  { %v5238_v60 = vpop.eup %5237  ;;  %v3762_v61 = vadd.f32 1.0, %v5236_v13  ;;  %5251 = vtanh.f32 %v3690_v48  ;;  %v3655_v58 = vadd.f32 %v7184_v39, %v3607_v63  ;;  %v3361_v12 = vadd.f32 %v7093_v24, %v7107_v22 }
 0x451   :  { %v5240_v56 = vpop.eup %5239  ;;  %v3764_v27 = vadd.f32 1.0, %v5238_v60  ;;  %5253 = vtanh.f32 %v3691_v4  ;;  %v3702_v43 = vmul.f32 0.7978846, %v3654_v1  ;;  %v3363_v36 = vadd.f32 %v7095_v7, %v7111_v54 }
 0x452   :  { %v5242_v41 = vpop.eup %5241  ;;  %v3810_v35 = vmul.f32 %v3762_v61, %v3426_v25  ;;  %v3763_v42 = vadd.f32 1.0, %v5240_v56  ;;  %v3703_v11 = vmul.f32 0.7978846, %v3655_v58  ;;  %v3441_v15 = vmul.f32 0.5, %v7153_v52 }
 0x453   :  { %v5244_v5 = vpop.eup %5243  ;;  %v3812_v47 = vmul.f32 %v3764_v27, %v3428_v0  ;;  %v3765_v17 = vadd.f32 1.0, %v5242_v41  ;;  %5255 = vtanh.f32 %v3702_v43  ;;  %v3450_v0 = vmul.f32 0.5, %v7166_v6 }
 0x454   :  { %v3811_v19 = vmul.f32 %v3763_v42, %v3427_v37  ;;  %v3774_v57 = vadd.f32 1.0, %v5244_v5  ;;  %v5246_v62 = vpop.eup %5245  ;;  %5257 = vtanh.f32 %v3703_v11  ;;  %v3451_v37 = vmul.f32 0.5, %v7171_v34 }
 0x455   :  { %v3813_v3 = vmul.f32 %v3765_v17, %v3429_v16  ;;  %v5248_v18 = vpop.eup %5247  ;;  %v3776_v23 = vadd.f32 1.0, %v5246_v62  ;;  %v3462_v42 = vmul.f32 0.5, %v7180_v53  ;;  %v3463_v17 = vmul.f32 0.5, %v7184_v39 }
 0x456   :  { %v4420_v9 = vpack.c.bf16 %v3811_v19, %v3810_v35  ;;  %v3822_v44 = vmul.f32 %v3774_v57, %v3438_v28  ;;  %v3775_v59 = vadd.f32 1.0, %v5248_v18  ;;  %v5250_v14 = vpop.eup %5249 }
 0x457   :  { %v4421_v33 = vpack.c.bf16 %v3813_v3, %v3812_v47  ;;  %v3824_v55 = vmul.f32 %v3776_v23, %v3440_v2  ;;  %v3777_v10 = vadd.f32 1.0, %v5250_v14 }
 0x458   :  { %3998 = vst [vmem:[%s7251_s10 + $0x20] sm:$0xff] %v4420_v9  ;;  %v3409_v29 = vpop.f32.mrb[36].mxu1  ;;  %v3823_v38 = vmul.f32 %v3775_v59, %v3439_v8 }
 0x459   :  { %3999 = vst [vmem:[%s7251_s10 + $0x28] sm:$0xff] %v4421_v33  ;;  %v3410_v31 = vadd.f32 %v3409_v29, %v3357_v21  ;;  %v3411_v45 = vpop.f32.mrb[37].mxu1  ;;  %v3825_v13 = vmul.f32 %v3777_v10, %v3441_v15 }
 0x45a   :  { %v3412_v32 = vadd.f32 %v3411_v45, %v3359_v30  ;;  %v3413_v20 = vpop.f32.mrb[38].mxu1  ;;  %v4426_v25 = vpack.c.bf16 %v3823_v38, %v3822_v44  ;;  %v5252_v22 = vpop.eup %5251 }
 0x45b   :  { %v3500_v26 = vmul.f32 %v3410_v31, %v3410_v31  ;;  %v3414_v46 = vadd.f32 %v3413_v20, %v3361_v12  ;;  %v3415_v24 = vpop.f32.mrb[39].mxu1  ;;  %v3786_v40 = vadd.f32 1.0, %v5252_v22  ;;  %v5254_v60 = vpop.eup %5253  ;;  %v4427_v61 = vpack.c.bf16 %v3825_v13, %v3824_v55 }
 0x45c   :  { %v3501_v7 = vmul.f32 %v3412_v32, %v3412_v32  ;;  %v3416_v54 = vadd.f32 %v3415_v24, %v3363_v36  ;;  %4004 = vst [vmem:[%s7251_s10 + $0x50] sm:$0xff] %v4426_v25  ;;  %v3787_v27 = vadd.f32 1.0, %v5254_v60  ;;  %v3452_v8 = vmul.f32 0.5, %v3410_v31 }
 0x45d   :  { %v3548_v51 = vmul.f32 %v3500_v26, %v3410_v31  ;;  %v3512_v52 = vmul.f32 %v3414_v46, %v3414_v46  ;;  %v3834_v56 = vmul.f32 %v3786_v40, %v3450_v0  ;;  %4005 = vst [vmem:[%s7251_s10 + $0x58] sm:$0xff] %v4427_v61  ;;  %v5256_v6 = vpop.eup %5255  ;;  %v3453_v59 = vmul.f32 0.5, %v3412_v32 }
 0x45e   :  { %v3549_v48 = vmul.f32 %v3501_v7, %v3412_v32  ;;  %v3513_v50 = vmul.f32 %v3416_v54, %v3416_v54  ;;  %v3835_v35 = vmul.f32 %v3787_v27, %v3451_v37  ;;  %v5258_v47 = vpop.eup %5257  ;;  %v3798_v34 = vadd.f32 1.0, %v5256_v6 }
 0x45f   :  { %v3596_v16 = vmul.f32 0.044715, %v3548_v51  ;;  %v3560_v49 = vmul.f32 %v3512_v52, %v3414_v46  ;;  %v3799_v57 = vadd.f32 1.0, %v5258_v47  ;;  %v3464_v14 = vmul.f32 0.5, %v3414_v46 }
 0x460   :  { %v3597_v63 = vmul.f32 0.044715, %v3549_v48  ;;  %v3561_v41 = vmul.f32 %v3513_v50, %v3416_v54  ;;  %v4432_v19 = vpack.c.bf16 %v3835_v35, %v3834_v56  ;;  %v3846_v28 = vmul.f32 %v3798_v34, %v3462_v42 }
 0x461   :  { %v3644_v4 = vadd.f32 %v3596_v16, %v3410_v31  ;;  %v3608_v5 = vmul.f32 0.044715, %v3560_v49  ;;  %v3847_v53 = vmul.f32 %v3799_v57, %v3463_v17  ;;  %v3465_v38 = vmul.f32 0.5, %v3416_v54 }
 0x462   :  { %v3645_v1 = vadd.f32 %v3597_v63, %v3412_v32  ;;  %v3609_v58 = vmul.f32 0.044715, %v3561_v41  ;;  %4010 = vst [vmem:[%s7251_s10 + $0x80] sm:$0xff] %v4432_v19 }
 0x463   :  { %v3692_v62 = vmul.f32 0.7978846, %v3644_v4  ;;  %v3656_v3 = vadd.f32 %v3608_v5, %v3414_v46  ;;  %v4438_v9 = vpack.c.bf16 %v3847_v53, %v3846_v28 }
 0x464   :  { %v3693_v43 = vmul.f32 0.7978846, %v3645_v1  ;;  %v3657_v11 = vadd.f32 %v3609_v58, %v3416_v54 }
 0x465   :  { %5259 = vtanh.f32 %v3692_v62  ;;  %v3704_v18 = vmul.f32 0.7978846, %v3656_v3  ;;  %4016 = vst [vmem:[%s7251_s10 + $0xb0] sm:$0xff] %v4438_v9 }
 0x466   :  { %5261 = vtanh.f32 %v3693_v43  ;;  %v3705_v21 = vmul.f32 0.7978846, %v3657_v11 }
 0x467   :  { %5263 = vtanh.f32 %v3704_v18 }
 0x468   :  { %5265 = vtanh.f32 %v3705_v21 }
 0x46f   :  { %v5260_v39 = vpop.eup %5259 }
 0x470   :  { %v5262_v23 = vpop.eup %5261  ;;  %v3788_v33 = vadd.f32 1.0, %v5260_v39 }
 0x471   :  { %v5264_v44 = vpop.eup %5263  ;;  %v3789_v30 = vadd.f32 1.0, %v5262_v23 }
 0x472   :  { %v5266_v2 = vpop.eup %5265  ;;  %v3836_v29 = vmul.f32 %v3788_v33, %v3452_v8  ;;  %v3800_v12 = vadd.f32 1.0, %v5264_v44 }
 0x473   :  { %v3837_v36 = vmul.f32 %v3789_v30, %v3453_v59  ;;  %v3801_v45 = vadd.f32 1.0, %v5266_v2 }
 0x474   :  { %v3848_v55 = vmul.f32 %v3800_v12, %v3464_v14 }
 0x475   :  { %v4433_v15 = vpack.c.bf16 %v3837_v36, %v3836_v29  ;;  %v3849_v10 = vmul.f32 %v3801_v45, %v3465_v38 }
 0x477   :  { %4011 = vst [vmem:[%s7251_s10 + $0x88] sm:$0xff] %v4433_v15  ;;  %v4439_v20 = vpack.c.bf16 %v3849_v10, %v3848_v55 }
 0x479   :  { %4017 = vst [vmem:[%s7251_s10 + $0xb8] sm:$0xff] %v4439_v20 }

// kernel: dino_v2_forward.76
= control target key start
LH: loop header
LB: loop body
LE: loop exit
PB: predicated region body
PF: predicated region fallthrough
CT: control target
= control target key end

     0   :  { %s4901_s1 = inlined_call_operand.vmem [shape: bf16[1536,384], index: 1, kind: input, shape index: {}]   ;;  %s4902_s0 = inlined_call_operand.vmem [shape: bf16[32,1536], index: 0, kind: input, shape index: {}]   ;;  %s4903_s2 = inlined_call_operand.vmem [shape: f32[1,384], index: 2, kind: input, shape index: {}]   ;;  %s4904_s3 = inlined_call_operand.vmem [shape: f32[1,384], index: 3, kind: input, shape index: {}]   ;;  %s4905_s4 = inlined_call_operand.vmem [shape: f32[32,384], index: 4, kind: input, shape index: {}]   ;;  %s4906_s5 = inlined_call_operand.vmem [shape: f32[32,384], index: 5, kind: output, shape index: {}]  }
   0x1   :  { %v3311_v0 = vld [vmem:[%s4901_s1 + $0x4] ss:$12 sps:$4 sm:$0xff]   ;;  %v3315_v2 = vld [vmem:[%s4901_s1] ss:$12 sps:$4 sm:$0xff]   ;;  %v3317_v4 = vld [vmem:[%s4901_s1 + $0x1c] ss:$12 sps:$4 sm:$0xff]  }
   0x2   :  { %v3313_v1 = vld [vmem:[%s4901_s1 + $0x184] ss:$12 sps:$4 sm:$0xff]   ;;  %2102 = vmatprep.subr.bf16.mxu1 %v3311_v0  ;;  %v3316_v3 = vld [vmem:[%s4901_s1 + $0x180] ss:$12 sps:$4 sm:$0xff]   ;;  %v3319_v5 = vld [vmem:[%s4901_s1 + $0x19c] ss:$12 sps:$4 sm:$0xff]  }
   0x3   :  { %2155 = vmatprep.subr.bf16.mxu0 %v3313_v1  ;;  %2103 = vmatpush1.bf16.msra.mxu1 %v3315_v2  ;;  %v3321_v6 = vld [vmem:[%s4901_s1 + $0x18] ss:$12 sps:$4 sm:$0xff]   ;;  %v3323_v8 = vld [vmem:[%s4901_s1 + $0x34] ss:$12 sps:$4 sm:$0xff]   ;;  %v3327_v10 = vld [vmem:[%s4901_s1 + $0x30] ss:$12 sps:$4 sm:$0xff]  }
   0x4   :  { %2156 = vmatpush1.bf16.msra.mxu0 %v3316_v3  ;;  %2104 = vmatprep.subr.bf16.mxu1 %v3317_v4  ;;  %v3322_v7 = vld [vmem:[%s4901_s1 + $0x198] ss:$12 sps:$4 sm:$0xff]   ;;  %v3325_v9 = vld [vmem:[%s4901_s1 + $0x1b4] ss:$12 sps:$4 sm:$0xff]   ;;  %v3328_v11 = vld [vmem:[%s4901_s1 + $0x1b0] ss:$12 sps:$4 sm:$0xff]  }
   0x5   :  { %2157 = vmatprep.subr.bf16.mxu0 %v3319_v5  ;;  %v3329_v12 = vld [vmem:[%s4901_s1 + $0x4c] ss:$12 sps:$4 sm:$0xff]   ;;  %v3333_v14 = vld [vmem:[%s4901_s1 + $0x48] ss:$12 sps:$4 sm:$0xff]   ;;  %v3335_v16 = vld [vmem:[%s4901_s1 + $0x64] ss:$12 sps:$4 sm:$0xff]  }
   0x6   :  { %v3331_v13 = vld [vmem:[%s4901_s1 + $0x1cc] ss:$12 sps:$4 sm:$0xff]   ;;  %v3334_v15 = vld [vmem:[%s4901_s1 + $0x1c8] ss:$12 sps:$4 sm:$0xff]   ;;  %v3337_v17 = vld [vmem:[%s4901_s1 + $0x1e4] ss:$12 sps:$4 sm:$0xff]  }
   0x7   :  { %2105 = vmatpush1.bf16.msra.mxu1 %v3321_v6  ;;  %v3339_v18 = vld [vmem:[%s4901_s1 + $0x60] ss:$12 sps:$4 sm:$0xff]   ;;  %v3341_v20 = vld [vmem:[%s4901_s1 + $0x7c] ss:$12 sps:$4 sm:$0xff]   ;;  %v3345_v22 = vld [vmem:[%s4901_s1 + $0x78] ss:$12 sps:$4 sm:$0xff]  }
   0x8   :  { %2158 = vmatpush1.bf16.msra.mxu0 %v3322_v7  ;;  %2106 = vmatprep.subr.bf16.mxu1 %v3323_v8  ;;  %v3340_v19 = vld [vmem:[%s4901_s1 + $0x1e0] ss:$12 sps:$4 sm:$0xff]   ;;  %v3343_v21 = vld [vmem:[%s4901_s1 + $0x1fc] ss:$12 sps:$4 sm:$0xff]   ;;  %v3346_v23 = vld [vmem:[%s4901_s1 + $0x1f8] ss:$12 sps:$4 sm:$0xff]  }
   0x9   :  { %2159 = vmatprep.subr.bf16.mxu0 %v3325_v9  ;;  %v3347_v24 = vld [vmem:[%s4901_s1 + $0x94] ss:$12 sps:$4 sm:$0xff]   ;;  %v3351_v26 = vld [vmem:[%s4901_s1 + $0x90] ss:$12 sps:$4 sm:$0xff]   ;;  %v3353_v28 = vld [vmem:[%s4901_s1 + $0xac] ss:$12 sps:$4 sm:$0xff]  }
   0xa   :  { %v3349_v25 = vld [vmem:[%s4901_s1 + $0x214] ss:$12 sps:$4 sm:$0xff]   ;;  %v3352_v27 = vld [vmem:[%s4901_s1 + $0x210] ss:$12 sps:$4 sm:$0xff]   ;;  %v3355_v29 = vld [vmem:[%s4901_s1 + $0x22c] ss:$12 sps:$4 sm:$0xff]  }
   0xb   :  { %2107 = vmatpush1.bf16.msra.mxu1 %v3327_v10  ;;  %v3357_v30 = vld [vmem:[%s4901_s1 + $0xa8] ss:$12 sps:$4 sm:$0xff]   ;;  %v3359_v32 = vld [vmem:[%s4901_s1 + $0xc4] ss:$12 sps:$4 sm:$0xff]   ;;  %v3363_v34 = vld [vmem:[%s4901_s1 + $0xc0] ss:$12 sps:$4 sm:$0xff]  }
   0xc   :  { %2160 = vmatpush1.bf16.msra.mxu0 %v3328_v11  ;;  %2108 = vmatprep.subr.bf16.mxu1 %v3329_v12  ;;  %v3358_v31 = vld [vmem:[%s4901_s1 + $0x228] ss:$12 sps:$4 sm:$0xff]   ;;  %v3361_v33 = vld [vmem:[%s4901_s1 + $0x244] ss:$12 sps:$4 sm:$0xff]   ;;  %v3364_v35 = vld [vmem:[%s4901_s1 + $0x240] ss:$12 sps:$4 sm:$0xff]  }
   0xd   :  { %2161 = vmatprep.subr.bf16.mxu0 %v3331_v13  ;;  %v3365_v36 = vld [vmem:[%s4901_s1 + $0xdc] ss:$12 sps:$4 sm:$0xff]   ;;  %v3369_v38 = vld [vmem:[%s4901_s1 + $0xd8] ss:$12 sps:$4 sm:$0xff]   ;;  %v3371_v40 = vld [vmem:[%s4901_s1 + $0xf4] ss:$12 sps:$4 sm:$0xff]  }
   0xe   :  { %v3367_v37 = vld [vmem:[%s4901_s1 + $0x25c] ss:$12 sps:$4 sm:$0xff]   ;;  %v3370_v39 = vld [vmem:[%s4901_s1 + $0x258] ss:$12 sps:$4 sm:$0xff]   ;;  %v3373_v41 = vld [vmem:[%s4901_s1 + $0x274] ss:$12 sps:$4 sm:$0xff]  }
   0xf   :  { %2109 = vmatpush1.bf16.msra.mxu1 %v3333_v14  ;;  %v3375_v42 = vld [vmem:[%s4901_s1 + $0xf0] ss:$12 sps:$4 sm:$0xff]   ;;  %v3377_v44 = vld [vmem:[%s4901_s1 + $0x10c] ss:$12 sps:$4 sm:$0xff]   ;;  %v3381_v46 = vld [vmem:[%s4901_s1 + $0x108] ss:$12 sps:$4 sm:$0xff]  }
  0x10   :  { %2162 = vmatpush1.bf16.msra.mxu0 %v3334_v15  ;;  %2110 = vmatprep.subr.bf16.mxu1 %v3335_v16  ;;  %v3376_v43 = vld [vmem:[%s4901_s1 + $0x270] ss:$12 sps:$4 sm:$0xff]   ;;  %v3379_v45 = vld [vmem:[%s4901_s1 + $0x28c] ss:$12 sps:$4 sm:$0xff]   ;;  %v3382_v47 = vld [vmem:[%s4901_s1 + $0x288] ss:$12 sps:$4 sm:$0xff]  }
  0x11   :  { %2163 = vmatprep.subr.bf16.mxu0 %v3337_v17  ;;  %v3383_v48 = vld [vmem:[%s4901_s1 + $0x124] ss:$12 sps:$4 sm:$0xff]   ;;  %v3919_v51 = vld [vmem:[%s4902_s0 + $0xc] ss:$48 sps:$4 sm:$0xff]   ;;  %v3395_v58 = vld [vmem:[%s4901_s1 + $0x154] ss:$12 sps:$4 sm:$0xff]  }
  0x12   :  { %v3911_v49 = vld [vmem:[%s4902_s0 + $0x4] ss:$48 sps:$4 sm:$0xff]   ;;  %v3387_v52 = vld [vmem:[%s4901_s1 + $0x120] ss:$12 sps:$4 sm:$0xff]   ;;  %2187 = vmatprep.mubr.bf16.mxu0 %v3919_v51  ;;  %v3389_v54 = vld [vmem:[%s4901_s1 + $0x13c] ss:$12 sps:$4 sm:$0xff]  }
  0x13   :  { %2111 = vmatpush1.bf16.msra.mxu1 %v3339_v18  ;;  %v3385_v50 = vld [vmem:[%s4901_s1 + $0x2a4] ss:$12 sps:$4 sm:$0xff]   ;;  %2134 = vmatprep.mubr.bf16.mxu1 %v3911_v49  ;;  %v3388_v53 = vld [vmem:[%s4901_s1 + $0x2a0] ss:$12 sps:$4 sm:$0xff]   ;;  %v3391_v55 = vld [vmem:[%s4901_s1 + $0x2bc] ss:$12 sps:$4 sm:$0xff]  }
  0x14   :  { %2164 = vmatpush1.bf16.msra.mxu0 %v3340_v19  ;;  %2112 = vmatprep.subr.bf16.mxu1 %v3341_v20  ;;  %v3393_v56 = vld [vmem:[%s4901_s1 + $0x138] ss:$12 sps:$4 sm:$0xff]   ;;  %v3397_v59 = vld [vmem:[%s4901_s1 + $0x2d4] ss:$12 sps:$4 sm:$0xff]   ;;  %v3399_v60 = vld [vmem:[%s4901_s1 + $0x150] ss:$12 sps:$4 sm:$0xff]  }
  0x15   :  { %2165 = vmatprep.subr.bf16.mxu0 %v3343_v21  ;;  %v3394_v57 = vld [vmem:[%s4901_s1 + $0x2b8] ss:$12 sps:$4 sm:$0xff]   ;;  %v3400_v61 = vld [vmem:[%s4901_s1 + $0x2d0] ss:$12 sps:$4 sm:$0xff]   ;;  %v3405_v0 = vld [vmem:[%s4901_s1 + $0x168] ss:$12 sps:$4 sm:$0xff]  }
  0x16   :  { %v3401_v62 = vld [vmem:[%s4901_s1 + $0x16c] ss:$12 sps:$4 sm:$0xff]   ;;  %v3406_v1 = vld [vmem:[%s4901_s1 + $0x2e8] ss:$12 sps:$4 sm:$0xff]   ;;  %v3415_v2 = vld [vmem:[%s4901_s1 + $0x304] ss:$12 sps:$4 sm:$0xff]  }
  0x17   :  { %2113 = vmatpush1.bf16.msra.mxu1 %v3345_v22  ;;  %v3403_v63 = vld [vmem:[%s4901_s1 + $0x2ec] ss:$12 sps:$4 sm:$0xff]   ;;  %v3971_v3 = vld [vmem:[%s4902_s0] ss:$48 sps:$4 sm:$0xff]   ;;  %v3416_v5 = vld [vmem:[%s4901_s1 + $0xc8] ss:$12 sps:$4 sm:$0xff]  }
  0x18   :  { %2166 = vmatpush1.bf16.msra.mxu0 %v3346_v23  ;;  %2114 = vmatprep.subr.bf16.mxu1 %v3347_v24  ;;  %v3976_v4 = vld [vmem:[%s4902_s0 + $0x8] ss:$48 sps:$4 sm:$0xff]   ;;  %v3413_v6 = vld [vmem:[%s4901_s1 + $0x300] ss:$12 sps:$4 sm:$0xff]   ;;  %v3996_v10 = vld [vmem:[%s4902_s0 + $0x64] ss:$48 sps:$4 sm:$0xff]  }
  0x19   :  { %2167 = vmatprep.subr.bf16.mxu0 %v3349_v25  ;;  %v3417_v7 = vld [vmem:[%s4901_s1 + $0x8] ss:$12 sps:$4 sm:$0xff]   ;;  %v3421_v9 = vld [vmem:[%s4901_s1 + $0xe0] ss:$12 sps:$4 sm:$0xff]   ;;  %v3418_v11 = vld [vmem:[%s4901_s1 + $0x318] ss:$12 sps:$4 sm:$0xff]  }
  0x1a   :  { %v3420_v8 = vld [vmem:[%s4901_s1 + $0x31c] ss:$12 sps:$4 sm:$0xff]   ;;  %v3422_v12 = vld [vmem:[%s4901_s1 + $0x20] ss:$12 sps:$4 sm:$0xff]   ;;  %v3426_v14 = vld [vmem:[%s4901_s1 + $0xf8] ss:$12 sps:$4 sm:$0xff]  }
  0x1b   :  { %2115 = vmatpush1.bf16.msra.mxu1 %v3351_v26  ;;  %v3425_v13 = vld [vmem:[%s4901_s1 + $0x334] ss:$12 sps:$4 sm:$0xff]   ;;  %v3423_v15 = vld [vmem:[%s4901_s1 + $0x330] ss:$12 sps:$4 sm:$0xff]   ;;  %v3427_v16 = vld [vmem:[%s4901_s1 + $0x38] ss:$12 sps:$4 sm:$0xff]  }
  0x1c   :  { %2168 = vmatpush1.bf16.msra.mxu0 %v3352_v27  ;;  %2116 = vmatprep.subr.bf16.mxu1 %v3353_v28  ;;  %v4022_v17 = vld [vmem:[%s4902_s0 + $0x60] ss:$48 sps:$4 sm:$0xff]   ;;  %v3430_v18 = vld [vmem:[%s4901_s1 + $0x34c] ss:$12 sps:$4 sm:$0xff]   ;;  %v3428_v20 = vld [vmem:[%s4901_s1 + $0x348] ss:$12 sps:$4 sm:$0xff]  }
  0x1d   :  { %2169 = vmatprep.subr.bf16.mxu0 %v3355_v29  ;;  %v3431_v19 = vld [vmem:[%s4901_s1 + $0x110] ss:$12 sps:$4 sm:$0xff]   ;;  %v3436_v23 = vld [vmem:[%s4901_s1 + $0x128] ss:$12 sps:$4 sm:$0xff]   ;;  %v3433_v24 = vld [vmem:[%s4901_s1 + $0x360] ss:$12 sps:$4 sm:$0xff]  }
  0x1e   :  { %v3432_v21 = vld [vmem:[%s4901_s1 + $0x50] ss:$12 sps:$4 sm:$0xff]   ;;  %v3437_v25 = vld [vmem:[%s4901_s1 + $0x68] ss:$12 sps:$4 sm:$0xff]   ;;  %v3441_v27 = vld [vmem:[%s4901_s1 + $0x140] ss:$12 sps:$4 sm:$0xff]  }
  0x1f   :  { %2117 = vmatpush1.bf16.msra.mxu1 %v3357_v30  ;;  %v3435_v22 = vld [vmem:[%s4901_s1 + $0x364] ss:$12 sps:$4 sm:$0xff]   ;;  %v3440_v26 = vld [vmem:[%s4901_s1 + $0x37c] ss:$12 sps:$4 sm:$0xff]   ;;  %v3442_v29 = vld [vmem:[%s4901_s1 + $0x80] ss:$12 sps:$4 sm:$0xff]  }
  0x20   :  { %2170 = vmatpush1.bf16.msra.mxu0 %v3358_v31  ;;  %2118 = vmatprep.subr.bf16.mxu1 %v3359_v32  ;;  %v3438_v28 = vld [vmem:[%s4901_s1 + $0x378] ss:$12 sps:$4 sm:$0xff]   ;;  %v3447_v30 = vld [vmem:[%s4901_s1 + $0x394] ss:$12 sps:$4 sm:$0xff]   ;;  %v3445_v32 = vld [vmem:[%s4901_s1 + $0x390] ss:$12 sps:$4 sm:$0xff]  }
  0x21   :  { %2171 = vmatprep.subr.bf16.mxu0 %v3361_v33  ;;  %v3448_v31 = vld [vmem:[%s4901_s1 + $0x158] ss:$12 sps:$4 sm:$0xff]  }
  0x22   :  { %v3450_v33 = vld [vmem:[%s4901_s1 + $0x98] ss:$12 sps:$4 sm:$0xff]  }
  0x23   :  { %2119 = vmatpush1.bf16.msra.mxu1 %v3363_v34  ;;  %v3453_v34 = vld [vmem:[%s4901_s1 + $0x3ac] ss:$12 sps:$4 sm:$0xff]  }
  0x24   :  { %2172 = vmatpush1.bf16.msra.mxu0 %v3364_v35  ;;  %2120 = vmatprep.subr.bf16.mxu1 %v3365_v36  ;;  %v3454_v35 = vld [vmem:[%s4901_s1 + $0x170] ss:$12 sps:$4 sm:$0xff]   ;;  %v3451_v36 = vld [vmem:[%s4901_s1 + $0x3a8] ss:$12 sps:$4 sm:$0xff]  }
  0x25   :  { %2173 = vmatprep.subr.bf16.mxu0 %v3367_v37  ;;  %v3455_v37 = vld [vmem:[%s4901_s1 + $0xb0] ss:$12 sps:$4 sm:$0xff]  }
  0x27   :  { %2121 = vmatpush1.bf16.msra.mxu1 %v3369_v38  ;;  %v3458_v38 = vld [vmem:[%s4901_s1 + $0x3c4] ss:$12 sps:$4 sm:$0xff]  }
  0x28   :  { %2174 = vmatpush1.bf16.msra.mxu0 %v3370_v39  ;;  %2122 = vmatprep.subr.bf16.mxu1 %v3371_v40  ;;  %v3459_v39 = vld [vmem:[%s4901_s1 + $0x248] ss:$12 sps:$4 sm:$0xff]   ;;  %v4095_v40 = vld [vmem:[%s4902_s0 + $0x6c] ss:$48 sps:$4 sm:$0xff]  }
  0x29   :  { %2175 = vmatprep.subr.bf16.mxu0 %v3373_v41  ;;  %v3456_v41 = vld [vmem:[%s4901_s1 + $0x3c0] ss:$12 sps:$4 sm:$0xff]  }
  0x2b   :  { %2123 = vmatpush1.bf16.msra.mxu1 %v3375_v42  ;;  %v3460_v42 = vld [vmem:[%s4901_s1 + $0x188] ss:$12 sps:$4 sm:$0xff]  }
  0x2c   :  { %2176 = vmatpush1.bf16.msra.mxu0 %v3376_v43  ;;  %2124 = vmatprep.subr.bf16.mxu1 %v3377_v44  ;;  %v3463_v43 = vld [vmem:[%s4901_s1 + $0x3dc] ss:$12 sps:$4 sm:$0xff]  }
  0x2d   :  { %2177 = vmatprep.subr.bf16.mxu0 %v3379_v45  ;;  %v4109_v44 = vld [vmem:[%s4902_s0 + $0x68] ss:$48 sps:$4 sm:$0xff]   ;;  %v3464_v45 = vld [vmem:[%s4901_s1 + $0x260] ss:$12 sps:$4 sm:$0xff]  }
  0x2f   :  { %2125 = vmatpush1.bf16.msra.mxu1 %v3381_v46  ;;  %v3461_v46 = vld [vmem:[%s4901_s1 + $0x3d8] ss:$12 sps:$4 sm:$0xff]  }
  0x30   :  { %2178 = vmatpush1.bf16.msra.mxu0 %v3382_v47  ;;  %2126 = vmatprep.subr.bf16.mxu1 %v3383_v48  ;;  %v3465_v47 = vld [vmem:[%s4901_s1 + $0x1a0] ss:$12 sps:$4 sm:$0xff]  }
  0x31   :  { %2179 = vmatprep.subr.bf16.mxu0 %v3385_v50  ;;  %v3468_v48 = vld [vmem:[%s4901_s1 + $0x3f4] ss:$12 sps:$4 sm:$0xff]  }
  0x32   :  { %v4133_v50 = vld [vmem:[%s4902_s0 + $0x14] ss:$48 sps:$4 sm:$0xff]  }
  0x33   :  { %2127 = vmatpush1.bf16.msra.mxu1 %v3387_v52  ;;  %v3466_v52 = vld [vmem:[%s4901_s1 + $0x3f0] ss:$12 sps:$4 sm:$0xff]  }
  0x34   :  { %2180 = vmatpush1.bf16.msra.mxu0 %v3388_v53  ;;  %2128 = vmatprep.subr.bf16.mxu1 %v3389_v54  ;;  %v3470_v53 = vld [vmem:[%s4901_s1 + $0x1b8] ss:$12 sps:$4 sm:$0xff]  }
  0x35   :  { %2181 = vmatprep.subr.bf16.mxu0 %v3391_v55  ;;  %v3473_v54 = vld [vmem:[%s4901_s1 + $0x40c] ss:$12 sps:$4 sm:$0xff]   ;;  %v3474_v55 = vld [vmem:[%s4901_s1 + $0x290] ss:$12 sps:$4 sm:$0xff]  }
  0x37   :  { %2129 = vmatpush1.bf16.msra.mxu1 %v3393_v56  ;;  %v3471_v56 = vld [vmem:[%s4901_s1 + $0x408] ss:$12 sps:$4 sm:$0xff]  }
  0x38   :  { %2182 = vmatpush1.bf16.msra.mxu0 %v3394_v57  ;;  %2130 = vmatprep.subr.bf16.mxu1 %v3395_v58  ;;  %v3475_v57 = vld [vmem:[%s4901_s1 + $0x1d0] ss:$12 sps:$4 sm:$0xff]  }
  0x39   :  { %2183 = vmatprep.subr.bf16.mxu0 %v3397_v59  ;;  %v3478_v58 = vld [vmem:[%s4901_s1 + $0x424] ss:$12 sps:$4 sm:$0xff]   ;;  %v3479_v59 = vld [vmem:[%s4901_s1 + $0x2a8] ss:$12 sps:$4 sm:$0xff]  }
  0x3b   :  { %2131 = vmatpush1.bf16.msra.mxu1 %v3399_v60  ;;  %v3476_v60 = vld [vmem:[%s4901_s1 + $0x420] ss:$12 sps:$4 sm:$0xff]  }
  0x3c   :  { %2184 = vmatpush1.bf16.msra.mxu0 %v3400_v61  ;;  %2132 = vmatprep.subr.bf16.mxu1 %v3401_v62  ;;  %v3480_v61 = vld [vmem:[%s4901_s1 + $0x1e8] ss:$12 sps:$4 sm:$0xff]  }
  0x3d   :  { %2185 = vmatprep.subr.bf16.mxu0 %v3403_v63  ;;  %v3483_v62 = vld [vmem:[%s4901_s1 + $0x43c] ss:$12 sps:$4 sm:$0xff]   ;;  %v3481_v63 = vld [vmem:[%s4901_s1 + $0x438] ss:$12 sps:$4 sm:$0xff]  }
  0x3f   :  { %2133 = vmatpush1.bf16.msra.mxu1 %v3405_v0  ;;  %v3485_v0 = vld [vmem:[%s4901_s1 + $0x200] ss:$12 sps:$4 sm:$0xff]  }
  0x40   :  { %2186 = vmatpush1.bf16.msra.mxu0 %v3406_v1  ;;  %3095 = vmatprep.subr.bf16.mxu1 %v3416_v5  ;;  %v3490_v1 = vld [vmem:[%s4901_s1 + $0x454] ss:$12 sps:$4 sm:$0xff]   ;;  %v3493_v5 = vld [vmem:[%s4901_s1 + $0x218] ss:$12 sps:$4 sm:$0xff]  }
  0x41   :  { %2208 = vmatprep.subr.bf16.mxu0 %v3415_v2  ;;  %v3491_v2 = vld [vmem:[%s4901_s1 + $0x2d8] ss:$12 sps:$4 sm:$0xff]  }
  0x42   :  { %2135 = vmatmul.mubr.bf16.vlgmr.msra.gmra.mrb[0].mxu1 %v3971_v3 }
  0x43   :  { %2188 = vmatmul.mubr.bf16.vlgmr.msra.gmra.mrb[0].mxu0 %v3976_v4  ;;  %3096 = vmatpush3.bf16.msra.mxu1 %v3417_v7  ;;  %v3497_v7 = vld [vmem:[%s4901_s1 + $0x2f0] ss:$12 sps:$4 sm:$0xff]  }
  0x44   :  { %2209 = vmatpush1.bf16.msra.mxu0 %v3413_v6  ;;  %3097 = vmatprep.subr.bf16.mxu1 %v3421_v9  ;;  %v3496_v6 = vld [vmem:[%s4901_s1 + $0x46c] ss:$12 sps:$4 sm:$0xff]   ;;  %v3498_v9 = vld [vmem:[%s4901_s1 + $0x230] ss:$12 sps:$4 sm:$0xff]  }
  0x45   :  { %2210 = vmatprep.subr.bf16.mxu0 %v3420_v8  ;;  %2144 = vmatprep.mubr.bf16.mxu1 %v3996_v10  ;;  %v3494_v8 = vld [vmem:[%s4901_s1 + $0x468] ss:$12 sps:$4 sm:$0xff]  }
  0x46   :  { %2197 = vmatprep.mubr.bf16.mxu0 %v4095_v40 }
  0x47   :  { %3098 = vmatpush3.bf16.msra.mxu1 %v3422_v12  ;;  %v3505_v12 = vld [vmem:[%s4901_s1 + $0x3c8] ss:$12 sps:$4 sm:$0xff]  }
  0x48   :  { %2211 = vmatpush1.bf16.msra.mxu0 %v3418_v11  ;;  %3099 = vmatprep.subr.bf16.mxu1 %v3426_v14  ;;  %v4210_v11 = vld [vmem:[%s4902_s0 + $0x10] ss:$48 sps:$4 sm:$0xff]   ;;  %v3506_v14 = vld [vmem:[%s4901_s1 + $0x308] ss:$12 sps:$4 sm:$0xff]  }
  0x49   :  { %2212 = vmatprep.subr.bf16.mxu0 %v3425_v13  ;;  %v3502_v13 = vld [vmem:[%s4901_s1 + $0x480] ss:$12 sps:$4 sm:$0xff]  }
  0x4a   :  { %2145 = vmatmul.mubr.bf16.gmra.mrb[4].mxu1 %v4022_v17 }
  0x4b   :  { %3100 = vmatpush3.bf16.msra.mxu1 %v3427_v16  ;;  %2452 = vmatprep.mubr.bf16.mxu1 %v3911_v49  ;;  %v3469_v49 = vld [vmem:[%s4901_s1 + $0x278] ss:$12 sps:$4 sm:$0xff]   ;;  %v3510_v16 = vld [vmem:[%s4901_s1 + $0x3e0] ss:$12 sps:$4 sm:$0xff]  }
  0x4c   :  { %2213 = vmatpush1.bf16.msra.mxu0 %v3423_v15  ;;  %3101 = vmatprep.subr.bf16.mxu1 %v3431_v19  ;;  %v3509_v15 = vld [vmem:[%s4901_s1 + $0x49c] ss:$12 sps:$4 sm:$0xff]   ;;  %v3514_v19 = vld [vmem:[%s4901_s1 + $0x4b4] ss:$12 sps:$4 sm:$0xff]  }
  0x4d   :  { %2214 = vmatprep.subr.bf16.mxu0 %v3430_v18  ;;  %2198 = vmatmul.mubr.bf16.gmra.mrb[4].mxu0 %v4109_v44  ;;  %v3511_v18 = vld [vmem:[%s4901_s1 + $0x320] ss:$12 sps:$4 sm:$0xff]  }
  0x4e   :  { %2240 = vmatprep.mubr.bf16.mxu0 %v4133_v50 }
  0x4f   :  { %3102 = vmatpush3.bf16.msra.mxu1 %v3432_v21  ;;  %v3516_v21 = vld [vmem:[%s4901_s1 + $0x338] ss:$12 sps:$4 sm:$0xff]  }
  0x50   :  { %2215 = vmatpush1.bf16.msra.mxu0 %v3428_v20  ;;  %3103 = vmatprep.subr.bf16.mxu1 %v3436_v23  ;;  %v3512_v20 = vld [vmem:[%s4901_s1 + $0x4b0] ss:$12 sps:$4 sm:$0xff]  }
  0x51   :  { %2216 = vmatprep.subr.bf16.mxu0 %v3435_v22  ;;  %v3519_v22 = vld [vmem:[%s4901_s1 + $0x4cc] ss:$12 sps:$4 sm:$0xff]   ;;  %v3520_v23 = vld [vmem:[%s4901_s1 + $0x410] ss:$12 sps:$4 sm:$0xff]  }
  0x53   :  { %3104 = vmatpush3.bf16.msra.mxu1 %v3437_v25  ;;  %v3521_v25 = vld [vmem:[%s4901_s1 + $0x350] ss:$12 sps:$4 sm:$0xff]  }
  0x54   :  { %2217 = vmatpush1.bf16.msra.mxu0 %v3433_v24  ;;  %3105 = vmatprep.subr.bf16.mxu1 %v3441_v27  ;;  %v3517_v24 = vld [vmem:[%s4901_s1 + $0x4c8] ss:$12 sps:$4 sm:$0xff]  }
  0x55   :  { %2218 = vmatprep.subr.bf16.mxu0 %v3440_v26  ;;  %v3524_v26 = vld [vmem:[%s4901_s1 + $0x4e4] ss:$12 sps:$4 sm:$0xff]   ;;  %v3525_v27 = vld [vmem:[%s4901_s1 + $0x428] ss:$12 sps:$4 sm:$0xff]  }
  0x57   :  { %3106 = vmatpush3.bf16.msra.mxu1 %v3442_v29  ;;  %v3526_v29 = vld [vmem:[%s4901_s1 + $0x368] ss:$12 sps:$4 sm:$0xff]  }
  0x58   :  { %2219 = vmatpush1.bf16.msra.mxu0 %v3438_v28  ;;  %3107 = vmatprep.subr.bf16.mxu1 %v3448_v31  ;;  %v3522_v28 = vld [vmem:[%s4901_s1 + $0x4e0] ss:$12 sps:$4 sm:$0xff]  }
  0x59   :  { %2220 = vmatprep.subr.bf16.mxu0 %v3447_v30  ;;  %v3529_v30 = vld [vmem:[%s4901_s1 + $0x4fc] ss:$12 sps:$4 sm:$0xff]   ;;  %v3530_v31 = vld [vmem:[%s4901_s1 + $0x440] ss:$12 sps:$4 sm:$0xff]  }
  0x5b   :  { %3108 = vmatpush3.bf16.msra.mxu1 %v3450_v33  ;;  %v3531_v33 = vld [vmem:[%s4901_s1 + $0x380] ss:$12 sps:$4 sm:$0xff]  }
  0x5c   :  { %2221 = vmatpush1.bf16.msra.mxu0 %v3445_v32  ;;  %3109 = vmatprep.subr.bf16.mxu1 %v3454_v35  ;;  %v3527_v32 = vld [vmem:[%s4901_s1 + $0x4f8] ss:$12 sps:$4 sm:$0xff]  }
  0x5d   :  { %2222 = vmatprep.subr.bf16.mxu0 %v3453_v34  ;;  %v3534_v34 = vld [vmem:[%s4901_s1 + $0x514] ss:$12 sps:$4 sm:$0xff]   ;;  %v3535_v35 = vld [vmem:[%s4901_s1 + $0x458] ss:$12 sps:$4 sm:$0xff]  }
  0x5f   :  { %3110 = vmatpush3.bf16.msra.mxu1 %v3455_v37  ;;  %v3532_v37 = vld [vmem:[%s4901_s1 + $0x510] ss:$12 sps:$4 sm:$0xff]  }
  0x60   :  { %2223 = vmatpush1.bf16.msra.mxu0 %v3451_v36  ;;  %3123 = vmatprep.subr.bf16.mxu1 %v3459_v39  ;;  %v3572_v36 = vld [vmem:[%s4902_s0 + $0x74] ss:$48 sps:$4 sm:$0xff]   ;;  %v3577_v39 = vld [vmem:[%s4902_s0 + $0x70] ss:$48 sps:$4 sm:$0xff]  }
  0x61   :  { %2224 = vmatprep.subr.bf16.mxu0 %v3458_v38  ;;  %v3536_v38 = vld [vmem:[%s4901_s1 + $0x398] ss:$12 sps:$4 sm:$0xff]  }
  0x62   :  { %2453 = vmatmul.mubr.bf16.vlgmr.msra.gmra.mrb[8].mxu1 %v3971_v3  ;;  %v3488_v3 = vld [vmem:[%s4901_s1 + $0x450] ss:$12 sps:$4 sm:$0xff]  }
  0x63   :  { %3124 = vmatpush3.bf16.msra.mxu1 %v3460_v42  ;;  %2460 = vmatprep.mubr.bf16.mxu1 %v3996_v10  ;;  %v3504_v10 = vld [vmem:[%s4901_s1 + $0x484] ss:$12 sps:$4 sm:$0xff]   ;;  %v3537_v42 = vld [vmem:[%s4901_s1 + $0x528] ss:$12 sps:$4 sm:$0xff]  }
  0x64   :  { %2225 = vmatpush1.bf16.msra.mxu0 %v3456_v41  ;;  %3125 = vmatprep.subr.bf16.mxu1 %v3464_v45  ;;  %v3540_v41 = vld [vmem:[%s4901_s1 + $0x470] ss:$12 sps:$4 sm:$0xff]   ;;  %v3545_v45 = vld [vmem:[%s4901_s1 + $0x548] ss:$12 sps:$4 sm:$0xff]  }
  0x65   :  { %2226 = vmatprep.subr.bf16.mxu0 %v3463_v43  ;;  %v3541_v43 = vld [vmem:[%s4901_s1 + $0x3b0] ss:$12 sps:$4 sm:$0xff]  }
  0x67   :  { %3126 = vmatpush3.bf16.msra.mxu1 %v3465_v47  ;;  %v3542_v47 = vld [vmem:[%s4901_s1 + $0x540] ss:$12 sps:$4 sm:$0xff]  }
  0x68   :  { %2227 = vmatpush1.bf16.msra.mxu0 %v3461_v46  ;;  %3127 = vmatprep.subr.bf16.mxu1 %v3469_v49  ;;  %v3587_v46 = vld [vmem:[%s4902_s0 + $0x1c] ss:$48 sps:$4 sm:$0xff]  }
  0x69   :  { %2228 = vmatprep.subr.bf16.mxu0 %v3468_v48  ;;  %v3546_v48 = vld [vmem:[%s4901_s1 + $0x488] ss:$12 sps:$4 sm:$0xff]  }
  0x6a   :  { %2461 = vmatmul.mubr.bf16.gmra.mrb[12].mxu1 %v4022_v17  ;;  %v3507_v17 = vld [vmem:[%s4901_s1 + $0x498] ss:$12 sps:$4 sm:$0xff]   ;;  %v3549_v49 = vld [vmem:[%s4901_s1 + $0x55c] ss:$12 sps:$4 sm:$0xff]  }
  0x6b   :  { %3128 = vmatpush3.bf16.msra.mxu1 %v3470_v53  ;;  %2501 = vmatprep.mubr.bf16.mxu1 %v3919_v51  ;;  %v3484_v51 = vld [vmem:[%s4901_s1 + $0x2c0] ss:$12 sps:$4 sm:$0xff]  }
  0x6c   :  { %2229 = vmatpush1.bf16.msra.mxu0 %v3466_v52  ;;  %3129 = vmatprep.subr.bf16.mxu1 %v3474_v55  ;;  %v3547_v52 = vld [vmem:[%s4901_s1 + $0x558] ss:$12 sps:$4 sm:$0xff]   ;;  %v3551_v53 = vld [vmem:[%s4901_s1 + $0x4a0] ss:$12 sps:$4 sm:$0xff]  }
  0x6d   :  { %2230 = vmatprep.subr.bf16.mxu0 %v3473_v54  ;;  %v3554_v54 = vld [vmem:[%s4901_s1 + $0x574] ss:$12 sps:$4 sm:$0xff]   ;;  %v3555_v55 = vld [vmem:[%s4901_s1 + $0x578] ss:$12 sps:$4 sm:$0xff]  }
  0x6f   :  { %3130 = vmatpush3.bf16.msra.mxu1 %v3475_v57  ;;  %v3556_v57 = vld [vmem:[%s4901_s1 + $0x4b8] ss:$12 sps:$4 sm:$0xff]  }
  0x70   :  { %2231 = vmatpush1.bf16.msra.mxu0 %v3471_v56  ;;  %3131 = vmatprep.subr.bf16.mxu1 %v3479_v59  ;;  %v3552_v56 = vld [vmem:[%s4901_s1 + $0x570] ss:$12 sps:$4 sm:$0xff]  }
  0x71   :  { %2232 = vmatprep.subr.bf16.mxu0 %v3478_v58  ;;  %v3559_v58 = vld [vmem:[%s4901_s1 + $0x58c] ss:$12 sps:$4 sm:$0xff]   ;;  %v3560_v59 = vld [vmem:[%s4901_s1 + $0x590] ss:$12 sps:$4 sm:$0xff]  }
  0x73   :  { %3132 = vmatpush3.bf16.msra.mxu1 %v3480_v61  ;;  %v3561_v61 = vld [vmem:[%s4901_s1 + $0x4d0] ss:$12 sps:$4 sm:$0xff]  }
  0x74   :  { %2233 = vmatpush1.bf16.msra.mxu0 %v3476_v60  ;;  %3133 = vmatprep.subr.bf16.mxu1 %v3484_v51  ;;  %v3557_v60 = vld [vmem:[%s4901_s1 + $0x588] ss:$12 sps:$4 sm:$0xff]  }
  0x75   :  { %2234 = vmatprep.subr.bf16.mxu0 %v3483_v62  ;;  %v3564_v62 = vld [vmem:[%s4901_s1 + $0x5a4] ss:$12 sps:$4 sm:$0xff]   ;;  %v3565_v51 = vld [vmem:[%s4901_s1 + $0x5a8] ss:$12 sps:$4 sm:$0xff]  }
  0x77   :  { %3134 = vmatpush3.bf16.msra.mxu1 %v3485_v0  ;;  %v3566_v0 = vld [vmem:[%s4901_s1 + $0x4e8] ss:$12 sps:$4 sm:$0xff]  }
  0x78   :  { %2235 = vmatpush1.bf16.msra.mxu0 %v3481_v63  ;;  %3135 = vmatprep.subr.bf16.mxu1 %v3491_v2  ;;  %v3562_v63 = vld [vmem:[%s4901_s1 + $0x5a0] ss:$12 sps:$4 sm:$0xff]  }
  0x79   :  { %2236 = vmatprep.subr.bf16.mxu0 %v3490_v1  ;;  %v3569_v1 = vld [vmem:[%s4901_s1 + $0x5bc] ss:$12 sps:$4 sm:$0xff]   ;;  %v3570_v2 = vld [vmem:[%s4901_s1 + $0x5c0] ss:$12 sps:$4 sm:$0xff]  }
  0x7b   :  { %3136 = vmatpush3.bf16.msra.mxu1 %v3493_v5  ;;  %v3571_v5 = vld [vmem:[%s4901_s1 + $0x500] ss:$12 sps:$4 sm:$0xff]  }
  0x7c   :  { %2237 = vmatpush1.bf16.msra.mxu0 %v3488_v3  ;;  %3137 = vmatprep.subr.bf16.mxu1 %v3497_v7  ;;  %v3567_v3 = vld [vmem:[%s4901_s1 + $0x5b8] ss:$12 sps:$4 sm:$0xff]  }
  0x7d   :  { %2238 = vmatprep.subr.bf16.mxu0 %v3496_v6  ;;  %v3576_v6 = vld [vmem:[%s4901_s1 + $0x5d4] ss:$12 sps:$4 sm:$0xff]   ;;  %v3578_v7 = vld [vmem:[%s4901_s1 + $0x5d8] ss:$12 sps:$4 sm:$0xff]  }
  0x7f   :  { %3138 = vmatpush3.bf16.msra.mxu1 %v3498_v9  ;;  %v3579_v9 = vld [vmem:[%s4901_s1 + $0x518] ss:$12 sps:$4 sm:$0xff]  }
  0x80   :  { %2239 = vmatpush1.bf16.msra.mxu0 %v3494_v8  ;;  %3151 = vmatprep.subr.bf16.mxu1 %v3505_v12  ;;  %v3574_v8 = vld [vmem:[%s4901_s1 + $0x5d0] ss:$12 sps:$4 sm:$0xff]   ;;  %v3580_v12 = vld [vmem:[%s4901_s1 + $0x5e8] ss:$12 sps:$4 sm:$0xff]  }
  0x81   :  { %2261 = vmatprep.subr.bf16.mxu0 %v3504_v10  ;;  %v3582_v10 = vld [vmem:[%s4901_s1 + $0x5ec] ss:$12 sps:$4 sm:$0xff]  }
  0x82   :  { %2502 = vmatmul.mubr.bf16.vlgmr.msra.gmra.mrb[16].mxu1 %v3976_v4  ;;  %v3515_v4 = vld [vmem:[%s4901_s1 + $0x3f8] ss:$12 sps:$4 sm:$0xff]  }
  0x83   :  { %2241 = vmatmul.mubr.bf16.vlgmr.msra.gmra.mrb[0].mxu0 %v4210_v11  ;;  %3152 = vmatpush3.bf16.msra.mxu1 %v3506_v14  ;;  %v3590_v14 = vld [vmem:[%s4901_s1 + $0x604] ss:$12 sps:$4 sm:$0xff]  }
  0x84   :  { %2262 = vmatpush1.bf16.msra.mxu0 %v3502_v13  ;;  %3153 = vmatprep.subr.bf16.mxu1 %v3510_v16  ;;  %v3584_v13 = vld [vmem:[%s4901_s1 + $0x530] ss:$12 sps:$4 sm:$0xff]   ;;  %v3585_v16 = vld [vmem:[%s4902_s0 + $0x18] ss:$48 sps:$4 sm:$0xff]  }
  0x85   :  { %2263 = vmatprep.subr.bf16.mxu0 %v3509_v15  ;;  %2509 = vmatprep.mubr.bf16.mxu1 %v4095_v40  ;;  %v3539_v40 = vld [vmem:[%s4901_s1 + $0x52c] ss:$12 sps:$4 sm:$0xff]   ;;  %v3591_v15 = vld [vmem:[%s4901_s1 + $0x6c8] ss:$12 sps:$4 sm:$0xff]  }
  0x86   :  { %2250 = vmatprep.mubr.bf16.mxu0 %v3572_v36 }
  0x87   :  { %3154 = vmatpush3.bf16.msra.mxu1 %v3511_v18  ;;  %v3592_v18 = vld [vmem:[%s4901_s1 + $0x608] ss:$12 sps:$4 sm:$0xff]  }
  0x88   :  { %2264 = vmatpush1.bf16.msra.mxu0 %v3507_v17  ;;  %3155 = vmatprep.subr.bf16.mxu1 %v3515_v4  ;;  %v3588_v17 = vld [vmem:[%s4901_s1 + $0x600] ss:$12 sps:$4 sm:$0xff]  }
  0x89   :  { %2265 = vmatprep.subr.bf16.mxu0 %v3514_v19  ;;  %v3595_v19 = vld [vmem:[%s4901_s1 + $0x61c] ss:$12 sps:$4 sm:$0xff]   ;;  %v3596_v4 = vld [vmem:[%s4901_s1 + $0x6e0] ss:$12 sps:$4 sm:$0xff]  }
  0x8a   :  { %2510 = vmatmul.mubr.bf16.gmra.mrb[20].mxu1 %v4109_v44  ;;  %v3544_v44 = vld [vmem:[%s4901_s1 + $0x544] ss:$12 sps:$4 sm:$0xff]  }
  0x8b   :  { %3156 = vmatpush3.bf16.msra.mxu1 %v3516_v21  ;;  %2550 = vmatprep.mubr.bf16.mxu1 %v4133_v50  ;;  %v3550_v50 = vld [vmem:[%s4901_s1 + $0x560] ss:$12 sps:$4 sm:$0xff]   ;;  %v3593_v21 = vld [vmem:[%s4901_s1 + $0x618] ss:$12 sps:$4 sm:$0xff]  }
  0x8c   :  { %2266 = vmatpush1.bf16.msra.mxu0 %v3512_v20  ;;  %3157 = vmatprep.subr.bf16.mxu1 %v3520_v23  ;;  %v3598_v20 = vld [vmem:[%s4902_s0 + $0x7c] ss:$48 sps:$4 sm:$0xff]   ;;  %v3602_v23 = vld [vmem:[%s4901_s1 + $0x634] ss:$12 sps:$4 sm:$0xff]  }
  0x8d   :  { %2267 = vmatprep.subr.bf16.mxu0 %v3519_v22  ;;  %2251 = vmatmul.mubr.bf16.gmra.mrb[4].mxu0 %v3577_v39  ;;  %v3597_v22 = vld [vmem:[%s4901_s1 + $0x620] ss:$12 sps:$4 sm:$0xff]  }
  0x8e   :  { %2293 = vmatprep.mubr.bf16.mxu0 %v3587_v46 }
  0x8f   :  { %3158 = vmatpush3.bf16.msra.mxu1 %v3521_v25  ;;  %v3600_v25 = vld [vmem:[%s4901_s1 + $0x630] ss:$12 sps:$4 sm:$0xff]  }
  0x90   :  { %2268 = vmatpush1.bf16.msra.mxu0 %v3517_v24  ;;  %3159 = vmatprep.subr.bf16.mxu1 %v3525_v27  ;;  %v3604_v24 = vld [vmem:[%s4901_s1 + $0x6f8] ss:$12 sps:$4 sm:$0xff]  }
  0x91   :  { %2269 = vmatprep.subr.bf16.mxu0 %v3524_v26  ;;  %v3603_v26 = vld [vmem:[%s4902_s0 + $0x78] ss:$48 sps:$4 sm:$0xff]  }
  0x92   :  { %v3605_v27 = vld [vmem:[%s4901_s1 + $0x638] ss:$12 sps:$4 sm:$0xff]  }
  0x93   :  { %3160 = vmatpush3.bf16.msra.mxu1 %v3526_v29  ;;  %v3609_v29 = vld [vmem:[%s4901_s1 + $0x710] ss:$12 sps:$4 sm:$0xff]  }
  0x94   :  { %2270 = vmatpush1.bf16.msra.mxu0 %v3522_v28  ;;  %3161 = vmatprep.subr.bf16.mxu1 %v3530_v31  ;;  %v3608_v28 = vld [vmem:[%s4901_s1 + $0x64c] ss:$12 sps:$4 sm:$0xff]   ;;  %v3606_v31 = vld [vmem:[%s4901_s1 + $0x648] ss:$12 sps:$4 sm:$0xff]  }
  0x95   :  { %2271 = vmatprep.subr.bf16.mxu0 %v3529_v30  ;;  %v3633_v30 = vld [vmem:[%s4902_s0 + $0x24] ss:$48 sps:$4 sm:$0xff]  }
  0x97   :  { %3162 = vmatpush3.bf16.msra.mxu1 %v3531_v33  ;;  %v3613_v33 = vld [vmem:[%s4901_s1 + $0x664] ss:$12 sps:$4 sm:$0xff]  }
  0x98   :  { %2272 = vmatpush1.bf16.msra.mxu0 %v3527_v32  ;;  %3163 = vmatprep.subr.bf16.mxu1 %v3535_v35  ;;  %v3610_v32 = vld [vmem:[%s4901_s1 + $0x650] ss:$12 sps:$4 sm:$0xff]   ;;  %v3611_v35 = vld [vmem:[%s4901_s1 + $0x660] ss:$12 sps:$4 sm:$0xff]  }
  0x99   :  { %2273 = vmatprep.subr.bf16.mxu0 %v3534_v34  ;;  %v3614_v34 = vld [vmem:[%s4901_s1 + $0x728] ss:$12 sps:$4 sm:$0xff]  }
  0x9b   :  { %3164 = vmatpush3.bf16.msra.mxu1 %v3536_v38  ;;  %v3619_v38 = vld [vmem:[%s4901_s1 + $0x740] ss:$12 sps:$4 sm:$0xff]  }
  0x9c   :  { %2274 = vmatpush1.bf16.msra.mxu0 %v3532_v37  ;;  %3165 = vmatprep.subr.bf16.mxu1 %v3540_v41  ;;  %v3618_v37 = vld [vmem:[%s4901_s1 + $0x67c] ss:$12 sps:$4 sm:$0xff]   ;;  %v3623_v41 = vld [vmem:[%s4901_s1 + $0x694] ss:$12 sps:$4 sm:$0xff]  }
  0x9d   :  { %2275 = vmatprep.subr.bf16.mxu0 %v3539_v40  ;;  %v3620_v40 = vld [vmem:[%s4901_s1 + $0x680] ss:$12 sps:$4 sm:$0xff]  }
  0x9f   :  { %3166 = vmatpush3.bf16.msra.mxu1 %v3541_v43  ;;  %v3621_v43 = vld [vmem:[%s4901_s1 + $0x690] ss:$12 sps:$4 sm:$0xff]  }
  0xa0   :  { %2276 = vmatpush1.bf16.msra.mxu0 %v3537_v42  ;;  %3179 = vmatprep.subr.bf16.mxu1 %v3545_v45  ;;  %v3624_v42 = vld [vmem:[%s4901_s1 + $0x758] ss:$12 sps:$4 sm:$0xff]  }
  0xa1   :  { %2277 = vmatprep.subr.bf16.mxu0 %v3544_v44  ;;  %v3625_v44 = vld [vmem:[%s4901_s1 + $0x698] ss:$12 sps:$4 sm:$0xff]  }
  0xa2   :  { %2551 = vmatmul.mubr.bf16.vlgmr.msra.gmra.mrb[24].mxu1 %v4210_v11  ;;  %v3583_v11 = vld [vmem:[%s4901_s1 + $0x5f0] ss:$12 sps:$4 sm:$0xff]   ;;  %v3628_v45 = vld [vmem:[%s4901_s1 + $0x6ac] ss:$12 sps:$4 sm:$0xff]  }
  0xa3   :  { %3180 = vmatpush3.bf16.msra.mxu1 %v3546_v48  ;;  %2558 = vmatprep.mubr.bf16.mxu1 %v3572_v36  ;;  %v3615_v36 = vld [vmem:[%s4901_s1 + $0x668] ss:$12 sps:$4 sm:$0xff]   ;;  %v3630_v48 = vld [vmem:[%s4901_s1 + $0x6b0] ss:$12 sps:$4 sm:$0xff]  }
  0xa4   :  { %2278 = vmatpush1.bf16.msra.mxu0 %v3542_v47  ;;  %3181 = vmatprep.subr.bf16.mxu1 %v3550_v50  ;;  %v3626_v47 = vld [vmem:[%s4901_s1 + $0x6a8] ss:$12 sps:$4 sm:$0xff]  }
  0xa5   :  { %2279 = vmatprep.subr.bf16.mxu0 %v3549_v49  ;;  %v3636_v49 = vld [vmem:[%s4901_s1 + $0x6c4] ss:$12 sps:$4 sm:$0xff]   ;;  %v3637_v50 = vld [vmem:[%s4901_s1 + $0x848] ss:$12 sps:$4 sm:$0xff]  }
  0xa7   :  { %3182 = vmatpush3.bf16.msra.mxu1 %v3551_v53  ;;  %v3634_v53 = vld [vmem:[%s4901_s1 + $0x6c0] ss:$12 sps:$4 sm:$0xff]  }
  0xa8   :  { %2280 = vmatpush1.bf16.msra.mxu0 %v3547_v52  ;;  %3183 = vmatprep.subr.bf16.mxu1 %v3555_v55  ;;  %v4533_v52 = vld [vmem:[%s4902_s0 + $0x20] ss:$48 sps:$4 sm:$0xff]   ;;  %v3641_v55 = vld [vmem:[%s4901_s1 + $0x6dc] ss:$12 sps:$4 sm:$0xff]  }
  0xa9   :  { %2281 = vmatprep.subr.bf16.mxu0 %v3554_v54  ;;  %v3638_v54 = vld [vmem:[%s4901_s1 + $0x788] ss:$12 sps:$4 sm:$0xff]  }
  0xaa   :  { %2559 = vmatmul.mubr.bf16.gmra.mrb[28].mxu1 %v3577_v39  ;;  %v3616_v39 = vld [vmem:[%s4901_s1 + $0x678] ss:$12 sps:$4 sm:$0xff]  }
  0xab   :  { %3184 = vmatpush3.bf16.msra.mxu1 %v3556_v57  ;;  %2599 = vmatprep.mubr.bf16.mxu1 %v3587_v46  ;;  %v3629_v46 = vld [vmem:[%s4901_s1 + $0x770] ss:$12 sps:$4 sm:$0xff]   ;;  %v4550_v57 = vld [vmem:[%s4902_s0 + $0x84] ss:$48 sps:$4 sm:$0xff]  }
  0xac   :  { %2282 = vmatpush1.bf16.msra.mxu0 %v3552_v56  ;;  %3185 = vmatprep.subr.bf16.mxu1 %v3560_v59  ;;  %v3642_v56 = vld [vmem:[%s4901_s1 + $0x860] ss:$12 sps:$4 sm:$0xff]  }
  0xad   :  { %2283 = vmatprep.subr.bf16.mxu0 %v3559_v58  ;;  %v3639_v58 = vld [vmem:[%s4901_s1 + $0x6d8] ss:$12 sps:$4 sm:$0xff]   ;;  %v3643_v59 = vld [vmem:[%s4901_s1 + $0x7a0] ss:$12 sps:$4 sm:$0xff]  }
  0xaf   :  { %3186 = vmatpush3.bf16.msra.mxu1 %v3561_v61  ;;  %v3650_v61 = vld [vmem:[%s4901_s1 + $0x878] ss:$12 sps:$4 sm:$0xff]  }
  0xb0   :  { %2284 = vmatpush1.bf16.msra.mxu0 %v3557_v60  ;;  %3187 = vmatprep.subr.bf16.mxu1 %v3565_v51  ;;  %v3648_v60 = vld [vmem:[%s4901_s1 + $0x6f4] ss:$12 sps:$4 sm:$0xff]   ;;  %v3646_v51 = vld [vmem:[%s4901_s1 + $0x6f0] ss:$12 sps:$4 sm:$0xff]  }
  0xb1   :  { %2285 = vmatprep.subr.bf16.mxu0 %v3564_v62  ;;  %v431_v62 = vlaneseq }
  0xb3   :  { %3188 = vmatpush3.bf16.msra.mxu1 %v3566_v0  ;;  %v3651_v0 = vld [vmem:[%s4901_s1 + $0x7b8] ss:$12 sps:$4 sm:$0xff]  }
  0xb4   :  { %2286 = vmatpush1.bf16.msra.mxu0 %v3562_v63  ;;  %3189 = vmatprep.subr.bf16.mxu1 %v3570_v2  ;;  %v4572_v63 = vld [vmem:[%s4902_s0 + $0x80] ss:$48 sps:$4 sm:$0xff]  }
  0xb5   :  { %2287 = vmatprep.subr.bf16.mxu0 %v3569_v1  ;;  %v3654_v1 = vld [vmem:[%s4901_s1 + $0x70c] ss:$12 sps:$4 sm:$0xff]   ;;  %v3655_v2 = vld [vmem:[%s4901_s1 + $0x890] ss:$12 sps:$4 sm:$0xff]  }
  0xb7   :  { %3190 = vmatpush3.bf16.msra.mxu1 %v3571_v5  ;;  %v4588_v5 = vld [vmem:[%s4902_s0 + $0x2c] ss:$48 sps:$4 sm:$0xff]  }
  0xb8   :  { %2288 = vmatpush1.bf16.msra.mxu0 %v3567_v3  ;;  %3191 = vmatprep.subr.bf16.mxu1 %v3578_v7  ;;  %v4583_v3 = vshrl.u32 %v431_v62, 7  ;;  %v3656_v7 = vld [vmem:[%s4901_s1 + $0x7d0] ss:$12 sps:$4 sm:$0xff]  }
  0xb9   :  { %2289 = vmatprep.subr.bf16.mxu0 %v3576_v6  ;;  %v3652_v6 = vld [vmem:[%s4901_s1 + $0x708] ss:$12 sps:$4 sm:$0xff]  }
  0xbb   :  { %3192 = vmatpush3.bf16.msra.mxu1 %v3579_v9  ;;  %v3660_v9 = vld [vmem:[%s4901_s1 + $0x8a8] ss:$12 sps:$4 sm:$0xff]  }
  0xbc   :  { %2290 = vmatpush1.bf16.msra.mxu0 %v3574_v8  ;;  %3193 = vmatprep.subr.bf16.mxu1 %v3583_v11  ;;  %v3659_v8 = vld [vmem:[%s4901_s1 + $0x724] ss:$12 sps:$4 sm:$0xff]   ;;  %v437_v11 = vsub.s32 1, %v4583_v3 }
  0xbd   :  { %2291 = vmatprep.subr.bf16.mxu0 %v3582_v10  ;;  %v433_v10 = vsub.s32 0, %v4583_v3 }
  0xbf   :  { %3194 = vmatpush3.bf16.msra.mxu1 %v3584_v13  ;;  %v3661_v13 = vld [vmem:[%s4901_s1 + $0x7e8] ss:$12 sps:$4 sm:$0xff]  }
  0xc0   :  { %2292 = vmatpush1.bf16.msra.mxu0 %v3580_v12  ;;  %3207 = vmatprep.subr.bf16.mxu1 %v3591_v15  ;;  %v3657_v12 = vld [vmem:[%s4901_s1 + $0x720] ss:$12 sps:$4 sm:$0xff]   ;;  %v3664_v15 = vld [vmem:[%s4901_s1 + $0x73c] ss:$12 sps:$4 sm:$0xff]  }
  0xc1   :  { %2314 = vmatprep.subr.bf16.mxu0 %v3590_v14  ;;  %v4615_v14 = vld [vmem:[%s4903_s2] sm:$0x7] }
  0xc2   :  { %2600 = vmatmul.mubr.bf16.vlgmr.msra.gmra.mrb[32].mxu1 %v3585_v16 }
  0xc3   :  { %2294 = vmatmul.mubr.bf16.vlgmr.msra.gmra.mrb[0].mxu0 %v3585_v16  ;;  %3208 = vmatpush3.bf16.msra.mxu1 %v3592_v18  ;;  %v3665_v16 = vld [vmem:[%s4901_s1 + $0x8c0] ss:$12 sps:$4 sm:$0xff]   ;;  %v4631_v18 = vrot.slane %v4615_v14, %v437_v11 }
  0xc4   :  { %2315 = vmatpush1.bf16.msra.mxu0 %v3588_v17  ;;  %3209 = vmatprep.subr.bf16.mxu1 %v3596_v4  ;;  %v4626_v17 = vrot.slane %v4615_v14, %v433_v10  ;;  %v3666_v4 = vld [vmem:[%s4901_s1 + $0x800] ss:$12 sps:$4 sm:$0xff]  }
  0xc5   :  { %2316 = vmatprep.subr.bf16.mxu0 %v3595_v19  ;;  %2607 = vmatprep.mubr.bf16.mxu1 %v3598_v20  ;;  %v3662_v19 = vld [vmem:[%s4901_s1 + $0x738] ss:$12 sps:$4 sm:$0xff]  }
  0xc6   :  { %2303 = vmatprep.mubr.bf16.mxu0 %v3598_v20  ;;  %v3669_v20 = vld [vmem:[%s4901_s1 + $0x754] ss:$12 sps:$4 sm:$0xff]  }
  0xc7   :  { %3210 = vmatpush3.bf16.msra.mxu1 %v3597_v22  ;;  %v3667_v22 = vld [vmem:[%s4901_s1 + $0x750] ss:$12 sps:$4 sm:$0xff]  }
  0xc8   :  { %2317 = vmatpush1.bf16.msra.mxu0 %v3593_v21  ;;  %3211 = vmatprep.subr.bf16.mxu1 %v3604_v24  ;;  %v3670_v21 = vld [vmem:[%s4901_s1 + $0x8d8] ss:$12 sps:$4 sm:$0xff]  }
  0xc9   :  { %2318 = vmatprep.subr.bf16.mxu0 %v3602_v23  ;;  %v3671_v23 = vld [vmem:[%s4901_s1 + $0x818] ss:$12 sps:$4 sm:$0xff]  }
  0xca   :  { %2608 = vmatmul.mubr.bf16.gmra.mrb[36].mxu1 %v3603_v26  ;;  %v3674_v24 = vld [vmem:[%s4901_s1 + $0x76c] ss:$12 sps:$4 sm:$0xff]  }
  0xcb   :  { %2304 = vmatmul.mubr.bf16.gmra.mrb[4].mxu0 %v3603_v26  ;;  %3212 = vmatpush3.bf16.msra.mxu1 %v3605_v27  ;;  %v3672_v26 = vld [vmem:[%s4901_s1 + $0x768] ss:$12 sps:$4 sm:$0xff]   ;;  %v3676_v27 = vld [vmem:[%s4901_s1 + $0x830] ss:$12 sps:$4 sm:$0xff]  }
  0xcc   :  { %2319 = vmatpush1.bf16.msra.mxu0 %v3600_v25  ;;  %3213 = vmatprep.subr.bf16.mxu1 %v3609_v29  ;;  %v3675_v25 = vld [vmem:[%s4901_s1 + $0x8f0] ss:$12 sps:$4 sm:$0xff]   ;;  %v4669_v29 = vld [vmem:[%s4902_s0 + $0x28] ss:$48 sps:$4 sm:$0xff]  }
  0xcd   :  { %2320 = vmatprep.subr.bf16.mxu0 %v3608_v28  ;;  %2648 = vmatprep.mubr.bf16.mxu1 %v3633_v30  ;;  %v3682_v28 = vld [vmem:[%s4901_s1 + $0x784] ss:$12 sps:$4 sm:$0xff]  }
  0xce   :  { %2346 = vmatprep.mubr.bf16.mxu0 %v3633_v30  ;;  %v3680_v30 = vld [vmem:[%s4901_s1 + $0x780] ss:$12 sps:$4 sm:$0xff]  }
  0xcf   :  { %3214 = vmatpush3.bf16.msra.mxu1 %v3610_v32  ;;  %v3685_v32 = vld [vmem:[%s4901_s1 + $0x79c] ss:$12 sps:$4 sm:$0xff]  }
  0xd0   :  { %2321 = vmatpush1.bf16.msra.mxu0 %v3606_v31  ;;  %3215 = vmatprep.subr.bf16.mxu1 %v3614_v34  ;;  %v4677_v31 = vld [vmem:[%s4902_s0 + $0x8c] ss:$48 sps:$4 sm:$0xff]   ;;  %v3690_v34 = vld [vmem:[%s4901_s1 + $0x7b4] ss:$12 sps:$4 sm:$0xff]  }
  0xd1   :  { %2322 = vmatprep.subr.bf16.mxu0 %v3613_v33  ;;  %v3683_v33 = vld [vmem:[%s4901_s1 + $0x798] ss:$12 sps:$4 sm:$0xff]  }
  0xd3   :  { %3216 = vmatpush3.bf16.msra.mxu1 %v3615_v36  ;;  %v3688_v36 = vld [vmem:[%s4901_s1 + $0x7b0] ss:$12 sps:$4 sm:$0xff]  }
  0xd4   :  { %2323 = vmatpush1.bf16.msra.mxu0 %v3611_v35  ;;  %3217 = vmatprep.subr.bf16.mxu1 %v3619_v38  ;;  %v4695_v35 = vld [vmem:[%s4902_s0 + $0x88] ss:$48 sps:$4 sm:$0xff]  }
  0xd5   :  { %2324 = vmatprep.subr.bf16.mxu0 %v3618_v37  ;;  %v3694_v37 = vld [vmem:[%s4901_s1 + $0x7cc] ss:$12 sps:$4 sm:$0xff]   ;;  %v3692_v38 = vld [vmem:[%s4901_s1 + $0x7c8] ss:$12 sps:$4 sm:$0xff]  }
  0xd7   :  { %3218 = vmatpush3.bf16.msra.mxu1 %v3620_v40  ;;  %v3695_v40 = vld [vmem:[%s4901_s1 + $0x7e0] ss:$12 sps:$4 sm:$0xff]  }
  0xd8   :  { %2325 = vmatpush1.bf16.msra.mxu0 %v3616_v39  ;;  %3219 = vmatprep.subr.bf16.mxu1 %v3624_v42  ;;  %v3697_v39 = vld [vmem:[%s4901_s1 + $0x7e4] ss:$12 sps:$4 sm:$0xff]  }
  0xd9   :  { %2326 = vmatprep.subr.bf16.mxu0 %v3623_v41  ;;  %v3700_v41 = vld [vmem:[%s4901_s1 + $0x7fc] ss:$12 sps:$4 sm:$0xff]   ;;  %v3698_v42 = vld [vmem:[%s4901_s1 + $0x7f8] ss:$12 sps:$4 sm:$0xff]  }
  0xdb   :  { %3220 = vmatpush3.bf16.msra.mxu1 %v3625_v44 }
  0xdc   :  { %2327 = vmatpush1.bf16.msra.mxu0 %v3621_v43  ;;  %3221 = vmatprep.subr.bf16.mxu1 %v3629_v46  ;;  %v3703_v43 = vld [vmem:[%s4901_s1 + $0x814] ss:$12 sps:$4 sm:$0xff]  }
  0xdd   :  { %2328 = vmatprep.subr.bf16.mxu0 %v3628_v45 }
  0xdf   :  { %3222 = vmatpush3.bf16.msra.mxu1 %v3630_v48 }
  0xe0   :  { %2329 = vmatpush1.bf16.msra.mxu0 %v3626_v47  ;;  %3235 = vmatprep.subr.bf16.mxu1 %v3637_v50  ;;  %v3701_v47 = vld [vmem:[%s4901_s1 + $0x810] ss:$12 sps:$4 sm:$0xff]   ;;  %v3706_v50 = vld [vmem:[%s4901_s1 + $0x82c] ss:$12 sps:$4 sm:$0xff]  }
  0xe1   :  { %2330 = vmatprep.subr.bf16.mxu0 %v3636_v49 }
  0xe2   :  { %2649 = vmatmul.mubr.bf16.vlgmr.msra.gmra.mrb[40].mxu1 %v4533_v52 }
  0xe3   :  { %3236 = vmatpush3.bf16.msra.mxu1 %v3638_v54  ;;  %2656 = vmatprep.mubr.bf16.mxu1 %v4550_v57 }
  0xe4   :  { %2331 = vmatpush1.bf16.msra.mxu0 %v3634_v53  ;;  %3237 = vmatprep.subr.bf16.mxu1 %v3642_v56  ;;  %v3709_v56 = vld [vmem:[%s4901_s1 + $0x844] ss:$12 sps:$4 sm:$0xff]  }
  0xe5   :  { %2332 = vmatprep.subr.bf16.mxu0 %v3641_v55  ;;  %v3704_v55 = vld [vmem:[%s4901_s1 + $0x828] ss:$12 sps:$4 sm:$0xff]  }
  0xe7   :  { %3238 = vmatpush3.bf16.msra.mxu1 %v3643_v59 }
  0xe8   :  { %2333 = vmatpush1.bf16.msra.mxu0 %v3639_v58  ;;  %3239 = vmatprep.subr.bf16.mxu1 %v3650_v61 }
  0xe9   :  { %2334 = vmatprep.subr.bf16.mxu0 %v3648_v60  ;;  %v3707_v60 = vld [vmem:[%s4901_s1 + $0x840] ss:$12 sps:$4 sm:$0xff]  }
  0xea   :  { %2657 = vmatmul.mubr.bf16.gmra.mrb[44].mxu1 %v4572_v63 }
  0xeb   :  { %3240 = vmatpush3.bf16.msra.mxu1 %v3651_v0  ;;  %2697 = vmatprep.mubr.bf16.mxu1 %v4588_v5 }
  0xec   :  { %2335 = vmatpush1.bf16.msra.mxu0 %v3646_v51  ;;  %3241 = vmatprep.subr.bf16.mxu1 %v3655_v2  ;;  %v3712_v51 = vld [vmem:[%s4901_s1 + $0x85c] ss:$12 sps:$4 sm:$0xff]   ;;  %v3710_v2 = vld [vmem:[%s4901_s1 + $0x858] ss:$12 sps:$4 sm:$0xff]  }
  0xed   :  { %2336 = vmatprep.subr.bf16.mxu0 %v3654_v1 }
  0xef   :  { %3242 = vmatpush3.bf16.msra.mxu1 %v3656_v7  ;;  %v3718_v7 = vld [vmem:[%s4901_s1 + $0x88c] ss:$12 sps:$4 sm:$0xff]  }
  0xf0   :  { %2337 = vmatpush1.bf16.msra.mxu0 %v3652_v6  ;;  %3243 = vmatprep.subr.bf16.mxu1 %v3660_v9  ;;  %v3713_v6 = vld [vmem:[%s4901_s1 + $0x870] ss:$12 sps:$4 sm:$0xff]  }
  0xf1   :  { %2338 = vmatprep.subr.bf16.mxu0 %v3659_v8  ;;  %v3716_v8 = vld [vmem:[%s4901_s1 + $0x888] ss:$12 sps:$4 sm:$0xff]   ;;  %v3721_v9 = vld [vmem:[%s4901_s1 + $0x8a4] ss:$12 sps:$4 sm:$0xff]  }
  0xf3   :  { %3244 = vmatpush3.bf16.msra.mxu1 %v3661_v13  ;;  %v3724_v13 = vld [vmem:[%s4901_s1 + $0x8bc] ss:$12 sps:$4 sm:$0xff]  }
  0xf4   :  { %2339 = vmatpush1.bf16.msra.mxu0 %v3657_v12  ;;  %3245 = vmatprep.subr.bf16.mxu1 %v3665_v16  ;;  %v3719_v12 = vld [vmem:[%s4901_s1 + $0x8a0] ss:$12 sps:$4 sm:$0xff]  }
  0xf5   :  { %2340 = vmatprep.subr.bf16.mxu0 %v3664_v15  ;;  %v3722_v15 = vld [vmem:[%s4901_s1 + $0x8b8] ss:$12 sps:$4 sm:$0xff]   ;;  %v3727_v16 = vld [vmem:[%s4901_s1 + $0x8d4] ss:$12 sps:$4 sm:$0xff]  }
  0xf7   :  { %3246 = vmatpush3.bf16.msra.mxu1 %v3666_v4 }
  0xf8   :  { %2341 = vmatpush1.bf16.msra.mxu0 %v3662_v19  ;;  %3247 = vmatprep.subr.bf16.mxu1 %v3670_v21  ;;  %v3725_v19 = vld [vmem:[%s4901_s1 + $0x8d0] ss:$12 sps:$4 sm:$0xff]   ;;  %v3730_v21 = vld [vmem:[%s4901_s1 + $0x8ec] ss:$12 sps:$4 sm:$0xff]  }
  0xf9   :  { %2342 = vmatprep.subr.bf16.mxu0 %v3669_v20 }
  0xfb   :  { %3248 = vmatpush3.bf16.msra.mxu1 %v3671_v23 }
  0xfc   :  { %2343 = vmatpush1.bf16.msra.mxu0 %v3667_v22  ;;  %3249 = vmatprep.subr.bf16.mxu1 %v3675_v25 }
  0xfd   :  { %2344 = vmatprep.subr.bf16.mxu0 %v3674_v24  ;;  %v3728_v24 = vld [vmem:[%s4901_s1 + $0x8e8] ss:$12 sps:$4 sm:$0xff]  }
  0xff   :  { %3250 = vmatpush3.bf16.msra.mxu1 %v3676_v27 }
 0x100   :  { %2345 = vmatpush1.bf16.msra.mxu0 %v3672_v26 }
 0x101   :  { %2367 = vmatprep.subr.bf16.mxu0 %v3682_v28 }
 0x102   :  { %2698 = vmatmul.mubr.bf16.vlgmr.msra.gmra.mrb[48].mxu1 %v4669_v29 }
 0x103   :  { %2347 = vmatmul.mubr.bf16.vlgmr.msra.gmra.mrb[0].mxu0 %v4533_v52  ;;  %2705 = vmatprep.mubr.bf16.mxu1 %v4677_v31 }
 0x104   :  { %2368 = vmatpush1.bf16.msra.mxu0 %v3680_v30  ;;  %2356 = vmatprep.mubr.bf16.mxu0 %v4550_v57 }
 0x105   :  { %2369 = vmatprep.subr.bf16.mxu0 %v3685_v32 }
 0x108   :  { %2370 = vmatpush1.bf16.msra.mxu0 %v3683_v33  ;;  %v441_v33 = vsub.s32 2, %v4583_v3 }
 0x109   :  { %2371 = vmatprep.subr.bf16.mxu0 %v3690_v34 }
 0x10a   :  { %2706 = vmatmul.mubr.bf16.gmra.mrb[52].mxu1 %v4695_v35  ;;  %v442_v34 = vrot.slane %v4615_v14, %v441_v33 }
 0x10b   :  { %2357 = vmatmul.mubr.bf16.gmra.mrb[4].mxu0 %v4572_v63 }
 0x10c   :  { %2372 = vmatpush1.bf16.msra.mxu0 %v3688_v36  ;;  %2399 = vmatprep.mubr.bf16.mxu0 %v4588_v5  ;;  %v3715_v5 = vld [vmem:[%s4901_s1 + $0x874] ss:$12 sps:$4 sm:$0xff]  }
 0x10d   :  { %2373 = vmatprep.subr.bf16.mxu0 %v3694_v37 }
 0x110   :  { %2374 = vmatpush1.bf16.msra.mxu0 %v3692_v38 }
 0x111   :  { %2375 = vmatprep.subr.bf16.mxu0 %v3697_v39 }
 0x114   :  { %2376 = vmatpush1.bf16.msra.mxu0 %v3695_v40 }
 0x115   :  { %2377 = vmatprep.subr.bf16.mxu0 %v3700_v41  ;;  %v2136_v44 = vpop.f32.mrb[0].mxu1 }
 0x116   :  { %v4725_v45 = vadd.f32 %v2136_v44, %v4626_v17  ;;  %v2138_v46 = vpop.f32.mrb[1].mxu1 }
 0x117   :  { %v4731_v48 = vadd.f32 %v2138_v46, %v4631_v18  ;;  %v2140_v49 = vpop.f32.mrb[2].mxu1 }
 0x118   :  { %2378 = vmatpush1.bf16.msra.mxu0 %v3698_v42  ;;  %v4737_v52 = vadd.f32 %v2140_v49, %v4626_v17  ;;  %v2142_v53 = vpop.f32.mrb[3].mxu1 }
 0x119   :  { %2379 = vmatprep.subr.bf16.mxu0 %v3703_v43  ;;  %v4740_v54 = vadd.f32 %v2142_v53, %v4631_v18 }
 0x11c   :  { %2380 = vmatpush1.bf16.msra.mxu0 %v3701_v47 }
 0x11d   :  { %2381 = vmatprep.subr.bf16.mxu0 %v3706_v50  ;;  %v2146_v57 = vpop.f32.mrb[4].mxu1 }
 0x11e   :  { %v4749_v58 = vadd.f32 %v2146_v57, %v4626_v17  ;;  %v2148_v59 = vpop.f32.mrb[5].mxu1 }
 0x11f   :  { %v4755_v61 = vadd.f32 %v2148_v59, %v4631_v18  ;;  %v2150_v62 = vpop.f32.mrb[6].mxu1 }
 0x120   :  { %2382 = vmatpush1.bf16.msra.mxu0 %v3704_v55  ;;  %v4761_v63 = vadd.f32 %v2150_v62, %v4626_v17  ;;  %v2152_v0 = vpop.f32.mrb[7].mxu1 }
 0x121   :  { %2383 = vmatprep.subr.bf16.mxu0 %v3709_v56  ;;  %v4764_v1 = vadd.f32 %v2152_v0, %v4631_v18 }
 0x124   :  { %2384 = vmatpush1.bf16.msra.mxu0 %v3707_v60 }
 0x125   :  { %2385 = vmatprep.subr.bf16.mxu0 %v3712_v51 }
 0x128   :  { %2386 = vmatpush1.bf16.msra.mxu0 %v3710_v2 }
 0x129   :  { %2387 = vmatprep.subr.bf16.mxu0 %v3715_v5 }
 0x12c   :  { %2388 = vmatpush1.bf16.msra.mxu0 %v3713_v6 }
 0x12d   :  { %2389 = vmatprep.subr.bf16.mxu0 %v3718_v7 }
 0x130   :  { %2390 = vmatpush1.bf16.msra.mxu0 %v3716_v8 }
 0x131   :  { %2391 = vmatprep.subr.bf16.mxu0 %v3721_v9 }
 0x134   :  { %2392 = vmatpush1.bf16.msra.mxu0 %v3719_v12 }
 0x135   :  { %2393 = vmatprep.subr.bf16.mxu0 %v3724_v13  ;;  %v3111_v17 = vpop.f32.mrb[8].mxu1 }
 0x136   :  { %v3112_v18 = vpop.f32.mrb[9].mxu1 }
 0x137   :  { %v3113_v4 = vadd.f32 %v3112_v18, %v3111_v17  ;;  %v3114_v20 = vpop.f32.mrb[10].mxu1 }
 0x138   :  { %2394 = vmatpush1.bf16.msra.mxu0 %v3722_v15  ;;  %v3115_v22 = vpop.f32.mrb[11].mxu1 }
 0x139   :  { %2395 = vmatprep.subr.bf16.mxu0 %v3727_v16  ;;  %v3116_v23 = vadd.f32 %v3115_v22, %v3114_v20  ;;  %v2455_v36 = vadd.f32 %v3113_v4, %v442_v34 }
 0x13b   :  { %v2458_v39 = vadd.f32 %v3116_v23, %v442_v34 }
 0x13c   :  { %2396 = vmatpush1.bf16.msra.mxu0 %v3725_v19 }
 0x13d   :  { %2397 = vmatprep.subr.bf16.mxu0 %v3730_v21  ;;  %v3117_v25 = vpop.f32.mrb[12].mxu1 }
 0x13e   :  { %v3118_v26 = vpop.f32.mrb[13].mxu1 }
 0x13f   :  { %v3119_v27 = vadd.f32 %v3118_v26, %v3117_v25  ;;  %v3120_v28 = vpop.f32.mrb[14].mxu1 }
 0x140   :  { %2398 = vmatpush1.bf16.msra.mxu0 %v3728_v24  ;;  %v3121_v30 = vpop.f32.mrb[15].mxu1 }
 0x141   :  { %v3122_v32 = vadd.f32 %v3121_v30, %v3120_v28  ;;  %v2463_v46 = vadd.f32 %v3119_v27, %v442_v34 }
 0x143   :  { %2400 = vmatmul.mubr.bf16.vlgmr.msra.gmra.mrb[0].mxu0 %v4669_v29 }
 0x144   :  { %2409 = vmatprep.mubr.bf16.mxu0 %v4677_v31 }
 0x14b   :  { %2410 = vmatmul.mubr.bf16.gmra.mrb[4].mxu0 %v4695_v35  ;;  %v2466_v35 = vadd.f32 %v3122_v32, %v442_v34 }
 0x155   :  { %v3139_v37 = vpop.f32.mrb[16].mxu1 }
 0x156   :  { %v3140_v38 = vpop.f32.mrb[17].mxu1 }
 0x157   :  { %v3141_v40 = vadd.f32 %v3140_v38, %v3139_v37  ;;  %v3142_v41 = vpop.f32.mrb[18].mxu1 }
 0x158   :  { %v3143_v42 = vpop.f32.mrb[19].mxu1 }
 0x159   :  { %v2504_v43 = vadd.f32 %v3141_v40, %v2455_v36  ;;  %v3144_v44 = vadd.f32 %v3143_v42, %v3142_v41 }
 0x15b   :  { %v2507_v29 = vadd.f32 %v3144_v44, %v2458_v39 }
 0x15d   :  { %v3145_v31 = vpop.f32.mrb[20].mxu1 }
 0x15e   :  { %v3146_v47 = vpop.f32.mrb[21].mxu1 }
 0x15f   :  { %v3147_v49 = vadd.f32 %v3146_v47, %v3145_v31  ;;  %v3148_v50 = vpop.f32.mrb[22].mxu1 }
 0x160   :  { %v3149_v53 = vpop.f32.mrb[23].mxu1 }
 0x161   :  { %v2512_v55 = vadd.f32 %v3147_v49, %v2463_v46  ;;  %v3150_v56 = vadd.f32 %v3149_v53, %v3148_v50  ;;  %v2726_v53 = vld [vmem:[%s4904_s3] sm:$0x7] }
 0x163   :  { %v2515_v14 = vadd.f32 %v3150_v56, %v2466_v35 }
 0x175   :  { %v3167_v57 = vpop.f32.mrb[24].mxu1 }
 0x176   :  { %v3168_v59 = vpop.f32.mrb[25].mxu1 }
 0x177   :  { %v3169_v60 = vadd.f32 %v3168_v59, %v3167_v57  ;;  %v3170_v62 = vpop.f32.mrb[26].mxu1  ;;  %v2739_v57 = vrot.slane %v2726_v53, %v441_v33 }
 0x178   :  { %v3171_v51 = vpop.f32.mrb[27].mxu1 }
 0x179   :  { %v2553_v0 = vadd.f32 %v3169_v60, %v2504_v43  ;;  %v3172_v2 = vadd.f32 %v3171_v51, %v3170_v62 }
 0x17b   :  { %v2556_v5 = vadd.f32 %v3172_v2, %v2507_v29 }
 0x17d   :  { %v3173_v6 = vpop.f32.mrb[28].mxu1 }
 0x17e   :  { %v3174_v7 = vpop.f32.mrb[29].mxu1 }
 0x17f   :  { %v3175_v8 = vadd.f32 %v3174_v7, %v3173_v6  ;;  %v3176_v9 = vpop.f32.mrb[30].mxu1  ;;  %v2719_v6 = vld [vmem:[%s4905_s4 + $0x28] sm:$0xff] }
 0x180   :  { %v3177_v12 = vpop.f32.mrb[31].mxu1 }
 0x181   :  { %v2561_v13 = vadd.f32 %v3175_v8, %v2512_v55  ;;  %v3178_v15 = vadd.f32 %v3177_v12, %v3176_v9 }
 0x183   :  { %v2564_v16 = vadd.f32 %v3178_v15, %v2515_v14 }
 0x195   :  { %v3195_v17 = vpop.f32.mrb[32].mxu1 }
 0x196   :  { %v3196_v18 = vpop.f32.mrb[33].mxu1 }
 0x197   :  { %v3197_v19 = vadd.f32 %v3196_v18, %v3195_v17  ;;  %v3198_v4 = vpop.f32.mrb[34].mxu1 }
 0x198   :  { %v3199_v20 = vpop.f32.mrb[35].mxu1 }
 0x199   :  { %v2602_v21 = vadd.f32 %v3197_v19, %v2553_v0  ;;  %v3200_v22 = vadd.f32 %v3199_v20, %v3198_v4  ;;  %v2716_v0 = vld [vmem:[%s4905_s4 + $0x10] sm:$0xff]  ;;  %v2722_v19 = vld [vmem:[%s4905_s4 + $0x40] sm:$0xff] }
 0x19b   :  { %v2605_v23 = vadd.f32 %v3200_v22, %v2556_v5 }
 0x19d   :  { %v3201_v24 = vpop.f32.mrb[36].mxu1 }
 0x19e   :  { %v3202_v25 = vpop.f32.mrb[37].mxu1 }
 0x19f   :  { %v3203_v26 = vadd.f32 %v3202_v25, %v3201_v24  ;;  %v3204_v27 = vpop.f32.mrb[38].mxu1  ;;  %v2731_v25 = vrot.slane %v2726_v53, %v433_v10 }
 0x1a0   :  { %v3205_v28 = vpop.f32.mrb[39].mxu1 }
 0x1a1   :  { %v2610_v30 = vadd.f32 %v3203_v26, %v2561_v13  ;;  %v3206_v32 = vadd.f32 %v3205_v28, %v3204_v27  ;;  %v2735_v27 = vrot.slane %v2726_v53, %v437_v11  ;;  %v2717_v11 = vld [vmem:[%s4905_s4 + $0x18] sm:$0xff] }
 0x1a3   :  { %v2613_v34 = vadd.f32 %v3206_v32, %v2564_v16  ;;  %v2714_v32 = vld [vmem:[%s4905_s4] sm:$0xff] }
 0x1b5   :  { %v3223_v36 = vpop.f32.mrb[40].mxu1 }
 0x1b6   :  { %v3224_v37 = vpop.f32.mrb[41].mxu1 }
 0x1b7   :  { %v3225_v38 = vadd.f32 %v3224_v37, %v3223_v36  ;;  %v3226_v39 = vpop.f32.mrb[42].mxu1 }
 0x1b8   :  { %v3227_v40 = vpop.f32.mrb[43].mxu1 }
 0x1b9   :  { %v2651_v41 = vadd.f32 %v3225_v38, %v2602_v21  ;;  %v3228_v42 = vadd.f32 %v3227_v40, %v3226_v39  ;;  %v2725_v21 = vld [vmem:[%s4905_s4 + $0x58] sm:$0xff]  ;;  %v2715_v38 = vld [vmem:[%s4905_s4 + $0x8] sm:$0xff] }
 0x1bb   :  { %v2654_v43 = vadd.f32 %v3228_v42, %v2605_v23 }
 0x1bd   :  { %v3229_v44 = vpop.f32.mrb[44].mxu1 }
 0x1be   :  { %v3230_v29 = vpop.f32.mrb[45].mxu1 }
 0x1bf   :  { %v3231_v46 = vadd.f32 %v3230_v29, %v3229_v44  ;;  %v3232_v31 = vpop.f32.mrb[46].mxu1 }
 0x1c0   :  { %v3233_v47 = vpop.f32.mrb[47].mxu1 }
 0x1c1   :  { %v2659_v35 = vadd.f32 %v3231_v46, %v2610_v30  ;;  %v3234_v49 = vadd.f32 %v3233_v47, %v3232_v31  ;;  %v2720_v31 = vld [vmem:[%s4905_s4 + $0x30] sm:$0xff] }
 0x1c3   :  { %v2662_v50 = vadd.f32 %v3234_v49, %v2613_v34 }
 0x1d5   :  { %v3251_v55 = vpop.f32.mrb[48].mxu1 }
 0x1d6   :  { %v3252_v56 = vpop.f32.mrb[49].mxu1 }
 0x1d7   :  { %v3253_v14 = vadd.f32 %v3252_v56, %v3251_v55  ;;  %v3254_v59 = vpop.f32.mrb[50].mxu1  ;;  %v2723_v56 = vld [vmem:[%s4905_s4 + $0x48] sm:$0xff] }
 0x1d8   :  { %v3255_v60 = vpop.f32.mrb[51].mxu1 }
 0x1d9   :  { %v2700_v62 = vadd.f32 %v3253_v14, %v2651_v41  ;;  %v3256_v51 = vadd.f32 %v3255_v60, %v3254_v59 }
 0x1db   :  { %v2745_v2 = vmul.f32 %v2739_v57, %v2700_v62  ;;  %v2703_v5 = vadd.f32 %v3256_v51, %v2654_v43 }
 0x1dd   :  { %v2757_v7 = vadd.f32 %v2745_v2, %v2716_v0  ;;  %v2748_v8 = vmul.f32 %v2739_v57, %v2703_v5  ;;  %v3257_v9 = vpop.f32.mrb[52].mxu1 }
 0x1de   :  { %v3258_v12 = vpop.f32.mrb[53].mxu1 }
 0x1df   :  { %2769 = vst [vmem:[%s4906_s5 + $0x10] sm:$0xff] %v2757_v7  ;;  %v2760_v33 = vadd.f32 %v2748_v8, %v2719_v6  ;;  %v3259_v13 = vadd.f32 %v3258_v12, %v3257_v9  ;;  %v3260_v15 = vpop.f32.mrb[54].mxu1 }
 0x1e0   :  { %v3261_v16 = vpop.f32.mrb[55].mxu1 }
 0x1e1   :  { %2772 = vst [vmem:[%s4906_s5 + $0x28] sm:$0xff] %v2760_v33  ;;  %v2708_v17 = vadd.f32 %v3259_v13, %v2659_v35  ;;  %v3262_v18 = vadd.f32 %v3261_v16, %v3260_v15 }
 0x1e3   :  { %v2751_v4 = vmul.f32 %v2739_v57, %v2708_v17  ;;  %v2711_v20 = vadd.f32 %v3262_v18, %v2662_v50  ;;  %v2721_v50 = vld [vmem:[%s4905_s4 + $0x38] sm:$0xff] }
 0x1e5   :  { %v2763_v22 = vadd.f32 %v2751_v4, %v2722_v19  ;;  %v2754_v23 = vmul.f32 %v2739_v57, %v2711_v20 }
 0x1e7   :  { %2775 = vst [vmem:[%s4906_s5 + $0x40] sm:$0xff] %v2763_v22  ;;  %v2766_v24 = vadd.f32 %v2754_v23, %v2725_v21 }
 0x1e9   :  { %2778 = vst [vmem:[%s4906_s5 + $0x58] sm:$0xff] %v2766_v24 }
 0x216   :  { %v2401_v26 = vpop.f32.mrb[0].mxu0 }
 0x217   :  { %v3264_v28 = vadd.f32 %v2401_v26, %v4725_v45  ;;  %v2403_v30 = vpop.f32.mrb[1].mxu0 }
 0x218   :  { %v3266_v34 = vadd.f32 %v2403_v30, %v4731_v48  ;;  %v2405_v36 = vpop.f32.mrb[2].mxu0  ;;  %v2718_v48 = vld [vmem:[%s4905_s4 + $0x20] sm:$0xff] }
 0x219   :  { %v2743_v37 = vmul.f32 %v3264_v28, %v2731_v25  ;;  %v3268_v10 = vadd.f32 %v2405_v36, %v4737_v52  ;;  %v2407_v39 = vpop.f32.mrb[3].mxu0 }
 0x21a   :  { %v2744_v3 = vmul.f32 %v3266_v34, %v2735_v27  ;;  %v3270_v45 = vadd.f32 %v2407_v39, %v4740_v54 }
 0x21b   :  { %v2755_v40 = vadd.f32 %v2743_v37, %v2714_v32  ;;  %v2746_v41 = vmul.f32 %v3268_v10, %v2731_v25 }
 0x21c   :  { %v2756_v42 = vadd.f32 %v2744_v3, %v2715_v38  ;;  %v2747_v43 = vmul.f32 %v3270_v45, %v2735_v27 }
 0x21d   :  { %2767 = vst [vmem:[%s4906_s5] sm:$0xff] %v2755_v40  ;;  %v2758_v52 = vadd.f32 %v2746_v41, %v2717_v11 }
 0x21e   :  { %2768 = vst [vmem:[%s4906_s5 + $0x8] sm:$0xff] %v2756_v42  ;;  %v2759_v44 = vadd.f32 %v2747_v43, %v2718_v48  ;;  %v2411_v29 = vpop.f32.mrb[4].mxu0 }
 0x21f   :  { %2770 = vst [vmem:[%s4906_s5 + $0x18] sm:$0xff] %v2758_v52  ;;  %v3272_v54 = vadd.f32 %v2411_v29, %v4749_v58  ;;  %v2413_v46 = vpop.f32.mrb[5].mxu0 }
 0x220   :  { %2771 = vst [vmem:[%s4906_s5 + $0x20] sm:$0xff] %v2759_v44  ;;  %v3274_v47 = vadd.f32 %v2413_v46, %v4755_v61  ;;  %v2415_v35 = vpop.f32.mrb[6].mxu0  ;;  %v2724_v61 = vld [vmem:[%s4905_s4 + $0x50] sm:$0xff] }
 0x221   :  { %v2749_v49 = vmul.f32 %v3272_v54, %v2731_v25  ;;  %v3276_v53 = vadd.f32 %v2415_v35, %v4761_v63  ;;  %v2417_v58 = vpop.f32.mrb[7].mxu0 }
 0x222   :  { %v2750_v55 = vmul.f32 %v3274_v47, %v2735_v27  ;;  %v3278_v14 = vadd.f32 %v2417_v58, %v4764_v1 }
 0x223   :  { %v2761_v57 = vadd.f32 %v2749_v49, %v2720_v31  ;;  %v2752_v59 = vmul.f32 %v3276_v53, %v2731_v25 }
 0x224   :  { %v2762_v60 = vadd.f32 %v2750_v55, %v2721_v50  ;;  %v2753_v62 = vmul.f32 %v3278_v14, %v2735_v27 }
 0x225   :  { %2773 = vst [vmem:[%s4906_s5 + $0x30] sm:$0xff] %v2761_v57  ;;  %v2764_v63 = vadd.f32 %v2752_v59, %v2723_v56 }
 0x226   :  { %2774 = vst [vmem:[%s4906_s5 + $0x38] sm:$0xff] %v2762_v60  ;;  %v2765_v51 = vadd.f32 %v2753_v62, %v2724_v61 }
 0x227   :  { %2776 = vst [vmem:[%s4906_s5 + $0x48] sm:$0xff] %v2764_v63 }
 0x228   :  { %2777 = vst [vmem:[%s4906_s5 + $0x50] sm:$0xff] %v2765_v51 }

// kernel: dino_v2_forward.43
= control target key start
LH: loop header
LB: loop body
LE: loop exit
PB: predicated region body
PF: predicated region fallthrough
CT: control target
= control target key end

     0   :  { %s8763_s1 = inlined_call_operand.vmem [shape: bf16[1536,384], index: 1, kind: input, shape index: {}]   ;;  %s8764_s0 = inlined_call_operand.vmem [shape: bf16[32,1536], index: 0, kind: input, shape index: {}]   ;;  %s8765_s2 = inlined_call_operand.vmem [shape: f32[1,384], index: 2, kind: input, shape index: {}]   ;;  %s8766_s3 = inlined_call_operand.vmem [shape: f32[1,384], index: 3, kind: input, shape index: {}]   ;;  %s8767_s4 = inlined_call_operand.vmem [shape: f32[32,384], index: 4, kind: input, shape index: {}]   ;;  %s8768_s9 = inlined_call_operand.vmem [shape: f32[32,384], index: 9, kind: output, shape index: {0}]   ;;  %s8769_s7 = inlined_call_operand.vmem [shape: bf16[384,1152], index: 7, kind: input, shape index: {}]   ;;  %s8770_s5 = inlined_call_operand.vmem [shape: f32[1,384], index: 5, kind: input, shape index: {}]   ;;  %s8771_s6 = inlined_call_operand.vmem [shape: f32[1,384], index: 6, kind: input, shape index: {}]   ;;  %s8772_s8 = inlined_call_operand.vmem [shape: f32[1,1152], index: 8, kind: input, shape index: {}]   ;;  %s8773_s10 = inlined_call_operand.vmem [shape: bf16[32,1152], index: 10, kind: output, shape index: {1}]  }
   0x1   :  { %v5905_v0 = vld [vmem:[%s8763_s1 + $0x4] ss:$12 sps:$4 sm:$0xff]   ;;  %v5907_v1 = vld [vmem:[%s8763_s1] ss:$12 sps:$4 sm:$0xff]   ;;  %v5908_v2 = vld [vmem:[%s8763_s1 + $0x1c] ss:$12 sps:$4 sm:$0xff]  }
   0x2   :  { %2128 = vmatprep.subr.bf16.mxu0 %v5905_v0  ;;  %v5910_v3 = vld [vmem:[%s8763_s1 + $0x18] ss:$12 sps:$4 sm:$0xff]   ;;  %v5911_v4 = vld [vmem:[%s8763_s1 + $0x34] ss:$12 sps:$4 sm:$0xff]   ;;  %v5913_v5 = vld [vmem:[%s8763_s1 + $0x30] ss:$12 sps:$4 sm:$0xff]  }
   0x3   :  { %2129 = vmatpush1.bf16.msra.mxu0 %v5907_v1  ;;  %v5914_v6 = vld [vmem:[%s8763_s1 + $0x4c] ss:$12 sps:$4 sm:$0xff]   ;;  %v5916_v7 = vld [vmem:[%s8763_s1 + $0x48] ss:$12 sps:$4 sm:$0xff]   ;;  %v5917_v8 = vld [vmem:[%s8763_s1 + $0x64] ss:$12 sps:$4 sm:$0xff]  }
   0x4   :  { %2130 = vmatprep.subr.bf16.mxu0 %v5908_v2  ;;  %v5919_v9 = vld [vmem:[%s8763_s1 + $0x60] ss:$12 sps:$4 sm:$0xff]   ;;  %v5920_v10 = vld [vmem:[%s8763_s1 + $0x7c] ss:$12 sps:$4 sm:$0xff]   ;;  %v5922_v13 = vld [vmem:[%s8763_s1 + $0x78] ss:$12 sps:$4 sm:$0xff]  }
   0x5   :  { %v5937_v11 = vld [vmem:[%s8763_s1 + $0xc8] ss:$12 sps:$4 sm:$0xff]   ;;  %v5942_v14 = vld [vmem:[%s8763_s1 + $0xe0] ss:$12 sps:$4 sm:$0xff]   ;;  %v5947_v17 = vld [vmem:[%s8763_s1 + $0xf8] ss:$12 sps:$4 sm:$0xff]  }
   0x6   :  { %v5939_v12 = vld [vmem:[%s8763_s1 + $0x8] ss:$12 sps:$4 sm:$0xff]   ;;  %5566 = vmatprep.subr.bf16.mxu1 %v5937_v11  ;;  %v5944_v15 = vld [vmem:[%s8763_s1 + $0x20] ss:$12 sps:$4 sm:$0xff]   ;;  %v5925_v18 = vld [vmem:[%s8763_s1 + $0x90] ss:$12 sps:$4 sm:$0xff]  }
   0x7   :  { %2131 = vmatpush1.bf16.msra.mxu0 %v5910_v3  ;;  %5567 = vmatpush3.bf16.msra.mxu1 %v5939_v12  ;;  %v5923_v16 = vld [vmem:[%s8763_s1 + $0x94] ss:$12 sps:$4 sm:$0xff]   ;;  %v5949_v19 = vld [vmem:[%s8763_s1 + $0x38] ss:$12 sps:$4 sm:$0xff]   ;;  %v5952_v21 = vld [vmem:[%s8763_s1 + $0x110] ss:$12 sps:$4 sm:$0xff]  }
   0x8   :  { %2132 = vmatprep.subr.bf16.mxu0 %v5911_v4  ;;  %5568 = vmatprep.subr.bf16.mxu1 %v5942_v14  ;;  %v5926_v20 = vld [vmem:[%s8763_s1 + $0xac] ss:$12 sps:$4 sm:$0xff]   ;;  %v5954_v22 = vld [vmem:[%s8763_s1 + $0x50] ss:$12 sps:$4 sm:$0xff]   ;;  %v5928_v23 = vld [vmem:[%s8763_s1 + $0xa8] ss:$12 sps:$4 sm:$0xff]  }
   0x9   :  { %v5929_v24 = vld [vmem:[%s8763_s1 + $0xc4] ss:$12 sps:$4 sm:$0xff]   ;;  %v5957_v25 = vld [vmem:[%s8763_s1 + $0x128] ss:$12 sps:$4 sm:$0xff]   ;;  %v5931_v26 = vld [vmem:[%s8763_s1 + $0xc0] ss:$12 sps:$4 sm:$0xff]  }
   0xa   :  { %v5959_v27 = vld [vmem:[%s8763_s1 + $0x68] ss:$12 sps:$4 sm:$0xff]   ;;  %v5962_v28 = vld [vmem:[%s8763_s1 + $0x140] ss:$12 sps:$4 sm:$0xff]   ;;  %v5934_v32 = vld [vmem:[%s8763_s1 + $0xd8] ss:$12 sps:$4 sm:$0xff]  }
   0xb   :  { %2133 = vmatpush1.bf16.msra.mxu0 %v5913_v5  ;;  %5569 = vmatpush3.bf16.msra.mxu1 %v5944_v15  ;;  %v5932_v29 = vld [vmem:[%s8763_s1 + $0xdc] ss:$12 sps:$4 sm:$0xff]   ;;  %v5964_v30 = vld [vmem:[%s8763_s1 + $0x80] ss:$12 sps:$4 sm:$0xff]   ;;  %v5967_v31 = vld [vmem:[%s8764_s0 + $0x4] ss:$48 sps:$4 sm:$0xff]  }
   0xc   :  { %2134 = vmatprep.subr.bf16.mxu0 %v5914_v6  ;;  %5570 = vmatprep.subr.bf16.mxu1 %v5947_v17  ;;  %v5935_v33 = vld [vmem:[%s8763_s1 + $0xf4] ss:$12 sps:$4 sm:$0xff]   ;;  %v5971_v34 = vld [vmem:[%s8763_s1 + $0x158] ss:$12 sps:$4 sm:$0xff]   ;;  %v5938_v35 = vld [vmem:[%s8763_s1 + $0xf0] ss:$12 sps:$4 sm:$0xff]  }
   0xd   :  { %2160 = vmatprep.mubr.bf16.mxu0 %v5967_v31  ;;  %2478 = vmatprep.mubr.bf16.mxu1 %v5967_v31  ;;  %v5972_v36 = vld [vmem:[%s8763_s1 + $0x98] ss:$12 sps:$4 sm:$0xff]   ;;  %v5976_v38 = vld [vmem:[%s8763_s1 + $0x170] ss:$12 sps:$4 sm:$0xff]   ;;  %v5943_v39 = vld [vmem:[%s8763_s1 + $0x108] ss:$12 sps:$4 sm:$0xff]  }
   0xe   :  { %v5940_v37 = vld [vmem:[%s8763_s1 + $0x10c] ss:$12 sps:$4 sm:$0xff]   ;;  %v5977_v40 = vld [vmem:[%s8763_s1 + $0xb0] ss:$12 sps:$4 sm:$0xff]   ;;  %v5981_v41 = vld [vmem:[%s8763_s1 + $0x248] ss:$12 sps:$4 sm:$0xff]  }
   0xf   :  { %2135 = vmatpush1.bf16.msra.mxu0 %v5916_v7  ;;  %5571 = vmatpush3.bf16.msra.mxu1 %v5949_v19  ;;  %v5945_v42 = vld [vmem:[%s8763_s1 + $0x124] ss:$12 sps:$4 sm:$0xff]   ;;  %v5948_v43 = vld [vmem:[%s8763_s1 + $0x120] ss:$12 sps:$4 sm:$0xff]   ;;  %v5982_v45 = vld [vmem:[%s8763_s1 + $0x188] ss:$12 sps:$4 sm:$0xff]  }
  0x10   :  { %2136 = vmatprep.subr.bf16.mxu0 %v5917_v8  ;;  %5572 = vmatprep.subr.bf16.mxu1 %v5952_v21  ;;  %v5965_v44 = vld [vmem:[%s8764_s0] ss:$48 sps:$4 sm:$0xff]   ;;  %v5950_v47 = vld [vmem:[%s8763_s1 + $0x13c] ss:$12 sps:$4 sm:$0xff]   ;;  %v5953_v48 = vld [vmem:[%s8763_s1 + $0x138] ss:$12 sps:$4 sm:$0xff]  }
  0x11   :  { %v5986_v46 = vld [vmem:[%s8763_s1 + $0x260] ss:$12 sps:$4 sm:$0xff]   ;;  %v5991_v50 = vld [vmem:[%s8763_s1 + $0x278] ss:$12 sps:$4 sm:$0xff]   ;;  %v5958_v53 = vld [vmem:[%s8763_s1 + $0x150] ss:$12 sps:$4 sm:$0xff]  }
  0x12   :  { %v5987_v49 = vld [vmem:[%s8763_s1 + $0x1a0] ss:$12 sps:$4 sm:$0xff]   ;;  %v5992_v52 = vld [vmem:[%s8763_s1 + $0x1b8] ss:$12 sps:$4 sm:$0xff]   ;;  %v5996_v54 = vld [vmem:[%s8763_s1 + $0x290] ss:$12 sps:$4 sm:$0xff]  }
  0x13   :  { %2137 = vmatpush1.bf16.msra.mxu0 %v5919_v9  ;;  %5573 = vmatpush3.bf16.msra.mxu1 %v5954_v22  ;;  %v5955_v51 = vld [vmem:[%s8763_s1 + $0x154] ss:$12 sps:$4 sm:$0xff]   ;;  %v5960_v55 = vld [vmem:[%s8763_s1 + $0x16c] ss:$12 sps:$4 sm:$0xff]   ;;  %v5997_v57 = vld [vmem:[%s8763_s1 + $0x1d0] ss:$12 sps:$4 sm:$0xff]  }
  0x14   :  { %2138 = vmatprep.subr.bf16.mxu0 %v5920_v10  ;;  %5574 = vmatprep.subr.bf16.mxu1 %v5957_v25  ;;  %v5963_v56 = vld [vmem:[%s8763_s1 + $0x168] ss:$12 sps:$4 sm:$0xff]   ;;  %v5970_v59 = vld [vmem:[%s8763_s1 + $0x184] ss:$12 sps:$4 sm:$0xff]   ;;  %v5968_v60 = vld [vmem:[%s8763_s1 + $0x180] ss:$12 sps:$4 sm:$0xff]  }
  0x15   :  { %v6001_v58 = vld [vmem:[%s8763_s1 + $0x2a8] ss:$12 sps:$4 sm:$0xff]   ;;  %v6006_v62 = vld [vmem:[%s8763_s1 + $0x2c0] ss:$12 sps:$4 sm:$0xff]   ;;  %v5973_v2 = vld [vmem:[%s8763_s1 + $0x198] ss:$12 sps:$4 sm:$0xff]  }
  0x16   :  { %v6002_v61 = vld [vmem:[%s8763_s1 + $0x1e8] ss:$12 sps:$4 sm:$0xff]   ;;  %v6014_v1 = vld [vmem:[%s8764_s0 + $0x60] ss:$48 sps:$4 sm:$0xff]   ;;  %v6013_v4 = vld [vmem:[%s8763_s1 + $0x2d8] ss:$12 sps:$4 sm:$0xff]  }
  0x17   :  { %2139 = vmatpush1.bf16.msra.mxu0 %v5922_v13  ;;  %5575 = vmatpush3.bf16.msra.mxu1 %v5959_v27  ;;  %v6011_v63 = vld [vmem:[%s8764_s0 + $0x64] ss:$48 sps:$4 sm:$0xff]   ;;  %v5975_v0 = vld [vmem:[%s8763_s1 + $0x19c] ss:$12 sps:$4 sm:$0xff]   ;;  %v6007_v3 = vld [vmem:[%s8763_s1 + $0x200] ss:$12 sps:$4 sm:$0xff]  }
  0x18   :  { %2140 = vmatprep.subr.bf16.mxu0 %v5923_v16  ;;  %5576 = vmatprep.subr.bf16.mxu1 %v5962_v28  ;;  %v5980_v5 = vld [vmem:[%s8763_s1 + $0x1b4] ss:$12 sps:$4 sm:$0xff]   ;;  %v5978_v6 = vld [vmem:[%s8763_s1 + $0x1b0] ss:$12 sps:$4 sm:$0xff]   ;;  %v6015_v7 = vld [vmem:[%s8763_s1 + $0x218] ss:$12 sps:$4 sm:$0xff]  }
  0x19   :  { %v6019_v8 = vld [vmem:[%s8763_s1 + $0x2f0] ss:$12 sps:$4 sm:$0xff]   ;;  %v5985_v10 = vld [vmem:[%s8763_s1 + $0x1cc] ss:$12 sps:$4 sm:$0xff]   ;;  %v5983_v11 = vld [vmem:[%s8763_s1 + $0x1c8] ss:$12 sps:$4 sm:$0xff]  }
  0x1a   :  { %v6026_v9 = vld [vmem:[%s8764_s0 + $0xc] ss:$48 sps:$4 sm:$0xff]   ;;  %v6027_v13 = vld [vmem:[%s8763_s1 + $0x3c8] ss:$12 sps:$4 sm:$0xff]   ;;  %v5990_v14 = vld [vmem:[%s8763_s1 + $0x1e4] ss:$12 sps:$4 sm:$0xff]  }
  0x1b   :  { %2141 = vmatpush1.bf16.msra.mxu0 %v5925_v18  ;;  %5577 = vmatpush3.bf16.msra.mxu1 %v5964_v30  ;;  %v6020_v12 = vld [vmem:[%s8763_s1 + $0x230] ss:$12 sps:$4 sm:$0xff]   ;;  %v6941_v15 = vld [vmem:[%s8764_s0 + $0x8] ss:$48 sps:$4 sm:$0xff]   ;;  %v5988_v16 = vld [vmem:[%s8763_s1 + $0x1e0] ss:$12 sps:$4 sm:$0xff]  }
  0x1c   :  { %2142 = vmatprep.subr.bf16.mxu0 %v5926_v20  ;;  %5578 = vmatprep.subr.bf16.mxu1 %v5971_v34  ;;  %v6028_v17 = vld [vmem:[%s8763_s1 + $0x308] ss:$12 sps:$4 sm:$0xff]   ;;  %v6032_v18 = vld [vmem:[%s8763_s1 + $0x3e0] ss:$12 sps:$4 sm:$0xff]   ;;  %v5993_v20 = vld [vmem:[%s8763_s1 + $0x1f8] ss:$12 sps:$4 sm:$0xff]  }
  0x1d   :  { %v5995_v19 = vld [vmem:[%s8763_s1 + $0x1fc] ss:$12 sps:$4 sm:$0xff]   ;;  %v6033_v21 = vld [vmem:[%s8763_s1 + $0x320] ss:$12 sps:$4 sm:$0xff]   ;;  %v6037_v22 = vld [vmem:[%s8763_s1 + $0x3f8] ss:$12 sps:$4 sm:$0xff]  }
  0x1e   :  { %v6038_v25 = vld [vmem:[%s8763_s1 + $0x338] ss:$12 sps:$4 sm:$0xff]   ;;  %v6003_v28 = vld [vmem:[%s8763_s1 + $0x228] ss:$12 sps:$4 sm:$0xff]  }
  0x1f   :  { %2143 = vmatpush1.bf16.msra.mxu0 %v5928_v23  ;;  %5579 = vmatpush3.bf16.msra.mxu1 %v5972_v36  ;;  %v6000_v23 = vld [vmem:[%s8763_s1 + $0x214] ss:$12 sps:$4 sm:$0xff]   ;;  %v6005_v27 = vld [vmem:[%s8763_s1 + $0x22c] ss:$12 sps:$4 sm:$0xff]   ;;  %v6010_v30 = vld [vmem:[%s8763_s1 + $0x244] ss:$12 sps:$4 sm:$0xff]  }
  0x20   :  { %2144 = vmatprep.subr.bf16.mxu0 %v5929_v24  ;;  %5580 = vmatprep.subr.bf16.mxu1 %v5976_v38  ;;  %v5998_v24 = vld [vmem:[%s8763_s1 + $0x210] ss:$12 sps:$4 sm:$0xff]   ;;  %v6047_v31 = vld [vmem:[%s8763_s1 + $0x428] ss:$12 sps:$4 sm:$0xff]   ;;  %v6052_v36 = vld [vmem:[%s8763_s1 + $0x440] ss:$12 sps:$4 sm:$0xff]  }
  0x21   :  { %v6048_v34 = vld [vmem:[%s8763_s1 + $0x368] ss:$12 sps:$4 sm:$0xff]   ;;  %v6053_v38 = vld [vmem:[%s8763_s1 + $0x380] ss:$12 sps:$4 sm:$0xff]  }
  0x23   :  { %2145 = vmatpush1.bf16.msra.mxu0 %v5931_v26  ;;  %5581 = vmatpush3.bf16.msra.mxu1 %v5977_v40  ;;  %v6042_v26 = vld [vmem:[%s8763_s1 + $0x410] ss:$12 sps:$4 sm:$0xff]   ;;  %v6059_v40 = vld [vmem:[%s8763_s1 + $0x458] ss:$12 sps:$4 sm:$0xff]  }
  0x24   :  { %2146 = vmatprep.subr.bf16.mxu0 %v5932_v29  ;;  %5594 = vmatprep.subr.bf16.mxu1 %v5981_v41  ;;  %v6043_v29 = vld [vmem:[%s8763_s1 + $0x350] ss:$12 sps:$4 sm:$0xff]   ;;  %v6023_v41 = vld [vmem:[%s8763_s1 + $0x274] ss:$12 sps:$4 sm:$0xff]  }
  0x26   :  { %2479 = vmatmul.mubr.bf16.vlgmr.msra.gmra.mrb[0].mxu1 %v5965_v44 }
  0x27   :  { %2147 = vmatpush1.bf16.msra.mxu0 %v5934_v32  ;;  %5595 = vmatpush3.bf16.msra.mxu1 %v5982_v45  ;;  %v6995_v32 = vld [vmem:[%s8764_s0 + $0x6c] ss:$48 sps:$4 sm:$0xff]  }
  0x28   :  { %2148 = vmatprep.subr.bf16.mxu0 %v5935_v33  ;;  %5596 = vmatprep.subr.bf16.mxu1 %v5986_v46  ;;  %v6008_v33 = vld [vmem:[%s8763_s1 + $0x240] ss:$12 sps:$4 sm:$0xff]   ;;  %v6065_v45 = vld [vmem:[%s8763_s1 + $0x470] ss:$12 sps:$4 sm:$0xff]  }
  0x29   :  { %2486 = vmatprep.mubr.bf16.mxu1 %v6011_v63  ;;  %v6031_v46 = vld [vmem:[%s8763_s1 + $0x28c] ss:$12 sps:$4 sm:$0xff]  }
  0x2b   :  { %2149 = vmatpush1.bf16.msra.mxu0 %v5938_v35  ;;  %5597 = vmatpush3.bf16.msra.mxu1 %v5987_v49  ;;  %v7007_v35 = vld [vmem:[%s8764_s0 + $0x68] ss:$48 sps:$4 sm:$0xff]  }
  0x2c   :  { %2150 = vmatprep.subr.bf16.mxu0 %v5940_v37  ;;  %5598 = vmatprep.subr.bf16.mxu1 %v5991_v50  ;;  %v6018_v37 = vld [vmem:[%s8763_s1 + $0x25c] ss:$12 sps:$4 sm:$0xff]   ;;  %v6036_v50 = vld [vmem:[%s8763_s1 + $0x2a4] ss:$12 sps:$4 sm:$0xff]  }
  0x2d   :  { %v6073_v49 = vld [vmem:[%s8763_s1 + $0x548] ss:$12 sps:$4 sm:$0xff]  }
  0x2e   :  { %2487 = vmatmul.mubr.bf16.gmra.mrb[4].mxu1 %v6014_v1 }
  0x2f   :  { %2151 = vmatpush1.bf16.msra.mxu0 %v5943_v39  ;;  %5599 = vmatpush3.bf16.msra.mxu1 %v5992_v52  ;;  %v6016_v39 = vld [vmem:[%s8763_s1 + $0x258] ss:$12 sps:$4 sm:$0xff]   ;;  %v7064_v52 = vld [vmem:[%s8764_s0 + $0x10] ss:$48 sps:$4 sm:$0xff]  }
  0x30   :  { %2152 = vmatprep.subr.bf16.mxu0 %v5945_v42  ;;  %5600 = vmatprep.subr.bf16.mxu1 %v5996_v54  ;;  %v6021_v42 = vld [vmem:[%s8763_s1 + $0x270] ss:$12 sps:$4 sm:$0xff]   ;;  %v6078_v54 = vld [vmem:[%s8763_s1 + $0x560] ss:$12 sps:$4 sm:$0xff]  }
  0x31   :  { %2527 = vmatprep.mubr.bf16.mxu1 %v6026_v9 }
  0x33   :  { %2153 = vmatpush1.bf16.msra.mxu0 %v5948_v43  ;;  %5601 = vmatpush3.bf16.msra.mxu1 %v5997_v57  ;;  %v7034_v43 = vld [vmem:[%s8764_s0 + $0x14] ss:$48 sps:$4 sm:$0xff]   ;;  %v6079_v57 = vld [vmem:[%s8763_s1 + $0x4a0] ss:$12 sps:$4 sm:$0xff]  }
  0x34   :  { %2154 = vmatprep.subr.bf16.mxu0 %v5950_v47  ;;  %5602 = vmatprep.subr.bf16.mxu1 %v6001_v58  ;;  %v6066_v47 = vld [vmem:[%s8763_s1 + $0x3b0] ss:$12 sps:$4 sm:$0xff]   ;;  %v6083_v58 = vld [vmem:[%s8763_s1 + $0x578] ss:$12 sps:$4 sm:$0xff]  }
  0x37   :  { %2155 = vmatpush1.bf16.msra.mxu0 %v5953_v48  ;;  %5603 = vmatpush3.bf16.msra.mxu1 %v6002_v61  ;;  %v6029_v48 = vld [vmem:[%s8763_s1 + $0x288] ss:$12 sps:$4 sm:$0xff]   ;;  %v6084_v61 = vld [vmem:[%s8763_s1 + $0x4b8] ss:$12 sps:$4 sm:$0xff]  }
  0x38   :  { %2156 = vmatprep.subr.bf16.mxu0 %v5955_v51  ;;  %5604 = vmatprep.subr.bf16.mxu1 %v6006_v62  ;;  %v6034_v51 = vld [vmem:[%s8763_s1 + $0x2a0] ss:$12 sps:$4 sm:$0xff]   ;;  %v6088_v62 = vld [vmem:[%s8763_s1 + $0x590] ss:$12 sps:$4 sm:$0xff]  }
  0x3b   :  { %2157 = vmatpush1.bf16.msra.mxu0 %v5958_v53  ;;  %5605 = vmatpush3.bf16.msra.mxu1 %v6007_v3  ;;  %v6074_v53 = vld [vmem:[%s8763_s1 + $0x488] ss:$12 sps:$4 sm:$0xff]  }
  0x3c   :  { %2158 = vmatprep.subr.bf16.mxu0 %v5960_v55  ;;  %5606 = vmatprep.subr.bf16.mxu1 %v6013_v4  ;;  %v6041_v55 = vld [vmem:[%s8763_s1 + $0x2bc] ss:$12 sps:$4 sm:$0xff]   ;;  %v7117_v4 = vld [vmem:[%s8764_s0 + $0x70] ss:$48 sps:$4 sm:$0xff]  }
  0x3d   :  { %v6093_v3 = vld [vmem:[%s8763_s1 + $0x5a8] ss:$12 sps:$4 sm:$0xff]  }
  0x3f   :  { %2159 = vmatpush1.bf16.msra.mxu0 %v5963_v56  ;;  %5607 = vmatpush3.bf16.msra.mxu1 %v6015_v7  ;;  %v6039_v56 = vld [vmem:[%s8763_s1 + $0x2b8] ss:$12 sps:$4 sm:$0xff]   ;;  %v6094_v7 = vld [vmem:[%s8763_s1 + $0x4e8] ss:$12 sps:$4 sm:$0xff]  }
  0x40   :  { %2181 = vmatprep.subr.bf16.mxu0 %v5970_v59  ;;  %5608 = vmatprep.subr.bf16.mxu1 %v6019_v8  ;;  %v6046_v59 = vld [vmem:[%s8763_s1 + $0x2d4] ss:$12 sps:$4 sm:$0xff]  }
  0x41   :  { %v6098_v8 = vld [vmem:[%s8763_s1 + $0x5c0] ss:$12 sps:$4 sm:$0xff]  }
  0x42   :  { %2161 = vmatmul.mubr.bf16.vlgmr.msra.gmra.mrb[0].mxu0 %v5965_v44  ;;  %v6061_v44 = vld [vmem:[%s8763_s1 + $0x398] ss:$12 sps:$4 sm:$0xff]  }
  0x43   :  { %2182 = vmatpush1.bf16.msra.mxu0 %v5968_v60  ;;  %2170 = vmatprep.mubr.bf16.mxu0 %v6011_v63  ;;  %v6044_v60 = vld [vmem:[%s8763_s1 + $0x2d0] ss:$12 sps:$4 sm:$0xff]   ;;  %v6051_v63 = vld [vmem:[%s8763_s1 + $0x2ec] ss:$12 sps:$4 sm:$0xff]  }
  0x44   :  { %2183 = vmatprep.subr.bf16.mxu0 %v5975_v0  ;;  %5609 = vmatpush3.bf16.msra.mxu1 %v6020_v12  ;;  %v6049_v0 = vld [vmem:[%s8763_s1 + $0x2e8] ss:$12 sps:$4 sm:$0xff]   ;;  %v7146_v12 = vld [vmem:[%s8764_s0 + $0x1c] ss:$48 sps:$4 sm:$0xff]  }
  0x45   :  { %5622 = vmatprep.subr.bf16.mxu1 %v6027_v13  ;;  %v6105_v13 = vld [vmem:[%s8763_s1 + $0x5d8] ss:$12 sps:$4 sm:$0xff]  }
  0x47   :  { %2184 = vmatpush1.bf16.msra.mxu0 %v5973_v2  ;;  %2528 = vmatmul.mubr.bf16.vlgmr.msra.gmra.mrb[8].mxu1 %v6941_v15  ;;  %v7109_v2 = vld [vmem:[%s8764_s0 + $0x74] ss:$48 sps:$4 sm:$0xff]  }
  0x48   :  { %2185 = vmatprep.subr.bf16.mxu0 %v5980_v5  ;;  %5623 = vmatpush3.bf16.msra.mxu1 %v6028_v17  ;;  %v6056_v5 = vld [vmem:[%s8763_s1 + $0x304] ss:$12 sps:$4 sm:$0xff]  }
  0x49   :  { %5624 = vmatprep.subr.bf16.mxu1 %v6032_v18  ;;  %2535 = vmatprep.mubr.bf16.mxu1 %v6995_v32  ;;  %v6111_v17 = vld [vmem:[%s8763_s1 + $0x5f0] ss:$12 sps:$4 sm:$0xff]   ;;  %v6077_v18 = vld [vmem:[%s8763_s1 + $0x34c] ss:$12 sps:$4 sm:$0xff]  }
  0x4a   :  { %2171 = vmatmul.mubr.bf16.gmra.mrb[4].mxu0 %v6014_v1  ;;  %v6089_v1 = vld [vmem:[%s8763_s1 + $0x4d0] ss:$12 sps:$4 sm:$0xff]  }
  0x4b   :  { %2186 = vmatpush1.bf16.msra.mxu0 %v5978_v6  ;;  %2213 = vmatprep.mubr.bf16.mxu0 %v6026_v9  ;;  %v6054_v6 = vld [vmem:[%s8763_s1 + $0x300] ss:$12 sps:$4 sm:$0xff]   ;;  %v6064_v9 = vld [vmem:[%s8763_s1 + $0x31c] ss:$12 sps:$4 sm:$0xff]  }
  0x4c   :  { %2187 = vmatprep.subr.bf16.mxu0 %v5985_v10  ;;  %5625 = vmatpush3.bf16.msra.mxu1 %v6033_v21  ;;  %v6062_v10 = vld [vmem:[%s8763_s1 + $0x318] ss:$12 sps:$4 sm:$0xff]   ;;  %v6119_v21 = vld [vmem:[%s8763_s1 + $0x6c8] ss:$12 sps:$4 sm:$0xff]  }
  0x4d   :  { %5626 = vmatprep.subr.bf16.mxu1 %v6037_v22  ;;  %v6082_v22 = vld [vmem:[%s8763_s1 + $0x364] ss:$12 sps:$4 sm:$0xff]  }
  0x4f   :  { %2188 = vmatpush1.bf16.msra.mxu0 %v5983_v11  ;;  %2536 = vmatmul.mubr.bf16.gmra.mrb[12].mxu1 %v7007_v35  ;;  %v6099_v11 = vld [vmem:[%s8763_s1 + $0x500] ss:$12 sps:$4 sm:$0xff]  }
  0x50   :  { %2189 = vmatprep.subr.bf16.mxu0 %v5990_v14  ;;  %5627 = vmatpush3.bf16.msra.mxu1 %v6038_v25  ;;  %v6069_v14 = vld [vmem:[%s8763_s1 + $0x334] ss:$12 sps:$4 sm:$0xff]  }
  0x51   :  { %5628 = vmatprep.subr.bf16.mxu1 %v6042_v26  ;;  %2576 = vmatprep.mubr.bf16.mxu1 %v7034_v43  ;;  %v6080_v25 = vld [vmem:[%s8763_s1 + $0x360] ss:$12 sps:$4 sm:$0xff]  }
  0x52   :  { %v6124_v26 = vld [vmem:[%s8763_s1 + $0x6e0] ss:$12 sps:$4 sm:$0xff]  }
  0x53   :  { %2190 = vmatpush1.bf16.msra.mxu0 %v5988_v16  ;;  %v6107_v16 = vld [vmem:[%s8763_s1 + $0x518] ss:$12 sps:$4 sm:$0xff]  }
  0x54   :  { %2191 = vmatprep.subr.bf16.mxu0 %v5995_v19  ;;  %5629 = vmatpush3.bf16.msra.mxu1 %v6043_v29  ;;  %v6075_v19 = vld [vmem:[%s8763_s1 + $0x348] ss:$12 sps:$4 sm:$0xff]   ;;  %v6125_v29 = vld [vmem:[%s8763_s1 + $0x620] ss:$12 sps:$4 sm:$0xff]  }
  0x55   :  { %5630 = vmatprep.subr.bf16.mxu1 %v6047_v31  ;;  %v6092_v31 = vld [vmem:[%s8763_s1 + $0x394] ss:$12 sps:$4 sm:$0xff]  }
  0x57   :  { %2192 = vmatpush1.bf16.msra.mxu0 %v5993_v20  ;;  %v6112_v20 = vld [vmem:[%s8763_s1 + $0x530] ss:$12 sps:$4 sm:$0xff]  }
  0x58   :  { %2193 = vmatprep.subr.bf16.mxu0 %v6000_v23  ;;  %5631 = vmatpush3.bf16.msra.mxu1 %v6048_v34  ;;  %v7185_v23 = vld [vmem:[%s8764_s0 + $0x18] ss:$48 sps:$4 sm:$0xff]   ;;  %v6134_v34 = vld [vmem:[%s8763_s1 + $0x710] ss:$12 sps:$4 sm:$0xff]  }
  0x59   :  { %5632 = vmatprep.subr.bf16.mxu1 %v6052_v36  ;;  %v6097_v36 = vld [vmem:[%s8763_s1 + $0x3ac] ss:$12 sps:$4 sm:$0xff]  }
  0x5b   :  { %2194 = vmatpush1.bf16.msra.mxu0 %v5998_v24  ;;  %v6120_v24 = vld [vmem:[%s8763_s1 + $0x608] ss:$12 sps:$4 sm:$0xff]  }
  0x5c   :  { %2195 = vmatprep.subr.bf16.mxu0 %v6005_v27  ;;  %5633 = vmatpush3.bf16.msra.mxu1 %v6053_v38  ;;  %v6087_v27 = vld [vmem:[%s8763_s1 + $0x37c] ss:$12 sps:$4 sm:$0xff]  }
  0x5d   :  { %5634 = vmatprep.subr.bf16.mxu1 %v6059_v40  ;;  %v6095_v38 = vld [vmem:[%s8763_s1 + $0x3a8] ss:$12 sps:$4 sm:$0xff]  }
  0x5e   :  { %v6139_v40 = vld [vmem:[%s8763_s1 + $0x728] ss:$12 sps:$4 sm:$0xff]  }
  0x5f   :  { %2196 = vmatpush1.bf16.msra.mxu0 %v6003_v28  ;;  %v6085_v28 = vld [vmem:[%s8763_s1 + $0x378] ss:$12 sps:$4 sm:$0xff]  }
  0x60   :  { %2197 = vmatprep.subr.bf16.mxu0 %v6010_v30  ;;  %5635 = vmatpush3.bf16.msra.mxu1 %v6061_v44  ;;  %v6129_v30 = vld [vmem:[%s8763_s1 + $0x6f8] ss:$12 sps:$4 sm:$0xff]   ;;  %v6144_v44 = vld [vmem:[%s8763_s1 + $0x740] ss:$12 sps:$4 sm:$0xff]  }
  0x61   :  { %5636 = vmatprep.subr.bf16.mxu1 %v6065_v45  ;;  %v7260_v45 = vld [vmem:[%s8764_s0 + $0x24] ss:$48 sps:$4 sm:$0xff]  }
  0x63   :  { %2198 = vmatpush1.bf16.msra.mxu0 %v6008_v33  ;;  %v6130_v33 = vld [vmem:[%s8763_s1 + $0x638] ss:$12 sps:$4 sm:$0xff]  }
  0x64   :  { %2199 = vmatprep.subr.bf16.mxu0 %v6018_v37  ;;  %5637 = vmatpush3.bf16.msra.mxu1 %v6066_v47  ;;  %v7232_v37 = vld [vmem:[%s8764_s0 + $0x78] ss:$48 sps:$4 sm:$0xff]  }
  0x65   :  { %5650 = vmatprep.subr.bf16.mxu1 %v6073_v49  ;;  %v6108_v47 = vld [vmem:[%s8763_s1 + $0x3d8] ss:$12 sps:$4 sm:$0xff]  }
  0x66   :  { %v6151_v49 = vld [vmem:[%s8763_s1 + $0x758] ss:$12 sps:$4 sm:$0xff]  }
  0x67   :  { %2200 = vmatpush1.bf16.msra.mxu0 %v6016_v39  ;;  %2577 = vmatmul.mubr.bf16.vlgmr.msra.gmra.mrb[16].mxu1 %v7064_v52  ;;  %v6135_v39 = vld [vmem:[%s8763_s1 + $0x650] ss:$12 sps:$4 sm:$0xff]  }
  0x68   :  { %2201 = vmatprep.subr.bf16.mxu0 %v6023_v41  ;;  %5651 = vmatpush3.bf16.msra.mxu1 %v6074_v53  ;;  %v6102_v41 = vld [vmem:[%s8763_s1 + $0x3c4] ss:$12 sps:$4 sm:$0xff]  }
  0x69   :  { %5652 = vmatprep.subr.bf16.mxu1 %v6078_v54  ;;  %2584 = vmatprep.mubr.bf16.mxu1 %v7109_v2  ;;  %v6153_v53 = vld [vmem:[%s8763_s1 + $0x698] ss:$12 sps:$4 sm:$0xff]   ;;  %v6157_v54 = vld [vmem:[%s8763_s1 + $0x770] ss:$12 sps:$4 sm:$0xff]  }
  0x6b   :  { %2202 = vmatpush1.bf16.msra.mxu0 %v6021_v42  ;;  %v6100_v42 = vld [vmem:[%s8763_s1 + $0x3c0] ss:$12 sps:$4 sm:$0xff]  }
  0x6c   :  { %2203 = vmatprep.subr.bf16.mxu0 %v6031_v46  ;;  %5653 = vmatpush3.bf16.msra.mxu1 %v6079_v57  ;;  %v6110_v46 = vld [vmem:[%s8763_s1 + $0x3dc] ss:$12 sps:$4 sm:$0xff]  }
  0x6d   :  { %5654 = vmatprep.subr.bf16.mxu1 %v6083_v58  ;;  %v6158_v57 = vld [vmem:[%s8763_s1 + $0x6b0] ss:$12 sps:$4 sm:$0xff]   ;;  %v6165_v58 = vld [vmem:[%s8763_s1 + $0x848] ss:$12 sps:$4 sm:$0xff]  }
  0x6f   :  { %2204 = vmatpush1.bf16.msra.mxu0 %v6029_v48  ;;  %2585 = vmatmul.mubr.bf16.gmra.mrb[20].mxu1 %v7117_v4  ;;  %v6145_v48 = vld [vmem:[%s8763_s1 + $0x680] ss:$12 sps:$4 sm:$0xff]  }
  0x70   :  { %2205 = vmatprep.subr.bf16.mxu0 %v6036_v50  ;;  %5655 = vmatpush3.bf16.msra.mxu1 %v6084_v61  ;;  %v6115_v50 = vld [vmem:[%s8763_s1 + $0x3f4] ss:$12 sps:$4 sm:$0xff]  }
  0x71   :  { %5656 = vmatprep.subr.bf16.mxu1 %v6088_v62  ;;  %2625 = vmatprep.mubr.bf16.mxu1 %v7146_v12  ;;  %v7308_v61 = vld [vmem:[%s8764_s0 + $0x20] ss:$48 sps:$4 sm:$0xff]   ;;  %v6166_v62 = vld [vmem:[%s8763_s1 + $0x788] ss:$12 sps:$4 sm:$0xff]  }
  0x73   :  { %2206 = vmatpush1.bf16.msra.mxu0 %v6034_v51  ;;  %v6113_v51 = vld [vmem:[%s8763_s1 + $0x3f0] ss:$12 sps:$4 sm:$0xff]  }
  0x74   :  { %2207 = vmatprep.subr.bf16.mxu0 %v6041_v55  ;;  %5657 = vmatpush3.bf16.msra.mxu1 %v6089_v1  ;;  %v6123_v55 = vld [vmem:[%s8763_s1 + $0x40c] ss:$12 sps:$4 sm:$0xff]  }
  0x75   :  { %5658 = vmatprep.subr.bf16.mxu1 %v6093_v3  ;;  %v6131_v1 = vld [vmem:[%s8763_s1 + $0x438] ss:$12 sps:$4 sm:$0xff]   ;;  %v6171_v3 = vld [vmem:[%s8763_s1 + $0x7a0] ss:$12 sps:$4 sm:$0xff]  }
  0x77   :  { %2208 = vmatpush1.bf16.msra.mxu0 %v6039_v56  ;;  %v6121_v56 = vld [vmem:[%s8763_s1 + $0x408] ss:$12 sps:$4 sm:$0xff]  }
  0x78   :  { %2209 = vmatprep.subr.bf16.mxu0 %v6046_v59  ;;  %5659 = vmatpush3.bf16.msra.mxu1 %v6094_v7  ;;  %v6128_v59 = vld [vmem:[%s8763_s1 + $0x424] ss:$12 sps:$4 sm:$0xff]   ;;  %v6138_v7 = vld [vmem:[%s8763_s1 + $0x454] ss:$12 sps:$4 sm:$0xff]  }
  0x79   :  { %5660 = vmatprep.subr.bf16.mxu1 %v6098_v8  ;;  %v6136_v8 = vld [vmem:[%s8763_s1 + $0x450] ss:$12 sps:$4 sm:$0xff]  }
  0x7b   :  { %2210 = vmatpush1.bf16.msra.mxu0 %v6044_v60  ;;  %v6126_v60 = vld [vmem:[%s8763_s1 + $0x420] ss:$12 sps:$4 sm:$0xff]  }
  0x7c   :  { %2211 = vmatprep.subr.bf16.mxu0 %v6051_v63  ;;  %5661 = vmatpush3.bf16.msra.mxu1 %v6099_v11  ;;  %v6170_v63 = vld [vmem:[%s8763_s1 + $0x860] ss:$12 sps:$4 sm:$0xff]   ;;  %v6180_v11 = vld [vmem:[%s8763_s1 + $0x890] ss:$12 sps:$4 sm:$0xff]  }
  0x7d   :  { %5662 = vmatprep.subr.bf16.mxu1 %v6105_v13  ;;  %v6143_v13 = vld [vmem:[%s8763_s1 + $0x46c] ss:$12 sps:$4 sm:$0xff]  }
  0x7f   :  { %2212 = vmatpush1.bf16.msra.mxu0 %v6049_v0  ;;  %v6133_v0 = vld [vmem:[%s8763_s1 + $0x43c] ss:$12 sps:$4 sm:$0xff]  }
  0x80   :  { %2234 = vmatprep.subr.bf16.mxu0 %v6056_v5  ;;  %5663 = vmatpush3.bf16.msra.mxu1 %v6107_v16  ;;  %v6175_v5 = vld [vmem:[%s8763_s1 + $0x878] ss:$12 sps:$4 sm:$0xff]   ;;  %v6185_v16 = vld [vmem:[%s8763_s1 + $0x8a8] ss:$12 sps:$4 sm:$0xff]  }
  0x81   :  { %5664 = vmatprep.subr.bf16.mxu1 %v6111_v17  ;;  %v7368_v17 = vld [vmem:[%s8764_s0 + $0x2c] ss:$48 sps:$4 sm:$0xff]  }
  0x82   :  { %2214 = vmatmul.mubr.bf16.vlgmr.msra.gmra.mrb[0].mxu0 %v6941_v15  ;;  %v6067_v15 = vld [vmem:[%s8763_s1 + $0x330] ss:$12 sps:$4 sm:$0xff]  }
  0x83   :  { %2235 = vmatpush1.bf16.msra.mxu0 %v6054_v6  ;;  %2223 = vmatprep.mubr.bf16.mxu0 %v6995_v32  ;;  %v6090_v32 = vld [vmem:[%s8763_s1 + $0x390] ss:$12 sps:$4 sm:$0xff]   ;;  %v7332_v6 = vld [vmem:[%s8764_s0 + $0x84] ss:$48 sps:$4 sm:$0xff]  }
  0x84   :  { %2236 = vmatprep.subr.bf16.mxu0 %v6064_v9  ;;  %5665 = vmatpush3.bf16.msra.mxu1 %v6112_v20  ;;  %v7344_v9 = vld [vmem:[%s8764_s0 + $0x80] ss:$48 sps:$4 sm:$0xff]  }
  0x85   :  { %5678 = vmatprep.subr.bf16.mxu1 %v6119_v21  ;;  %v6146_v20 = vld [vmem:[%s8763_s1 + $0x480] ss:$12 sps:$4 sm:$0xff]  }
  0x86   :  { %v6190_v21 = vld [vmem:[%s8763_s1 + $0x8c0] ss:$12 sps:$4 sm:$0xff]  }
  0x87   :  { %2237 = vmatpush1.bf16.msra.mxu0 %v6062_v10  ;;  %2626 = vmatmul.mubr.bf16.vlgmr.msra.gmra.mrb[24].mxu1 %v7185_v23  ;;  %v6176_v10 = vld [vmem:[%s8763_s1 + $0x7b8] ss:$12 sps:$4 sm:$0xff]  }
  0x88   :  { %2238 = vmatprep.subr.bf16.mxu0 %v6069_v14  ;;  %5679 = vmatpush3.bf16.msra.mxu1 %v6120_v24  ;;  %v6141_v14 = vld [vmem:[%s8763_s1 + $0x468] ss:$12 sps:$4 sm:$0xff]   ;;  %v6191_v24 = vld [vmem:[%s8763_s1 + $0x800] ss:$12 sps:$4 sm:$0xff]  }
  0x89   :  { %5680 = vmatprep.subr.bf16.mxu1 %v6124_v26  ;;  %v6198_v26 = vld [vmem:[%s8763_s1 + $0x8d8] ss:$12 sps:$4 sm:$0xff]  }
  0x8a   :  { %2224 = vmatmul.mubr.bf16.gmra.mrb[4].mxu0 %v7007_v35  ;;  %v7224_v35 = vld [vmem:[%s8764_s0 + $0x7c] ss:$48 sps:$4 sm:$0xff]  }
  0x8b   :  { %2239 = vmatpush1.bf16.msra.mxu0 %v6067_v15  ;;  %2266 = vmatprep.mubr.bf16.mxu0 %v7034_v43  ;;  %v6140_v43 = vld [vmem:[%s8763_s1 + $0x668] ss:$12 sps:$4 sm:$0xff]   ;;  %v6181_v15 = vld [vmem:[%s8763_s1 + $0x7d0] ss:$12 sps:$4 sm:$0xff]  }
  0x8c   :  { %2240 = vmatprep.subr.bf16.mxu0 %v6077_v18  ;;  %5681 = vmatpush3.bf16.msra.mxu1 %v6125_v29  ;;  %v6148_v18 = vld [vmem:[%s8763_s1 + $0x484] ss:$12 sps:$4 sm:$0xff]  }
  0x8d   :  { %5682 = vmatprep.subr.bf16.mxu1 %v6129_v30  ;;  %2633 = vmatprep.mubr.bf16.mxu1 %v7224_v35  ;;  %v6203_v29 = vld [vmem:[%s8763_s1 + $0x8f0] ss:$12 sps:$4 sm:$0xff]  }
  0x8e   :  { %v6204_v30 = vld [vmem:[%s8763_s1 + $0x830] ss:$12 sps:$4 sm:$0xff]  }
  0x8f   :  { %2241 = vmatpush1.bf16.msra.mxu0 %v6075_v19  ;;  %2634 = vmatmul.mubr.bf16.gmra.mrb[28].mxu1 %v7232_v37  ;;  %v6186_v19 = vld [vmem:[%s8763_s1 + $0x7e8] ss:$12 sps:$4 sm:$0xff]  }
  0x90   :  { %2242 = vmatprep.subr.bf16.mxu0 %v6082_v22  ;;  %5683 = vmatpush3.bf16.msra.mxu1 %v6130_v33  ;;  %v6156_v22 = vld [vmem:[%s8763_s1 + $0x49c] ss:$12 sps:$4 sm:$0xff]  }
  0x91   :  { %5684 = vmatprep.subr.bf16.mxu1 %v6134_v34  ;;  %2674 = vmatprep.mubr.bf16.mxu1 %v7260_v45  ;;  %v7426_v33 = vld [vmem:[%s8764_s0 + $0x28] ss:$48 sps:$4 sm:$0xff]   ;;  %v6172_v34 = vld [vmem:[%s8763_s1 + $0x4e0] ss:$12 sps:$4 sm:$0xff]  }
  0x93   :  { %2243 = vmatpush1.bf16.msra.mxu0 %v6080_v25  ;;  %v6154_v25 = vld [vmem:[%s8763_s1 + $0x498] ss:$12 sps:$4 sm:$0xff]  }
  0x94   :  { %2244 = vmatprep.subr.bf16.mxu0 %v6087_v27  ;;  %5685 = vmatpush3.bf16.msra.mxu1 %v6135_v39  ;;  %v6199_v27 = vld [vmem:[%s8763_s1 + $0x818] ss:$12 sps:$4 sm:$0xff]  }
  0x95   :  { %5686 = vmatprep.subr.bf16.mxu1 %v6139_v40  ;;  %v7450_v39 = vld [vmem:[%s8764_s0 + $0x88] ss:$48 sps:$4 sm:$0xff]   ;;  %v6182_v40 = vld [vmem:[%s8763_s1 + $0x510] ss:$12 sps:$4 sm:$0xff]  }
  0x97   :  { %2245 = vmatpush1.bf16.msra.mxu0 %v6085_v28  ;;  %v6159_v28 = vld [vmem:[%s8763_s1 + $0x4b0] ss:$12 sps:$4 sm:$0xff]  }
  0x98   :  { %2246 = vmatprep.subr.bf16.mxu0 %v6092_v31  ;;  %5687 = vmatpush3.bf16.msra.mxu1 %v6140_v43  ;;  %v6167_v31 = vld [vmem:[%s8763_s1 + $0x4c8] ss:$12 sps:$4 sm:$0xff]   ;;  %v6196_v43 = vld [vmem:[%s8763_s1 + $0x544] ss:$12 sps:$4 sm:$0xff]  }
  0x99   :  { %5688 = vmatprep.subr.bf16.mxu1 %v6144_v44  ;;  %v6194_v44 = vld [vmem:[%s8763_s1 + $0x540] ss:$12 sps:$4 sm:$0xff]  }
  0x9b   :  { %2247 = vmatpush1.bf16.msra.mxu0 %v6090_v32  ;;  %v6174_v32 = vld [vmem:[%s8763_s1 + $0x4e4] ss:$12 sps:$4 sm:$0xff]  }
  0x9c   :  { %2248 = vmatprep.subr.bf16.mxu0 %v6097_v36  ;;  %5689 = vmatpush3.bf16.msra.mxu1 %v6145_v48  ;;  %v6177_v36 = vld [vmem:[%s8763_s1 + $0x4f8] ss:$12 sps:$4 sm:$0xff]   ;;  %v6210_v48 = vld [vmem:[%s8763_s1 + $0x574] ss:$12 sps:$4 sm:$0xff]  }
  0x9d   :  { %5690 = vmatprep.subr.bf16.mxu1 %v6151_v49  ;;  %v6208_v49 = vld [vmem:[%s8763_s1 + $0x570] ss:$12 sps:$4 sm:$0xff]  }
  0x9f   :  { %2249 = vmatpush1.bf16.msra.mxu0 %v6095_v38  ;;  %v6184_v38 = vld [vmem:[%s8763_s1 + $0x514] ss:$12 sps:$4 sm:$0xff]  }
  0xa0   :  { %2250 = vmatprep.subr.bf16.mxu0 %v6102_v41  ;;  %5691 = vmatpush3.bf16.msra.mxu1 %v6153_v53  ;;  %v6189_v41 = vld [vmem:[%s8763_s1 + $0x52c] ss:$12 sps:$4 sm:$0xff]   ;;  %v6216_v53 = vld [vmem:[%s8763_s1 + $0x5a4] ss:$12 sps:$4 sm:$0xff]  }
  0xa1   :  { %5692 = vmatprep.subr.bf16.mxu1 %v6157_v54  ;;  %v6214_v54 = vld [vmem:[%s8763_s1 + $0x5a0] ss:$12 sps:$4 sm:$0xff]  }
  0xa3   :  { %2251 = vmatpush1.bf16.msra.mxu0 %v6100_v42  ;;  %v6187_v42 = vld [vmem:[%s8763_s1 + $0x528] ss:$12 sps:$4 sm:$0xff]  }
  0xa4   :  { %2252 = vmatprep.subr.bf16.mxu0 %v6110_v46  ;;  %5693 = vmatpush3.bf16.msra.mxu1 %v6158_v57  ;;  %v6202_v46 = vld [vmem:[%s8763_s1 + $0x55c] ss:$12 sps:$4 sm:$0xff]   ;;  %v6222_v57 = vld [vmem:[%s8763_s1 + $0x5d4] ss:$12 sps:$4 sm:$0xff]  }
  0xa5   :  { %5706 = vmatprep.subr.bf16.mxu1 %v6165_v58  ;;  %v6220_v58 = vld [vmem:[%s8763_s1 + $0x5d0] ss:$12 sps:$4 sm:$0xff]  }
  0xa7   :  { %2253 = vmatpush1.bf16.msra.mxu0 %v6108_v47  ;;  %2675 = vmatmul.mubr.bf16.vlgmr.msra.gmra.mrb[32].mxu1 %v7308_v61  ;;  %v6200_v47 = vld [vmem:[%s8763_s1 + $0x558] ss:$12 sps:$4 sm:$0xff]  }
  0xa8   :  { %2254 = vmatprep.subr.bf16.mxu0 %v6115_v50  ;;  %5707 = vmatpush3.bf16.msra.mxu1 %v6166_v62  ;;  %v6213_v50 = vld [vmem:[%s8763_s1 + $0x58c] ss:$12 sps:$4 sm:$0xff]   ;;  %v6230_v62 = vld [vmem:[%s8763_s1 + $0x604] ss:$12 sps:$4 sm:$0xff]  }
  0xa9   :  { %5708 = vmatprep.subr.bf16.mxu1 %v6170_v63  ;;  %2682 = vmatprep.mubr.bf16.mxu1 %v7332_v6  ;;  %v6228_v63 = vld [vmem:[%s8763_s1 + $0x600] ss:$12 sps:$4 sm:$0xff]  }
  0xab   :  { %2255 = vmatpush1.bf16.msra.mxu0 %v6113_v51  ;;  %v6211_v51 = vld [vmem:[%s8763_s1 + $0x588] ss:$12 sps:$4 sm:$0xff]  }
  0xac   :  { %2256 = vmatprep.subr.bf16.mxu0 %v6123_v55  ;;  %5709 = vmatpush3.bf16.msra.mxu1 %v6171_v3  ;;  %v6219_v55 = vld [vmem:[%s8763_s1 + $0x5bc] ss:$12 sps:$4 sm:$0xff]   ;;  %v6237_v3 = vld [vmem:[%s8763_s1 + $0x634] ss:$12 sps:$4 sm:$0xff]  }
  0xad   :  { %5710 = vmatprep.subr.bf16.mxu1 %v6175_v5  ;;  %v6235_v5 = vld [vmem:[%s8763_s1 + $0x630] ss:$12 sps:$4 sm:$0xff]  }
  0xaf   :  { %2257 = vmatpush1.bf16.msra.mxu0 %v6121_v56  ;;  %2683 = vmatmul.mubr.bf16.gmra.mrb[36].mxu1 %v7344_v9  ;;  %v6217_v56 = vld [vmem:[%s8763_s1 + $0x5b8] ss:$12 sps:$4 sm:$0xff]  }
  0xb0   :  { %2258 = vmatprep.subr.bf16.mxu0 %v6128_v59  ;;  %5711 = vmatpush3.bf16.msra.mxu1 %v6176_v10  ;;  %v6225_v59 = vld [vmem:[%s8763_s1 + $0x5ec] ss:$12 sps:$4 sm:$0xff]   ;;  %v6243_v10 = vld [vmem:[%s8763_s1 + $0x664] ss:$12 sps:$4 sm:$0xff]  }
  0xb1   :  { %5712 = vmatprep.subr.bf16.mxu1 %v6180_v11  ;;  %2723 = vmatprep.mubr.bf16.mxu1 %v7368_v17 }
  0xb3   :  { %2259 = vmatpush1.bf16.msra.mxu0 %v6126_v60  ;;  %v6223_v60 = vld [vmem:[%s8763_s1 + $0x5e8] ss:$12 sps:$4 sm:$0xff]  }
  0xb4   :  { %2260 = vmatprep.subr.bf16.mxu0 %v6133_v0  ;;  %5713 = vmatpush3.bf16.msra.mxu1 %v6181_v15  ;;  %v6234_v0 = vld [vmem:[%s8763_s1 + $0x61c] ss:$12 sps:$4 sm:$0xff]  }
  0xb5   :  { %5714 = vmatprep.subr.bf16.mxu1 %v6185_v16  ;;  %v6244_v16 = vld [vmem:[%s8763_s1 + $0x678] ss:$12 sps:$4 sm:$0xff]  }
  0xb7   :  { %2261 = vmatpush1.bf16.msra.mxu0 %v6131_v1  ;;  %v6232_v1 = vld [vmem:[%s8763_s1 + $0x618] ss:$12 sps:$4 sm:$0xff]  }
  0xb8   :  { %2262 = vmatprep.subr.bf16.mxu0 %v6138_v7  ;;  %5715 = vmatpush3.bf16.msra.mxu1 %v6186_v19  ;;  %v457_v19 = vlaneseq }
  0xb9   :  { %5716 = vmatprep.subr.bf16.mxu1 %v6190_v21 }
  0xbb   :  { %2263 = vmatpush1.bf16.msra.mxu0 %v6136_v8 }
  0xbc   :  { %2264 = vmatprep.subr.bf16.mxu0 %v6143_v13  ;;  %5717 = vmatpush3.bf16.msra.mxu1 %v6191_v24  ;;  %v7559_v24 = vshrl.u32 %v457_v19, 7 }
  0xbd   :  { %5718 = vmatprep.subr.bf16.mxu1 %v6198_v26 }
  0xbf   :  { %2265 = vmatpush1.bf16.msra.mxu0 %v6141_v14 }
  0xc0   :  { %2287 = vmatprep.subr.bf16.mxu0 %v6148_v18  ;;  %5719 = vmatpush3.bf16.msra.mxu1 %v6199_v27  ;;  %v6249_v18 = vld [vmem:[%s8763_s1 + $0x694] ss:$12 sps:$4 sm:$0xff]  }
  0xc1   :  { %5720 = vmatprep.subr.bf16.mxu1 %v6203_v29 }
  0xc2   :  { %2267 = vmatmul.mubr.bf16.vlgmr.msra.gmra.mrb[0].mxu0 %v7064_v52  ;;  %v6161_v52 = vld [vmem:[%s8763_s1 + $0x4b4] ss:$12 sps:$4 sm:$0xff]  }
  0xc3   :  { %2288 = vmatpush1.bf16.msra.mxu0 %v6146_v20  ;;  %2276 = vmatprep.mubr.bf16.mxu0 %v7109_v2  ;;  %v6169_v2 = vld [vmem:[%s8763_s1 + $0x4cc] ss:$12 sps:$4 sm:$0xff]   ;;  %v6247_v20 = vld [vmem:[%s8763_s1 + $0x690] ss:$12 sps:$4 sm:$0xff]  }
  0xc4   :  { %2289 = vmatprep.subr.bf16.mxu0 %v6156_v22  ;;  %5721 = vmatpush3.bf16.msra.mxu1 %v6204_v30  ;;  %v6252_v22 = vld [vmem:[%s8763_s1 + $0x6ac] ss:$12 sps:$4 sm:$0xff]   ;;  %v7568_v30 = vsub.s32 2, %v7559_v24 }
  0xc7   :  { %2290 = vmatpush1.bf16.msra.mxu0 %v6154_v25  ;;  %2724 = vmatmul.mubr.bf16.vlgmr.msra.gmra.mrb[40].mxu1 %v7426_v33 }
  0xc8   :  { %2291 = vmatprep.subr.bf16.mxu0 %v6161_v52 }
  0xca   :  { %2277 = vmatmul.mubr.bf16.gmra.mrb[4].mxu0 %v7117_v4  ;;  %v7431_v4 = vld [vmem:[%s8764_s0 + $0x8c] ss:$48 sps:$4 sm:$0xff]  }
  0xcb   :  { %2292 = vmatpush1.bf16.msra.mxu0 %v6159_v28  ;;  %2319 = vmatprep.mubr.bf16.mxu0 %v7146_v12  ;;  %v6179_v12 = vld [vmem:[%s8763_s1 + $0x4fc] ss:$12 sps:$4 sm:$0xff]  }
  0xcc   :  { %2293 = vmatprep.subr.bf16.mxu0 %v6169_v2  ;;  %2731 = vmatprep.mubr.bf16.mxu1 %v7431_v4  ;;  %v6250_v28 = vld [vmem:[%s8763_s1 + $0x6a8] ss:$12 sps:$4 sm:$0xff]   ;;  %v6255_v2 = vld [vmem:[%s8763_s1 + $0x6c4] ss:$12 sps:$4 sm:$0xff]  }
  0xcf   :  { %2294 = vmatpush1.bf16.msra.mxu0 %v6167_v31  ;;  %2732 = vmatmul.mubr.bf16.gmra.mrb[44].mxu1 %v7450_v39  ;;  %v7573_v31 = vld [vmem:[%s8765_s2] sm:$0x7] }
  0xd0   :  { %2295 = vmatprep.subr.bf16.mxu0 %v6174_v32  ;;  %v6253_v32 = vld [vmem:[%s8763_s1 + $0x6c0] ss:$12 sps:$4 sm:$0xff]  }
  0xd3   :  { %2296 = vmatpush1.bf16.msra.mxu0 %v6172_v34  ;;  %v6258_v34 = vld [vmem:[%s8763_s1 + $0x6dc] ss:$12 sps:$4 sm:$0xff]  }
  0xd4   :  { %2297 = vmatprep.subr.bf16.mxu0 %v6179_v12  ;;  %v468_v12 = vrot.slane %v7573_v31, %v7568_v30 }
  0xd7   :  { %2298 = vmatpush1.bf16.msra.mxu0 %v6177_v36  ;;  %v6256_v36 = vld [vmem:[%s8763_s1 + $0x6d8] ss:$12 sps:$4 sm:$0xff]  }
  0xd8   :  { %2299 = vmatprep.subr.bf16.mxu0 %v6184_v38  ;;  %v6261_v38 = vld [vmem:[%s8763_s1 + $0x6f4] ss:$12 sps:$4 sm:$0xff]  }
  0xdb   :  { %2300 = vmatpush1.bf16.msra.mxu0 %v6182_v40 }
  0xdc   :  { %2301 = vmatprep.subr.bf16.mxu0 %v6189_v41 }
  0xdf   :  { %2302 = vmatpush1.bf16.msra.mxu0 %v6187_v42 }
  0xe0   :  { %2303 = vmatprep.subr.bf16.mxu0 %v6196_v43 }
  0xe3   :  { %2304 = vmatpush1.bf16.msra.mxu0 %v6194_v44 }
  0xe4   :  { %2305 = vmatprep.subr.bf16.mxu0 %v6202_v46 }
  0xe7   :  { %2306 = vmatpush1.bf16.msra.mxu0 %v6200_v47  ;;  %v6259_v47 = vld [vmem:[%s8763_s1 + $0x6f0] ss:$12 sps:$4 sm:$0xff]  }
  0xe8   :  { %2307 = vmatprep.subr.bf16.mxu0 %v6210_v48 }
  0xeb   :  { %2308 = vmatpush1.bf16.msra.mxu0 %v6208_v49  ;;  %v6264_v49 = vld [vmem:[%s8763_s1 + $0x70c] ss:$12 sps:$4 sm:$0xff]  }
  0xec   :  { %2309 = vmatprep.subr.bf16.mxu0 %v6213_v50 }
  0xef   :  { %2310 = vmatpush1.bf16.msra.mxu0 %v6211_v51 }
  0xf0   :  { %2311 = vmatprep.subr.bf16.mxu0 %v6216_v53 }
  0xf3   :  { %2312 = vmatpush1.bf16.msra.mxu0 %v6214_v54  ;;  %v6262_v54 = vld [vmem:[%s8763_s1 + $0x708] ss:$12 sps:$4 sm:$0xff]  }
  0xf4   :  { %2313 = vmatprep.subr.bf16.mxu0 %v6219_v55  ;;  %v6267_v55 = vld [vmem:[%s8763_s1 + $0x724] ss:$12 sps:$4 sm:$0xff]  }
  0xf7   :  { %2314 = vmatpush1.bf16.msra.mxu0 %v6217_v56  ;;  %v6265_v56 = vld [vmem:[%s8763_s1 + $0x720] ss:$12 sps:$4 sm:$0xff]  }
  0xf8   :  { %2315 = vmatprep.subr.bf16.mxu0 %v6222_v57  ;;  %v6270_v57 = vld [vmem:[%s8763_s1 + $0x73c] ss:$12 sps:$4 sm:$0xff]  }
  0xf9   :  { %v5582_v7 = vpop.f32.mrb[0].mxu1 }
  0xfa   :  { %v5583_v8 = vpop.f32.mrb[1].mxu1 }
  0xfb   :  { %2316 = vmatpush1.bf16.msra.mxu0 %v6220_v58  ;;  %v5584_v11 = vadd.f32 %v5583_v8, %v5582_v7  ;;  %v5585_v13 = vpop.f32.mrb[2].mxu1  ;;  %v6268_v58 = vld [vmem:[%s8763_s1 + $0x738] ss:$12 sps:$4 sm:$0xff]  }
  0xfc   :  { %2317 = vmatprep.subr.bf16.mxu0 %v6225_v59  ;;  %v5586_v14 = vpop.f32.mrb[3].mxu1  ;;  %v6276_v8 = vld [vmem:[%s8763_s1 + $0x76c] ss:$12 sps:$4 sm:$0xff]  }
  0xfd   :  { %v5587_v15 = vadd.f32 %v5586_v14, %v5585_v13  ;;  %v2481_v40 = vadd.f32 %v5584_v11, %v468_v12  ;;  %v6274_v11 = vld [vmem:[%s8763_s1 + $0x768] ss:$12 sps:$4 sm:$0xff]   ;;  %v6279_v13 = vld [vmem:[%s8763_s1 + $0x784] ss:$12 sps:$4 sm:$0xff]   ;;  %v6277_v14 = vld [vmem:[%s8763_s1 + $0x780] ss:$12 sps:$4 sm:$0xff]  }
  0xff   :  { %2318 = vmatpush1.bf16.msra.mxu0 %v6223_v60  ;;  %v2484_v43 = vadd.f32 %v5587_v15, %v468_v12  ;;  %v6282_v15 = vld [vmem:[%s8763_s1 + $0x79c] ss:$12 sps:$4 sm:$0xff]  }
 0x100   :  { %2340 = vmatprep.subr.bf16.mxu0 %v6230_v62  ;;  %v6273_v62 = vld [vmem:[%s8763_s1 + $0x754] ss:$12 sps:$4 sm:$0xff]  }
 0x101   :  { %v5588_v21 = vpop.f32.mrb[4].mxu1 }
 0x102   :  { %2320 = vmatmul.mubr.bf16.vlgmr.msra.gmra.mrb[0].mxu0 %v7185_v23  ;;  %v6240_v23 = vld [vmem:[%s8763_s1 + $0x64c] ss:$12 sps:$4 sm:$0xff]   ;;  %v5589_v25 = vpop.f32.mrb[5].mxu1 }
 0x103   :  { %2341 = vmatpush1.bf16.msra.mxu0 %v6228_v63  ;;  %2329 = vmatprep.mubr.bf16.mxu0 %v7224_v35  ;;  %v6238_v35 = vld [vmem:[%s8763_s1 + $0x648] ss:$12 sps:$4 sm:$0xff]   ;;  %v5590_v26 = vadd.f32 %v5589_v25, %v5588_v21  ;;  %v5591_v52 = vpop.f32.mrb[6].mxu1 }
 0x104   :  { %2342 = vmatprep.subr.bf16.mxu0 %v6234_v0  ;;  %v5592_v27 = vpop.f32.mrb[7].mxu1 }
 0x105   :  { %v5593_v29 = vadd.f32 %v5592_v27, %v5591_v52  ;;  %v2489_v59 = vadd.f32 %v5590_v26, %v468_v12  ;;  %v6286_v52 = vld [vmem:[%s8763_s1 + $0x7c8] ss:$12 sps:$4 sm:$0xff]   ;;  %v6291_v27 = vld [vmem:[%s8763_s1 + $0x7e4] ss:$12 sps:$4 sm:$0xff]  }
 0x107   :  { %2343 = vmatpush1.bf16.msra.mxu0 %v6232_v1  ;;  %v2492_v0 = vadd.f32 %v5593_v29, %v468_v12 }
 0x108   :  { %2344 = vmatprep.subr.bf16.mxu0 %v6237_v3 }
 0x10a   :  { %2330 = vmatmul.mubr.bf16.gmra.mrb[4].mxu0 %v7232_v37  ;;  %v6241_v37 = vld [vmem:[%s8763_s1 + $0x660] ss:$12 sps:$4 sm:$0xff]  }
 0x10b   :  { %2345 = vmatpush1.bf16.msra.mxu0 %v6235_v5  ;;  %2372 = vmatprep.mubr.bf16.mxu0 %v7260_v45  ;;  %v6246_v45 = vld [vmem:[%s8763_s1 + $0x67c] ss:$12 sps:$4 sm:$0xff]  }
 0x10c   :  { %2346 = vmatprep.subr.bf16.mxu0 %v6240_v23  ;;  %v6271_v23 = vld [vmem:[%s8763_s1 + $0x750] ss:$12 sps:$4 sm:$0xff]  }
 0x10f   :  { %2347 = vmatpush1.bf16.msra.mxu0 %v6238_v35 }
 0x110   :  { %2348 = vmatprep.subr.bf16.mxu0 %v6243_v10 }
 0x113   :  { %2349 = vmatpush1.bf16.msra.mxu0 %v6241_v37  ;;  %v6280_v37 = vld [vmem:[%s8763_s1 + $0x798] ss:$12 sps:$4 sm:$0xff]  }
 0x114   :  { %2350 = vmatprep.subr.bf16.mxu0 %v6246_v45  ;;  %v6285_v45 = vld [vmem:[%s8763_s1 + $0x7b4] ss:$12 sps:$4 sm:$0xff]  }
 0x117   :  { %2351 = vmatpush1.bf16.msra.mxu0 %v6244_v16 }
 0x118   :  { %2352 = vmatprep.subr.bf16.mxu0 %v6249_v18 }
 0x11a   :  { %v5610_v41 = vpop.f32.mrb[8].mxu1 }
 0x11b   :  { %2353 = vmatpush1.bf16.msra.mxu0 %v6247_v20  ;;  %v5611_v42 = vpop.f32.mrb[9].mxu1 }
 0x11c   :  { %2354 = vmatprep.subr.bf16.mxu0 %v6252_v22  ;;  %v5612_v44 = vadd.f32 %v5611_v42, %v5610_v41  ;;  %v5613_v46 = vpop.f32.mrb[10].mxu1  ;;  %v6295_v42 = vld [vmem:[%s8763_s1 + $0x810] ss:$12 sps:$4 sm:$0xff]  }
 0x11d   :  { %v5614_v48 = vpop.f32.mrb[11].mxu1 }
 0x11e   :  { %v2530_v50 = vadd.f32 %v5612_v44, %v2481_v40  ;;  %v5615_v51 = vadd.f32 %v5614_v48, %v5613_v46  ;;  %v6298_v44 = vld [vmem:[%s8763_s1 + $0x828] ss:$12 sps:$4 sm:$0xff]   ;;  %v6303_v46 = vld [vmem:[%s8763_s1 + $0x844] ss:$12 sps:$4 sm:$0xff]  }
 0x11f   :  { %2355 = vmatpush1.bf16.msra.mxu0 %v6250_v28  ;;  %v6289_v28 = vld [vmem:[%s8763_s1 + $0x7e0] ss:$12 sps:$4 sm:$0xff]   ;;  %v6306_v48 = vld [vmem:[%s8763_s1 + $0x85c] ss:$12 sps:$4 sm:$0xff]  }
 0x120   :  { %2356 = vmatprep.subr.bf16.mxu0 %v6255_v2  ;;  %v2533_v53 = vadd.f32 %v5615_v51, %v2484_v43  ;;  %v6300_v43 = vld [vmem:[%s8763_s1 + $0x82c] ss:$12 sps:$4 sm:$0xff]  }
 0x122   :  { %v5616_v60 = vpop.f32.mrb[12].mxu1 }
 0x123   :  { %2357 = vmatpush1.bf16.msra.mxu0 %v6253_v32  ;;  %v5617_v63 = vpop.f32.mrb[13].mxu1 }
 0x124   :  { %2358 = vmatprep.subr.bf16.mxu0 %v6258_v34  ;;  %v5618_v1 = vadd.f32 %v5617_v63, %v5616_v60  ;;  %v5619_v3 = vpop.f32.mrb[14].mxu1  ;;  %v6310_v63 = vld [vmem:[%s8763_s1 + $0x888] ss:$12 sps:$4 sm:$0xff]  }
 0x125   :  { %v5620_v5 = vpop.f32.mrb[15].mxu1 }
 0x126   :  { %v2538_v7 = vadd.f32 %v5618_v1, %v2489_v59  ;;  %v5621_v35 = vadd.f32 %v5620_v5, %v5619_v3  ;;  %v6313_v1 = vld [vmem:[%s8763_s1 + $0x8a0] ss:$12 sps:$4 sm:$0xff]   ;;  %v6318_v5 = vld [vmem:[%s8763_s1 + $0x8bc] ss:$12 sps:$4 sm:$0xff]  }
 0x127   :  { %2359 = vmatpush1.bf16.msra.mxu0 %v6256_v36  ;;  %v6297_v36 = vld [vmem:[%s8763_s1 + $0x814] ss:$12 sps:$4 sm:$0xff]  }
 0x128   :  { %2360 = vmatprep.subr.bf16.mxu0 %v6261_v38  ;;  %v2541_v10 = vadd.f32 %v5621_v35, %v2492_v0  ;;  %v6315_v0 = vld [vmem:[%s8763_s1 + $0x8a4] ss:$12 sps:$4 sm:$0xff]  }
 0x12b   :  { %2361 = vmatpush1.bf16.msra.mxu0 %v6259_v47  ;;  %v6301_v47 = vld [vmem:[%s8763_s1 + $0x840] ss:$12 sps:$4 sm:$0xff]  }
 0x12c   :  { %2362 = vmatprep.subr.bf16.mxu0 %v6264_v49  ;;  %v6304_v49 = vld [vmem:[%s8763_s1 + $0x858] ss:$12 sps:$4 sm:$0xff]  }
 0x12f   :  { %2363 = vmatpush1.bf16.msra.mxu0 %v6262_v54 }
 0x130   :  { %2364 = vmatprep.subr.bf16.mxu0 %v6267_v55 }
 0x133   :  { %2365 = vmatpush1.bf16.msra.mxu0 %v6265_v56  ;;  %v6307_v56 = vld [vmem:[%s8763_s1 + $0x870] ss:$12 sps:$4 sm:$0xff]  }
 0x134   :  { %2366 = vmatprep.subr.bf16.mxu0 %v6270_v57 }
 0x137   :  { %2367 = vmatpush1.bf16.msra.mxu0 %v6268_v58  ;;  %v6312_v58 = vld [vmem:[%s8763_s1 + $0x88c] ss:$12 sps:$4 sm:$0xff]  }
 0x138   :  { %2368 = vmatprep.subr.bf16.mxu0 %v6273_v62 }
 0x13a   :  { %v5638_v16 = vpop.f32.mrb[16].mxu1 }
 0x13b   :  { %2369 = vmatpush1.bf16.msra.mxu0 %v6271_v23  ;;  %v5639_v18 = vpop.f32.mrb[17].mxu1 }
 0x13c   :  { %2370 = vmatprep.subr.bf16.mxu0 %v6276_v8  ;;  %v5640_v19 = vadd.f32 %v5639_v18, %v5638_v16  ;;  %v5641_v20 = vpop.f32.mrb[18].mxu1  ;;  %v6322_v16 = vld [vmem:[%s8763_s1 + $0x8e8] ss:$12 sps:$4 sm:$0xff]  }
 0x13d   :  { %v5642_v21 = vpop.f32.mrb[19].mxu1 }
 0x13e   :  { %v2579_v22 = vadd.f32 %v5640_v19, %v2530_v50  ;;  %v5643_v25 = vadd.f32 %v5642_v21, %v5641_v20  ;;  %v6309_v50 = vld [vmem:[%s8763_s1 + $0x874] ss:$12 sps:$4 sm:$0xff]  }
 0x13f   :  { %2371 = vmatpush1.bf16.msra.mxu0 %v6274_v11 }
 0x140   :  { %2393 = vmatprep.subr.bf16.mxu0 %v6279_v13  ;;  %v2582_v26 = vadd.f32 %v5643_v25, %v2533_v53 }
 0x142   :  { %2373 = vmatmul.mubr.bf16.vlgmr.msra.gmra.mrb[0].mxu0 %v7308_v61  ;;  %v6283_v61 = vld [vmem:[%s8763_s1 + $0x7b0] ss:$12 sps:$4 sm:$0xff]   ;;  %v5644_v29 = vpop.f32.mrb[20].mxu1 }
 0x143   :  { %2394 = vmatpush1.bf16.msra.mxu0 %v6277_v14  ;;  %2382 = vmatprep.mubr.bf16.mxu0 %v7332_v6  ;;  %v6288_v6 = vld [vmem:[%s8763_s1 + $0x7cc] ss:$12 sps:$4 sm:$0xff]   ;;  %v5645_v2 = vpop.f32.mrb[21].mxu1  ;;  %v6321_v14 = vld [vmem:[%s8763_s1 + $0x8d4] ss:$12 sps:$4 sm:$0xff]  }
 0x144   :  { %2395 = vmatprep.subr.bf16.mxu0 %v6282_v15  ;;  %v5646_v32 = vadd.f32 %v5645_v2, %v5644_v29  ;;  %v5647_v34 = vpop.f32.mrb[22].mxu1 }
 0x145   :  { %v5648_v12 = vpop.f32.mrb[23].mxu1 }
 0x146   :  { %v2587_v38 = vadd.f32 %v5646_v32, %v2538_v7  ;;  %v5649_v40 = vadd.f32 %v5648_v12, %v5647_v34 }
 0x147   :  { %2396 = vmatpush1.bf16.msra.mxu0 %v6280_v37  ;;  %v6319_v37 = vld [vmem:[%s8763_s1 + $0x8d0] ss:$12 sps:$4 sm:$0xff]  }
 0x148   :  { %2397 = vmatprep.subr.bf16.mxu0 %v6285_v45  ;;  %v2590_v41 = vadd.f32 %v5649_v40, %v2541_v10  ;;  %v6316_v10 = vld [vmem:[%s8763_s1 + $0x8b8] ss:$12 sps:$4 sm:$0xff]  }
 0x149   :  { %v6324_v45 = vld [vmem:[%s8763_s1 + $0x8ec] ss:$12 sps:$4 sm:$0xff]  }
 0x14a   :  { %2383 = vmatmul.mubr.bf16.gmra.mrb[4].mxu0 %v7344_v9  ;;  %v6294_v9 = vld [vmem:[%s8763_s1 + $0x7fc] ss:$12 sps:$4 sm:$0xff]  }
 0x14b   :  { %2398 = vmatpush1.bf16.msra.mxu0 %v6283_v61  ;;  %2425 = vmatprep.mubr.bf16.mxu0 %v7368_v17  ;;  %v6292_v17 = vld [vmem:[%s8763_s1 + $0x7f8] ss:$12 sps:$4 sm:$0xff]  }
 0x14c   :  { %2399 = vmatprep.subr.bf16.mxu0 %v6288_v6 }
 0x14f   :  { %2400 = vmatpush1.bf16.msra.mxu0 %v6286_v52 }
 0x150   :  { %2401 = vmatprep.subr.bf16.mxu0 %v6291_v27 }
 0x153   :  { %2402 = vmatpush1.bf16.msra.mxu0 %v6289_v28 }
 0x154   :  { %2403 = vmatprep.subr.bf16.mxu0 %v6294_v9 }
 0x157   :  { %2404 = vmatpush1.bf16.msra.mxu0 %v6292_v17 }
 0x158   :  { %2405 = vmatprep.subr.bf16.mxu0 %v6297_v36 }
 0x15a   :  { %v5666_v51 = vpop.f32.mrb[24].mxu1 }
 0x15b   :  { %2406 = vmatpush1.bf16.msra.mxu0 %v6295_v42  ;;  %v5667_v53 = vpop.f32.mrb[25].mxu1 }
 0x15c   :  { %2407 = vmatprep.subr.bf16.mxu0 %v6300_v43  ;;  %v5668_v54 = vadd.f32 %v5667_v53, %v5666_v51  ;;  %v5669_v55 = vpop.f32.mrb[26].mxu1 }
 0x15d   :  { %v5670_v57 = vpop.f32.mrb[27].mxu1 }
 0x15e   :  { %v2628_v59 = vadd.f32 %v5668_v54, %v2579_v22  ;;  %v5671_v60 = vadd.f32 %v5670_v57, %v5669_v55  ;;  %v451_v57 = vld [vmem:[%s8767_s4 + $0x40] sm:$0xff] }
 0x15f   :  { %2408 = vmatpush1.bf16.msra.mxu0 %v6298_v44  ;;  %v448_v44 = vld [vmem:[%s8767_s4 + $0x28] sm:$0xff] }
 0x160   :  { %2409 = vmatprep.subr.bf16.mxu0 %v6303_v46  ;;  %v2631_v62 = vadd.f32 %v5671_v60, %v2582_v26  ;;  %v454_v60 = vld [vmem:[%s8767_s4 + $0x58] sm:$0xff] }
 0x162   :  { %v5672_v3 = vpop.f32.mrb[28].mxu1 }
 0x163   :  { %2410 = vmatpush1.bf16.msra.mxu0 %v6301_v47  ;;  %v5673_v23 = vpop.f32.mrb[29].mxu1 }
 0x164   :  { %2411 = vmatprep.subr.bf16.mxu0 %v6306_v48  ;;  %v5674_v7 = vadd.f32 %v5673_v23, %v5672_v3  ;;  %v5675_v35 = vpop.f32.mrb[30].mxu1  ;;  %v7769_v3 = vsub.s32 1, %v7559_v24 }
 0x165   :  { %v5676_v8 = vpop.f32.mrb[31].mxu1 }
 0x166   :  { %v2636_v11 = vadd.f32 %v5674_v7, %v2587_v38  ;;  %v5677_v13 = vadd.f32 %v5676_v8, %v5675_v35  ;;  %v464_v23 = vrot.slane %v7573_v31, %v7769_v3 }
 0x167   :  { %2412 = vmatpush1.bf16.msra.mxu0 %v6304_v49 }
 0x168   :  { %2413 = vmatprep.subr.bf16.mxu0 %v6309_v50  ;;  %v2639_v15 = vadd.f32 %v5677_v13, %v2590_v41  ;;  %v445_v41 = vld [vmem:[%s8767_s4 + $0x10] sm:$0xff]  ;;  %v443_v13 = vld [vmem:[%s8767_s4] sm:$0xff] }
 0x16b   :  { %2414 = vmatpush1.bf16.msra.mxu0 %v6307_v56 }
 0x16c   :  { %2415 = vmatprep.subr.bf16.mxu0 %v6312_v58 }
 0x16f   :  { %2416 = vmatpush1.bf16.msra.mxu0 %v6310_v63 }
 0x170   :  { %2417 = vmatprep.subr.bf16.mxu0 %v6315_v0 }
 0x173   :  { %2418 = vmatpush1.bf16.msra.mxu0 %v6313_v1  ;;  %v7766_v1 = vsub.s32 0, %v7559_v24 }
 0x174   :  { %2419 = vmatprep.subr.bf16.mxu0 %v6318_v5 }
 0x175   :  { %v460_v5 = vrot.slane %v7573_v31, %v7766_v1 }
 0x177   :  { %2420 = vmatpush1.bf16.msra.mxu0 %v6316_v10 }
 0x178   :  { %2421 = vmatprep.subr.bf16.mxu0 %v6321_v14 }
 0x17a   :  { %v5694_v18 = vpop.f32.mrb[32].mxu1 }
 0x17b   :  { %2422 = vmatpush1.bf16.msra.mxu0 %v6319_v37  ;;  %v5695_v19 = vpop.f32.mrb[33].mxu1 }
 0x17c   :  { %2423 = vmatprep.subr.bf16.mxu0 %v6324_v45  ;;  %v5696_v20 = vadd.f32 %v5695_v19, %v5694_v18  ;;  %v5697_v61 = vpop.f32.mrb[34].mxu1  ;;  %v444_v45 = vld [vmem:[%s8767_s4 + $0x8] sm:$0xff]  ;;  %v446_v19 = vld [vmem:[%s8767_s4 + $0x18] sm:$0xff] }
 0x17d   :  { %v5698_v21 = vpop.f32.mrb[35].mxu1 }
 0x17e   :  { %v2677_v6 = vadd.f32 %v5696_v20, %v2628_v59  ;;  %v5699_v22 = vadd.f32 %v5698_v21, %v5697_v61 }
 0x17f   :  { %2424 = vmatpush1.bf16.msra.mxu0 %v6322_v16 }
 0x180   :  { %v2680_v25 = vadd.f32 %v5699_v22, %v2631_v62 }
 0x182   :  { %2426 = vmatmul.mubr.bf16.vlgmr.msra.gmra.mrb[0].mxu0 %v7426_v33  ;;  %v5700_v26 = vpop.f32.mrb[36].mxu1 }
 0x183   :  { %2435 = vmatprep.mubr.bf16.mxu0 %v7431_v4  ;;  %v5701_v52 = vpop.f32.mrb[37].mxu1  ;;  %v2740_v4 = vld [vmem:[%s8766_s3] sm:$0x7] }
 0x184   :  { %v5702_v27 = vadd.f32 %v5701_v52, %v5700_v26  ;;  %v5703_v28 = vpop.f32.mrb[38].mxu1  ;;  %v2753_v12 = vrot.slane %v2740_v4, %v7568_v30  ;;  %v2745_v7 = vrot.slane %v2740_v4, %v7766_v1  ;;  %v2749_v8 = vrot.slane %v2740_v4, %v7769_v3 }
 0x185   :  { %v5704_v9 = vpop.f32.mrb[39].mxu1 }
 0x186   :  { %v2685_v29 = vadd.f32 %v5702_v27, %v2636_v11  ;;  %v5705_v2 = vadd.f32 %v5704_v9, %v5703_v28 }
 0x188   :  { %v2688_v33 = vadd.f32 %v5705_v2, %v2639_v15  ;;  %v449_v2 = vld [vmem:[%s8767_s4 + $0x30] sm:$0xff] }
 0x18a   :  { %2436 = vmatmul.mubr.bf16.gmra.mrb[4].mxu0 %v7450_v39 }
 0x19a   :  { %v5722_v32 = vpop.f32.mrb[40].mxu1 }
 0x19b   :  { %v5723_v34 = vpop.f32.mrb[41].mxu1 }
 0x19c   :  { %v5724_v17 = vadd.f32 %v5723_v34, %v5722_v32  ;;  %v5725_v36 = vpop.f32.mrb[42].mxu1 }
 0x19d   :  { %v5726_v39 = vpop.f32.mrb[43].mxu1 }
 0x19e   :  { %v2726_v38 = vadd.f32 %v5724_v17, %v2677_v6  ;;  %v5727_v40 = vadd.f32 %v5726_v39, %v5725_v36  ;;  %v447_v6 = vld [vmem:[%s8767_s4 + $0x20] sm:$0xff] }
 0x1a0   :  { %v2759_v42 = vmul.f32 %v2753_v12, %v2726_v38  ;;  %v2729_v43 = vadd.f32 %v5727_v40, %v2680_v25  ;;  %v452_v40 = vld [vmem:[%s8767_s4 + $0x48] sm:$0xff] }
 0x1a2   :  { %v2762_v46 = vmul.f32 %v2753_v12, %v2729_v43  ;;  %v5728_v47 = vpop.f32.mrb[44].mxu1  ;;  %v7735_v48 = vadd.f32 %v2759_v42, %v445_v41 }
 0x1a3   :  { %v5729_v49 = vpop.f32.mrb[45].mxu1 }
 0x1a4   :  { %v5730_v50 = vadd.f32 %v5729_v49, %v5728_v47  ;;  %v5731_v51 = vpop.f32.mrb[46].mxu1  ;;  %2783 = vst [vmem:[%s8768_s9 + $0x10] sm:$0xff] %v7735_v48  ;;  %v7741_v53 = vadd.f32 %v2762_v46, %v448_v44  ;;  %v453_v44 = vld [vmem:[%s8767_s4 + $0x50] sm:$0xff] }
 0x1a5   :  { %v5732_v54 = vpop.f32.mrb[47].mxu1 }
 0x1a6   :  { %v2734_v55 = vadd.f32 %v5730_v50, %v2685_v29  ;;  %v5733_v56 = vadd.f32 %v5732_v54, %v5731_v51  ;;  %2786 = vst [vmem:[%s8768_s9 + $0x28] sm:$0xff] %v7741_v53 }
 0x1a8   :  { %v2765_v58 = vmul.f32 %v2753_v12, %v2734_v55  ;;  %v2737_v59 = vadd.f32 %v5733_v56, %v2688_v33 }
 0x1aa   :  { %v2768_v62 = vmul.f32 %v2753_v12, %v2737_v59  ;;  %v7753_v63 = vadd.f32 %v2765_v58, %v451_v57  ;;  %v450_v12 = vld [vmem:[%s8767_s4 + $0x38] sm:$0xff]  ;;  %v6325_v58 = vld [vmem:[%s8769_s7] ss:$36 sps:$4 sm:$0xff]  }
 0x1ab   :  { %v6327_v59 = vld [vmem:[%s8769_s7 + $0x4] ss:$36 sps:$4 sm:$0xff]  }
 0x1ac   :  { %2789 = vst [vmem:[%s8768_s9 + $0x40] sm:$0xff] %v7753_v63  ;;  %v7759_v0 = vadd.f32 %v2768_v62, %v454_v60  ;;  %v6328_v60 = vld [vmem:[%s8769_s7 + $0x10] ss:$36 sps:$4 sm:$0xff]   ;;  %4335 = vmatprep.subr.bf16.mxu1 %v6327_v59 }
 0x1ad   :  { %v6330_v62 = vld [vmem:[%s8769_s7 + $0x14] ss:$36 sps:$4 sm:$0xff]   ;;  %4336 = vmatpush1.bf16.msra.mxu1 %v6325_v58 }
 0x1ae   :  { %2792 = vst [vmem:[%s8768_s9 + $0x58] sm:$0xff] %v7759_v0  ;;  %4547 = vmatprep.subr.bf16.mxu0 %v6330_v62 }
 0x1af   :  { %4548 = vmatpush1.bf16.msra.mxu0 %v6328_v60 }
 0x255   :  { %v2427_v35 = vpop.f32.mrb[0].mxu0 }
 0x256   :  { %v5792_v10 = vadd.f32 %v2427_v35, %v460_v5  ;;  %v2429_v11 = vpop.f32.mrb[1].mxu0  ;;  %v6336_v35 = vld [vmem:[%s8769_s7 + $0x5c] ss:$36 sps:$4 sm:$0xff]  }
 0x257   :  { %v5793_v14 = vadd.f32 %v2429_v11, %v464_v23  ;;  %v2431_v15 = vpop.f32.mrb[2].mxu0  ;;  %4549 = vmatprep.subr.bf16.mxu0 %v6336_v35  ;;  %v6342_v11 = vld [vmem:[%s8769_s7 + $0xa4] ss:$36 sps:$4 sm:$0xff]  }
 0x258   :  { %v2757_v37 = vmul.f32 %v5792_v10, %v2745_v7  ;;  %v5794_v16 = vadd.f32 %v2431_v15, %v460_v5  ;;  %v2433_v31 = vpop.f32.mrb[3].mxu0  ;;  %v6337_v10 = vld [vmem:[%s8769_s7 + $0x90] ss:$36 sps:$4 sm:$0xff]  }
 0x259   :  { %v2758_v18 = vmul.f32 %v5793_v14, %v2749_v8  ;;  %v5795_v20 = vadd.f32 %v2433_v31, %v464_v23  ;;  %v6345_v14 = vld [vmem:[%s8769_s7 + $0xdc] ss:$36 sps:$4 sm:$0xff]   ;;  %v6348_v15 = vld [vmem:[%s8769_s7 + $0xec] ss:$36 sps:$4 sm:$0xff]   ;;  %v6354_v31 = vld [vmem:[%s8769_s7 + $0x134] ss:$36 sps:$4 sm:$0xff]  }
 0x25a   :  { %v7786_v61 = vadd.f32 %v2757_v37, %v443_v13  ;;  %v2760_v21 = vmul.f32 %v5794_v16, %v2745_v7  ;;  %v6340_v13 = vld [vmem:[%s8769_s7 + $0xa0] ss:$36 sps:$4 sm:$0xff]   ;;  %v6343_v37 = vld [vmem:[%s8769_s7 + $0xd8] ss:$36 sps:$4 sm:$0xff]  }
 0x25b   :  { %v7791_v22 = vadd.f32 %v2758_v18, %v444_v45  ;;  %v2761_v25 = vmul.f32 %v5795_v20, %v2749_v8  ;;  %v6346_v45 = vld [vmem:[%s8769_s7 + $0xe8] ss:$36 sps:$4 sm:$0xff]   ;;  %v6349_v18 = vld [vmem:[%s8769_s7 + $0x120] ss:$36 sps:$4 sm:$0xff]  }
 0x25c   :  { %2781 = vst [vmem:[%s8768_s9] sm:$0xff] %v7786_v61  ;;  %v7797_v26 = vadd.f32 %v2760_v21, %v446_v19  ;;  %v6351_v16 = vld [vmem:[%s8769_s7 + $0x124] ss:$36 sps:$4 sm:$0xff]   ;;  %v6352_v19 = vld [vmem:[%s8769_s7 + $0x130] ss:$36 sps:$4 sm:$0xff]   ;;  %v6360_v21 = vld [vmem:[%s8769_s7 + $0x17c] ss:$36 sps:$4 sm:$0xff]  }
 0x25d   :  { %2782 = vst [vmem:[%s8768_s9 + $0x8] sm:$0xff] %v7791_v22  ;;  %v7803_v52 = vadd.f32 %v2761_v25, %v447_v6  ;;  %v2437_v27 = vpop.f32.mrb[4].mxu0  ;;  %v2795_v28 = vadd.f32 %v7791_v22, %v7786_v61  ;;  %v6357_v20 = vld [vmem:[%s8769_s7 + $0x16c] ss:$36 sps:$4 sm:$0xff]   ;;  %v6358_v25 = vld [vmem:[%s8769_s7 + $0x178] ss:$36 sps:$4 sm:$0xff]  }
 0x25e   :  { %2784 = vst [vmem:[%s8768_s9 + $0x18] sm:$0xff] %v7797_v26  ;;  %v5796_v9 = vadd.f32 %v2437_v27, %v460_v5  ;;  %v2439_v29 = vpop.f32.mrb[5].mxu0  ;;  %v6355_v6 = vld [vmem:[%s8769_s7 + $0x168] ss:$36 sps:$4 sm:$0xff]   ;;  %v6363_v27 = vld [vmem:[%s8769_s7 + $0x1b4] ss:$36 sps:$4 sm:$0xff]  }
 0x25f   :  { %2785 = vst [vmem:[%s8768_s9 + $0x20] sm:$0xff] %v7803_v52  ;;  %v5797_v33 = vadd.f32 %v2439_v29, %v464_v23  ;;  %v2441_v4 = vpop.f32.mrb[6].mxu0  ;;  %v2796_v32 = vadd.f32 %v2795_v28, %v7735_v48  ;;  %v2799_v34 = vadd.f32 %v7803_v52, %v7797_v26  ;;  %v6366_v28 = vld [vmem:[%s8769_s7 + $0x1c4] ss:$36 sps:$4 sm:$0xff]  }
 0x260   :  { %v2763_v17 = vmul.f32 %v5796_v9, %v2745_v7  ;;  %v5798_v36 = vadd.f32 %v2441_v4, %v460_v5  ;;  %v2443_v39 = vpop.f32.mrb[7].mxu0  ;;  %v6331_v5 = vld [vmem:[%s8769_s7 + $0x48] ss:$36 sps:$4 sm:$0xff]   ;;  %v6361_v9 = vld [vmem:[%s8769_s7 + $0x1b0] ss:$36 sps:$4 sm:$0xff]  }
 0x261   :  { %v2764_v38 = vmul.f32 %v5797_v33, %v2749_v8  ;;  %v5799_v41 = vadd.f32 %v2443_v39, %v464_v23  ;;  %2797 = vadd.xlane.f32.xlu0 %v2796_v32  ;;  %v2800_v49 = vadd.f32 %v2799_v34, %v7741_v53  ;;  %v6333_v23 = vld [vmem:[%s8769_s7 + $0x4c] ss:$36 sps:$4 sm:$0xff]   ;;  %v6364_v29 = vld [vmem:[%s8769_s7 + $0x1c0] ss:$36 sps:$4 sm:$0xff]   ;;  %v6367_v33 = vld [vmem:[%s8769_s7 + $0x1f8] ss:$36 sps:$4 sm:$0xff]  }
 0x262   :  { %v7827_v42 = vadd.f32 %v2763_v17, %v449_v2  ;;  %v2766_v43 = vmul.f32 %v5798_v36, %v2745_v7  ;;  %v6334_v7 = vld [vmem:[%s8769_s7 + $0x58] ss:$36 sps:$4 sm:$0xff]   ;;  %4337 = vmatprep.subr.bf16.mxu1 %v6333_v23  ;;  %v6372_v4 = vld [vmem:[%s8769_s7 + $0x20c] ss:$36 sps:$4 sm:$0xff]   ;;  %v6375_v34 = vld [vmem:[%s8769_s7 + $0x244] ss:$36 sps:$4 sm:$0xff]  }
 0x263   :  { %v7832_v46 = vadd.f32 %v2764_v38, %v450_v12  ;;  %v2767_v47 = vmul.f32 %v5799_v41, %v2749_v8  ;;  %v6339_v8 = vld [vmem:[%s8769_s7 + $0x94] ss:$36 sps:$4 sm:$0xff]   ;;  %4338 = vmatpush1.bf16.msra.mxu1 %v6331_v5  ;;  %4550 = vmatpush1.bf16.msra.mxu0 %v6334_v7  ;;  %v6369_v2 = vld [vmem:[%s8769_s7 + $0x1fc] ss:$36 sps:$4 sm:$0xff]   ;;  %v6370_v32 = vld [vmem:[%s8769_s7 + $0x208] ss:$36 sps:$4 sm:$0xff]  }
 0x264   :  { %2787 = vst [vmem:[%s8768_s9 + $0x30] sm:$0xff] %v7827_v42  ;;  %v7839_v50 = vadd.f32 %v2766_v43, %v452_v40  ;;  %4339 = vmatprep.subr.bf16.mxu1 %v6339_v8  ;;  %4551 = vmatprep.subr.bf16.mxu0 %v6342_v11  ;;  %v6378_v17 = vld [vmem:[%s8769_s7 + $0x254] ss:$36 sps:$4 sm:$0xff]   ;;  %v6373_v12 = vld [vmem:[%s8769_s7 + $0x240] ss:$36 sps:$4 sm:$0xff]  }
 0x265   :  { %2788 = vst [vmem:[%s8768_s9 + $0x38] sm:$0xff] %v7832_v46  ;;  %v7845_v51 = vadd.f32 %v2767_v47, %v453_v44  ;;  %2801 = vadd.xlane.f32.xlu0 %v2800_v49  ;;  %v2803_v54 = vadd.f32 %v7832_v46, %v7827_v42  ;;  %v6376_v36 = vld [vmem:[%s8769_s7 + $0x250] ss:$36 sps:$4 sm:$0xff]   ;;  %v6384_v38 = vld [vmem:[%s8769_s7 + $0x29c] ss:$36 sps:$4 sm:$0xff]  }
 0x266   :  { %2790 = vst [vmem:[%s8768_s9 + $0x48] sm:$0xff] %v7839_v50  ;;  %v6381_v39 = vld [vmem:[%s8769_s7 + $0x28c] ss:$36 sps:$4 sm:$0xff]   ;;  %v6382_v41 = vld [vmem:[%s8769_s7 + $0x298] ss:$36 sps:$4 sm:$0xff]  }
 0x267   :  { %2791 = vst [vmem:[%s8768_s9 + $0x50] sm:$0xff] %v7845_v51  ;;  %v2804_v55 = vadd.f32 %v2803_v54, %v7753_v63  ;;  %v2807_v56 = vadd.f32 %v7845_v51, %v7839_v50  ;;  %4340 = vmatpush1.bf16.msra.mxu1 %v6337_v10  ;;  %4552 = vmatpush1.bf16.msra.mxu0 %v6340_v13  ;;  %v6379_v40 = vld [vmem:[%s8769_s7 + $0x288] ss:$36 sps:$4 sm:$0xff]  }
 0x268   :  { %4341 = vmatprep.subr.bf16.mxu1 %v6345_v14  ;;  %4553 = vmatprep.subr.bf16.mxu0 %v6348_v15 }
 0x269   :  { %2805 = vadd.xlane.f32.xlu1 %v2804_v55  ;;  %v2808_v57 = vadd.f32 %v2807_v56, %v7759_v0 }
 0x26b   :  { %4342 = vmatpush1.bf16.msra.mxu1 %v6343_v37  ;;  %4554 = vmatpush1.bf16.msra.mxu0 %v6346_v45 }
 0x26c   :  { %4343 = vmatprep.subr.bf16.mxu1 %v6351_v16  ;;  %4555 = vmatprep.subr.bf16.mxu0 %v6354_v31 }
 0x26d   :  { %2809 = vadd.xlane.f32.xlu1 %v2808_v57 }
 0x26f   :  { %4344 = vmatpush1.bf16.msra.mxu1 %v6349_v18  ;;  %4556 = vmatpush1.bf16.msra.mxu0 %v6352_v19 }
 0x270   :  { %4345 = vmatprep.subr.bf16.mxu1 %v6357_v20  ;;  %4557 = vmatprep.subr.bf16.mxu0 %v6360_v21 }
 0x273   :  { %4346 = vmatpush1.bf16.msra.mxu1 %v6355_v6  ;;  %4558 = vmatpush1.bf16.msra.mxu0 %v6358_v25  ;;  %v6385_v6 = vld [vmem:[%s8769_s7 + $0x2d0] ss:$36 sps:$4 sm:$0xff]   ;;  %v6388_v25 = vld [vmem:[%s8769_s7 + $0x2e0] ss:$36 sps:$4 sm:$0xff]  }
 0x274   :  { %4347 = vmatprep.subr.bf16.mxu1 %v6363_v27  ;;  %4559 = vmatprep.subr.bf16.mxu0 %v6366_v28  ;;  %v6393_v27 = vld [vmem:[%s8769_s7 + $0x31c] ss:$36 sps:$4 sm:$0xff]   ;;  %v6396_v28 = vld [vmem:[%s8769_s7 + $0x32c] ss:$36 sps:$4 sm:$0xff]  }
 0x277   :  { %4348 = vmatpush1.bf16.msra.mxu1 %v6361_v9  ;;  %4560 = vmatpush1.bf16.msra.mxu0 %v6364_v29  ;;  %v6391_v9 = vld [vmem:[%s8769_s7 + $0x318] ss:$36 sps:$4 sm:$0xff]   ;;  %v6394_v29 = vld [vmem:[%s8769_s7 + $0x328] ss:$36 sps:$4 sm:$0xff]  }
 0x278   :  { %4349 = vmatprep.subr.bf16.mxu1 %v6369_v2  ;;  %4561 = vmatprep.subr.bf16.mxu0 %v6372_v4  ;;  %v6399_v2 = vld [vmem:[%s8769_s7 + $0x364] ss:$36 sps:$4 sm:$0xff]  }
 0x279   :  { %v6397_v4 = vld [vmem:[%s8769_s7 + $0x360] ss:$36 sps:$4 sm:$0xff]  }
 0x27b   :  { %4350 = vmatpush1.bf16.msra.mxu1 %v6367_v33  ;;  %4562 = vmatpush1.bf16.msra.mxu0 %v6370_v32  ;;  %v6402_v33 = vld [vmem:[%s8769_s7 + $0x374] ss:$36 sps:$4 sm:$0xff]  }
 0x27c   :  { %4351 = vmatprep.subr.bf16.mxu1 %v6375_v34  ;;  %4563 = vmatprep.subr.bf16.mxu0 %v6378_v17  ;;  %v6400_v32 = vld [vmem:[%s8769_s7 + $0x370] ss:$36 sps:$4 sm:$0xff]   ;;  %v6408_v17 = vld [vmem:[%s8769_s7 + $0x3bc] ss:$36 sps:$4 sm:$0xff]  }
 0x27d   :  { %v6405_v34 = vld [vmem:[%s8769_s7 + $0x3ac] ss:$36 sps:$4 sm:$0xff]  }
 0x27f   :  { %4352 = vmatpush1.bf16.msra.mxu1 %v6373_v12  ;;  %4564 = vmatpush1.bf16.msra.mxu0 %v6376_v36  ;;  %v6403_v12 = vld [vmem:[%s8769_s7 + $0x3a8] ss:$36 sps:$4 sm:$0xff]   ;;  %v6406_v36 = vld [vmem:[%s8769_s7 + $0x3b8] ss:$36 sps:$4 sm:$0xff]  }
 0x280   :  { %4353 = vmatprep.subr.bf16.mxu1 %v6381_v39  ;;  %4565 = vmatprep.subr.bf16.mxu0 %v6384_v38  ;;  %v6411_v39 = vld [vmem:[%s8769_s7 + $0x3f4] ss:$36 sps:$4 sm:$0xff]  }
 0x281   :  { %v6409_v38 = vld [vmem:[%s8769_s7 + $0x3f0] ss:$36 sps:$4 sm:$0xff]  }
 0x283   :  { %4354 = vmatpush1.bf16.msra.mxu1 %v6379_v40  ;;  %4566 = vmatpush1.bf16.msra.mxu0 %v6382_v41  ;;  %v6412_v40 = vld [vmem:[%s8769_s7 + $0x400] ss:$36 sps:$4 sm:$0xff]  }
 0x284   :  { %v6414_v41 = vld [vmem:[%s8769_s7 + $0x404] ss:$36 sps:$4 sm:$0xff]  }
 0x2ee   :  { %v2798_v43 = vpop.xlane.xlu0 %2797 }
 0x2ef   :  { %v2812_v44 = vmul.f32 0.0026041667, %v2798_v43  ;;  %v6417_v43 = vld [vmem:[%s8769_s7 + $0x43c] ss:$36 sps:$4 sm:$0xff]  }
 0x2f1   :  { %v7982_v47 = vsub.f32 %v7786_v61, %v2812_v44  ;;  %v7985_v49 = vsub.f32 %v7791_v22, %v2812_v44  ;;  %v7988_v54 = vsub.f32 %v7735_v48, %v2812_v44  ;;  %v6420_v44 = vld [vmem:[%s8769_s7 + $0x44c] ss:$36 sps:$4 sm:$0xff]  }
 0x2f2   :  { %v2802_v55 = vpop.xlane.xlu0 %2801 }
 0x2f3   :  { %v2813_v56 = vmul.f32 0.0026041667, %v2802_v55  ;;  %v2828_v57 = vmul.f32 %v7982_v47, %v7982_v47  ;;  %v2829_v58 = vmul.f32 %v7985_v49, %v7985_v49  ;;  %v2830_v59 = vmul.f32 %v7988_v54, %v7988_v54  ;;  %v6415_v55 = vld [vmem:[%s8769_s7 + $0x438] ss:$36 sps:$4 sm:$0xff]  }
 0x2f5   :  { %v7997_v61 = vsub.f32 %v7797_v26, %v2813_v56  ;;  %v8000_v22 = vsub.f32 %v7803_v52, %v2813_v56  ;;  %v8003_v48 = vsub.f32 %v7741_v53, %v2813_v56  ;;  %v2840_v60 = vadd.f32 %v2829_v58, %v2828_v57  ;;  %v6418_v56 = vld [vmem:[%s8769_s7 + $0x448] ss:$36 sps:$4 sm:$0xff]   ;;  %v6426_v58 = vld [vmem:[%s8769_s7 + $0x494] ss:$36 sps:$4 sm:$0xff]  }
 0x2f6   :  { %v2806_v62 = vpop.xlane.xlu1 %2805  ;;  %v6423_v57 = vld [vmem:[%s8769_s7 + $0x484] ss:$36 sps:$4 sm:$0xff]  }
 0x2f7   :  { %v2814_v5 = vmul.f32 0.0026041667, %v2806_v62  ;;  %v2841_v23 = vadd.f32 %v2840_v60, %v2830_v59  ;;  %v2831_v7 = vmul.f32 %v7997_v61, %v7997_v61  ;;  %v2832_v35 = vmul.f32 %v8000_v22, %v8000_v22 }
 0x2f8   :  { %v2833_v26 = vmul.f32 %v8003_v48, %v8003_v48 }
 0x2f9   :  { %v8012_v8 = vsub.f32 %v7827_v42, %v2814_v5  ;;  %v8015_v52 = vsub.f32 %v7832_v46, %v2814_v5  ;;  %v8018_v53 = vsub.f32 %v7753_v63, %v2814_v5  ;;  %2842 = vadd.xlane.f32.xlu0 %v2841_v23  ;;  %v2844_v10 = vadd.f32 %v2832_v35, %v2831_v7 }
 0x2fa   :  { %v2810_v11 = vpop.xlane.xlu1 %2809 }
 0x2fb   :  { %v2815_v13 = vmul.f32 0.0026041667, %v2810_v11  ;;  %v2845_v14 = vadd.f32 %v2844_v10, %v2833_v26  ;;  %v2834_v15 = vmul.f32 %v8012_v8, %v8012_v8  ;;  %v2835_v37 = vmul.f32 %v8015_v52, %v8015_v52 }
 0x2fc   :  { %v2836_v42 = vmul.f32 %v8018_v53, %v8018_v53 }
 0x2fd   :  { %v8027_v46 = vsub.f32 %v7839_v50, %v2815_v13  ;;  %v8030_v63 = vsub.f32 %v7845_v51, %v2815_v13  ;;  %v8033_v45 = vsub.f32 %v7759_v0, %v2815_v13  ;;  %2846 = vadd.xlane.f32.xlu1 %v2845_v14  ;;  %v2848_v16 = vadd.f32 %v2835_v37, %v2834_v15  ;;  %v6387_v0 = vld [vmem:[%s8769_s7 + $0x2d4] ss:$36 sps:$4 sm:$0xff]   ;;  %v6390_v51 = vld [vmem:[%s8769_s7 + $0x2e4] ss:$36 sps:$4 sm:$0xff]   ;;  %v8122_v13 = vld [vmem:[%s8770_s5] sm:$0x7] }
 0x2fe   :  { %4355 = vmatprep.subr.bf16.mxu1 %v6387_v0  ;;  %4567 = vmatprep.subr.bf16.mxu0 %v6390_v51 }
 0x2ff   :  { %v2849_v31 = vadd.f32 %v2848_v16, %v2836_v42  ;;  %v2837_v18 = vmul.f32 %v8027_v46, %v8027_v46  ;;  %v2838_v19 = vmul.f32 %v8030_v63, %v8030_v63  ;;  %v2839_v50 = vmul.f32 %v8033_v45, %v8033_v45  ;;  %4356 = vmatpush1.bf16.msra.mxu1 %v6385_v6 }
 0x300   :  { %4568 = vmatpush1.bf16.msra.mxu0 %v6388_v25  ;;  %4357 = vmatprep.subr.bf16.mxu1 %v6393_v27  ;;  %v2888_v42 = vrot.slane %v8122_v13, %v7769_v3  ;;  %v2884_v16 = vrot.slane %v8122_v13, %v7766_v1 }
 0x301   :  { %2850 = vadd.xlane.f32.xlu0 %v2849_v31  ;;  %v2852_v20 = vadd.f32 %v2838_v19, %v2837_v18  ;;  %4569 = vmatprep.subr.bf16.mxu0 %v6396_v28  ;;  %v8133_v31 = vld [vmem:[%s8771_s6] sm:$0x7] }
 0x302   :  { %v2912_v51 = vrot.slane %v8133_v31, %v7766_v1 }
 0x303   :  { %v2853_v21 = vadd.f32 %v2852_v20, %v2839_v50  ;;  %4358 = vmatpush1.bf16.msra.mxu1 %v6391_v9 }
 0x304   :  { %4570 = vmatpush1.bf16.msra.mxu0 %v6394_v29  ;;  %4359 = vmatprep.subr.bf16.mxu1 %v6399_v2 }
 0x305   :  { %2854 = vadd.xlane.f32.xlu1 %v2853_v21  ;;  %4571 = vmatprep.subr.bf16.mxu0 %v6402_v33  ;;  %v2916_v21 = vrot.slane %v8133_v31, %v7769_v3 }
 0x307   :  { %4360 = vmatpush1.bf16.msra.mxu1 %v6397_v4 }
 0x308   :  { %4572 = vmatpush1.bf16.msra.mxu0 %v6400_v32  ;;  %4361 = vmatprep.subr.bf16.mxu1 %v6405_v34 }
 0x309   :  { %4573 = vmatprep.subr.bf16.mxu0 %v6408_v17 }
 0x30b   :  { %4362 = vmatpush1.bf16.msra.mxu1 %v6403_v12 }
 0x30c   :  { %4574 = vmatpush1.bf16.msra.mxu0 %v6406_v36  ;;  %4363 = vmatprep.subr.bf16.mxu1 %v6411_v39 }
 0x30d   :  { %4575 = vmatprep.subr.bf16.mxu0 %v6414_v41  ;;  %v6430_v41 = vld [vmem:[%s8769_s7 + $0x4d8] ss:$36 sps:$4 sm:$0xff]  }
 0x30f   :  { %4364 = vmatpush1.bf16.msra.mxu1 %v6409_v38 }
 0x310   :  { %4576 = vmatpush1.bf16.msra.mxu0 %v6412_v40  ;;  %4365 = vmatprep.subr.bf16.mxu1 %v6417_v43  ;;  %v6427_v40 = vld [vmem:[%s8769_s7 + $0x4c8] ss:$36 sps:$4 sm:$0xff]  }
 0x311   :  { %4577 = vmatprep.subr.bf16.mxu0 %v6420_v44  ;;  %v6438_v44 = vld [vmem:[%s8769_s7 + $0x524] ss:$36 sps:$4 sm:$0xff]  }
 0x313   :  { %4366 = vmatpush1.bf16.msra.mxu1 %v6415_v55 }
 0x314   :  { %4578 = vmatpush1.bf16.msra.mxu0 %v6418_v56  ;;  %4388 = vmatprep.subr.bf16.mxu1 %v6423_v57 }
 0x315   :  { %4600 = vmatprep.subr.bf16.mxu0 %v6426_v58 }
 0x386   :  { %v2843_v59 = vpop.xlane.xlu0 %2842 }
 0x387   :  { %v2856_v60 = vmul.f32 0.0026041667, %v2843_v59 }
 0x389   :  { %v2860_v62 = vadd.f32 1e-06, %v2856_v60  ;;  %v6433_v60 = vld [vmem:[%s8769_s7 + $0x510] ss:$36 sps:$4 sm:$0xff]  }
 0x38a   :  { %v2847_v5 = vpop.xlane.xlu1 %2846 }
 0x38b   :  { %6637 = vrsqrt.f32 %v2860_v62  ;;  %v2857_v23 = vmul.f32 0.0026041667, %v2847_v5  ;;  %v6436_v62 = vld [vmem:[%s8769_s7 + $0x520] ss:$36 sps:$4 sm:$0xff]  }
 0x38d   :  { %v2861_v7 = vadd.f32 1e-06, %v2857_v23  ;;  %v6441_v23 = vld [vmem:[%s8769_s7 + $0x55c] ss:$36 sps:$4 sm:$0xff]  }
 0x38e   :  { %v2851_v35 = vpop.xlane.xlu0 %2850 }
 0x38f   :  { %6639 = vrsqrt.f32 %v2861_v7  ;;  %v2858_v26 = vmul.f32 0.0026041667, %v2851_v35  ;;  %v6444_v7 = vld [vmem:[%s8769_s7 + $0x56c] ss:$36 sps:$4 sm:$0xff]   ;;  %v6439_v35 = vld [vmem:[%s8769_s7 + $0x558] ss:$36 sps:$4 sm:$0xff]  }
 0x391   :  { %v2862_v10 = vadd.f32 1e-06, %v2858_v26  ;;  %v6442_v26 = vld [vmem:[%s8769_s7 + $0x568] ss:$36 sps:$4 sm:$0xff]  }
 0x392   :  { %v2855_v11 = vpop.xlane.xlu1 %2854 }
 0x393   :  { %6641 = vrsqrt.f32 %v2862_v10  ;;  %v2859_v14 = vmul.f32 0.0026041667, %v2855_v11  ;;  %v6447_v10 = vld [vmem:[%s8769_s7 + $0x5a4] ss:$36 sps:$4 sm:$0xff]   ;;  %v6450_v11 = vld [vmem:[%s8769_s7 + $0x5b4] ss:$36 sps:$4 sm:$0xff]  }
 0x395   :  { %v8124_v15 = vpop.eup %6637  ;;  %v2863_v37 = vadd.f32 1e-06, %v2859_v14  ;;  %v6645_v14 = vmov 0  }
 0x396   :  { %v2869_v18 = vmul.f32 %v8124_v15, %v7985_v49  ;;  %v2868_v19 = vmul.f32 %v8124_v15, %v7982_v47 }
 0x397   :  { %6643 = vrsqrt.f32 %v2863_v37  ;;  %v6445_v37 = vld [vmem:[%s8769_s7 + $0x5a0] ss:$36 sps:$4 sm:$0xff]  }
 0x398   :  { %v2897_v20 = vmul.f32 %v2888_v42, %v2869_v18  ;;  %v2896_v0 = vmul.f32 %v2884_v16, %v2868_v19  ;;  %v6456_v18 = vld [vmem:[%s8769_s7 + $0x5fc] ss:$36 sps:$4 sm:$0xff]   ;;  %v6451_v19 = vld [vmem:[%s8769_s7 + $0x5e8] ss:$36 sps:$4 sm:$0xff]  }
 0x399   :  { %v8139_v50 = vpop.eup %6639 }
 0x39a   :  { %v2872_v6 = vmul.f32 %v8139_v50, %v8000_v22  ;;  %v2871_v49 = vmul.f32 %v8139_v50, %v7997_v61  ;;  %v2925_v28 = vadd.f32 %v2916_v21, %v2897_v20  ;;  %v2924_v9 = vadd.f32 %v2912_v51, %v2896_v0  ;;  %v6421_v61 = vld [vmem:[%s8769_s7 + $0x480] ss:$36 sps:$4 sm:$0xff]   ;;  %v6424_v22 = vld [vmem:[%s8769_s7 + $0x490] ss:$36 sps:$4 sm:$0xff]   ;;  %v6454_v20 = vld [vmem:[%s8769_s7 + $0x5f8] ss:$36 sps:$4 sm:$0xff]  }
 0x39b   :  { %v6462_v0 = vld [vmem:[%s8769_s7 + $0x644] ss:$36 sps:$4 sm:$0xff]  }
 0x39c   :  { %v2900_v25 = vmul.f32 %v2888_v42, %v2872_v6  ;;  %v2899_v27 = vmul.f32 %v2884_v16, %v2871_v49  ;;  %v2870_v6 = vmul.f32 %v8124_v15, %v7988_v54  ;;  %v2892_v49 = vrot.slane %v8122_v13, %v7568_v30  ;;  %v6468_v54 = vld [vmem:[%s8769_s7 + $0x68c] ss:$36 sps:$4 sm:$0xff]  }
 0x39d   :  { %v8149_v47 = vpop.eup %6641 }
 0x39e   :  { %v2928_v29 = vadd.f32 %v2916_v21, %v2900_v25  ;;  %v2927_v2 = vadd.f32 %v2912_v51, %v2899_v27  ;;  %v2875_v33 = vmul.f32 %v8149_v47, %v8015_v52  ;;  %v2874_v4 = vmul.f32 %v8149_v47, %v8012_v8  ;;  %v6429_v52 = vld [vmem:[%s8769_s7 + $0x4cc] ss:$36 sps:$4 sm:$0xff]   ;;  %v6432_v8 = vld [vmem:[%s8769_s7 + $0x4dc] ss:$36 sps:$4 sm:$0xff]  }
 0x39f   :  { %v6457_v25 = vld [vmem:[%s8769_s7 + $0x630] ss:$36 sps:$4 sm:$0xff]   ;;  %v6460_v27 = vld [vmem:[%s8769_s7 + $0x640] ss:$36 sps:$4 sm:$0xff]   ;;  %v2898_v15 = vmul.f32 %v2892_v49, %v2870_v6 }
 0x3a0   :  { %v8155_v32 = vpack.c.bf16 %v2928_v29, %v2925_v28  ;;  %v8163_v34 = vpack.c.bf16 %v2927_v2, %v2924_v9  ;;  %v2903_v12 = vmul.f32 %v2888_v42, %v2875_v33  ;;  %v2902_v38 = vmul.f32 %v2884_v16, %v2874_v4  ;;  %v6463_v28 = vld [vmem:[%s8769_s7 + $0x678] ss:$36 sps:$4 sm:$0xff]   ;;  %v6466_v9 = vld [vmem:[%s8769_s7 + $0x688] ss:$36 sps:$4 sm:$0xff]  }
 0x3a1   :  { %v8165_v17 = vpop.eup %6643  ;;  %v6471_v2 = vld [vmem:[%s8769_s7 + $0xc] ss:$36 sps:$4 sm:$0xff]   ;;  %v6514_v6 = vld [vmem:[%s8769_s7 + $0x294] ss:$36 sps:$4 sm:$0xff]  }
 0x3a2   :  { %4367 = vmatprep.mubr.bf16.mxu1 %v8155_v32  ;;  %4579 = vmatprep.mubr.bf16.mxu0 %v8155_v32  ;;  %v2878_v36 = vmul.f32 %v8165_v17, %v8030_v63  ;;  %v2877_v39 = vmul.f32 %v8165_v17, %v8027_v46  ;;  %v6435_v46 = vld [vmem:[%s8769_s7 + $0x514] ss:$36 sps:$4 sm:$0xff]   ;;  %v2931_v55 = vadd.f32 %v2916_v21, %v2903_v12 }
 0x3a3   :  { %4368 = vmatmul.mubr.bf16.vlgmr.msra.gmra.mrb[48].mxu1 %v8163_v34  ;;  %4580 = vmatmul.mubr.bf16.vlgmr.msra.gmra.mrb[8].mxu0 %v8163_v34  ;;  %v2930_v57 = vadd.f32 %v2912_v51, %v2902_v38  ;;  %v2879_v33 = vmul.f32 %v8165_v17, %v8033_v45  ;;  %v6476_v45 = vld [vmem:[%s8769_s7 + $0x54] ss:$36 sps:$4 sm:$0xff]   ;;  %v6481_v38 = vld [vmem:[%s8769_s7 + $0x9c] ss:$36 sps:$4 sm:$0xff]  }
 0x3a4   :  { %4389 = vmatpush1.bf16.msra.mxu1 %v6421_v61  ;;  %4601 = vmatpush1.bf16.msra.mxu0 %v6424_v22  ;;  %v2906_v43 = vmul.f32 %v2888_v42, %v2878_v36  ;;  %v2905_v63 = vmul.f32 %v2884_v16, %v2877_v39  ;;  %v6448_v42 = vld [vmem:[%s8769_s7 + $0x5b0] ss:$36 sps:$4 sm:$0xff]   ;;  %v2876_v61 = vmul.f32 %v8149_v47, %v8018_v53  ;;  %v6469_v22 = vld [vmem:[%s8769_s7 + $0x8] ss:$36 sps:$4 sm:$0xff]  }
 0x3a5   :  { %4390 = vmatprep.subr.bf16.mxu1 %v6429_v52  ;;  %4602 = vmatprep.subr.bf16.mxu0 %v6432_v8  ;;  %v6453_v16 = vld [vmem:[%s8769_s7 + $0x5ec] ss:$36 sps:$4 sm:$0xff]   ;;  %v6473_v52 = vld [vmem:[%s8769_s7 + $0x20] ss:$36 sps:$4 sm:$0xff]   ;;  %v2907_v47 = vmul.f32 %v2892_v49, %v2879_v33 }
 0x3a6   :  { %v2934_v56 = vadd.f32 %v2916_v21, %v2906_v43  ;;  %v2933_v58 = vadd.f32 %v2912_v51, %v2905_v63  ;;  %v6459_v21 = vld [vmem:[%s8769_s7 + $0x634] ss:$36 sps:$4 sm:$0xff]   ;;  %v2873_v51 = vmul.f32 %v8139_v50, %v8003_v48  ;;  %v6465_v48 = vld [vmem:[%s8769_s7 + $0x67c] ss:$36 sps:$4 sm:$0xff]   ;;  %v2920_v50 = vrot.slane %v8133_v31, %v7568_v30  ;;  %v6477_v53 = vld [vmem:[%s8769_s7 + $0x2a8] ss:$36 sps:$4 sm:$0xff]  }
 0x3a7   :  { %v6472_v31 = vld [vmem:[%s8769_s7 + $0x260] ss:$36 sps:$4 sm:$0xff]   ;;  %v2904_v17 = vmul.f32 %v2892_v49, %v2876_v61  ;;  %v6474_v12 = vld [vmem:[%s8769_s7 + $0x50] ss:$36 sps:$4 sm:$0xff]   ;;  %v6478_v36 = vld [vmem:[%s8769_s7 + $0x68] ss:$36 sps:$4 sm:$0xff]  }
 0x3a8   :  { %4391 = vmatpush1.bf16.msra.mxu1 %v6427_v40  ;;  %4603 = vmatpush1.bf16.msra.mxu0 %v6430_v41  ;;  %v8193_v59 = vpack.c.bf16 %v2934_v56, %v2931_v55  ;;  %v8201_v5 = vpack.c.bf16 %v2933_v58, %v2930_v57  ;;  %v2901_v13 = vmul.f32 %v2892_v49, %v2873_v51  ;;  %v6482_v40 = vld [vmem:[%s8769_s7 + $0x2f0] ss:$36 sps:$4 sm:$0xff]   ;;  %v6479_v43 = vld [vmem:[%s8769_s7 + $0x98] ss:$36 sps:$4 sm:$0xff]   ;;  %v6484_v56 = vld [vmem:[%s8769_s7 + $0xe0] ss:$36 sps:$4 sm:$0xff]  }
 0x3a9   :  { %4392 = vmatprep.subr.bf16.mxu1 %v6435_v46  ;;  %4604 = vmatprep.subr.bf16.mxu0 %v6438_v44  ;;  %v2926_v4 = vadd.f32 %v2920_v50, %v2898_v15  ;;  %v2935_v39 = vadd.f32 %v2920_v50, %v2907_v47  ;;  %v2932_v41 = vadd.f32 %v2920_v50, %v2904_v17  ;;  %v6483_v46 = vld [vmem:[%s8769_s7 + $0xb0] ss:$36 sps:$4 sm:$0xff]   ;;  %v6486_v44 = vld [vmem:[%s8769_s7 + $0xe4] ss:$36 sps:$4 sm:$0xff]   ;;  %v6487_v55 = vld [vmem:[%s8769_s7 + $0x338] ss:$36 sps:$4 sm:$0xff]  }
 0x3aa   :  { %4377 = vmatprep.mubr.bf16.mxu1 %v8193_v59  ;;  %4589 = vmatprep.mubr.bf16.mxu0 %v8193_v59  ;;  %v2929_v29 = vadd.f32 %v2920_v50, %v2901_v13  ;;  %v6488_v57 = vld [vmem:[%s8769_s7 + $0xf8] ss:$36 sps:$4 sm:$0xff]   ;;  %v6491_v58 = vld [vmem:[%s8769_s7 + $0x12c] ss:$36 sps:$4 sm:$0xff]   ;;  %v6542_v47 = vld [vmem:[%s8769_s7 + $0x560] ss:$36 sps:$4 sm:$0xff]  }
 0x3ab   :  { %4378 = vmatmul.mubr.bf16.gmra.mrb[52].mxu1 %v8201_v5  ;;  %4590 = vmatmul.mubr.bf16.gmra.mrb[12].mxu0 %v8201_v5  ;;  %v8320_v63 = vpack.c.bf16 %v2935_v39, %v2932_v41  ;;  %v6509_v51 = vld [vmem:[%s8769_s7 + $0x248] ss:$36 sps:$4 sm:$0xff]   ;;  %v6512_v49 = vld [vmem:[%s8769_s7 + $0x290] ss:$36 sps:$4 sm:$0xff]  }
 0x3ac   :  { %4393 = vmatpush1.bf16.msra.mxu1 %v6433_v60  ;;  %4605 = vmatpush1.bf16.msra.mxu0 %v6436_v62  ;;  %v8293_v8 = vpack.c.bf16 %v2929_v29, %v2926_v4  ;;  %v6492_v60 = vld [vmem:[%s8769_s7 + $0x380] ss:$36 sps:$4 sm:$0xff]   ;;  %v6489_v62 = vld [vmem:[%s8769_s7 + $0x128] ss:$36 sps:$4 sm:$0xff]   ;;  %v6526_v50 = vld [vmem:[%s8769_s7 + $0x3b4] ss:$36 sps:$4 sm:$0xff]  }
 0x3ad   :  { %4394 = vmatprep.subr.bf16.mxu1 %v6441_v23  ;;  %4606 = vmatprep.subr.bf16.mxu0 %v6444_v7  ;;  %v6493_v23 = vld [vmem:[%s8769_s7 + $0x140] ss:$36 sps:$4 sm:$0xff]   ;;  %v6496_v7 = vld [vmem:[%s8769_s7 + $0x174] ss:$36 sps:$4 sm:$0xff]   ;;  %v6523_v13 = vld [vmem:[%s8769_s7 + $0x36c] ss:$36 sps:$4 sm:$0xff]  }
 0x3ae   :  { %4420 = vmatprep.mubr.bf16.mxu1 %v6645_v14  ;;  %4632 = vmatprep.mubr.bf16.mxu0 %v6645_v14  ;;  %v6521_v15 = vld [vmem:[%s8769_s7 + $0x368] ss:$36 sps:$4 sm:$0xff]   ;;  %v6527_v29 = vld [vmem:[%s8769_s7 + $0x3f8] ss:$36 sps:$4 sm:$0xff]   ;;  %v6548_v39 = vld [vmem:[%s8769_s7 + $0x5f0] ss:$36 sps:$4 sm:$0xff]  }
 0x3af   :  { %v6535_v33 = vld [vmem:[%s8769_s7 + $0x48c] ss:$36 sps:$4 sm:$0xff]   ;;  %v6538_v61 = vld [vmem:[%s8769_s7 + $0x4d4] ss:$36 sps:$4 sm:$0xff]   ;;  %v6556_v41 = vld [vmem:[%s8769_s7 + $0x684] ss:$36 sps:$4 sm:$0xff]  }
 0x3b0   :  { %4395 = vmatpush1.bf16.msra.mxu1 %v6439_v35  ;;  %4607 = vmatpush1.bf16.msra.mxu0 %v6442_v26  ;;  %v6497_v35 = vld [vmem:[%s8769_s7 + $0x3c8] ss:$36 sps:$4 sm:$0xff]   ;;  %v6494_v26 = vld [vmem:[%s8769_s7 + $0x170] ss:$36 sps:$4 sm:$0xff]  }
 0x3b1   :  { %4396 = vmatprep.subr.bf16.mxu1 %v6447_v10  ;;  %4608 = vmatprep.subr.bf16.mxu0 %v6450_v11  ;;  %v6498_v10 = vld [vmem:[%s8769_s7 + $0x188] ss:$36 sps:$4 sm:$0xff]   ;;  %v6501_v11 = vld [vmem:[%s8769_s7 + $0x1bc] ss:$36 sps:$4 sm:$0xff]  }
 0x3b2   :  { %v6533_v4 = vld [vmem:[%s8769_s7 + $0x488] ss:$36 sps:$4 sm:$0xff]  }
 0x3b3   :  { %v6547_v17 = vld [vmem:[%s8769_s7 + $0x5ac] ss:$36 sps:$4 sm:$0xff]  }
 0x3b4   :  { %4397 = vmatpush1.bf16.msra.mxu1 %v6445_v37  ;;  %4609 = vmatpush1.bf16.msra.mxu0 %v6448_v42  ;;  %v6502_v37 = vld [vmem:[%s8769_s7 + $0x410] ss:$36 sps:$4 sm:$0xff]   ;;  %v6499_v42 = vld [vmem:[%s8769_s7 + $0x1b8] ss:$36 sps:$4 sm:$0xff]  }
 0x3b5   :  { %4398 = vmatprep.subr.bf16.mxu1 %v6453_v16  ;;  %4610 = vmatprep.subr.bf16.mxu0 %v6456_v18  ;;  %v6503_v16 = vld [vmem:[%s8769_s7 + $0x1d0] ss:$36 sps:$4 sm:$0xff]   ;;  %v6506_v18 = vld [vmem:[%s8769_s7 + $0x204] ss:$36 sps:$4 sm:$0xff]  }
 0x3b8   :  { %4399 = vmatpush1.bf16.msra.mxu1 %v6451_v19  ;;  %4611 = vmatpush1.bf16.msra.mxu0 %v6454_v20  ;;  %v6507_v19 = vld [vmem:[%s8769_s7 + $0x458] ss:$36 sps:$4 sm:$0xff]   ;;  %v6504_v20 = vld [vmem:[%s8769_s7 + $0x200] ss:$36 sps:$4 sm:$0xff]  }
 0x3b9   :  { %4400 = vmatprep.subr.bf16.mxu1 %v6459_v21  ;;  %4612 = vmatprep.subr.bf16.mxu0 %v6462_v0  ;;  %v6508_v21 = vld [vmem:[%s8769_s7 + $0x218] ss:$36 sps:$4 sm:$0xff]   ;;  %v6511_v0 = vld [vmem:[%s8769_s7 + $0x24c] ss:$36 sps:$4 sm:$0xff]  }
 0x3bc   :  { %4401 = vmatpush1.bf16.msra.mxu1 %v6457_v25  ;;  %4613 = vmatpush1.bf16.msra.mxu0 %v6460_v27  ;;  %v6517_v25 = vld [vmem:[%s8769_s7 + $0x2dc] ss:$36 sps:$4 sm:$0xff]  }
 0x3bd   :  { %4402 = vmatprep.subr.bf16.mxu1 %v6465_v48  ;;  %4614 = vmatprep.subr.bf16.mxu0 %v6468_v54  ;;  %v6515_v27 = vld [vmem:[%s8769_s7 + $0x2d8] ss:$36 sps:$4 sm:$0xff]   ;;  %v6520_v48 = vld [vmem:[%s8769_s7 + $0x324] ss:$36 sps:$4 sm:$0xff]  }
 0x3be   :  { %v6518_v54 = vld [vmem:[%s8769_s7 + $0x320] ss:$36 sps:$4 sm:$0xff]  }
 0x3c0   :  { %4403 = vmatpush1.bf16.msra.mxu1 %v6463_v28  ;;  %4615 = vmatpush1.bf16.msra.mxu0 %v6466_v9  ;;  %v6524_v28 = vld [vmem:[%s8769_s7 + $0x3b0] ss:$36 sps:$4 sm:$0xff]   ;;  %v6529_v9 = vld [vmem:[%s8769_s7 + $0x3fc] ss:$36 sps:$4 sm:$0xff]  }
 0x3c1   :  { %4441 = vmatprep.subr.bf16.mxu1 %v6471_v2  ;;  %5734 = vmatprep.subr.bf16.mxu0 %v6472_v31  ;;  %v6532_v2 = vld [vmem:[%s8769_s7 + $0x444] ss:$36 sps:$4 sm:$0xff]  }
 0x3c2   :  { %v6530_v31 = vld [vmem:[%s8769_s7 + $0x440] ss:$36 sps:$4 sm:$0xff]  }
 0x3c3   :  { %4421 = vmatmul.mubr.bf16.vlgmr.msra.gmra.mrb[48].mxu1 %v8293_v8  ;;  %4633 = vmatmul.mubr.bf16.vlgmr.msra.gmra.mrb[8].mxu0 %v8293_v8 }
 0x3c4   :  { %4442 = vmatpush1.bf16.msra.mxu1 %v6469_v22  ;;  %5735 = vmatpush3.bf16.msra.mxu0 %v6473_v52  ;;  %v6536_v22 = vld [vmem:[%s8769_s7 + $0x4d0] ss:$36 sps:$4 sm:$0xff]   ;;  %v6541_v52 = vld [vmem:[%s8769_s7 + $0x51c] ss:$36 sps:$4 sm:$0xff]  }
 0x3c5   :  { %4443 = vmatprep.subr.bf16.mxu1 %v6476_v45  ;;  %5736 = vmatprep.subr.bf16.mxu0 %v6477_v53  ;;  %v6539_v45 = vld [vmem:[%s8769_s7 + $0x518] ss:$36 sps:$4 sm:$0xff]   ;;  %v6544_v53 = vld [vmem:[%s8769_s7 + $0x564] ss:$36 sps:$4 sm:$0xff]  }
 0x3c6   :  { %4430 = vmatprep.mubr.bf16.mxu1 %v6645_v14  ;;  %4642 = vmatprep.mubr.bf16.mxu0 %v6645_v14 }
 0x3c8   :  { %4444 = vmatpush1.bf16.msra.mxu1 %v6474_v12  ;;  %5737 = vmatpush3.bf16.msra.mxu0 %v6478_v36  ;;  %v6545_v12 = vld [vmem:[%s8769_s7 + $0x5a8] ss:$36 sps:$4 sm:$0xff]   ;;  %v6550_v36 = vld [vmem:[%s8769_s7 + $0x5f4] ss:$36 sps:$4 sm:$0xff]  }
 0x3c9   :  { %4445 = vmatprep.subr.bf16.mxu1 %v6481_v38  ;;  %5738 = vmatprep.subr.bf16.mxu0 %v6482_v40  ;;  %v6553_v38 = vld [vmem:[%s8769_s7 + $0x63c] ss:$36 sps:$4 sm:$0xff]  }
 0x3ca   :  { %v6551_v40 = vld [vmem:[%s8769_s7 + $0x638] ss:$36 sps:$4 sm:$0xff]  }
 0x3cb   :  { %4431 = vmatmul.mubr.bf16.gmra.mrb[52].mxu1 %v8320_v63  ;;  %4643 = vmatmul.mubr.bf16.gmra.mrb[12].mxu0 %v8320_v63 }
 0x3cc   :  { %4446 = vmatpush1.bf16.msra.mxu1 %v6479_v43  ;;  %4473 = vmatprep.mubr.bf16.mxu1 %v8155_v32  ;;  %v6554_v43 = vld [vmem:[%s8769_s7 + $0x680] ss:$36 sps:$4 sm:$0xff]  }
 0x3cd   :  { %5739 = vmatpush3.bf16.msra.mxu0 %v6483_v46  ;;  %4791 = vmatprep.mubr.bf16.mxu0 %v8155_v32  ;;  %v6559_v46 = vld [vmem:[%s8769_s7 + $0x1c] ss:$36 sps:$4 sm:$0xff]  }
 0x3ce   :  { %4447 = vmatprep.subr.bf16.mxu1 %v6486_v44  ;;  %5740 = vmatprep.subr.bf16.mxu0 %v6487_v55  ;;  %v6557_v44 = vld [vmem:[%s8769_s7 + $0x18] ss:$36 sps:$4 sm:$0xff]   ;;  %v6562_v55 = vld [vmem:[%s8769_s7 + $0x64] ss:$36 sps:$4 sm:$0xff]  }
 0x3d0   :  { %4448 = vmatpush1.bf16.msra.mxu1 %v6484_v56  ;;  %v6560_v56 = vld [vmem:[%s8769_s7 + $0x60] ss:$36 sps:$4 sm:$0xff]  }
 0x3d1   :  { %5741 = vmatpush3.bf16.msra.mxu0 %v6488_v57  ;;  %4449 = vmatprep.subr.bf16.mxu1 %v6491_v58  ;;  %v6565_v57 = vld [vmem:[%s8769_s7 + $0xac] ss:$36 sps:$4 sm:$0xff]  }
 0x3d2   :  { %5742 = vmatprep.subr.bf16.mxu0 %v6492_v60  ;;  %v6563_v58 = vld [vmem:[%s8769_s7 + $0xa8] ss:$36 sps:$4 sm:$0xff]   ;;  %v6568_v60 = vld [vmem:[%s8769_s7 + $0xf4] ss:$36 sps:$4 sm:$0xff]  }
 0x3d4   :  { %4450 = vmatpush1.bf16.msra.mxu1 %v6489_v62  ;;  %v6566_v62 = vld [vmem:[%s8769_s7 + $0xf0] ss:$36 sps:$4 sm:$0xff]  }
 0x3d5   :  { %5743 = vmatpush3.bf16.msra.mxu0 %v6493_v23  ;;  %4451 = vmatprep.subr.bf16.mxu1 %v6496_v7  ;;  %v6571_v23 = vld [vmem:[%s8769_s7 + $0x13c] ss:$36 sps:$4 sm:$0xff]  }
 0x3d6   :  { %5744 = vmatprep.subr.bf16.mxu0 %v6497_v35  ;;  %v6569_v7 = vld [vmem:[%s8769_s7 + $0x138] ss:$36 sps:$4 sm:$0xff]   ;;  %v6574_v35 = vld [vmem:[%s8769_s7 + $0x184] ss:$36 sps:$4 sm:$0xff]  }
 0x3d8   :  { %4452 = vmatpush1.bf16.msra.mxu1 %v6494_v26  ;;  %v6577_v26 = vld [vmem:[%s8769_s7 + $0x1cc] ss:$36 sps:$4 sm:$0xff]  }
 0x3d9   :  { %5745 = vmatpush3.bf16.msra.mxu0 %v6498_v10  ;;  %4453 = vmatprep.subr.bf16.mxu1 %v6501_v11  ;;  %v6575_v10 = vld [vmem:[%s8769_s7 + $0x1c8] ss:$36 sps:$4 sm:$0xff]   ;;  %v6580_v11 = vld [vmem:[%s8769_s7 + $0x214] ss:$36 sps:$4 sm:$0xff]  }
 0x3da   :  { %5746 = vmatprep.subr.bf16.mxu0 %v6502_v37  ;;  %v6578_v37 = vld [vmem:[%s8769_s7 + $0x210] ss:$36 sps:$4 sm:$0xff]  }
 0x3dc   :  { %4454 = vmatpush1.bf16.msra.mxu1 %v6499_v42  ;;  %v6583_v42 = vld [vmem:[%s8769_s7 + $0x25c] ss:$36 sps:$4 sm:$0xff]  }
 0x3dd   :  { %5747 = vmatpush3.bf16.msra.mxu0 %v6503_v16  ;;  %4455 = vmatprep.subr.bf16.mxu1 %v6506_v18  ;;  %v6581_v16 = vld [vmem:[%s8769_s7 + $0x258] ss:$36 sps:$4 sm:$0xff]   ;;  %v6586_v18 = vld [vmem:[%s8769_s7 + $0x2a4] ss:$36 sps:$4 sm:$0xff]  }
 0x3de   :  { %5748 = vmatprep.subr.bf16.mxu0 %v6507_v19  ;;  %v6584_v19 = vld [vmem:[%s8769_s7 + $0x2a0] ss:$36 sps:$4 sm:$0xff]  }
 0x3e0   :  { %4456 = vmatpush1.bf16.msra.mxu1 %v6504_v20  ;;  %v6589_v20 = vld [vmem:[%s8769_s7 + $0x2ec] ss:$36 sps:$4 sm:$0xff]  }
 0x3e1   :  { %5749 = vmatpush3.bf16.msra.mxu0 %v6508_v21  ;;  %4457 = vmatprep.subr.bf16.mxu1 %v6511_v0  ;;  %v6587_v21 = vld [vmem:[%s8769_s7 + $0x2e8] ss:$36 sps:$4 sm:$0xff]   ;;  %v6592_v0 = vld [vmem:[%s8769_s7 + $0x334] ss:$36 sps:$4 sm:$0xff]  }
 0x3e4   :  { %4792 = vmatmul.mubr.bf16.vlgmr.msra.gmra.mrb[16].mxu0 %v8163_v34  ;;  %4458 = vmatpush1.bf16.msra.mxu1 %v6509_v51  ;;  %v6590_v51 = vld [vmem:[%s8769_s7 + $0x330] ss:$36 sps:$4 sm:$0xff]  }
 0x3e5   :  { %4799 = vmatprep.mubr.bf16.mxu0 %v8193_v59  ;;  %4459 = vmatprep.subr.bf16.mxu1 %v6514_v6  ;;  %v6595_v6 = vld [vmem:[%s8769_s7 + $0x37c] ss:$36 sps:$4 sm:$0xff]  }
 0x3e8   :  { %4460 = vmatpush1.bf16.msra.mxu1 %v6512_v49  ;;  %v6593_v49 = vld [vmem:[%s8769_s7 + $0x378] ss:$36 sps:$4 sm:$0xff]  }
 0x3e9   :  { %4461 = vmatprep.subr.bf16.mxu1 %v6517_v25  ;;  %v6598_v25 = vld [vmem:[%s8769_s7 + $0x3c4] ss:$36 sps:$4 sm:$0xff]  }
 0x3ec   :  { %4800 = vmatmul.mubr.bf16.gmra.mrb[20].mxu0 %v8201_v5  ;;  %4462 = vmatpush1.bf16.msra.mxu1 %v6515_v27  ;;  %v6596_v27 = vld [vmem:[%s8769_s7 + $0x3c0] ss:$36 sps:$4 sm:$0xff]  }
 0x3ed   :  { %4463 = vmatprep.subr.bf16.mxu1 %v6520_v48  ;;  %v6601_v48 = vld [vmem:[%s8769_s7 + $0x40c] ss:$36 sps:$4 sm:$0xff]  }
 0x3f0   :  { %4464 = vmatpush1.bf16.msra.mxu1 %v6518_v54  ;;  %v6599_v54 = vld [vmem:[%s8769_s7 + $0x408] ss:$36 sps:$4 sm:$0xff]  }
 0x3f1   :  { %4465 = vmatprep.subr.bf16.mxu1 %v6523_v13  ;;  %v6604_v13 = vld [vmem:[%s8769_s7 + $0x454] ss:$36 sps:$4 sm:$0xff]  }
 0x3f4   :  { %4466 = vmatpush1.bf16.msra.mxu1 %v6521_v15  ;;  %v6602_v15 = vld [vmem:[%s8769_s7 + $0x450] ss:$36 sps:$4 sm:$0xff]  }
 0x3f5   :  { %4467 = vmatprep.subr.bf16.mxu1 %v6526_v50  ;;  %v6607_v50 = vld [vmem:[%s8769_s7 + $0x49c] ss:$36 sps:$4 sm:$0xff]  }
 0x3f8   :  { %4468 = vmatpush1.bf16.msra.mxu1 %v6524_v28  ;;  %v6605_v28 = vld [vmem:[%s8769_s7 + $0x498] ss:$36 sps:$4 sm:$0xff]  }
 0x3f9   :  { %4469 = vmatprep.subr.bf16.mxu1 %v6529_v9  ;;  %v6610_v9 = vld [vmem:[%s8769_s7 + $0x4e4] ss:$36 sps:$4 sm:$0xff]  }
 0x3fc   :  { %4470 = vmatpush1.bf16.msra.mxu1 %v6527_v29  ;;  %v6608_v29 = vld [vmem:[%s8769_s7 + $0x4e0] ss:$36 sps:$4 sm:$0xff]  }
 0x3fd   :  { %4471 = vmatprep.subr.bf16.mxu1 %v6532_v2  ;;  %v6613_v2 = vld [vmem:[%s8769_s7 + $0x52c] ss:$36 sps:$4 sm:$0xff]  }
 0x400   :  { %4472 = vmatpush1.bf16.msra.mxu1 %v6530_v31  ;;  %v6611_v31 = vld [vmem:[%s8769_s7 + $0x528] ss:$36 sps:$4 sm:$0xff]  }
 0x401   :  { %4494 = vmatprep.subr.bf16.mxu1 %v6535_v33  ;;  %v6619_v33 = vld [vmem:[%s8769_s7 + $0x5bc] ss:$36 sps:$4 sm:$0xff]  }
 0x403   :  { %4474 = vmatmul.mubr.bf16.vlgmr.msra.gmra.mrb[56].mxu1 %v8163_v34 }
 0x404   :  { %4483 = vmatprep.mubr.bf16.mxu1 %v8193_v59  ;;  %4495 = vmatpush1.bf16.msra.mxu1 %v6533_v4  ;;  %v6617_v4 = vld [vmem:[%s8769_s7 + $0x5b8] ss:$36 sps:$4 sm:$0xff]  }
 0x405   :  { %4496 = vmatprep.subr.bf16.mxu1 %v6538_v61  ;;  %v6620_v61 = vld [vmem:[%s8769_s7 + $0x600] ss:$36 sps:$4 sm:$0xff]  }
 0x408   :  { %4497 = vmatpush1.bf16.msra.mxu1 %v6536_v22  ;;  %v6625_v22 = vld [vmem:[%s8769_s7 + $0x64c] ss:$36 sps:$4 sm:$0xff]  }
 0x409   :  { %4498 = vmatprep.subr.bf16.mxu1 %v6541_v52  ;;  %v6623_v52 = vld [vmem:[%s8769_s7 + $0x648] ss:$36 sps:$4 sm:$0xff]  }
 0x40b   :  { %4484 = vmatmul.mubr.bf16.gmra.mrb[60].mxu1 %v8201_v5 }
 0x40c   :  { %4499 = vmatpush1.bf16.msra.mxu1 %v6539_v45  ;;  %4526 = vmatprep.mubr.bf16.mxu1 %v6645_v14  ;;  %v6628_v45 = vld [vmem:[%s8769_s7 + $0x694] ss:$36 sps:$4 sm:$0xff]  }
 0x40d   :  { %4500 = vmatprep.subr.bf16.mxu1 %v6544_v53  ;;  %v6626_v53 = vld [vmem:[%s8769_s7 + $0x690] ss:$36 sps:$4 sm:$0xff]  }
 0x410   :  { %4501 = vmatpush1.bf16.msra.mxu1 %v6542_v47  ;;  %v6629_v47 = vld [vmem:[%s8769_s7 + $0x4a0] ss:$36 sps:$4 sm:$0xff]  }
 0x411   :  { %4502 = vmatprep.subr.bf16.mxu1 %v6547_v17  ;;  %v6630_v17 = vld [vmem:[%s8769_s7 + $0x4e8] ss:$36 sps:$4 sm:$0xff]  }
 0x414   :  { %4503 = vmatpush1.bf16.msra.mxu1 %v6545_v12  ;;  %v6631_v12 = vld [vmem:[%s8769_s7 + $0x530] ss:$36 sps:$4 sm:$0xff]  }
 0x415   :  { %4504 = vmatprep.subr.bf16.mxu1 %v6550_v36  ;;  %v6632_v36 = vld [vmem:[%s8769_s7 + $0x578] ss:$36 sps:$4 sm:$0xff]  }
 0x418   :  { %4505 = vmatpush1.bf16.msra.mxu1 %v6548_v39  ;;  %v3204_v39 = vsub.s32 4, %v7559_v24 }
 0x419   :  { %4506 = vmatprep.subr.bf16.mxu1 %v6553_v38  ;;  %v8667_v38 = vld [vmem:[%s8772_s8] sm:$0xff] }
 0x41c   :  { %4507 = vmatpush1.bf16.msra.mxu1 %v6551_v40  ;;  %v3208_v40 = vsub.s32 5, %v7559_v24 }
 0x41d   :  { %4508 = vmatprep.subr.bf16.mxu1 %v6556_v41  ;;  %v3189_v41 = vrot.slane %v8667_v38, %v7766_v1 }
 0x420   :  { %4509 = vmatpush1.bf16.msra.mxu1 %v6554_v43  ;;  %v3205_v43 = vrot.slane %v8667_v38, %v3204_v39 }
 0x421   :  { %4653 = vmatprep.subr.bf16.mxu1 %v6559_v46  ;;  %v3193_v46 = vrot.slane %v8667_v38, %v7769_v3 }
 0x423   :  { %4527 = vmatmul.mubr.bf16.vlgmr.msra.gmra.mrb[56].mxu1 %v8293_v8 }
 0x424   :  { %4654 = vmatpush1.bf16.msra.mxu1 %v6557_v44  ;;  %4536 = vmatprep.mubr.bf16.mxu1 %v6645_v14  ;;  %v3209_v44 = vrot.slane %v8667_v38, %v3208_v40 }
 0x425   :  { %4655 = vmatprep.subr.bf16.mxu1 %v6562_v55  ;;  %v6635_v55 = vld [vmem:[%s8769_s7 + $0x650] ss:$36 sps:$4 sm:$0xff]  }
 0x428   :  { %4656 = vmatpush1.bf16.msra.mxu1 %v6560_v56 }
 0x429   :  { %4657 = vmatprep.subr.bf16.mxu1 %v6565_v57 }
 0x42b   :  { %4537 = vmatmul.mubr.bf16.gmra.mrb[60].mxu1 %v8320_v63 }
 0x42c   :  { %4658 = vmatpush1.bf16.msra.mxu1 %v6563_v58  ;;  %4685 = vmatprep.mubr.bf16.mxu1 %v8155_v32  ;;  %v6572_v32 = vld [vmem:[%s8769_s7 + $0x180] ss:$36 sps:$4 sm:$0xff]  }
 0x42d   :  { %4659 = vmatprep.subr.bf16.mxu1 %v6568_v60 }
 0x430   :  { %4660 = vmatpush1.bf16.msra.mxu1 %v6566_v62 }
 0x431   :  { %4661 = vmatprep.subr.bf16.mxu1 %v6571_v23 }
 0x434   :  { %4662 = vmatpush1.bf16.msra.mxu1 %v6569_v7 }
 0x435   :  { %4663 = vmatprep.subr.bf16.mxu1 %v6574_v35 }
 0x438   :  { %4664 = vmatpush1.bf16.msra.mxu1 %v6572_v32 }
 0x439   :  { %4665 = vmatprep.subr.bf16.mxu1 %v6577_v26 }
 0x43c   :  { %4666 = vmatpush1.bf16.msra.mxu1 %v6575_v10 }
 0x43d   :  { %4667 = vmatprep.subr.bf16.mxu1 %v6580_v11 }
 0x440   :  { %4668 = vmatpush1.bf16.msra.mxu1 %v6578_v37  ;;  %v6636_v37 = vld [vmem:[%s8769_s7 + $0x698] ss:$36 sps:$4 sm:$0xff]  }
 0x441   :  { %4669 = vmatprep.subr.bf16.mxu1 %v6583_v42 }
 0x444   :  { %4670 = vmatpush1.bf16.msra.mxu1 %v6581_v16 }
 0x445   :  { %4671 = vmatprep.subr.bf16.mxu1 %v6586_v18 }
 0x448   :  { %4672 = vmatpush1.bf16.msra.mxu1 %v6584_v19 }
 0x449   :  { %4673 = vmatprep.subr.bf16.mxu1 %v6589_v20 }
 0x44c   :  { %4674 = vmatpush1.bf16.msra.mxu1 %v6587_v21 }
 0x44d   :  { %4675 = vmatprep.subr.bf16.mxu1 %v6592_v0 }
 0x450   :  { %4676 = vmatpush1.bf16.msra.mxu1 %v6590_v51 }
 0x451   :  { %4677 = vmatprep.subr.bf16.mxu1 %v6595_v6 }
 0x454   :  { %4678 = vmatpush1.bf16.msra.mxu1 %v6593_v49 }
 0x455   :  { %4679 = vmatprep.subr.bf16.mxu1 %v6598_v25 }
 0x458   :  { %4680 = vmatpush1.bf16.msra.mxu1 %v6596_v27 }
 0x459   :  { %4681 = vmatprep.subr.bf16.mxu1 %v6601_v48 }
 0x45c   :  { %4682 = vmatpush1.bf16.msra.mxu1 %v6599_v54 }
 0x45d   :  { %4683 = vmatprep.subr.bf16.mxu1 %v6604_v13 }
 0x460   :  { %4684 = vmatpush1.bf16.msra.mxu1 %v6602_v15 }
 0x461   :  { %4706 = vmatprep.subr.bf16.mxu1 %v6607_v50 }
 0x463   :  { %4686 = vmatmul.mubr.bf16.vlgmr.msra.gmra.mrb[64].mxu1 %v8163_v34  ;;  %v6616_v34 = vld [vmem:[%s8769_s7 + $0x574] ss:$36 sps:$4 sm:$0xff]  }
 0x464   :  { %4695 = vmatprep.mubr.bf16.mxu1 %v8193_v59  ;;  %4707 = vmatpush1.bf16.msra.mxu1 %v6605_v28  ;;  %v6614_v59 = vld [vmem:[%s8769_s7 + $0x570] ss:$36 sps:$4 sm:$0xff]  }
 0x465   :  { %4708 = vmatprep.subr.bf16.mxu1 %v6610_v9 }
 0x468   :  { %4709 = vmatpush1.bf16.msra.mxu1 %v6608_v29 }
 0x469   :  { %4710 = vmatprep.subr.bf16.mxu1 %v6613_v2 }
 0x46b   :  { %4696 = vmatmul.mubr.bf16.gmra.mrb[68].mxu1 %v8201_v5  ;;  %v6622_v5 = vld [vmem:[%s8769_s7 + $0x604] ss:$36 sps:$4 sm:$0xff]  }
 0x46c   :  { %4711 = vmatpush1.bf16.msra.mxu1 %v6611_v31  ;;  %4738 = vmatprep.mubr.bf16.mxu1 %v6645_v14 }
 0x46d   :  { %4712 = vmatprep.subr.bf16.mxu1 %v6616_v34 }
 0x470   :  { %4713 = vmatpush1.bf16.msra.mxu1 %v6614_v59 }
 0x471   :  { %4714 = vmatprep.subr.bf16.mxu1 %v6619_v33 }
 0x474   :  { %4715 = vmatpush1.bf16.msra.mxu1 %v6617_v4 }
 0x475   :  { %4716 = vmatprep.subr.bf16.mxu1 %v6622_v5 }
 0x478   :  { %4717 = vmatpush1.bf16.msra.mxu1 %v6620_v61  ;;  %v5309_v61 = vld [vmem:[%s8772_s8 + $0x8] ss:$0 sm:$0xff] }
 0x479   :  { %4718 = vmatprep.subr.bf16.mxu1 %v6625_v22 }
 0x47c   :  { %4719 = vmatpush1.bf16.msra.mxu1 %v6623_v52 }
 0x47d   :  { %4720 = vmatprep.subr.bf16.mxu1 %v6628_v45 }
 0x480   :  { %4721 = vmatpush1.bf16.msra.mxu1 %v6626_v53 }
 0x481   :  { %5772 = vmatprep.subr.bf16.mxu1 %v6629_v47 }
 0x483   :  { %4739 = vmatmul.mubr.bf16.vlgmr.msra.gmra.mrb[64].mxu1 %v8293_v8 }
 0x484   :  { %5773 = vmatpush3.bf16.msra.mxu1 %v6629_v47  ;;  %4748 = vmatprep.mubr.bf16.mxu1 %v6645_v14  ;;  %v6633_v14 = vld [vmem:[%s8769_s7 + $0x5c0] ss:$36 sps:$4 sm:$0xff]  }
 0x485   :  { %5774 = vmatprep.subr.bf16.mxu1 %v6630_v17 }
 0x488   :  { %5775 = vmatpush3.bf16.msra.mxu1 %v6630_v17 }
 0x489   :  { %5776 = vmatprep.subr.bf16.mxu1 %v6631_v12 }
 0x48b   :  { %4749 = vmatmul.mubr.bf16.gmra.mrb[68].mxu1 %v8320_v63 }
 0x48c   :  { %5777 = vmatpush3.bf16.msra.mxu1 %v6631_v12  ;;  %5788 = vmatprep.mubr.bf16.mxu1 %v8293_v8  ;;  %v6634_v8 = vld [vmem:[%s8769_s7 + $0x608] ss:$36 sps:$4 sm:$0xff]  }
 0x48d   :  { %5778 = vmatprep.subr.bf16.mxu1 %v6632_v36 }
 0x490   :  { %5779 = vmatpush3.bf16.msra.mxu1 %v6632_v36 }
 0x491   :  { %5780 = vmatprep.subr.bf16.mxu1 %v6633_v14 }
 0x494   :  { %5781 = vmatpush3.bf16.msra.mxu1 %v6633_v14 }
 0x495   :  { %5782 = vmatprep.subr.bf16.mxu1 %v6634_v8 }
 0x496   :  { %v4422_v56 = vpop.f32.mrb[48].mxu1  ;;  %v4634_v57 = vpop.f32.mrb[8].mxu0 }
 0x497   :  { %v5800_v58 = vadd.f32 %v4422_v56, %v3189_v41  ;;  %v5816_v60 = vadd.f32 %v4634_v57, %v3205_v43  ;;  %v4424_v62 = vpop.f32.mrb[49].mxu1  ;;  %v4636_v23 = vpop.f32.mrb[9].mxu0 }
 0x498   :  { %v5801_v1 = vadd.f32 %v4424_v62, %v3193_v46  ;;  %v5817_v7 = vadd.f32 %v4636_v23, %v3209_v44  ;;  %v4426_v35 = vpop.f32.mrb[50].mxu1  ;;  %v4638_v32 = vpop.f32.mrb[10].mxu0  ;;  %5783 = vmatpush3.bf16.msra.mxu1 %v6634_v8 }
 0x499   :  { %v5802_v26 = vadd.f32 %v4426_v35, %v3189_v41  ;;  %v5818_v3 = vadd.f32 %v4638_v32, %v3205_v43  ;;  %v4428_v10 = vpop.f32.mrb[51].mxu1  ;;  %v4640_v11 = vpop.f32.mrb[11].mxu0  ;;  %5784 = vmatprep.subr.bf16.mxu1 %v6635_v55 }
 0x49a   :  { %v5546_v42 = vpack.c.bf16 %v5801_v1, %v5800_v58  ;;  %v5548_v16 = vpack.c.bf16 %v5817_v7, %v5816_v60  ;;  %v5803_v18 = vadd.f32 %v4428_v10, %v3193_v46  ;;  %v5819_v19 = vadd.f32 %v4640_v11, %v3209_v44 }
 0x49c   :  { %4969 = vst [vmem:[%s8773_s10] sm:$0xff] %v5546_v42  ;;  %4971 = vst [vmem:[%s8773_s10 + $0x10] sm:$0xff] %v5548_v16  ;;  %v5551_v20 = vpack.c.bf16 %v5803_v18, %v5802_v26  ;;  %v5553_v21 = vpack.c.bf16 %v5819_v19, %v5818_v3  ;;  %5785 = vmatpush3.bf16.msra.mxu1 %v6635_v55 }
 0x49d   :  { %5786 = vmatprep.subr.bf16.mxu1 %v6636_v37 }
 0x49e   :  { %4974 = vst [vmem:[%s8773_s10 + $0x24] sm:$0xff] %v5551_v20  ;;  %4976 = vst [vmem:[%s8773_s10 + $0x34] sm:$0xff] %v5553_v21  ;;  %v4432_v0 = vpop.f32.mrb[52].mxu1  ;;  %v4644_v51 = vpop.f32.mrb[12].mxu0  ;;  %v3212_v20 = vsub.s32 6, %v7559_v24  ;;  %v3216_v21 = vsub.s32 7, %v7559_v24 }
 0x49f   :  { %v5804_v6 = vadd.f32 %v4432_v0, %v3189_v41  ;;  %v5820_v49 = vadd.f32 %v4644_v51, %v3205_v43  ;;  %v4434_v25 = vpop.f32.mrb[53].mxu1  ;;  %v4646_v27 = vpop.f32.mrb[13].mxu0 }
 0x4a0   :  { %v5805_v48 = vadd.f32 %v4434_v25, %v3193_v46  ;;  %v5821_v54 = vadd.f32 %v4646_v27, %v3209_v44  ;;  %v4436_v13 = vpop.f32.mrb[54].mxu1  ;;  %v4648_v15 = vpop.f32.mrb[14].mxu0  ;;  %5787 = vmatpush3.bf16.msra.mxu1 %v6636_v37  ;;  %v3213_v0 = vrot.slane %v8667_v38, %v3212_v20  ;;  %v3217_v51 = vrot.slane %v8667_v38, %v3216_v21 }
 0x4a1   :  { %v5806_v50 = vadd.f32 %v4436_v13, %v3189_v41  ;;  %v5822_v28 = vadd.f32 %v4648_v15, %v3205_v43  ;;  %v4438_v9 = vpop.f32.mrb[55].mxu1  ;;  %v4650_v29 = vpop.f32.mrb[15].mxu0 }
 0x4a2   :  { %v5556_v2 = vpack.c.bf16 %v5805_v48, %v5804_v6  ;;  %v5558_v31 = vpack.c.bf16 %v5821_v54, %v5820_v49  ;;  %v5807_v34 = vadd.f32 %v4438_v9, %v3193_v46  ;;  %v5823_v59 = vadd.f32 %v4650_v29, %v3209_v44 }
 0x4a3   :  { %5789 = vmatmul.mubr.bf16.vlgmr.msra.gmra.mrb[72].mxu1 %v8320_v63  ;;  %v3200_v46 = vsub.s32 3, %v7559_v24  ;;  %v3197_v44 = vrot.slane %v8667_v38, %v7568_v30 }
 0x4a4   :  { %4979 = vst [vmem:[%s8773_s10 + $0x48] sm:$0xff] %v5556_v2  ;;  %4981 = vst [vmem:[%s8773_s10 + $0x58] sm:$0xff] %v5558_v31  ;;  %v5561_v33 = vpack.c.bf16 %v5807_v34, %v5806_v50  ;;  %v5563_v4 = vpack.c.bf16 %v5823_v59, %v5822_v28 }
 0x4a5   :  { %v3201_v55 = vrot.slane %v8667_v38, %v3200_v46 }
 0x4a6   :  { %4984 = vst [vmem:[%s8773_s10 + $0x6c] sm:$0xff] %v5561_v33  ;;  %4986 = vst [vmem:[%s8773_s10 + $0x7c] sm:$0xff] %v5563_v4 }
 0x4b7   :  { %v5750_v5 = vpop.f32.mrb[16].mxu0 }
 0x4b8   :  { %v5751_v63 = vpop.f32.mrb[17].mxu0 }
 0x4b9   :  { %v5752_v22 = vadd.f32 %v5751_v63, %v5750_v5  ;;  %v5753_v52 = vpop.f32.mrb[18].mxu0 }
 0x4ba   :  { %v5754_v45 = vpop.f32.mrb[19].mxu0 }
 0x4bb   :  { %v5755_v53 = vadd.f32 %v5754_v45, %v5753_v52  ;;  %v8713_v47 = vadd.f32 %v5752_v22, %v5309_v61 }
 0x4bd   :  { %v8715_v17 = vadd.f32 %v5755_v53, %v5309_v61 }
 0x4bf   :  { %v5756_v12 = vpop.f32.mrb[20].mxu0 }
 0x4c0   :  { %v5757_v36 = vpop.f32.mrb[21].mxu0 }
 0x4c1   :  { %v5758_v14 = vadd.f32 %v5757_v36, %v5756_v12  ;;  %v5759_v39 = vpop.f32.mrb[22].mxu0 }
 0x4c2   :  { %v5760_v40 = vpop.f32.mrb[23].mxu0 }
 0x4c3   :  { %v5761_v8 = vadd.f32 %v5760_v40, %v5759_v39  ;;  %v4802_v41 = vadd.f32 %v5758_v14, %v5309_v61 }
 0x4c5   :  { %v4805_v43 = vadd.f32 %v5761_v8, %v5309_v61 }
 0x4f6   :  { %v4528_v56 = vpop.f32.mrb[56].mxu1 }
 0x4f7   :  { %v5808_v57 = vadd.f32 %v4528_v56, %v3197_v44  ;;  %v4530_v58 = vpop.f32.mrb[57].mxu1 }
 0x4f8   :  { %v5809_v60 = vadd.f32 %v4530_v58, %v3201_v55  ;;  %v4532_v62 = vpop.f32.mrb[58].mxu1 }
 0x4f9   :  { %v5810_v23 = vadd.f32 %v4532_v62, %v3197_v44  ;;  %v4534_v1 = vpop.f32.mrb[59].mxu1 }
 0x4fa   :  { %v5547_v7 = vpack.c.bf16 %v5809_v60, %v5808_v57  ;;  %v5811_v35 = vadd.f32 %v4534_v1, %v3201_v55 }
 0x4fc   :  { %4970 = vst [vmem:[%s8773_s10 + $0x8] sm:$0xff] %v5547_v7  ;;  %v5552_v32 = vpack.c.bf16 %v5811_v35, %v5810_v23 }
 0x4fe   :  { %4975 = vst [vmem:[%s8773_s10 + $0x2c] sm:$0xff] %v5552_v32  ;;  %v4538_v30 = vpop.f32.mrb[60].mxu1 }
 0x4ff   :  { %v5812_v26 = vadd.f32 %v4538_v30, %v3197_v44  ;;  %v4540_v3 = vpop.f32.mrb[61].mxu1 }
 0x500   :  { %v5813_v10 = vadd.f32 %v4540_v3, %v3201_v55  ;;  %v4542_v11 = vpop.f32.mrb[62].mxu1 }
 0x501   :  { %v5814_v37 = vadd.f32 %v4542_v11, %v3197_v44  ;;  %v4544_v42 = vpop.f32.mrb[63].mxu1 }
 0x502   :  { %v5557_v16 = vpack.c.bf16 %v5813_v10, %v5812_v26  ;;  %v5815_v18 = vadd.f32 %v4544_v42, %v3201_v55 }
 0x504   :  { %4980 = vst [vmem:[%s8773_s10 + $0x50] sm:$0xff] %v5557_v16  ;;  %v5562_v19 = vpack.c.bf16 %v5815_v18, %v5814_v37 }
 0x506   :  { %4985 = vst [vmem:[%s8773_s10 + $0x74] sm:$0xff] %v5562_v19 }
 0x556   :  { %v4740_v6 = vpop.f32.mrb[64].mxu1 }
 0x557   :  { %v5824_v49 = vadd.f32 %v4740_v6, %v3213_v0  ;;  %v4742_v25 = vpop.f32.mrb[65].mxu1 }
 0x558   :  { %v5825_v27 = vadd.f32 %v4742_v25, %v3217_v51  ;;  %v4744_v48 = vpop.f32.mrb[66].mxu1 }
 0x559   :  { %v5826_v54 = vadd.f32 %v4744_v48, %v3213_v0  ;;  %v4746_v13 = vpop.f32.mrb[67].mxu1 }
 0x55a   :  { %v5549_v15 = vpack.c.bf16 %v5825_v27, %v5824_v49  ;;  %v5827_v50 = vadd.f32 %v4746_v13, %v3217_v51 }
 0x55c   :  { %4972 = vst [vmem:[%s8773_s10 + $0x18] sm:$0xff] %v5549_v15  ;;  %v5554_v28 = vpack.c.bf16 %v5827_v50, %v5826_v54 }
 0x55e   :  { %4977 = vst [vmem:[%s8773_s10 + $0x3c] sm:$0xff] %v5554_v28  ;;  %v4750_v24 = vpop.f32.mrb[68].mxu1 }
 0x55f   :  { %v5828_v38 = vadd.f32 %v4750_v24, %v3213_v0  ;;  %v4752_v9 = vpop.f32.mrb[69].mxu1 }
 0x560   :  { %v5829_v29 = vadd.f32 %v4752_v9, %v3217_v51  ;;  %v4754_v2 = vpop.f32.mrb[70].mxu1 }
 0x561   :  { %v5830_v31 = vadd.f32 %v4754_v2, %v3213_v0  ;;  %v4756_v34 = vpop.f32.mrb[71].mxu1 }
 0x562   :  { %v5559_v59 = vpack.c.bf16 %v5829_v29, %v5828_v38  ;;  %v5831_v33 = vadd.f32 %v4756_v34, %v3217_v51 }
 0x564   :  { %4982 = vst [vmem:[%s8773_s10 + $0x60] sm:$0xff] %v5559_v59  ;;  %v5564_v4 = vpack.c.bf16 %v5831_v33, %v5830_v31 }
 0x566   :  { %4987 = vst [vmem:[%s8773_s10 + $0x84] sm:$0xff] %v5564_v4 }
 0x576   :  { %v5790_v5 = vpop.f32.mrb[72].mxu1 }
 0x577   :  { %v4851_v63 = vadd.f32 %v5790_v5, %v4802_v41  ;;  %v4842_v61 = vpop.f32.mrb[73].mxu1 }
 0x578   :  { %v4843_v22 = vadd.f32 %v4842_v61, %v8713_v47  ;;  %v5791_v52 = vpop.f32.mrb[74].mxu1 }
 0x579   :  { %v5560_v45 = vpack.c.bf16 %v4851_v63, %v4851_v63  ;;  %v4854_v53 = vadd.f32 %v5791_v52, %v4805_v43  ;;  %v4845_v12 = vpop.f32.mrb[75].mxu1 }
 0x57a   :  { %v5550_v36 = vpack.c.bf16 %v4843_v22, %v4843_v22  ;;  %v4846_v14 = vadd.f32 %v4845_v12, %v8715_v17 }
 0x57b   :  { %4983 = vst [vmem:[%s8773_s10 + $0x68] sm:$0xf] %v5560_v45  ;;  %v5565_v39 = vpack.c.bf16 %v4854_v53, %v4854_v53 }
 0x57c   :  { %4973 = vst [vmem:[%s8773_s10 + $0x20] sm:$0xf] %v5550_v36  ;;  %v5555_v40 = vpack.c.bf16 %v4846_v14, %v4846_v14 }
 0x57d   :  { %4988 = vst [vmem:[%s8773_s10 + $0x8c] sm:$0xf] %v5565_v39 }
 0x57e   :  { %4978 = vst [vmem:[%s8773_s10 + $0x44] sm:$0xf] %v5555_v40 }

</bundles_post_ra>
